<compile_context>
chip_gen: v6e
topology: v6e:2x2x1
jax: 0.10.0
libtpu: 0.0.40
codegen_flags: <defaults>
</compile_context>

<pallas_src>
import functools

import jax
import jax.numpy as jnp
from jax.experimental import pallas as pl
from jax.experimental.pallas import tpu as pltpu

EPS = 1e-5
LANE = 128


def _round_up(n, m=LANE):
    return ((n + m - 1) // m) * m


def _pad_axis(a, axis, target, value=0.0):
    pad = target - a.shape[axis]
    if pad == 0:
        return a
    cfg = [(0, 0)] * a.ndim
    cfg[axis] = (0, pad)
    return jnp.pad(a, cfg, constant_values=value)


def _bn(y, g, be):
    """Training-mode BatchNorm over the rows of a (M, C) block (full batch resident)."""
    mean = jnp.mean(y, axis=0, keepdims=True)
    var = jnp.mean(jnp.square(y - mean), axis=0, keepdims=True)
    return (y - mean) * jax.lax.rsqrt(var + EPS) * g + be


def _bottleneck_kernel(x_ref, w1_ref, w2_ref, w3_ref,
                       g1_ref, be1_ref, g2_ref, be2_ref, g3_ref, be3_ref,
                       o_ref, h1pad_ref, *,
                       N, H, W, Ho, Wo, stride, add_residual):
    Ctp = w1_ref.shape[-1]        # padded expanded channels (in_channel * t -> 128k)
    Cop = w3_ref.shape[-1]        # padded output channels
    M1 = N * H * W
    M2 = N * Ho * Wo

    x = x_ref[...]                                       # (N, H, W, Cp) f32
    xf = x.reshape(M1, x_ref.shape[-1])

    # ---- stage 1: 1x1 conv (bf16 MXU, f32 acc) + BN + ReLU (conv bias cancels in BN) ----
    y1 = jnp.dot(xf.astype(jnp.bfloat16), w1_ref[...],
                 preferred_element_type=jnp.float32)
    h1 = jnp.maximum(_bn(y1, g1_ref[...], be1_ref[...]), 0.0)

    # ---- stage 2: 3x3 conv, stride s, pad 1, as implicit GEMM -------------------------
    # Write stage-1 output once into a zero-halo VMEM scratch, then accumulate the 9
    # kernel taps as shifted (strided) slices x (Ctp, Ctp) MXU matmuls.
    h1pad_ref[...] = jnp.zeros(h1pad_ref.shape, h1pad_ref.dtype)
    h1pad_ref[:, 1:H + 1, 1:W + 1, :] = h1.reshape(N, H, W, Ctp)

    acc = jnp.zeros((M2, Ctp), jnp.float32)
    for kh in range(3):
        for kw in range(3):
            if stride == 1:
                tap = h1pad_ref[:, kh:kh + Ho, kw:kw + Wo, :]
            else:
                tap = h1pad_ref[:, pl.ds(kh, Ho, stride=stride),
                                pl.ds(kw, Wo, stride=stride), :]
            acc = acc + jnp.dot(tap.reshape(M2, Ctp).astype(jnp.bfloat16),
                                w2_ref[kh, kw],
                                preferred_element_type=jnp.float32)
    h2 = jnp.maximum(_bn(acc, g2_ref[...], be2_ref[...]), 0.0)

    # ---- stage 3: 1x1 conv + BN (+ residual when in_channel == c) ---------------------
    y3 = jnp.dot(h2.astype(jnp.bfloat16), w3_ref[...],
                 preferred_element_type=jnp.float32)
    h3 = _bn(y3, g3_ref[...], be3_ref[...])
    if add_residual:
        h3 = h3 + xf          # valid: stride == 1 and Cp == Cop when in_channel == c
    o_ref[...] = h3.reshape(N, Ho, Wo, Cop)


def bottleneck_forward(x_nchw, params, *, in_channel, t, c, s):
    N, Cin, H, W = x_nchw.shape
    assert Cin == in_channel
    flag = (in_channel == c)
    if flag:
        # Same constraint as the PyTorch module: the residual add requires matching
        # spatial dims, i.e. stride 1.
        assert s == 1, "residual branch requires stride 1"
    Ct = in_channel * t
    Ho = (H + 2 - 3) // s + 1
    Wo = (W + 2 - 3) // s + 1
    Cp, Ctp, Cop = _round_up(Cin), _round_up(Ct), _round_up(c)

    x = jnp.transpose(x_nchw, (0, 2, 3, 1)).astype(jnp.float32)        # NHWC
    xp = _pad_axis(x, 3, Cp)

    # Conv biases (b1/b2/b3) are intentionally NOT passed to the kernel: training-mode BN
    # subtracts the batch mean immediately after the conv, so a per-channel bias cancels
    # exactly.  Weights are zero-padded to 128-wide channels and cast to bf16 for the MXU.
    w1 = _pad_axis(_pad_axis(params["w1"], 0, Cp), 1, Ctp).astype(jnp.bfloat16)
    w2 = _pad_axis(_pad_axis(params["w2"], 2, Ctp), 3, Ctp).astype(jnp.bfloat16)
    w3 = _pad_axis(_pad_axis(params["w3"], 0, Ctp), 1, Cop).astype(jnp.bfloat16)
    g1 = _pad_axis(params["g1"], 1, Ctp, 1.0)
    be1 = _pad_axis(params["be1"], 1, Ctp)
    g2 = _pad_axis(params["g2"], 1, Ctp, 1.0)
    be2 = _pad_axis(params["be2"], 1, Ctp)
    g3 = _pad_axis(params["g3"], 1, Cop, 1.0)
    be3 = _pad_axis(params["be3"], 1, Cop)

    kern = functools.partial(_bottleneck_kernel, N=N, H=H, W=W, Ho=Ho, Wo=Wo,
                             stride=s, add_residual=flag)
    vmem = pl.BlockSpec(memory_space=pltpu.MemorySpace.VMEM)
    out = pl.pallas_call(
        kern,
        out_shape=jax.ShapeDtypeStruct((N, Ho, Wo, Cop), jnp.float32),
        in_specs=[vmem] * 10,
        out_specs=vmem,
        scratch_shapes=[pltpu.VMEM((N, H + 2, W + 2, Ctp), jnp.float32)],
    )(xp, w1, w2, w3, g1, be1, g2, be2, g3, be3)

    return jnp.transpose(out[..., :c], (0, 3, 1, 2))                   # back to NCHW


def init_params(key, in_channel, t, c):
    Ct = in_channel * t
    ks = jax.random.split(key, 6)
    return dict(
        w1=jax.random.normal(ks[0], (in_channel, Ct), jnp.float32) * 0.1,
        b1=jax.random.normal(ks[1], (1, Ct), jnp.float32) * 0.1,
        g1=jnp.ones((1, Ct), jnp.float32), be1=jnp.zeros((1, Ct), jnp.float32),
        w2=jax.random.normal(ks[2], (3, 3, Ct, Ct), jnp.float32) * 0.1,   # HWIO
        b2=jax.random.normal(ks[3], (1, Ct), jnp.float32) * 0.1,
        g2=jnp.ones((1, Ct), jnp.float32), be2=jnp.zeros((1, Ct), jnp.float32),
        w3=jax.random.normal(ks[4], (Ct, c), jnp.float32) * 0.1,
        b3=jax.random.normal(ks[5], (1, c), jnp.float32) * 0.1,
        g3=jnp.ones((1, c), jnp.float32), be3=jnp.zeros((1, c), jnp.float32),
    )


def ref_forward(x_nchw, params, *, in_channel, t, c, s, matmul_dtype=jnp.float32):
    """Pure-JAX reference (same training-mode BN semantics, INCLUDING the conv biases).

    `matmul_dtype=jnp.bfloat16` applies the kernel's precision policy (round matmul inputs
    to bf16, accumulate in f32) so the structural check can use a tight tolerance.
    """
    x = jnp.transpose(x_nchw, (0, 2, 3, 1)).astype(jnp.float32)
    hp = jax.lax.Precision.HIGHEST

    def md(a):
        return a.astype(matmul_dtype).astype(jnp.float32)

    def bn(y, g, be):
        mean = jnp.mean(y, axis=(0, 1, 2), keepdims=True)
        var = jnp.mean(jnp.square(y - mean), axis=(0, 1, 2), keepdims=True)
        return (y - mean) * jax.lax.rsqrt(var + EPS) * g.reshape(1, 1, 1, -1) \
            + be.reshape(1, 1, 1, -1)

    h = jnp.einsum("nhwc,cd->nhwd", md(x), md(params["w1"]),
                   precision=hp) + params["b1"].reshape(1, 1, 1, -1)
    h = jnp.maximum(bn(h, params["g1"], params["be1"]), 0.0)
    h = jax.lax.conv_general_dilated(
        md(h), md(params["w2"]), (s, s), ((1, 1), (1, 1)),
        dimension_numbers=("NHWC", "HWIO", "NHWC"),
        precision=hp) + params["b2"].reshape(1, 1, 1, -1)
    h = jnp.maximum(bn(h, params["g2"], params["be2"]), 0.0)
    h = jnp.einsum("nhwc,cd->nhwd", md(h), md(params["w3"]),
                   precision=hp) + params["b3"].reshape(1, 1, 1, -1)
    h = bn(h, params["g3"], params["be3"])
    if in_channel == c:
        h = h + x
    return jnp.transpose(h, (0, 3, 1, 2))


if __name__ == "__main__":
    in_channel, t, c, s = 4, 2, 4, 1   # Flag == True -> residual branch exercised
    key = jax.random.PRNGKey(0)
    kx, kp = jax.random.split(key)
    x = jax.random.normal(kx, (2, in_channel, 16, 16), jnp.float32)
    params = init_params(kp, in_channel, t, c)

    out = bottleneck_forward(x, params, in_channel=in_channel, t=t, c=c, s=s)
    out = jax.block_until_ready(out)
    assert out.shape == (2, c, 16, 16)

    # 1) Structural / semantic check against a reference using the same bf16 matmul-input
    #    policy (tight tolerance; also proves the conv biases cancel under batch-stat BN).
    ref_bf16 = ref_forward(x, params, in_channel=in_channel, t=t, c=c, s=s,
                           matmul_dtype=jnp.bfloat16)
    assert jnp.allclose(out, ref_bf16, atol=2e-3, rtol=2e-3), \
        f"max abs err vs bf16-policy ref: {jnp.max(jnp.abs(out - ref_bf16))}"

    # 2) Envelope check against the pure-f32 reference (tolerance sized for bf16 inputs).
    ref_f32 = ref_forward(x, params, in_channel=in_channel, t=t, c=c, s=s,
                          matmul_dtype=jnp.float32)
    assert jnp.allclose(out, ref_f32, atol=1e-1, rtol=1e-1), \
        f"max abs err vs f32 ref: {jnp.max(jnp.abs(out - ref_f32))}"

    print("KERNEL_OK")
</pallas_src>

<mosaic_0001>
module attributes {stable_mosaic.version = 11 : i64} {
  func.func @_bottleneck_kernel(%arg0: memref<2x16x16x128xf32, #tpu.memory_space<vmem>>, %arg1: memref<128x128xbf16, #tpu.memory_space<vmem>>, %arg2: memref<3x3x128x128xbf16, #tpu.memory_space<vmem>>, %arg3: memref<128x128xbf16, #tpu.memory_space<vmem>>, %arg4: memref<1x128xf32, #tpu.memory_space<vmem>>, %arg5: memref<1x128xf32, #tpu.memory_space<vmem>>, %arg6: memref<1x128xf32, #tpu.memory_space<vmem>>, %arg7: memref<1x128xf32, #tpu.memory_space<vmem>>, %arg8: memref<1x128xf32, #tpu.memory_space<vmem>>, %arg9: memref<1x128xf32, #tpu.memory_space<vmem>>, %arg10: memref<2x16x16x128xf32, #tpu.memory_space<vmem>>, %arg11: memref<2x18x18x128xf32, #tpu.memory_space<vmem>>) attributes {dimension_semantics = [], scalar_prefetch = 0 : i64, scratch_operands = 1 : i64, tpu.core_type = #tpu.core_type<tc>} {
    %c0 = arith.constant 0 : index
    %c0_0 = arith.constant 0 : index
    %c0_1 = arith.constant 0 : index
    %c0_2 = arith.constant 0 : index
    %0 = vector.load %arg0[%c0, %c0_0, %c0_1, %c0_2] : memref<2x16x16x128xf32, #tpu.memory_space<vmem>>, vector<2x16x16x128xf32>
    %1 = vector.shape_cast %0 : vector<2x16x16x128xf32> to vector<512x128xf32>
    %2 = arith.truncf %1 : vector<512x128xf32> to vector<512x128xbf16>
    %c0_3 = arith.constant 0 : index
    %c0_4 = arith.constant 0 : index
    %3 = vector.load %arg1[%c0_3, %c0_4] : memref<128x128xbf16, #tpu.memory_space<vmem>>, vector<128x128xbf16>
    %cst = arith.constant dense<0.000000e+00> : vector<512x128xf32>
    %4 = tpu.matmul %2, %3, %cst {dimension_numbers = #tpu.dot_dimension_numbers<[1], [0], [0], [1], [0, 0, 1, 1], [], []>} : vector<512x128xbf16>, vector<128x128xbf16>, vector<512x128xf32> -> vector<512x128xf32>
    %c0_5 = arith.constant 0 : index
    %c0_6 = arith.constant 0 : index
    %5 = vector.load %arg4[%c0_5, %c0_6] : memref<1x128xf32, #tpu.memory_space<vmem>>, vector<1x128xf32>
    %c0_7 = arith.constant 0 : index
    %c0_8 = arith.constant 0 : index
    %6 = vector.load %arg5[%c0_7, %c0_8] : memref<1x128xf32, #tpu.memory_space<vmem>>, vector<1x128xf32>
    %cst_9 = arith.constant dense<0.000000e+00> : vector<128xf32>
    %7 = vector.multi_reduction <add>, %4, %cst_9 [0] : vector<512x128xf32> to vector<128xf32>
    %8 = vector.shape_cast %7 : vector<128xf32> to vector<1x128xf32>
    %cst_10 = arith.constant 5.120000e+02 : f32
    %9 = vector.broadcast %cst_10 : f32 to vector<1x128xf32>
    %10 = arith.divf %8, %9 : vector<1x128xf32>
    %11 = vector.broadcast %10 : vector<1x128xf32> to vector<512x128xf32>
    %12 = arith.subf %4, %11 : vector<512x128xf32>
    %13 = arith.mulf %12, %12 : vector<512x128xf32>
    %cst_11 = arith.constant dense<0.000000e+00> : vector<128xf32>
    %14 = vector.multi_reduction <add>, %13, %cst_11 [0] : vector<512x128xf32> to vector<128xf32>
    %15 = vector.shape_cast %14 : vector<128xf32> to vector<1x128xf32>
    %cst_12 = arith.constant 5.120000e+02 : f32
    %16 = vector.broadcast %cst_12 : f32 to vector<1x128xf32>
    %17 = arith.divf %15, %16 : vector<1x128xf32>
    %18 = vector.broadcast %10 : vector<1x128xf32> to vector<512x128xf32>
    %19 = arith.subf %4, %18 : vector<512x128xf32>
    %cst_13 = arith.constant 9.99999974E-6 : f32
    %20 = vector.broadcast %cst_13 : f32 to vector<1x128xf32>
    %21 = arith.addf %17, %20 : vector<1x128xf32>
    %22 = math.rsqrt %21 : vector<1x128xf32>
    %23 = vector.broadcast %22 : vector<1x128xf32> to vector<512x128xf32>
    %24 = arith.mulf %19, %23 : vector<512x128xf32>
    %25 = vector.broadcast %5 : vector<1x128xf32> to vector<512x128xf32>
    %26 = arith.mulf %24, %25 : vector<512x128xf32>
    %27 = vector.broadcast %6 : vector<1x128xf32> to vector<512x128xf32>
    %28 = arith.addf %26, %27 : vector<512x128xf32>
    %cst_14 = arith.constant 0.000000e+00 : f32
    %29 = vector.broadcast %cst_14 : f32 to vector<512x128xf32>
    %30 = arith.maximumf %28, %29 : vector<512x128xf32>
    %cst_15 = arith.constant 0.000000e+00 : f32
    %31 = vector.broadcast %cst_15 : f32 to vector<2x18x18x128xf32>
    %c0_16 = arith.constant 0 : index
    %c0_17 = arith.constant 0 : index
    %c0_18 = arith.constant 0 : index
    %c0_19 = arith.constant 0 : index
    %32 = vector.load %arg11[%c0_16, %c0_17, %c0_18, %c0_19] : memref<2x18x18x128xf32, #tpu.memory_space<vmem>>, vector<2x18x18x128xf32>
    tpu.vector_store %arg11[%c0_16, %c0_17, %c0_18, %c0_19], %31 {strides = array<i32>} : memref<2x18x18x128xf32, #tpu.memory_space<vmem>>, vector<2x18x18x128xf32>,
    %33 = vector.shape_cast %30 : vector<512x128xf32> to vector<2x16x16x128xf32>
    %c0_20 = arith.constant 0 : index
    %c1 = arith.constant 1 : index
    %c1_21 = arith.constant 1 : index
    %c0_22 = arith.constant 0 : index
    %34 = vector.load %arg11[%c0_20, %c1, %c1_21, %c0_22] : memref<2x18x18x128xf32, #tpu.memory_space<vmem>>, vector<2x16x16x128xf32>
    tpu.vector_store %arg11[%c0_20, %c1, %c1_21, %c0_22], %33 {strides = array<i32>} : memref<2x18x18x128xf32, #tpu.memory_space<vmem>>, vector<2x16x16x128xf32>,
    %cst_23 = arith.constant 0.000000e+00 : f32
    %35 = vector.broadcast %cst_23 : f32 to vector<512x128xf32>
    %c0_24 = arith.constant 0 : index
    %c0_25 = arith.constant 0 : index
    %c0_26 = arith.constant 0 : index
    %c0_27 = arith.constant 0 : index
    %36 = vector.load %arg11[%c0_24, %c0_25, %c0_26, %c0_27] : memref<2x18x18x128xf32, #tpu.memory_space<vmem>>, vector<2x16x16x128xf32>
    %37 = vector.shape_cast %36 : vector<2x16x16x128xf32> to vector<512x128xf32>
    %38 = arith.truncf %37 : vector<512x128xf32> to vector<512x128xbf16>
    %c0_28 = arith.constant 0 : index
    %c0_29 = arith.constant 0 : index
    %c0_30 = arith.constant 0 : index
    %c0_31 = arith.constant 0 : index
    %39 = vector.load %arg2[%c0_28, %c0_29, %c0_30, %c0_31] : memref<3x3x128x128xbf16, #tpu.memory_space<vmem>>, vector<1x1x128x128xbf16>
    %40 = vector.shape_cast %39 : vector<1x1x128x128xbf16> to vector<128x128xbf16>
    %cst_32 = arith.constant dense<0.000000e+00> : vector<512x128xf32>
    %41 = tpu.matmul %38, %40, %cst_32 {dimension_numbers = #tpu.dot_dimension_numbers<[1], [0], [0], [1], [0, 0, 1, 1], [], []>} : vector<512x128xbf16>, vector<128x128xbf16>, vector<512x128xf32> -> vector<512x128xf32>
    %42 = arith.addf %35, %41 : vector<512x128xf32>
    %c0_33 = arith.constant 0 : index
    %c0_34 = arith.constant 0 : index
    %c1_35 = arith.constant 1 : index
    %c0_36 = arith.constant 0 : index
    %43 = vector.load %arg11[%c0_33, %c0_34, %c1_35, %c0_36] : memref<2x18x18x128xf32, #tpu.memory_space<vmem>>, vector<2x16x16x128xf32>
    %44 = vector.shape_cast %43 : vector<2x16x16x128xf32> to vector<512x128xf32>
    %45 = arith.truncf %44 : vector<512x128xf32> to vector<512x128xbf16>
    %c0_37 = arith.constant 0 : index
    %c1_38 = arith.constant 1 : index
    %c0_39 = arith.constant 0 : index
    %c0_40 = arith.constant 0 : index
    %46 = vector.load %arg2[%c0_37, %c1_38, %c0_39, %c0_40] : memref<3x3x128x128xbf16, #tpu.memory_space<vmem>>, vector<1x1x128x128xbf16>
    %47 = vector.shape_cast %46 : vector<1x1x128x128xbf16> to vector<128x128xbf16>
    %cst_41 = arith.constant dense<0.000000e+00> : vector<512x128xf32>
    %48 = tpu.matmul %45, %47, %cst_41 {dimension_numbers = #tpu.dot_dimension_numbers<[1], [0], [0], [1], [0, 0, 1, 1], [], []>} : vector<512x128xbf16>, vector<128x128xbf16>, vector<512x128xf32> -> vector<512x128xf32>
    %49 = arith.addf %42, %48 : vector<512x128xf32>
    %c0_42 = arith.constant 0 : index
    %c0_43 = arith.constant 0 : index
    %c2 = arith.constant 2 : index
    %c0_44 = arith.constant 0 : index
    %50 = vector.load %arg11[%c0_42, %c0_43, %c2, %c0_44] : memref<2x18x18x128xf32, #tpu.memory_space<vmem>>, vector<2x16x16x128xf32>
    %51 = vector.shape_cast %50 : vector<2x16x16x128xf32> to vector<512x128xf32>
    %52 = arith.truncf %51 : vector<512x128xf32> to vector<512x128xbf16>
    %c0_45 = arith.constant 0 : index
    %c2_46 = arith.constant 2 : index
    %c0_47 = arith.constant 0 : index
    %c0_48 = arith.constant 0 : index
    %53 = vector.load %arg2[%c0_45, %c2_46, %c0_47, %c0_48] : memref<3x3x128x128xbf16, #tpu.memory_space<vmem>>, vector<1x1x128x128xbf16>
    %54 = vector.shape_cast %53 : vector<1x1x128x128xbf16> to vector<128x128xbf16>
    %cst_49 = arith.constant dense<0.000000e+00> : vector<512x128xf32>
    %55 = tpu.matmul %52, %54, %cst_49 {dimension_numbers = #tpu.dot_dimension_numbers<[1], [0], [0], [1], [0, 0, 1, 1], [], []>} : vector<512x128xbf16>, vector<128x128xbf16>, vector<512x128xf32> -> vector<512x128xf32>
    %56 = arith.addf %49, %55 : vector<512x128xf32>
    %c0_50 = arith.constant 0 : index
    %c1_51 = arith.constant 1 : index
    %c0_52 = arith.constant 0 : index
    %c0_53 = arith.constant 0 : index
    %57 = vector.load %arg11[%c0_50, %c1_51, %c0_52, %c0_53] : memref<2x18x18x128xf32, #tpu.memory_space<vmem>>, vector<2x16x16x128xf32>
    %58 = vector.shape_cast %57 : vector<2x16x16x128xf32> to vector<512x128xf32>
    %59 = arith.truncf %58 : vector<512x128xf32> to vector<512x128xbf16>
    %c1_54 = arith.constant 1 : index
    %c0_55 = arith.constant 0 : index
    %c0_56 = arith.constant 0 : index
    %c0_57 = arith.constant 0 : index
    %60 = vector.load %arg2[%c1_54, %c0_55, %c0_56, %c0_57] : memref<3x3x128x128xbf16, #tpu.memory_space<vmem>>, vector<1x1x128x128xbf16>
    %61 = vector.shape_cast %60 : vector<1x1x128x128xbf16> to vector<128x128xbf16>
    %cst_58 = arith.constant dense<0.000000e+00> : vector<512x128xf32>
    %62 = tpu.matmul %59, %61, %cst_58 {dimension_numbers = #tpu.dot_dimension_numbers<[1], [0], [0], [1], [0, 0, 1, 1], [], []>} : vector<512x128xbf16>, vector<128x128xbf16>, vector<512x128xf32> -> vector<512x128xf32>
    %63 = arith.addf %56, %62 : vector<512x128xf32>
    %c0_59 = arith.constant 0 : index
    %c1_60 = arith.constant 1 : index
    %c1_61 = arith.constant 1 : index
    %c0_62 = arith.constant 0 : index
    %64 = vector.load %arg11[%c0_59, %c1_60, %c1_61, %c0_62] : memref<2x18x18x128xf32, #tpu.memory_space<vmem>>, vector<2x16x16x128xf32>
    %65 = vector.shape_cast %64 : vector<2x16x16x128xf32> to vector<512x128xf32>
    %66 = arith.truncf %65 : vector<512x128xf32> to vector<512x128xbf16>
    %c1_63 = arith.constant 1 : index
    %c1_64 = arith.constant 1 : index
    %c0_65 = arith.constant 0 : index
    %c0_66 = arith.constant 0 : index
    %67 = vector.load %arg2[%c1_63, %c1_64, %c0_65, %c0_66] : memref<3x3x128x128xbf16, #tpu.memory_space<vmem>>, vector<1x1x128x128xbf16>
    %68 = vector.shape_cast %67 : vector<1x1x128x128xbf16> to vector<128x128xbf16>
    %cst_67 = arith.constant dense<0.000000e+00> : vector<512x128xf32>
    %69 = tpu.matmul %66, %68, %cst_67 {dimension_numbers = #tpu.dot_dimension_numbers<[1], [0], [0], [1], [0, 0, 1, 1], [], []>} : vector<512x128xbf16>, vector<128x128xbf16>, vector<512x128xf32> -> vector<512x128xf32>
    %70 = arith.addf %63, %69 : vector<512x128xf32>
    %c0_68 = arith.constant 0 : index
    %c1_69 = arith.constant 1 : index
    %c2_70 = arith.constant 2 : index
    %c0_71 = arith.constant 0 : index
    %71 = vector.load %arg11[%c0_68, %c1_69, %c2_70, %c0_71] : memref<2x18x18x128xf32, #tpu.memory_space<vmem>>, vector<2x16x16x128xf32>
    %72 = vector.shape_cast %71 : vector<2x16x16x128xf32> to vector<512x128xf32>
    %73 = arith.truncf %72 : vector<512x128xf32> to vector<512x128xbf16>
    %c1_72 = arith.constant 1 : index
    %c2_73 = arith.constant 2 : index
    %c0_74 = arith.constant 0 : index
    %c0_75 = arith.constant 0 : index
    %74 = vector.load %arg2[%c1_72, %c2_73, %c0_74, %c0_75] : memref<3x3x128x128xbf16, #tpu.memory_space<vmem>>, vector<1x1x128x128xbf16>
    %75 = vector.shape_cast %74 : vector<1x1x128x128xbf16> to vector<128x128xbf16>
    %cst_76 = arith.constant dense<0.000000e+00> : vector<512x128xf32>
    %76 = tpu.matmul %73, %75, %cst_76 {dimension_numbers = #tpu.dot_dimension_numbers<[1], [0], [0], [1], [0, 0, 1, 1], [], []>} : vector<512x128xbf16>, vector<128x128xbf16>, vector<512x128xf32> -> vector<512x128xf32>
    %77 = arith.addf %70, %76 : vector<512x128xf32>
    %c0_77 = arith.constant 0 : index
    %c2_78 = arith.constant 2 : index
    %c0_79 = arith.constant 0 : index
    %c0_80 = arith.constant 0 : index
    %78 = vector.load %arg11[%c0_77, %c2_78, %c0_79, %c0_80] : memref<2x18x18x128xf32, #tpu.memory_space<vmem>>, vector<2x16x16x128xf32>
    %79 = vector.shape_cast %78 : vector<2x16x16x128xf32> to vector<512x128xf32>
    %80 = arith.truncf %79 : vector<512x128xf32> to vector<512x128xbf16>
    %c2_81 = arith.constant 2 : index
    %c0_82 = arith.constant 0 : index
    %c0_83 = arith.constant 0 : index
    %c0_84 = arith.constant 0 : index
    %81 = vector.load %arg2[%c2_81, %c0_82, %c0_83, %c0_84] : memref<3x3x128x128xbf16, #tpu.memory_space<vmem>>, vector<1x1x128x128xbf16>
    %82 = vector.shape_cast %81 : vector<1x1x128x128xbf16> to vector<128x128xbf16>
    %cst_85 = arith.constant dense<0.000000e+00> : vector<512x128xf32>
    %83 = tpu.matmul %80, %82, %cst_85 {dimension_numbers = #tpu.dot_dimension_numbers<[1], [0], [0], [1], [0, 0, 1, 1], [], []>} : vector<512x128xbf16>, vector<128x128xbf16>, vector<512x128xf32> -> vector<512x128xf32>
    %84 = arith.addf %77, %83 : vector<512x128xf32>
    %c0_86 = arith.constant 0 : index
    %c2_87 = arith.constant 2 : index
    %c1_88 = arith.constant 1 : index
    %c0_89 = arith.constant 0 : index
    %85 = vector.load %arg11[%c0_86, %c2_87, %c1_88, %c0_89] : memref<2x18x18x128xf32, #tpu.memory_space<vmem>>, vector<2x16x16x128xf32>
    %86 = vector.shape_cast %85 : vector<2x16x16x128xf32> to vector<512x128xf32>
    %87 = arith.truncf %86 : vector<512x128xf32> to vector<512x128xbf16>
    %c2_90 = arith.constant 2 : index
    %c1_91 = arith.constant 1 : index
    %c0_92 = arith.constant 0 : index
    %c0_93 = arith.constant 0 : index
    %88 = vector.load %arg2[%c2_90, %c1_91, %c0_92, %c0_93] : memref<3x3x128x128xbf16, #tpu.memory_space<vmem>>, vector<1x1x128x128xbf16>
    %89 = vector.shape_cast %88 : vector<1x1x128x128xbf16> to vector<128x128xbf16>
    %cst_94 = arith.constant dense<0.000000e+00> : vector<512x128xf32>
    %90 = tpu.matmul %87, %89, %cst_94 {dimension_numbers = #tpu.dot_dimension_numbers<[1], [0], [0], [1], [0, 0, 1, 1], [], []>} : vector<512x128xbf16>, vector<128x128xbf16>, vector<512x128xf32> -> vector<512x128xf32>
    %91 = arith.addf %84, %90 : vector<512x128xf32>
    %c0_95 = arith.constant 0 : index
    %c2_96 = arith.constant 2 : index
    %c2_97 = arith.constant 2 : index
    %c0_98 = arith.constant 0 : index
    %92 = vector.load %arg11[%c0_95, %c2_96, %c2_97, %c0_98] : memref<2x18x18x128xf32, #tpu.memory_space<vmem>>, vector<2x16x16x128xf32>
    %93 = vector.shape_cast %92 : vector<2x16x16x128xf32> to vector<512x128xf32>
    %94 = arith.truncf %93 : vector<512x128xf32> to vector<512x128xbf16>
    %c2_99 = arith.constant 2 : index
    %c2_100 = arith.constant 2 : index
    %c0_101 = arith.constant 0 : index
    %c0_102 = arith.constant 0 : index
    %95 = vector.load %arg2[%c2_99, %c2_100, %c0_101, %c0_102] : memref<3x3x128x128xbf16, #tpu.memory_space<vmem>>, vector<1x1x128x128xbf16>
    %96 = vector.shape_cast %95 : vector<1x1x128x128xbf16> to vector<128x128xbf16>
    %cst_103 = arith.constant dense<0.000000e+00> : vector<512x128xf32>
    %97 = tpu.matmul %94, %96, %cst_103 {dimension_numbers = #tpu.dot_dimension_numbers<[1], [0], [0], [1], [0, 0, 1, 1], [], []>} : vector<512x128xbf16>, vector<128x128xbf16>, vector<512x128xf32> -> vector<512x128xf32>
    %98 = arith.addf %91, %97 : vector<512x128xf32>
    %c0_104 = arith.constant 0 : index
    %c0_105 = arith.constant 0 : index
    %99 = vector.load %arg6[%c0_104, %c0_105] : memref<1x128xf32, #tpu.memory_space<vmem>>, vector<1x128xf32>
    %c0_106 = arith.constant 0 : index
    %c0_107 = arith.constant 0 : index
    %100 = vector.load %arg7[%c0_106, %c0_107] : memref<1x128xf32, #tpu.memory_space<vmem>>, vector<1x128xf32>
    %cst_108 = arith.constant dense<0.000000e+00> : vector<128xf32>
    %101 = vector.multi_reduction <add>, %98, %cst_108 [0] : vector<512x128xf32> to vector<128xf32>
    %102 = vector.shape_cast %101 : vector<128xf32> to vector<1x128xf32>
    %cst_109 = arith.constant 5.120000e+02 : f32
    %103 = vector.broadcast %cst_109 : f32 to vector<1x128xf32>
    %104 = arith.divf %102, %103 : vector<1x128xf32>
    %105 = vector.broadcast %104 : vector<1x128xf32> to vector<512x128xf32>
    %106 = arith.subf %98, %105 : vector<512x128xf32>
    %107 = arith.mulf %106, %106 : vector<512x128xf32>
    %cst_110 = arith.constant dense<0.000000e+00> : vector<128xf32>
    %108 = vector.multi_reduction <add>, %107, %cst_110 [0] : vector<512x128xf32> to vector<128xf32>
    %109 = vector.shape_cast %108 : vector<128xf32> to vector<1x128xf32>
    %cst_111 = arith.constant 5.120000e+02 : f32
    %110 = vector.broadcast %cst_111 : f32 to vector<1x128xf32>
    %111 = arith.divf %109, %110 : vector<1x128xf32>
    %112 = vector.broadcast %104 : vector<1x128xf32> to vector<512x128xf32>
    %113 = arith.subf %98, %112 : vector<512x128xf32>
    %cst_112 = arith.constant 9.99999974E-6 : f32
    %114 = vector.broadcast %cst_112 : f32 to vector<1x128xf32>
    %115 = arith.addf %111, %114 : vector<1x128xf32>
    %116 = math.rsqrt %115 : vector<1x128xf32>
    %117 = vector.broadcast %116 : vector<1x128xf32> to vector<512x128xf32>
    %118 = arith.mulf %113, %117 : vector<512x128xf32>
    %119 = vector.broadcast %99 : vector<1x128xf32> to vector<512x128xf32>
    %120 = arith.mulf %118, %119 : vector<512x128xf32>
    %121 = vector.broadcast %100 : vector<1x128xf32> to vector<512x128xf32>
    %122 = arith.addf %120, %121 : vector<512x128xf32>
    %cst_113 = arith.constant 0.000000e+00 : f32
    %123 = vector.broadcast %cst_113 : f32 to vector<512x128xf32>
    %124 = arith.maximumf %122, %123 : vector<512x128xf32>
    %125 = arith.truncf %124 : vector<512x128xf32> to vector<512x128xbf16>
    %c0_114 = arith.constant 0 : index
    %c0_115 = arith.constant 0 : index
    %126 = vector.load %arg3[%c0_114, %c0_115] : memref<128x128xbf16, #tpu.memory_space<vmem>>, vector<128x128xbf16>
    %cst_116 = arith.constant dense<0.000000e+00> : vector<512x128xf32>
    %127 = tpu.matmul %125, %126, %cst_116 {dimension_numbers = #tpu.dot_dimension_numbers<[1], [0], [0], [1], [0, 0, 1, 1], [], []>} : vector<512x128xbf16>, vector<128x128xbf16>, vector<512x128xf32> -> vector<512x128xf32>
    %c0_117 = arith.constant 0 : index
    %c0_118 = arith.constant 0 : index
    %128 = vector.load %arg8[%c0_117, %c0_118] : memref<1x128xf32, #tpu.memory_space<vmem>>, vector<1x128xf32>
    %c0_119 = arith.constant 0 : index
    %c0_120 = arith.constant 0 : index
    %129 = vector.load %arg9[%c0_119, %c0_120] : memref<1x128xf32, #tpu.memory_space<vmem>>, vector<1x128xf32>
    %cst_121 = arith.constant dense<0.000000e+00> : vector<128xf32>
    %130 = vector.multi_reduction <add>, %127, %cst_121 [0] : vector<512x128xf32> to vector<128xf32>
    %131 = vector.shape_cast %130 : vector<128xf32> to vector<1x128xf32>
    %cst_122 = arith.constant 5.120000e+02 : f32
    %132 = vector.broadcast %cst_122 : f32 to vector<1x128xf32>
    %133 = arith.divf %131, %132 : vector<1x128xf32>
    %134 = vector.broadcast %133 : vector<1x128xf32> to vector<512x128xf32>
    %135 = arith.subf %127, %134 : vector<512x128xf32>
    %136 = arith.mulf %135, %135 : vector<512x128xf32>
    %cst_123 = arith.constant dense<0.000000e+00> : vector<128xf32>
    %137 = vector.multi_reduction <add>, %136, %cst_123 [0] : vector<512x128xf32> to vector<128xf32>
    %138 = vector.shape_cast %137 : vector<128xf32> to vector<1x128xf32>
    %cst_124 = arith.constant 5.120000e+02 : f32
    %139 = vector.broadcast %cst_124 : f32 to vector<1x128xf32>
    %140 = arith.divf %138, %139 : vector<1x128xf32>
    %141 = vector.broadcast %133 : vector<1x128xf32> to vector<512x128xf32>
    %142 = arith.subf %127, %141 : vector<512x128xf32>
    %cst_125 = arith.constant 9.99999974E-6 : f32
    %143 = vector.broadcast %cst_125 : f32 to vector<1x128xf32>
    %144 = arith.addf %140, %143 : vector<1x128xf32>
    %145 = math.rsqrt %144 : vector<1x128xf32>
    %146 = vector.broadcast %145 : vector<1x128xf32> to vector<512x128xf32>
    %147 = arith.mulf %142, %146 : vector<512x128xf32>
    %148 = vector.broadcast %128 : vector<1x128xf32> to vector<512x128xf32>
    %149 = arith.mulf %147, %148 : vector<512x128xf32>
    %150 = vector.broadcast %129 : vector<1x128xf32> to vector<512x128xf32>
    %151 = arith.addf %149, %150 : vector<512x128xf32>
    %152 = arith.addf %151, %1 : vector<512x128xf32>
    %153 = vector.shape_cast %152 : vector<512x128xf32> to vector<2x16x16x128xf32>
    %c0_126 = arith.constant 0 : index
    %c0_127 = arith.constant 0 : index
    %c0_128 = arith.constant 0 : index
    %c0_129 = arith.constant 0 : index
    %154 = vector.load %arg10[%c0_126, %c0_127, %c0_128, %c0_129] : memref<2x16x16x128xf32, #tpu.memory_space<vmem>>, vector<2x16x16x128xf32>
    tpu.vector_store %arg10[%c0_126, %c0_127, %c0_128, %c0_129], %153 {strides = array<i32>} : memref<2x16x16x128xf32, #tpu.memory_space<vmem>>, vector<2x16x16x128xf32>,
    return
  }
}

</mosaic_0001>

<bundles_post_ra>
// kernel: tpu_custom_call.1
= control target key start
LH: loop header
LB: loop body
LE: loop exit
PB: predicated region body
PF: predicated region fallthrough
CT: control target
= control target key end

     0   :  { %15 = vsyncpa [#allocation4], 0  ;;  %s14379_s0 = inlined_call_operand.hbm [shape: f32[2,16,16,128], index: 0, kind: input, shape index: {}]   ;;  %s14380_s1 = inlined_call_operand.hbm [shape: bf16[128,128], index: 1, kind: input, shape index: {}]   ;;  %s14381_s2 = inlined_call_operand.hbm [shape: bf16[3,3,128,128], index: 2, kind: input, shape index: {}]   ;;  %s14382_s3 = inlined_call_operand.hbm [shape: bf16[128,128], index: 3, kind: input, shape index: {}]   ;;  %s14383_s4 = inlined_call_operand.vmem [shape: f32[1,128], index: 4, kind: input, shape index: {}]   ;;  %s14384_s5 = inlined_call_operand.vmem [shape: f32[1,128], index: 5, kind: input, shape index: {}]   ;;  %s14385_s6 = inlined_call_operand.vmem [shape: f32[1,128], index: 6, kind: input, shape index: {}]   ;;  %s14386_s7 = inlined_call_operand.vmem [shape: f32[1,128], index: 7, kind: input, shape index: {}]   ;;  %s14387_s8 = inlined_call_operand.vmem [shape: f32[1,128], index: 8, kind: input, shape index: {}]   ;;  %s14388_s9 = inlined_call_operand.vmem [shape: f32[1,128], index: 9, kind: input, shape index: {}]   ;;  %s14389_s10 = inlined_call_operand.hbm [shape: f32[2,16,16,128], index: 10, kind: output, shape index: {}]  }
   0x1   :  { %16 = vsyncpa [#allocation7], 0 }
   0x2   :  { %17 = vsyncpa [#allocation10], 0 }
   0x3   :  { %18 = vsyncpa [#allocation5], 0  ;;  %s9008_s13 = smov [#allocation6]  }
   0x4   :  { %s36_s14 = sshll.u32 %s9008_s13, 4  ;;  %s37_s14 = int_to_ptr.vmem [resolvable:$true] %s36_s14 }
   0x5   :  { %s8908_s15 = scalar_lea.vmem %s37_s14, 1024  ;;  %p8913_p1 = scmp.lt.s32.totalorder %s37_s14, %s37_s14 }
   0x6   :  { %p8909_p0 = scmp.ne.s32.totalorder %s37_s14, %s8908_s15  ;;  %p8914_p2 = scmp.lt.s32.totalorder %s8908_s15, %s8908_s15 }
   0x8   :  { %p8915_p3 = por %p8914_p2, %p8913_p1 }
   0xa   :  { %p8916_p4 = pnand %p8915_p3, %p8909_p0 }
   0xc   :  { %8919 = shalt.err (!%p8916_p4)
}
   0xd   :  { %s9009_s16 = smov 64   ;;  %s9010_s17 = smov 4  }
   0xe   :  { %42 = dma.hbm_to_vmem [thread:$0]  %s14380_s1, 1024, %s37_s14, [#allocation7], %s9009_s16, %s9009_s16, %s9010_s17  }
   0xf   :  { %s9011_s20 = smov [#allocation3]  }
  0x10   :  { %s24_s21 = sshll.u32 %s9011_s20, 4  ;;  %s25_s21 = int_to_ptr.vmem [resolvable:$true] %s24_s21 }
  0x11   :  { %s8928_s22 = scalar_lea.vmem %s25_s21, 8192  ;;  %p8933_p6 = scmp.lt.s32.totalorder %s25_s21, %s25_s21 }
  0x12   :  { %p8929_p5 = scmp.ne.s32.totalorder %s25_s21, %s8928_s22  ;;  %p8934_p7 = scmp.lt.s32.totalorder %s8928_s22, %s8928_s22 }
  0x14   :  { %p8935_p8 = por %p8934_p7, %p8933_p6 }
  0x16   :  { %p8936_p9 = pnand %p8935_p8, %p8929_p5 }
  0x18   :  { %8939 = shalt.err (!%p8936_p9)
}
  0x19   :  { %s9012_s23 = smov 128   ;;  %s9013_s24 = smov 8  }
  0x1a   :  { %30 = dma.hbm_to_vmem [thread:$0]  %s14379_s0, 8192, %s25_s21, [#allocation4], %s9012_s23, %s9012_s23, %s9013_s24  }
  0x1b   :  { %s9014_s1 = smov [#allocation8]   ;;  %s9015_s28 = smov [#allocation9]  }
  0x1c   :  { %s48_s27 = sshll.u32 %s9014_s1, 4  ;;  %s60_s29 = sshll.u32 %s9015_s28, 4  ;;  %s49_s27 = int_to_ptr.vmem [resolvable:$true] %s48_s27  ;;  %s61_s29 = int_to_ptr.vmem [resolvable:$true] %s60_s29 }
  0x1d   :  { %s8948_s30 = scalar_lea.vmem %s49_s27, 9216  ;;  %p8953_p11 = scmp.lt.s32.totalorder %s49_s27, %s49_s27 }
  0x1e   :  { %p8949_p10 = scmp.ne.s32.totalorder %s49_s27, %s8948_s30  ;;  %p8954_p12 = scmp.lt.s32.totalorder %s8948_s30, %s8948_s30 }
  0x20   :  { %p8955_p13 = por %p8954_p12, %p8953_p11 }
  0x22   :  { %p8956_p0 = pnand %p8955_p13, %p8949_p10 }
  0x24   :  { %8959 = shalt.err (!%p8956_p0)
}
  0x25   :  { %54 = dma.hbm_to_vmem [thread:$0]  %s14381_s2, 9216, %s49_s27, [#allocation7], %s9009_s16, %s9009_s16, %s9010_s17  }
  0x26   :  { %s8968_s0 = scalar_lea.vmem %s61_s29, 1024  ;;  %p8973_p2 = scmp.lt.s32.totalorder %s61_s29, %s61_s29 }
  0x27   :  { %p8969_p1 = scmp.ne.s32.totalorder %s61_s29, %s8968_s0  ;;  %p8974_p3 = scmp.lt.s32.totalorder %s8968_s0, %s8968_s0 }
  0x29   :  { %p8975_p4 = por %p8974_p3, %p8973_p2 }
  0x2b   :  { %p8976_p5 = pnand %p8975_p4, %p8969_p1 }
  0x2d   :  { %8979 = shalt.err (!%p8976_p5)
}
  0x2e   :  { %66 = dma.hbm_to_vmem [thread:$0]  %s14382_s3, 1024, %s61_s29, [#allocation10], %s9009_s16, %s9009_s16, %s9010_s17  }
  0x2f   :  { %9000 = dma.done.wait [#allocation4], 8192  }
  0x30   :  { %9001 = vsyncadd [#allocation4], 4294959104 }
  0x31   :  { %9002 = dma.done.wait [#allocation7], 10240  }
  0x32   :  { %9003 = vsyncadd [#allocation7], 4294957056 }
  0x33   :  { %9004 = dma.done.wait [#allocation10], 1024  }
  0x34   :  { %9005 = vsyncadd [#allocation10], 4294966272  ;;  %v8741_v0 = vld [vmem:[#allocation6 + $0x38] sm:$0xff]   ;;  %v8742_v1 = vld [vmem:[#allocation6 + $0x30] sm:$0xff]  }
  0x35   :  { %7835 = vmatprep.subr.bf16.mxu0 %v8741_v0  ;;  %8715 = vmatprep.subr.bf16.mxu1 %v8741_v0  ;;  %v8743_v2 = vld [vmem:[#allocation6 + $0x28] sm:$0xff]   ;;  %v8744_v3 = vld [vmem:[#allocation6 + $0x20] sm:$0xff]   ;;  %v8745_v7 = vld [vmem:[#allocation6 + $0x18] sm:$0xff]  }
  0x36   :  { %7836 = vmatpush3.bf16.msra.mxu0 %v8741_v0  ;;  %8723 = vmatpush3.bf16.msra.mxu1 %v8741_v0  ;;  %v92_v4 = vld [vmem:[#allocation3] sm:$0xff]  ;;  %v93_v5 = vld [vmem:[#allocation3 + $0x8] sm:$0xff]  ;;  %v8746_v8 = vld [vmem:[#allocation6 + $0x10] sm:$0xff]  }
  0x37   :  { %7837 = vmatprep.subr.bf16.mxu0 %v8742_v1  ;;  %8716 = vmatprep.subr.bf16.mxu1 %v8742_v1  ;;  %v156_v6 = vpack.c.bf16 %v93_v5, %v92_v4  ;;  %v124_v9 = vld [vmem:[#allocation3 + $0x100] sm:$0xff]  ;;  %v125_v10 = vld [vmem:[#allocation3 + $0x108] sm:$0xff]  ;;  %v94_v14 = vld [vmem:[#allocation3 + $0x10] sm:$0xff] }
  0x38   :  { %v8747_v11 = vld [vmem:[#allocation6 + $0x8] sm:$0xff]   ;;  %v172_v12 = vpack.c.bf16 %v125_v10, %v124_v9  ;;  %v8748_v13 = vld [vmem:[#allocation6] sm:$0xff]   ;;  %v95_v15 = vld [vmem:[#allocation3 + $0x18] sm:$0xff] }
  0x39   :  { %7851 = vmatprep.mubr.bf16.mxu0 %v156_v6  ;;  %v96_v16 = vld [vmem:[#allocation3 + $0x20] sm:$0xff]  ;;  %v97_v17 = vld [vmem:[#allocation3 + $0x28] sm:$0xff]  ;;  %v126_v18 = vld [vmem:[#allocation3 + $0x110] sm:$0xff]  ;;  %v157_v22 = vpack.c.bf16 %v95_v15, %v94_v14 }
  0x3a   :  { %7838 = vmatpush3.bf16.msra.mxu0 %v8742_v1  ;;  %8724 = vmatpush3.bf16.msra.mxu1 %v8742_v1  ;;  %v127_v19 = vld [vmem:[#allocation3 + $0x118] sm:$0xff]  ;;  %v128_v20 = vld [vmem:[#allocation3 + $0x120] sm:$0xff]  ;;  %v129_v21 = vld [vmem:[#allocation3 + $0x128] sm:$0xff]  ;;  %v158_v23 = vpack.c.bf16 %v97_v17, %v96_v16 }
  0x3b   :  { %7839 = vmatprep.subr.bf16.mxu0 %v8743_v2  ;;  %8717 = vmatprep.subr.bf16.mxu1 %v8743_v2  ;;  %v173_v24 = vpack.c.bf16 %v127_v19, %v126_v18  ;;  %v174_v25 = vpack.c.bf16 %v129_v21, %v128_v20  ;;  %v98_v26 = vld [vmem:[#allocation3 + $0x30] sm:$0xff]  ;;  %v99_v27 = vld [vmem:[#allocation3 + $0x38] sm:$0xff]  ;;  %v100_v28 = vld [vmem:[#allocation3 + $0x40] sm:$0xff] }
  0x3c   :  { %7883 = vmatprep.mubr.bf16.mxu1 %v172_v12  ;;  %v101_v29 = vld [vmem:[#allocation3 + $0x48] sm:$0xff]  ;;  %v130_v30 = vld [vmem:[#allocation3 + $0x130] sm:$0xff]  ;;  %v131_v31 = vld [vmem:[#allocation3 + $0x138] sm:$0xff]  ;;  %v159_v34 = vpack.c.bf16 %v99_v27, %v98_v26 }
  0x3d   :  { %v132_v32 = vld [vmem:[#allocation3 + $0x140] sm:$0xff]  ;;  %v133_v33 = vld [vmem:[#allocation3 + $0x148] sm:$0xff]  ;;  %v160_v35 = vpack.c.bf16 %v101_v29, %v100_v28  ;;  %v175_v36 = vpack.c.bf16 %v131_v31, %v130_v30  ;;  %v102_v38 = vld [vmem:[#allocation3 + $0x50] sm:$0xff] }
  0x3e   :  { %7840 = vmatpush3.bf16.msra.mxu0 %v8743_v2  ;;  %8725 = vmatpush3.bf16.msra.mxu1 %v8743_v2  ;;  %v176_v37 = vpack.c.bf16 %v133_v33, %v132_v32  ;;  %v103_v39 = vld [vmem:[#allocation3 + $0x58] sm:$0xff]  ;;  %v104_v40 = vld [vmem:[#allocation3 + $0x60] sm:$0xff]  ;;  %v105_v41 = vld [vmem:[#allocation3 + $0x68] sm:$0xff] }
  0x3f   :  { %7841 = vmatprep.subr.bf16.mxu0 %v8744_v3  ;;  %8718 = vmatprep.subr.bf16.mxu1 %v8744_v3  ;;  %v134_v42 = vld [vmem:[#allocation3 + $0x150] sm:$0xff]  ;;  %v135_v43 = vld [vmem:[#allocation3 + $0x158] sm:$0xff]  ;;  %v136_v44 = vld [vmem:[#allocation3 + $0x160] sm:$0xff]  ;;  %v161_v46 = vpack.c.bf16 %v103_v39, %v102_v38  ;;  %v162_v47 = vpack.c.bf16 %v105_v41, %v104_v40  ;;  %v9016_v40 = vmov 0.0  }
  0x40   :  { %v137_v45 = vld [vmem:[#allocation3 + $0x168] sm:$0xff]  ;;  %v177_v48 = vpack.c.bf16 %v135_v43, %v134_v42  ;;  %v106_v50 = vld [vmem:[#allocation3 + $0x70] sm:$0xff]  ;;  %v107_v51 = vld [vmem:[#allocation3 + $0x78] sm:$0xff]  ;;  %1088 = vst [vmem:[#allocation2 + $0x30] sm:$0xff] %v9016_v40 }
  0x41   :  { %v178_v49 = vpack.c.bf16 %v137_v45, %v136_v44  ;;  %v108_v52 = vld [vmem:[#allocation3 + $0x80] sm:$0xff]  ;;  %v109_v53 = vld [vmem:[#allocation3 + $0x88] sm:$0xff]  ;;  %v138_v54 = vld [vmem:[#allocation3 + $0x170] sm:$0xff]  ;;  %v163_v58 = vpack.c.bf16 %v107_v51, %v106_v50  ;;  %1089 = vst [vmem:[#allocation2 + $0x38] sm:$0xff] %v9016_v40 }
  0x42   :  { %7842 = vmatpush3.bf16.msra.mxu0 %v8744_v3  ;;  %8726 = vmatpush3.bf16.msra.mxu1 %v8744_v3  ;;  %v139_v55 = vld [vmem:[#allocation3 + $0x178] sm:$0xff]  ;;  %v140_v56 = vld [vmem:[#allocation3 + $0x180] sm:$0xff]  ;;  %v141_v57 = vld [vmem:[#allocation3 + $0x188] sm:$0xff]  ;;  %v164_v59 = vpack.c.bf16 %v109_v53, %v108_v52  ;;  %1082 = vst [vmem:[#allocation2] sm:$0xff] %v9016_v40 }
  0x43   :  { %7843 = vmatprep.subr.bf16.mxu0 %v8745_v7  ;;  %8719 = vmatprep.subr.bf16.mxu1 %v8745_v7  ;;  %v179_v60 = vpack.c.bf16 %v139_v55, %v138_v54  ;;  %v180_v61 = vpack.c.bf16 %v141_v57, %v140_v56  ;;  %v110_v62 = vld [vmem:[#allocation3 + $0x90] sm:$0xff]  ;;  %v111_v63 = vld [vmem:[#allocation3 + $0x98] sm:$0xff]  ;;  %v112_v0 = vld [vmem:[#allocation3 + $0xa0] sm:$0xff]  ;;  %1083 = vst [vmem:[#allocation2 + $0x8] sm:$0xff] %v9016_v40 }
  0x44   :  { %v113_v1 = vld [vmem:[#allocation3 + $0xa8] sm:$0xff]  ;;  %v142_v2 = vld [vmem:[#allocation3 + $0x190] sm:$0xff]  ;;  %v143_v3 = vld [vmem:[#allocation3 + $0x198] sm:$0xff]  ;;  %v165_v6 = vpack.c.bf16 %v111_v63, %v110_v62  ;;  %1084 = vst [vmem:[#allocation2 + $0x10] sm:$0x3] %v9016_v40 }
  0x45   :  { %v144_v4 = vld [vmem:[#allocation3 + $0x1a0] sm:$0xff]  ;;  %v145_v5 = vld [vmem:[#allocation3 + $0x1a8] sm:$0xff]  ;;  %v114_v10 = vld [vmem:[#allocation3 + $0xb0] sm:$0xff]  ;;  %1085 = vst [vmem:[#allocation2 + $0x18] sm:$0xff] %v9016_v40 }
  0x46   :  { %7844 = vmatpush3.bf16.msra.mxu0 %v8745_v7  ;;  %8727 = vmatpush3.bf16.msra.mxu1 %v8745_v7  ;;  %v166_v7 = vpack.c.bf16 %v113_v1, %v112_v0  ;;  %v182_v9 = vpack.c.bf16 %v145_v5, %v144_v4  ;;  %v116_v12 = vld [vmem:[#allocation3 + $0xc0] sm:$0xff]  ;;  %v146_v14 = vld [vmem:[#allocation3 + $0x1b0] sm:$0xff]  ;;  %v147_v15 = vld [vmem:[#allocation3 + $0x1b8] sm:$0xff]  ;;  %1086 = vst [vmem:[#allocation2 + $0x20] sm:$0xff] %v9016_v40 }
  0x47   :  { %7845 = vmatprep.subr.bf16.mxu0 %v8746_v8  ;;  %8720 = vmatprep.subr.bf16.mxu1 %v8746_v8  ;;  %v148_v16 = vld [vmem:[#allocation3 + $0x1c0] sm:$0xff]  ;;  %v149_v17 = vld [vmem:[#allocation3 + $0x1c8] sm:$0xff]  ;;  %v183_v20 = vpack.c.bf16 %v147_v15, %v146_v14  ;;  %v150_v26 = vld [vmem:[#allocation3 + $0x1d0] sm:$0xff]  ;;  %1087 = vst [vmem:[#allocation2 + $0x28] sm:$0x3] %v9016_v40 }
  0x48   :  { %v184_v21 = vpack.c.bf16 %v149_v17, %v148_v16  ;;  %v151_v27 = vld [vmem:[#allocation3 + $0x1d8] sm:$0xff]  ;;  %v152_v28 = vld [vmem:[#allocation3 + $0x1e0] sm:$0xff]  ;;  %v153_v29 = vld [vmem:[#allocation3 + $0x1e8] sm:$0xff]  ;;  %1090 = vst [vmem:[#allocation2 + $0x40] sm:$0x3] %v9016_v40 }
  0x49   :  { %v185_v32 = vpack.c.bf16 %v151_v27, %v150_v26  ;;  %v186_v33 = vpack.c.bf16 %v153_v29, %v152_v28  ;;  %1091 = vst [vmem:[#allocation2 + $0x48] sm:$0xff] %v9016_v40  ;;  %1092 = vst [vmem:[#allocation2 + $0x50] sm:$0xff] %v9016_v40 }
  0x4a   :  { %7846 = vmatpush3.bf16.msra.mxu0 %v8746_v8  ;;  %8728 = vmatpush3.bf16.msra.mxu1 %v8746_v8  ;;  %v181_v8 = vpack.c.bf16 %v143_v3, %v142_v2  ;;  %1093 = vst [vmem:[#allocation2 + $0x58] sm:$0x3] %v9016_v40  ;;  %1094 = vst [vmem:[#allocation2 + $0x60] sm:$0xff] %v9016_v40 }
  0x4b   :  { %7847 = vmatprep.subr.bf16.mxu0 %v8747_v11  ;;  %8721 = vmatprep.subr.bf16.mxu1 %v8747_v11  ;;  %1095 = vst [vmem:[#allocation2 + $0x68] sm:$0xff] %v9016_v40  ;;  %1096 = vst [vmem:[#allocation2 + $0x70] sm:$0x3] %v9016_v40 }
  0x4c   :  { %1097 = vst [vmem:[#allocation2 + $0x78] sm:$0xff] %v9016_v40  ;;  %1098 = vst [vmem:[#allocation2 + $0x80] sm:$0xff] %v9016_v40 }
  0x4d   :  { %1099 = vst [vmem:[#allocation2 + $0x88] sm:$0x3] %v9016_v40  ;;  %1100 = vst [vmem:[#allocation2 + $0x90] sm:$0xff] %v9016_v40 }
  0x4e   :  { %7848 = vmatpush3.bf16.msra.mxu0 %v8747_v11  ;;  %8729 = vmatpush3.bf16.msra.mxu1 %v8747_v11  ;;  %v115_v11 = vld [vmem:[#allocation3 + $0xb8] sm:$0xff]  ;;  %1101 = vst [vmem:[#allocation2 + $0x98] sm:$0xff] %v9016_v40  ;;  %1102 = vst [vmem:[#allocation2 + $0xa0] sm:$0x3] %v9016_v40 }
  0x4f   :  { %7849 = vmatprep.subr.bf16.mxu0 %v8748_v13  ;;  %8722 = vmatprep.subr.bf16.mxu1 %v8748_v13  ;;  %v167_v18 = vpack.c.bf16 %v115_v11, %v114_v10  ;;  %1103 = vst [vmem:[#allocation2 + $0xa8] sm:$0xff] %v9016_v40  ;;  %1104 = vst [vmem:[#allocation2 + $0xb0] sm:$0xff] %v9016_v40 }
  0x50   :  { %1105 = vst [vmem:[#allocation2 + $0xb8] sm:$0x3] %v9016_v40  ;;  %1106 = vst [vmem:[#allocation2 + $0xc0] sm:$0xff] %v9016_v40 }
  0x51   :  { %1107 = vst [vmem:[#allocation2 + $0xc8] sm:$0xff] %v9016_v40  ;;  %1108 = vst [vmem:[#allocation2 + $0xd0] sm:$0x3] %v9016_v40 }
  0x52   :  { %7850 = vmatpush3.bf16.msra.mxu0 %v8748_v13  ;;  %8730 = vmatpush3.bf16.msra.mxu1 %v8748_v13  ;;  %v117_v13 = vld [vmem:[#allocation3 + $0xc8] sm:$0xff]  ;;  %1109 = vst [vmem:[#allocation2 + $0xd8] sm:$0xff] %v9016_v40  ;;  %1110 = vst [vmem:[#allocation2 + $0xe0] sm:$0xff] %v9016_v40 }
  0x53   :  { %v168_v19 = vpack.c.bf16 %v117_v13, %v116_v12  ;;  %1111 = vst [vmem:[#allocation2 + $0xe8] sm:$0x3] %v9016_v40  ;;  %1112 = vst [vmem:[#allocation2 + $0xf0] sm:$0xff] %v9016_v40 }
  0x54   :  { %1113 = vst [vmem:[#allocation2 + $0xf8] sm:$0xff] %v9016_v40  ;;  %1114 = vst [vmem:[#allocation2 + $0x100] sm:$0x3] %v9016_v40 }
  0x55   :  { %7852 = vmatmul.mubr.bf16.vlgmr.msra.gmra.mxu0 %v157_v22  ;;  %7884 = vmatmul.mubr.bf16.vlgmr.msra.gmra.mxu1 %v173_v24  ;;  %v118_v22 = vld [vmem:[#allocation3 + $0xd0] sm:$0xff]  ;;  %v120_v24 = vld [vmem:[#allocation3 + $0xe0] sm:$0xff]  ;;  %1115 = vst [vmem:[#allocation2 + $0x108] sm:$0xff] %v9016_v40  ;;  %1116 = vst [vmem:[#allocation2 + $0x110] sm:$0xff] %v9016_v40 }
  0x56   :  { %7855 = vmatprep.mubr.bf16.mxu0 %v158_v23  ;;  %7887 = vmatprep.mubr.bf16.mxu1 %v174_v25  ;;  %v119_v23 = vld [vmem:[#allocation3 + $0xd8] sm:$0xff]  ;;  %v121_v25 = vld [vmem:[#allocation3 + $0xe8] sm:$0xff]  ;;  %1117 = vst [vmem:[#allocation2 + $0x118] sm:$0x3] %v9016_v40  ;;  %1118 = vst [vmem:[#allocation2 + $0x120] sm:$0xff] %v9016_v40 }
  0x57   :  { %v169_v30 = vpack.c.bf16 %v119_v23, %v118_v22  ;;  %v170_v31 = vpack.c.bf16 %v121_v25, %v120_v24  ;;  %1119 = vst [vmem:[#allocation2 + $0x128] sm:$0xff] %v9016_v40  ;;  %1120 = vst [vmem:[#allocation2 + $0x130] sm:$0x3] %v9016_v40 }
  0x58   :  { %1121 = vst [vmem:[#allocation2 + $0x138] sm:$0xff] %v9016_v40  ;;  %1122 = vst [vmem:[#allocation2 + $0x140] sm:$0xff] %v9016_v40 }
  0x59   :  { %1123 = vst [vmem:[#allocation2 + $0x148] sm:$0x3] %v9016_v40  ;;  %1124 = vst [vmem:[#allocation2 + $0x150] sm:$0xff] %v9016_v40 }
  0x5a   :  { %1125 = vst [vmem:[#allocation2 + $0x158] sm:$0xff] %v9016_v40  ;;  %1126 = vst [vmem:[#allocation2 + $0x160] sm:$0x3] %v9016_v40 }
  0x5b   :  { %1127 = vst [vmem:[#allocation2 + $0x168] sm:$0xff] %v9016_v40  ;;  %1128 = vst [vmem:[#allocation2 + $0x170] sm:$0xff] %v9016_v40 }
  0x5c   :  { %1129 = vst [vmem:[#allocation2 + $0x178] sm:$0x3] %v9016_v40  ;;  %1130 = vst [vmem:[#allocation2 + $0x180] sm:$0xff] %v9016_v40 }
  0x5d   :  { %7856 = vmatmul.mubr.bf16.gmra.mxu0 %v159_v34  ;;  %7888 = vmatmul.mubr.bf16.gmra.mxu1 %v175_v36  ;;  %v122_v34 = vld [vmem:[#allocation3 + $0xf0] sm:$0xff]  ;;  %1131 = vst [vmem:[#allocation2 + $0x188] sm:$0xff] %v9016_v40  ;;  %1132 = vst [vmem:[#allocation2 + $0x190] sm:$0x3] %v9016_v40 }
  0x5e   :  { %7859 = vmatprep.mubr.bf16.mxu0 %v160_v35  ;;  %7891 = vmatprep.mubr.bf16.mxu1 %v176_v37  ;;  %v123_v35 = vld [vmem:[#allocation3 + $0xf8] sm:$0xff]  ;;  %v154_v36 = vld [vmem:[#allocation3 + $0x1f0] sm:$0xff]  ;;  %1133 = vst [vmem:[#allocation2 + $0x198] sm:$0xff] %v9016_v40  ;;  %1134 = vst [vmem:[#allocation2 + $0x1a0] sm:$0xff] %v9016_v40 }
  0x5f   :  { %v155_v37 = vld [vmem:[#allocation3 + $0x1f8] sm:$0xff]  ;;  %v171_v38 = vpack.c.bf16 %v123_v35, %v122_v34  ;;  %1135 = vst [vmem:[#allocation2 + $0x1a8] sm:$0x3] %v9016_v40  ;;  %1136 = vst [vmem:[#allocation2 + $0x1b0] sm:$0xff] %v9016_v40 }
  0x60   :  { %v187_v39 = vpack.c.bf16 %v155_v37, %v154_v36  ;;  %1137 = vst [vmem:[#allocation2 + $0x1b8] sm:$0xff] %v9016_v40  ;;  %1138 = vst [vmem:[#allocation2 + $0x1c0] sm:$0x3] %v9016_v40 }
  0x61   :  { %1139 = vst [vmem:[#allocation2 + $0x1c8] sm:$0xff] %v9016_v40  ;;  %1140 = vst [vmem:[#allocation2 + $0x1d0] sm:$0xff] %v9016_v40 }
  0x62   :  { %1141 = vst [vmem:[#allocation2 + $0x1d8] sm:$0x3] %v9016_v40  ;;  %1142 = vst [vmem:[#allocation2 + $0x1e0] sm:$0xff] %v9016_v40 }
  0x63   :  { %1143 = vst [vmem:[#allocation2 + $0x1e8] sm:$0xff] %v9016_v40  ;;  %1144 = vst [vmem:[#allocation2 + $0x1f0] sm:$0x3] %v9016_v40 }
  0x64   :  { %1145 = vst [vmem:[#allocation2 + $0x1f8] sm:$0xff] %v9016_v40  ;;  %1146 = vst [vmem:[#allocation2 + $0x200] sm:$0xff] %v9016_v40 }
  0x65   :  { %7860 = vmatmul.mubr.bf16.gmra.mxu0 %v161_v46  ;;  %7892 = vmatmul.mubr.bf16.gmra.mxu1 %v177_v48  ;;  %1147 = vst [vmem:[#allocation2 + $0x208] sm:$0x3] %v9016_v40  ;;  %1148 = vst [vmem:[#allocation2 + $0x210] sm:$0xff] %v9016_v40 }
  0x66   :  { %7863 = vmatprep.mubr.bf16.mxu0 %v162_v47  ;;  %7895 = vmatprep.mubr.bf16.mxu1 %v178_v49  ;;  %1149 = vst [vmem:[#allocation2 + $0x218] sm:$0xff] %v9016_v40  ;;  %1150 = vst [vmem:[#allocation2 + $0x220] sm:$0x3] %v9016_v40 }
  0x67   :  { %1151 = vst [vmem:[#allocation2 + $0x228] sm:$0xff] %v9016_v40  ;;  %1152 = vst [vmem:[#allocation2 + $0x230] sm:$0xff] %v9016_v40 }
  0x68   :  { %1153 = vst [vmem:[#allocation2 + $0x238] sm:$0x3] %v9016_v40  ;;  %1154 = vst [vmem:[#allocation2 + $0x240] sm:$0xff] %v9016_v40 }
  0x69   :  { %1155 = vst [vmem:[#allocation2 + $0x248] sm:$0xff] %v9016_v40  ;;  %1156 = vst [vmem:[#allocation2 + $0x250] sm:$0x3] %v9016_v40 }
  0x6a   :  { %1157 = vst [vmem:[#allocation2 + $0x258] sm:$0xff] %v9016_v40  ;;  %1158 = vst [vmem:[#allocation2 + $0x260] sm:$0xff] %v9016_v40 }
  0x6b   :  { %1159 = vst [vmem:[#allocation2 + $0x268] sm:$0x3] %v9016_v40  ;;  %1160 = vst [vmem:[#allocation2 + $0x270] sm:$0xff] %v9016_v40 }
  0x6c   :  { %1161 = vst [vmem:[#allocation2 + $0x278] sm:$0xff] %v9016_v40  ;;  %1162 = vst [vmem:[#allocation2 + $0x280] sm:$0x3] %v9016_v40 }
  0x6d   :  { %7864 = vmatmul.mubr.bf16.gmra.mxu0 %v163_v58  ;;  %7896 = vmatmul.mubr.bf16.gmra.mxu1 %v179_v60  ;;  %1163 = vst [vmem:[#allocation2 + $0x288] sm:$0xff] %v9016_v40  ;;  %1164 = vst [vmem:[#allocation2 + $0x290] sm:$0xff] %v9016_v40 }
  0x6e   :  { %7867 = vmatprep.mubr.bf16.mxu0 %v164_v59  ;;  %7899 = vmatprep.mubr.bf16.mxu1 %v180_v61  ;;  %1165 = vst [vmem:[#allocation2 + $0x298] sm:$0x3] %v9016_v40  ;;  %1166 = vst [vmem:[#allocation2 + $0x2a0] sm:$0xff] %v9016_v40 }
  0x6f   :  { %1167 = vst [vmem:[#allocation2 + $0x2a8] sm:$0xff] %v9016_v40  ;;  %1168 = vst [vmem:[#allocation2 + $0x2b0] sm:$0x3] %v9016_v40 }
  0x70   :  { %1169 = vst [vmem:[#allocation2 + $0x2b8] sm:$0xff] %v9016_v40  ;;  %1170 = vst [vmem:[#allocation2 + $0x2c0] sm:$0xff] %v9016_v40 }
  0x71   :  { %1171 = vst [vmem:[#allocation2 + $0x2c8] sm:$0x3] %v9016_v40  ;;  %1172 = vst [vmem:[#allocation2 + $0x2d0] sm:$0xff] %v9016_v40 }
  0x72   :  { %1173 = vst [vmem:[#allocation2 + $0x2d8] sm:$0xff] %v9016_v40  ;;  %1174 = vst [vmem:[#allocation2 + $0x2e0] sm:$0x3] %v9016_v40 }
  0x73   :  { %1175 = vst [vmem:[#allocation2 + $0x2e8] sm:$0xff] %v9016_v40  ;;  %1176 = vst [vmem:[#allocation2 + $0x2f0] sm:$0xff] %v9016_v40 }
  0x74   :  { %1177 = vst [vmem:[#allocation2 + $0x2f8] sm:$0x3] %v9016_v40  ;;  %1178 = vst [vmem:[#allocation2 + $0x300] sm:$0xff] %v9016_v40 }
  0x75   :  { %7868 = vmatmul.mubr.bf16.gmra.mxu0 %v165_v6  ;;  %7900 = vmatmul.mubr.bf16.gmra.mxu1 %v181_v8  ;;  %1179 = vst [vmem:[#allocation2 + $0x308] sm:$0xff] %v9016_v40  ;;  %1180 = vst [vmem:[#allocation2 + $0x310] sm:$0x3] %v9016_v40 }
  0x76   :  { %7871 = vmatprep.mubr.bf16.mxu0 %v166_v7  ;;  %7903 = vmatprep.mubr.bf16.mxu1 %v182_v9  ;;  %1181 = vst [vmem:[#allocation2 + $0x318] sm:$0xff] %v9016_v40  ;;  %1182 = vst [vmem:[#allocation2 + $0x320] sm:$0xff] %v9016_v40 }
  0x77   :  { %1183 = vst [vmem:[#allocation2 + $0x328] sm:$0x3] %v9016_v40  ;;  %1184 = vst [vmem:[#allocation2 + $0x330] sm:$0xff] %v9016_v40 }
  0x78   :  { %1185 = vst [vmem:[#allocation2 + $0x338] sm:$0xff] %v9016_v40  ;;  %1186 = vst [vmem:[#allocation2 + $0x340] sm:$0x3] %v9016_v40 }
  0x79   :  { %1187 = vst [vmem:[#allocation2 + $0x348] sm:$0xff] %v9016_v40  ;;  %1188 = vst [vmem:[#allocation2 + $0x350] sm:$0xff] %v9016_v40 }
  0x7a   :  { %1189 = vst [vmem:[#allocation2 + $0x358] sm:$0x3] %v9016_v40 }
  0x7d   :  { %7872 = vmatmul.mubr.bf16.gmra.mxu0 %v167_v18  ;;  %7904 = vmatmul.mubr.bf16.gmra.mxu1 %v183_v20 }
  0x7e   :  { %7875 = vmatprep.mubr.bf16.mxu0 %v168_v19  ;;  %7907 = vmatprep.mubr.bf16.mxu1 %v184_v21 }
  0x85   :  { %7876 = vmatmul.mubr.bf16.gmra.mxu0 %v169_v30  ;;  %7908 = vmatmul.mubr.bf16.gmra.mxu1 %v185_v32 }
  0x86   :  { %7879 = vmatprep.mubr.bf16.mxu0 %v170_v31  ;;  %7911 = vmatprep.mubr.bf16.mxu1 %v186_v33 }
  0x8d   :  { %7880 = vmatmul.mubr.bf16.gmra.mxu0 %v171_v38  ;;  %7912 = vmatmul.mubr.bf16.gmra.mxu1 %v187_v39 }
 0x115   :  { %v9206_v41 = vpop.f32.mrf.mxu0  ;;  %v9214_v45 = vpop.f32.mrf.mxu1 }
 0x117   :  { %v9208_v42 = vpop.f32.mrf.mxu0  ;;  %v9223_v50 = vpop.f32.mrf.mxu1 }
 0x119   :  { %v9210_v43 = vpop.f32.mrf.mxu0  ;;  %v9231_v55 = vpop.f32.mrf.mxu1 }
 0x11b   :  { %v9212_v44 = vpop.f32.mrf.mxu0  ;;  %v9239_v60 = vpop.f32.mrf.mxu1 }
 0x11c   :  { %v543_v46 = vadd.f32 %v9212_v44, %v9208_v42 }
 0x11d   :  { %v9218_v47 = vpop.f32.mrf.mxu0  ;;  %v9247_v1 = vpop.f32.mrf.mxu1 }
 0x11e   :  { %v544_v48 = vadd.f32 %v9206_v41, %v543_v46 }
 0x11f   :  { %v9221_v49 = vpop.f32.mrf.mxu0  ;;  %v9255_v6 = vpop.f32.mrf.mxu1 }
 0x120   :  { %v545_v51 = vadd.f32 %v9210_v43, %v544_v48 }
 0x121   :  { %v9226_v52 = vpop.f32.mrf.mxu0  ;;  %v9263_v11 = vpop.f32.mrf.mxu1 }
 0x122   :  { %v546_v53 = vadd.f32 %v545_v51, %v9221_v49 }
 0x123   :  { %v9229_v54 = vpop.f32.mrf.mxu0  ;;  %v9271_v16 = vpop.f32.mrf.mxu1 }
 0x124   :  { %v547_v56 = vadd.f32 %v546_v53, %v9229_v54 }
 0x125   :  { %v9234_v57 = vpop.f32.mrf.mxu0  ;;  %v9279_v21 = vpop.f32.mrf.mxu1 }
 0x126   :  { %v548_v58 = vadd.f32 %v9218_v47, %v547_v56 }
 0x127   :  { %v9237_v59 = vpop.f32.mrf.mxu0  ;;  %v9287_v26 = vpop.f32.mrf.mxu1 }
 0x128   :  { %v549_v61 = vadd.f32 %v9226_v52, %v548_v58 }
 0x129   :  { %v9242_v62 = vpop.f32.mrf.mxu0  ;;  %v9295_v31 = vpop.f32.mrf.mxu1 }
 0x12a   :  { %v550_v63 = vadd.f32 %v549_v61, %v9237_v59  ;;  %14542 = vst [vmem:[#allocation16_spill] sm:$0xff] %v9295_v31 }
 0x12b   :  { %v9245_v0 = vpop.f32.mrf.mxu0  ;;  %v9303_v36 = vpop.f32.mrf.mxu1 }
 0x12c   :  { %v551_v2 = vadd.f32 %v550_v63, %v9245_v0  ;;  %14543 = vst [vmem:[#allocation17_spill] sm:$0xff] %v9303_v36 }
 0x12d   :  { %v9250_v3 = vpop.f32.mrf.mxu0  ;;  %v9311_v46 = vpop.f32.mrf.mxu1 }
 0x12e   :  { %v552_v4 = vadd.f32 %v9234_v57, %v551_v2 }
 0x12f   :  { %v9253_v5 = vpop.f32.mrf.mxu0  ;;  %v9319_v58 = vpop.f32.mrf.mxu1 }
 0x130   :  { %v553_v7 = vadd.f32 %v9242_v62, %v552_v4 }
 0x131   :  { %v9258_v8 = vpop.f32.mrf.mxu0 }
 0x132   :  { %v554_v9 = vadd.f32 %v553_v7, %v9253_v5  ;;  %v9327_v7 = vpop.f32.mrf.mxu1 }
 0x133   :  { %v9261_v10 = vpop.f32.mrf.mxu0  ;;  %14544 = vst [vmem:[#allocation18_spill] sm:$0xff] %v9327_v7 }
 0x134   :  { %v555_v12 = vadd.f32 %v554_v9, %v9261_v10 }
 0x135   :  { %v9266_v13 = vpop.f32.mrf.mxu0 }
 0x136   :  { %v556_v14 = vadd.f32 %v9250_v3, %v555_v12 }
 0x137   :  { %v9269_v15 = vpop.f32.mrf.mxu0 }
 0x138   :  { %v557_v17 = vadd.f32 %v9258_v8, %v556_v14  ;;  %v9331_v14 = vpop.f32.mrf.mxu1 }
 0x139   :  { %v9274_v18 = vpop.f32.mrf.mxu0  ;;  %14545 = vst [vmem:[#allocation19_spill] sm:$0xff] %v9331_v14 }
 0x13a   :  { %v558_v19 = vadd.f32 %v557_v17, %v9269_v15 }
 0x13b   :  { %v9277_v20 = vpop.f32.mrf.mxu0 }
 0x13c   :  { %v559_v22 = vadd.f32 %v558_v19, %v9277_v20 }
 0x13d   :  { %v9282_v23 = vpop.f32.mrf.mxu0 }
 0x13e   :  { %v560_v24 = vadd.f32 %v9266_v13, %v559_v22  ;;  %v9335_v22 = vpop.f32.mrf.mxu1 }
 0x13f   :  { %v9285_v25 = vpop.f32.mrf.mxu0 }
 0x140   :  { %v561_v27 = vadd.f32 %v9274_v18, %v560_v24 }
 0x141   :  { %v9290_v28 = vpop.f32.mrf.mxu0 }
 0x142   :  { %v562_v29 = vadd.f32 %v561_v27, %v9285_v25 }
 0x143   :  { %v9293_v30 = vpop.f32.mrf.mxu0 }
 0x144   :  { %v563_v32 = vadd.f32 %v562_v29, %v9293_v30  ;;  %v9339_v29 = vpop.f32.mrf.mxu1 }
 0x145   :  { %v9298_v33 = vpop.f32.mrf.mxu0 }
 0x146   :  { %v564_v34 = vadd.f32 %v9282_v23, %v563_v32 }
 0x147   :  { %v9301_v35 = vpop.f32.mrf.mxu0 }
 0x148   :  { %v565_v37 = vadd.f32 %v9290_v28, %v564_v34 }
 0x149   :  { %v9306_v38 = vpop.f32.mrf.mxu0 }
 0x14a   :  { %v566_v39 = vadd.f32 %v565_v37, %v9301_v35  ;;  %v9343_v37 = vpop.f32.mrf.mxu1 }
 0x14b   :  { %v9309_v40 = vpop.f32.mrf.mxu0  ;;  %14546 = vst [vmem:[#allocation20_spill] sm:$0xff] %v9343_v37 }
 0x14c   :  { %v567_v48 = vadd.f32 %v566_v39, %v9309_v40 }
 0x14d   :  { %v9314_v51 = vpop.f32.mrf.mxu0 }
 0x14e   :  { %v568_v53 = vadd.f32 %v9298_v33, %v567_v48 }
 0x14f   :  { %v9317_v56 = vpop.f32.mrf.mxu0 }
 0x150   :  { %v569_v61 = vadd.f32 %v9306_v38, %v568_v53  ;;  %v9347_v53 = vpop.f32.mrf.mxu1 }
 0x151   :  { %v9322_v63 = vpop.f32.mrf.mxu0  ;;  %14547 = vst [vmem:[#allocation21_spill] sm:$0xff] %v9347_v53 }
 0x152   :  { %v570_v2 = vadd.f32 %v569_v61, %v9317_v56 }
 0x153   :  { %v9325_v4 = vpop.f32.mrf.mxu0 }
 0x154   :  { %v571_v9 = vadd.f32 %v570_v2, %v9325_v4 }
 0x156   :  { %v572_v12 = vadd.f32 %v9314_v51, %v571_v9  ;;  %v9351_v9 = vpop.f32.mrf.mxu1 }
 0x157   :  { %14548 = vst [vmem:[#allocation22_spill] sm:$0xff] %v9351_v9 }
 0x158   :  { %v573_v17 = vadd.f32 %v9322_v63, %v572_v12 }
 0x15a   :  { %v574_v19 = vadd.f32 %v573_v17, %v9223_v50 }
 0x15c   :  { %v575_v24 = vadd.f32 %v574_v19, %v9239_v60  ;;  %v9355_v19 = vpop.f32.mrf.mxu1 }
 0x15d   :  { %14549 = vst [vmem:[#allocation23_spill] sm:$0xff] %v9355_v19 }
 0x15e   :  { %v576_v27 = vadd.f32 %v9214_v45, %v575_v24 }
 0x160   :  { %v577_v32 = vadd.f32 %v9231_v55, %v576_v27 }
 0x162   :  { %v578_v34 = vadd.f32 %v577_v32, %v9255_v6  ;;  %v9359_v32 = vpop.f32.mrf.mxu1 }
 0x163   :  { %14550 = vst [vmem:[#allocation24_spill] sm:$0xff] %v9359_v32 }
 0x164   :  { %v579_v39 = vadd.f32 %v578_v34, %v9271_v16 }
 0x166   :  { %v580_v48 = vadd.f32 %v9247_v1, %v579_v39 }
 0x168   :  { %v581_v61 = vadd.f32 %v9263_v11, %v580_v48  ;;  %v9363_v48 = vpop.f32.mrf.mxu1 }
 0x169   :  { %14551 = vst [vmem:[#allocation25_spill] sm:$0xff] %v9363_v48 }
 0x16a   :  { %v582_v2 = vadd.f32 %v581_v61, %v9287_v26 }
 0x16c   :  { %v583_v12 = vadd.f32 %v582_v2, %v9303_v36  ;;  %v9367_v36 = vpop.f32.mrf.mxu1 }
 0x16d   :  { %14552 = vst [vmem:[#allocation26_spill] sm:$0xff] %v9367_v36 }
 0x16e   :  { %v584_v17 = vadd.f32 %v9279_v21, %v583_v12 }
 0x170   :  { %v585_v24 = vadd.f32 %v9295_v31, %v584_v17  ;;  %v9371_v31 = vpop.f32.mrf.mxu1 }
 0x171   :  { %14553 = vst [vmem:[#allocation27_spill] sm:$0xff] %v9371_v31 }
 0x172   :  { %v586_v27 = vadd.f32 %v585_v24, %v9319_v58 }
 0x174   :  { %v587_v34 = vadd.f32 %v586_v27, %v9331_v14  ;;  %v9375_v14 = vpop.f32.mrf.mxu1 }
 0x176   :  { %v588_v39 = vadd.f32 %v9311_v46, %v587_v34 }
 0x178   :  { %v589_v61 = vadd.f32 %v9327_v7, %v588_v39  ;;  %v9379_v7 = vpop.f32.mrf.mxu1 }
 0x179   :  { %14554 = vst [vmem:[#allocation28_spill] sm:$0xff] %v9379_v7 }
 0x17a   :  { %v590_v2 = vadd.f32 %v589_v61, %v9339_v29 }
 0x17c   :  { %v591_v12 = vadd.f32 %v590_v2, %v9347_v53  ;;  %v9383_v53 = vpop.f32.mrf.mxu1 }
 0x17e   :  { %v592_v17 = vadd.f32 %v9335_v22, %v591_v12 }
 0x180   :  { %v593_v24 = vadd.f32 %v9343_v37, %v592_v17  ;;  %v9387_v37 = vpop.f32.mrf.mxu1 }
 0x182   :  { %v594_v27 = vadd.f32 %v593_v24, %v9355_v19  ;;  %v9390_v19 = vpop.f32.mrf.mxu1 }
 0x184   :  { %v595_v34 = vadd.f32 %v594_v27, %v9363_v48 }
 0x186   :  { %v596_v39 = vadd.f32 %v9351_v9, %v595_v34  ;;  %v9393_v34 = vpop.f32.mrf.mxu1 }
 0x188   :  { %v597_v61 = vadd.f32 %v9359_v32, %v596_v39 }
 0x18a   :  { %v598_v2 = vadd.f32 %v597_v61, %v9371_v31 }
 0x18c   :  { %v599_v12 = vadd.f32 %v598_v2, %v9379_v7 }
 0x18e   :  { %v600_v17 = vadd.f32 %v9367_v36, %v599_v12 }
 0x190   :  { %v601_v24 = vadd.f32 %v9375_v14, %v600_v17 }
 0x192   :  { %v602_v27 = vadd.f32 %v601_v24, %v9387_v37 }
 0x194   :  { %v603_v39 = vadd.f32 %v602_v27, %v9393_v34 }
 0x196   :  { %v604_v61 = vadd.f32 %v9383_v53, %v603_v39 }
 0x198   :  { %v605_v31 = vadd.f32 %v9390_v19, %v604_v61 }
 0x19a   :  { %v606_v32 = vrot.slane %v605_v31, 4 }
 0x19c   :  { %v607_v2 = vadd.f32 %v606_v32, %v605_v31 }
 0x19e   :  { %v608_v7 = vrot.slane %v607_v2, 2 }
 0x1a0   :  { %v609_v12 = vadd.f32 %v608_v7, %v607_v2 }
 0x1a2   :  { %v610_v36 = vrot.slane %v609_v12, 1 }
 0x1a4   :  { %v611_v9 = vadd.f32 %v610_v36, %v609_v12 }
 0x1a6   :  { %v9398_v48 = vmul.f32 0.001953125, %v611_v9 }
 0x1a8   :  { %v9402_v17 = vsub.f32 %v9208_v42, %v9398_v48  ;;  %v9406_v24 = vsub.f32 %v9212_v44, %v9398_v48  ;;  %v9410_v27 = vsub.f32 %v9206_v41, %v9398_v48  ;;  %v9418_v7 = vsub.f32 %v9210_v43, %v9398_v48 }
 0x1a9   :  { %v9422_v42 = vsub.f32 %v9221_v49, %v9398_v48  ;;  %v9428_v41 = vsub.f32 %v9229_v54, %v9398_v48  ;;  %v9434_v43 = vsub.f32 %v9218_v47, %v9398_v48  ;;  %v9440_v2 = vsub.f32 %v9226_v52, %v9398_v48 }
 0x1aa   :  { %v678_v31 = vmul.f32 %v9402_v17, %v9402_v17  ;;  %v679_v36 = vmul.f32 %v9406_v24, %v9406_v24  ;;  %v680_v44 = vmul.f32 %v9410_v27, %v9410_v27  ;;  %v681_v32 = vmul.f32 %v9418_v7, %v9418_v7 }
 0x1ab   :  { %v682_v49 = vmul.f32 %v9422_v42, %v9422_v42  ;;  %v683_v54 = vmul.f32 %v9428_v41, %v9428_v41  ;;  %v684_v47 = vmul.f32 %v9434_v43, %v9434_v43  ;;  %v685_v52 = vmul.f32 %v9440_v2, %v9440_v2 }
 0x1ac   :  { %v742_v9 = vadd.f32 %v679_v36, %v678_v31  ;;  %v9446_v31 = vsub.f32 %v9237_v59, %v9398_v48 }
 0x1ae   :  { %v743_v39 = vadd.f32 %v742_v9, %v680_v44  ;;  %v9452_v44 = vsub.f32 %v9245_v0, %v9398_v48  ;;  %v686_v59 = vmul.f32 %v9446_v31, %v9446_v31 }
 0x1b0   :  { %v744_v61 = vadd.f32 %v743_v39, %v681_v32  ;;  %v9458_v32 = vsub.f32 %v9234_v57, %v9398_v48  ;;  %v687_v0 = vmul.f32 %v9452_v44, %v9452_v44 }
 0x1b2   :  { %v745_v12 = vadd.f32 %v744_v61, %v682_v49  ;;  %v9464_v49 = vsub.f32 %v9242_v62, %v9398_v48  ;;  %v688_v57 = vmul.f32 %v9458_v32, %v9458_v32 }
 0x1b4   :  { %v746_v36 = vadd.f32 %v745_v12, %v683_v54  ;;  %v9470_v54 = vsub.f32 %v9253_v5, %v9398_v48  ;;  %v689_v62 = vmul.f32 %v9464_v49, %v9464_v49 }
 0x1b6   :  { %v747_v9 = vadd.f32 %v746_v36, %v684_v47  ;;  %v9476_v47 = vsub.f32 %v9261_v10, %v9398_v48  ;;  %v690_v5 = vmul.f32 %v9470_v54, %v9470_v54 }
 0x1b8   :  { %v748_v39 = vadd.f32 %v747_v9, %v685_v52  ;;  %v9482_v52 = vsub.f32 %v9250_v3, %v9398_v48  ;;  %v691_v10 = vmul.f32 %v9476_v47, %v9476_v47 }
 0x1ba   :  { %v749_v61 = vadd.f32 %v748_v39, %v686_v59  ;;  %v9488_v59 = vsub.f32 %v9258_v8, %v9398_v48  ;;  %v692_v3 = vmul.f32 %v9482_v52, %v9482_v52 }
 0x1bc   :  { %v750_v12 = vadd.f32 %v749_v61, %v687_v0  ;;  %v9494_v0 = vsub.f32 %v9269_v15, %v9398_v48  ;;  %v693_v8 = vmul.f32 %v9488_v59, %v9488_v59 }
 0x1be   :  { %v751_v36 = vadd.f32 %v750_v12, %v688_v57  ;;  %v9500_v57 = vsub.f32 %v9277_v20, %v9398_v48  ;;  %v694_v15 = vmul.f32 %v9494_v0, %v9494_v0 }
 0x1c0   :  { %v752_v9 = vadd.f32 %v751_v36, %v689_v62  ;;  %v9506_v62 = vsub.f32 %v9266_v13, %v9398_v48  ;;  %v695_v20 = vmul.f32 %v9500_v57, %v9500_v57 }
 0x1c2   :  { %v753_v39 = vadd.f32 %v752_v9, %v690_v5  ;;  %v9512_v5 = vsub.f32 %v9274_v18, %v9398_v48  ;;  %v696_v13 = vmul.f32 %v9506_v62, %v9506_v62 }
 0x1c4   :  { %v754_v61 = vadd.f32 %v753_v39, %v691_v10  ;;  %v9518_v10 = vsub.f32 %v9285_v25, %v9398_v48  ;;  %v697_v18 = vmul.f32 %v9512_v5, %v9512_v5 }
 0x1c6   :  { %v755_v12 = vadd.f32 %v754_v61, %v692_v3  ;;  %v9524_v3 = vsub.f32 %v9293_v30, %v9398_v48  ;;  %v698_v25 = vmul.f32 %v9518_v10, %v9518_v10 }
 0x1c8   :  { %v756_v36 = vadd.f32 %v755_v12, %v693_v8  ;;  %v9530_v8 = vsub.f32 %v9282_v23, %v9398_v48  ;;  %v699_v30 = vmul.f32 %v9524_v3, %v9524_v3 }
 0x1ca   :  { %v757_v9 = vadd.f32 %v756_v36, %v694_v15  ;;  %v9536_v15 = vsub.f32 %v9290_v28, %v9398_v48  ;;  %v700_v23 = vmul.f32 %v9530_v8, %v9530_v8 }
 0x1cc   :  { %v758_v39 = vadd.f32 %v757_v9, %v695_v20  ;;  %v9542_v20 = vsub.f32 %v9301_v35, %v9398_v48  ;;  %v701_v28 = vmul.f32 %v9536_v15, %v9536_v15 }
 0x1ce   :  { %v759_v61 = vadd.f32 %v758_v39, %v696_v13  ;;  %v9548_v13 = vsub.f32 %v9309_v40, %v9398_v48  ;;  %v702_v35 = vmul.f32 %v9542_v20, %v9542_v20 }
 0x1d0   :  { %v760_v12 = vadd.f32 %v759_v61, %v697_v18  ;;  %v9554_v18 = vsub.f32 %v9298_v33, %v9398_v48  ;;  %v703_v40 = vmul.f32 %v9548_v13, %v9548_v13 }
 0x1d2   :  { %v761_v36 = vadd.f32 %v760_v12, %v698_v25  ;;  %v9560_v25 = vsub.f32 %v9306_v38, %v9398_v48  ;;  %v704_v33 = vmul.f32 %v9554_v18, %v9554_v18 }
 0x1d4   :  { %v762_v9 = vadd.f32 %v761_v36, %v699_v30  ;;  %v9566_v30 = vsub.f32 %v9317_v56, %v9398_v48  ;;  %v705_v38 = vmul.f32 %v9560_v25, %v9560_v25 }
 0x1d6   :  { %v763_v39 = vadd.f32 %v762_v9, %v700_v23  ;;  %v9572_v23 = vsub.f32 %v9325_v4, %v9398_v48  ;;  %v706_v56 = vmul.f32 %v9566_v30, %v9566_v30 }
 0x1d8   :  { %v764_v61 = vadd.f32 %v763_v39, %v701_v28  ;;  %v9578_v28 = vsub.f32 %v9314_v51, %v9398_v48  ;;  %v707_v4 = vmul.f32 %v9572_v23, %v9572_v23 }
 0x1da   :  { %v765_v12 = vadd.f32 %v764_v61, %v702_v35  ;;  %v9584_v35 = vsub.f32 %v9322_v63, %v9398_v48  ;;  %v708_v51 = vmul.f32 %v9578_v28, %v9578_v28 }
 0x1dc   :  { %v766_v36 = vadd.f32 %v765_v12, %v703_v40  ;;  %v9590_v40 = vsub.f32 %v9223_v50, %v9398_v48  ;;  %v709_v63 = vmul.f32 %v9584_v35, %v9584_v35 }
 0x1de   :  { %v767_v9 = vadd.f32 %v766_v36, %v704_v33  ;;  %v9596_v33 = vsub.f32 %v9239_v60, %v9398_v48  ;;  %v710_v50 = vmul.f32 %v9590_v40, %v9590_v40 }
 0x1e0   :  { %v768_v39 = vadd.f32 %v767_v9, %v705_v38  ;;  %v9602_v38 = vsub.f32 %v9214_v45, %v9398_v48  ;;  %v711_v60 = vmul.f32 %v9596_v33, %v9596_v33 }
 0x1e2   :  { %v769_v61 = vadd.f32 %v768_v39, %v706_v56  ;;  %v8749_v56 = vld [vmem:[#allocation8 + $0x78] sm:$0xff]   ;;  %v9608_v39 = vsub.f32 %v9231_v55, %v9398_v48  ;;  %v712_v45 = vmul.f32 %v9602_v38, %v9602_v38 }
 0x1e3   :  { %7915 = vmatprep.subr.bf16.mxu1 %v8749_v56 }
 0x1e4   :  { %v770_v12 = vadd.f32 %v769_v61, %v707_v4  ;;  %v9614_v61 = vsub.f32 %v9255_v6, %v9398_v48  ;;  %7916 = vmatpush3.bf16.msra.mxu1 %v8749_v56  ;;  %v713_v55 = vmul.f32 %v9608_v39, %v9608_v39  ;;  %v8751_v56 = vld [vmem:[#allocation8 + $0x68] sm:$0xff]  }
 0x1e6   :  { %v771_v36 = vadd.f32 %v770_v12, %v708_v51  ;;  %14555 = vst [vmem:[#allocation29_spill] sm:$0xff] %v9614_v61  ;;  %v8750_v12 = vld [vmem:[#allocation8 + $0x70] sm:$0xff]   ;;  %v714_v6 = vmul.f32 %v9614_v61, %v9614_v61 }
 0x1e7   :  { %7917 = vmatprep.subr.bf16.mxu1 %v8750_v12 }
 0x1e8   :  { %v772_v9 = vadd.f32 %v771_v36, %v709_v63  ;;  %v9620_v63 = vsub.f32 %v9271_v16, %v9398_v48  ;;  %7918 = vmatpush3.bf16.msra.mxu1 %v8750_v12  ;;  %v9632_v16 = vsub.f32 %v9263_v11, %v9398_v48  ;;  %v14558_v11 = vld [vmem:[#allocation17_spill] sm:$0xff] }
 0x1e9   :  { %7919 = vmatprep.subr.bf16.mxu1 %v8751_v56  ;;  %v9644_v61 = vsub.f32 %v14558_v11, %v9398_v48  ;;  %v14561_v11 = vld [vmem:[#allocation16_spill] sm:$0xff] }
 0x1ea   :  { %v773_v4 = vadd.f32 %v772_v9, %v710_v50  ;;  %v9626_v50 = vsub.f32 %v9247_v1, %v9398_v48  ;;  %v9638_v1 = vsub.f32 %v9287_v26, %v9398_v48  ;;  %v9650_v26 = vsub.f32 %v9279_v21, %v9398_v48 }
 0x1eb   :  { %14559 = vst [vmem:[#allocation17_spill] sm:$0xff] %v9644_v61  ;;  %v9662_v21 = vsub.f32 %v9319_v58, %v9398_v48  ;;  %v9674_v58 = vsub.f32 %v9311_v46, %v9398_v48  ;;  %v9686_v46 = vsub.f32 %v9339_v29, %v9398_v48  ;;  %v9698_v29 = vsub.f32 %v9335_v22, %v9398_v48 }
 0x1ec   :  { %v774_v51 = vadd.f32 %v773_v4, %v711_v60  ;;  %14556 = vst [vmem:[#allocation30_spill] sm:$0xff] %v9626_v50  ;;  %v8754_v60 = vld [vmem:[#allocation8 + $0x38] sm:$0xff]   ;;  %v715_v4 = vmul.f32 %v9620_v63, %v9620_v63  ;;  %14557 = vst [vmem:[#allocation31_spill] sm:$0xff] %v9638_v1  ;;  %7920 = vmatpush3.bf16.msra.mxu1 %v8751_v56  ;;  %v718_v56 = vmul.f32 %v9638_v1, %v9638_v1 }
 0x1ed   :  { %7995 = vmatprep.subr.bf16.mxu0 %v8754_v60  ;;  %14560 = vst [vmem:[#allocation32_spill] sm:$0xff] %v9650_v26  ;;  %14563 = vst [vmem:[#allocation33_spill] sm:$0xff] %v9662_v21 }
 0x1ee   :  { %v775_v36 = vadd.f32 %v774_v51, %v712_v45  ;;  %v716_v51 = vmul.f32 %v9626_v50, %v9626_v50  ;;  %7996 = vmatpush3.bf16.msra.mxu0 %v8754_v60  ;;  %v9656_v50 = vsub.f32 %v14561_v11, %v9398_v48  ;;  %v14564_v11 = vld [vmem:[#allocation19_spill] sm:$0xff]  ;;  %14566 = vst [vmem:[#allocation34_spill] sm:$0xff] %v9674_v58 }
 0x1ef   :  { %v9668_v1 = vsub.f32 %v14564_v11, %v9398_v48  ;;  %v14567_v11 = vld [vmem:[#allocation18_spill] sm:$0xff] }
 0x1f0   :  { %v776_v9 = vadd.f32 %v775_v36, %v713_v55  ;;  %v8752_v55 = vld [vmem:[#allocation8 + $0x60] sm:$0xff]   ;;  %v8755_v36 = vld [vmem:[#allocation8 + $0x30] sm:$0xff]   ;;  %14562 = vst [vmem:[#allocation16_spill] sm:$0xff] %v9656_v50 }
 0x1f1   :  { %7921 = vmatprep.subr.bf16.mxu1 %v8752_v55  ;;  %7997 = vmatprep.subr.bf16.mxu0 %v8755_v36  ;;  %14565 = vst [vmem:[#allocation19_spill] sm:$0xff] %v9668_v1 }
 0x1f2   :  { %v777_v45 = vadd.f32 %v776_v9, %v714_v6  ;;  %v717_v6 = vmul.f32 %v9632_v16, %v9632_v16  ;;  %7922 = vmatpush3.bf16.msra.mxu1 %v8752_v55  ;;  %7998 = vmatpush3.bf16.msra.mxu0 %v8755_v36  ;;  %v720_v55 = vmul.f32 %v9650_v26, %v9650_v26 }
 0x1f3   :  { %v9680_v26 = vsub.f32 %v14567_v11, %v9398_v48  ;;  %v14569_v11 = vld [vmem:[#allocation21_spill] sm:$0xff] }
 0x1f4   :  { %v778_v12 = vadd.f32 %v777_v45, %v715_v4  ;;  %v8753_v4 = vld [vmem:[#allocation8 + $0x58] sm:$0xff]   ;;  %v8757_v45 = vld [vmem:[#allocation8 + $0x28] sm:$0xff]  }
 0x1f5   :  { %7923 = vmatprep.subr.bf16.mxu1 %v8753_v4  ;;  %7999 = vmatprep.subr.bf16.mxu0 %v8757_v45  ;;  %14568 = vst [vmem:[#allocation18_spill] sm:$0xff] %v9680_v26 }
 0x1f6   :  { %v779_v9 = vadd.f32 %v778_v12, %v716_v51  ;;  %v719_v51 = vmul.f32 %v9644_v61, %v9644_v61  ;;  %7924 = vmatpush3.bf16.msra.mxu1 %v8753_v4  ;;  %8000 = vmatpush3.bf16.msra.mxu0 %v8757_v45  ;;  %v722_v4 = vmul.f32 %v9662_v21, %v9662_v21  ;;  %v14413_v61 = vmov 0.0|0.0  }
 0x1f7   :  { %v9692_v21 = vsub.f32 %v14569_v11, %v9398_v48  ;;  %v8763_v11 = vld [vmem:[#allocation8 + $0x8] sm:$0xff]   ;;  %8011 = vmatprep.mubr.bf16.mxu0 %v14413_v61 }
 0x1f8   :  { %v780_v60 = vadd.f32 %v779_v9, %v717_v6  ;;  %v8756_v6 = vld [vmem:[#allocation8 + $0x50] sm:$0xff]   ;;  %v8758_v9 = vld [vmem:[#allocation8 + $0x20] sm:$0xff]  }
 0x1f9   :  { %7925 = vmatprep.subr.bf16.mxu1 %v8756_v6  ;;  %8001 = vmatprep.subr.bf16.mxu0 %v8758_v9  ;;  %v727_v22 = vmul.f32 %v9692_v21, %v9692_v21 }
 0x1fa   :  { %v781_v12 = vadd.f32 %v780_v60, %v718_v56  ;;  %v721_v56 = vmul.f32 %v9656_v50, %v9656_v50  ;;  %7926 = vmatpush3.bf16.msra.mxu1 %v8756_v6  ;;  %8002 = vmatpush3.bf16.msra.mxu0 %v8758_v9  ;;  %v724_v6 = vmul.f32 %v9674_v58, %v9674_v58  ;;  %v1367_v58 = vld [vmem:[#allocation2 + $0x1] sm:$0xff]  ;;  %v9702_v50 = vld [vmem:[#allocation8 + $0xb8] sm:$0xff]  }
 0x1fb   :  { %14570 = vst [vmem:[#allocation21_spill] sm:$0xff] %v9702_v50 }
 0x1fc   :  { %v782_v36 = vadd.f32 %v781_v12, %v719_v51  ;;  %v8759_v51 = vld [vmem:[#allocation8 + $0x48] sm:$0xff]   ;;  %v8760_v12 = vld [vmem:[#allocation8 + $0x18] sm:$0xff]  }
 0x1fd   :  { %7927 = vmatprep.subr.bf16.mxu1 %v8759_v51  ;;  %8003 = vmatprep.subr.bf16.mxu0 %v8760_v12 }
 0x1fe   :  { %v783_v60 = vadd.f32 %v782_v36, %v720_v55  ;;  %v723_v55 = vmul.f32 %v9668_v1, %v9668_v1  ;;  %7928 = vmatpush3.bf16.msra.mxu1 %v8759_v51  ;;  %8004 = vmatpush3.bf16.msra.mxu0 %v8760_v12  ;;  %v726_v51 = vmul.f32 %v9686_v46, %v9686_v46  ;;  %v8764_v1 = vld [vmem:[#allocation8] sm:$0xff]  }
 0x200   :  { %v784_v45 = vadd.f32 %v783_v60, %v721_v56  ;;  %v8761_v56 = vld [vmem:[#allocation8 + $0x10] sm:$0xff]   ;;  %v8762_v60 = vld [vmem:[#allocation8 + $0x40] sm:$0xff]  }
 0x201   :  { %8005 = vmatprep.subr.bf16.mxu0 %v8761_v56  ;;  %7929 = vmatprep.subr.bf16.mxu1 %v8762_v60 }
 0x202   :  { %v785_v36 = vadd.f32 %v784_v45, %v722_v4  ;;  %v725_v4 = vmul.f32 %v9680_v26, %v9680_v26  ;;  %8006 = vmatpush3.bf16.msra.mxu0 %v8761_v56  ;;  %7930 = vmatpush3.bf16.msra.mxu1 %v8762_v60  ;;  %v14572_v56 = vld [vmem:[#allocation23_spill] sm:$0xff]  ;;  %v728_v60 = vmul.f32 %v9698_v29, %v9698_v29 }
 0x203   :  { %8007 = vmatprep.subr.bf16.mxu0 %v8763_v11  ;;  %8075 = vmatprep.subr.bf16.mxu1 %v9702_v50  ;;  %v14579_v50 = vld [vmem:[#allocation27_spill] sm:$0xff] }
 0x204   :  { %v786_v9 = vadd.f32 %v785_v36, %v723_v55  ;;  %v1368_v55 = vld [vmem:[#allocation2 + $0x9] sm:$0xff] }
 0x205   :  { %v1431_v36 = vpack.c.bf16 %v1368_v55, %v1367_v58  ;;  %v9713_v58 = vsub.f32 %v14572_v56, %v9398_v48 }
 0x206   :  { %v787_v45 = vadd.f32 %v786_v9, %v724_v6  ;;  %v14571_v6 = vld [vmem:[#allocation20_spill] sm:$0xff]  ;;  %8008 = vmatpush3.bf16.msra.mxu0 %v8763_v11 }
 0x207   :  { %v9706_v9 = vsub.f32 %v14571_v6, %v9398_v48  ;;  %7931 = vmatprep.mubr.bf16.mxu1 %v1431_v36  ;;  %14573 = vst [vmem:[#allocation20_spill] sm:$0xff] %v9713_v58  ;;  %8009 = vmatprep.subr.bf16.mxu0 %v8764_v1  ;;  %v14576_v36 = vld [vmem:[#allocation22_spill] sm:$0xff]  ;;  %v730_v56 = vmul.f32 %v9713_v58, %v9713_v58  ;;  %v14577_v11 = vld [vmem:[#allocation24_spill] sm:$0xff] }
 0x208   :  { %v788_v12 = vadd.f32 %v787_v45, %v725_v4  ;;  %v14574_v45 = vld [vmem:[#allocation25_spill] sm:$0xff]  ;;  %v9726_v6 = vsub.f32 %v14576_v36, %v9398_v48  ;;  %v14581_v58 = vld [vmem:[#allocation28_spill] sm:$0xff] }
 0x209   :  { %v9720_v55 = vsub.f32 %v14574_v45, %v9398_v48 }
 0x20a   :  { %v789_v26 = vadd.f32 %v788_v12, %v726_v51  ;;  %v729_v51 = vmul.f32 %v9706_v9, %v9706_v9  ;;  %8010 = vmatpush3.bf16.msra.mxu0 %v8764_v1 }
 0x20b   :  { %14575 = vst [vmem:[#allocation23_spill] sm:$0xff] %v9720_v55  ;;  %v731_v45 = vmul.f32 %v9720_v55, %v9720_v55 }
 0x20c   :  { %v790_v4 = vadd.f32 %v789_v26, %v727_v22  ;;  %v9732_v22 = vsub.f32 %v14577_v11, %v9398_v48  ;;  %v14583_v11 = vld [vmem:[#allocation26_spill] sm:$0xff] }
 0x20d   :  { %v9750_v55 = vsub.f32 %v14583_v11, %v9398_v48  ;;  %v675_v11 = vsub.f32 %v9393_v34, %v9398_v48 }
 0x20e   :  { %v791_v12 = vadd.f32 %v790_v4, %v728_v60  ;;  %14578 = vst [vmem:[#allocation25_spill] sm:$0xff] %v9732_v22  ;;  %v9738_v60 = vsub.f32 %v14579_v50, %v9398_v48  ;;  %v732_v4 = vmul.f32 %v9726_v6, %v9726_v6  ;;  %v733_v1 = vmul.f32 %v9732_v22, %v9732_v22 }
 0x20f   :  { %14584 = vst [vmem:[#allocation27_spill] sm:$0xff] %v9750_v55 }
 0x210   :  { %v792_v26 = vadd.f32 %v791_v12, %v729_v51  ;;  %14580 = vst [vmem:[#allocation22_spill] sm:$0xff] %v9738_v60  ;;  %v9744_v51 = vsub.f32 %v14581_v58, %v9398_v48  ;;  %v734_v50 = vmul.f32 %v9738_v60, %v9738_v60 }
 0x212   :  { %v793_v61 = vadd.f32 %v792_v26, %v730_v56  ;;  %14582 = vst [vmem:[#allocation24_spill] sm:$0xff] %v9744_v51  ;;  %v9756_v26 = vsub.f32 %v9375_v14, %v9398_v48 }
 0x214   :  { %v794_v36 = vadd.f32 %v793_v61, %v731_v45  ;;  %14585 = vst [vmem:[#allocation28_spill] sm:$0xff] %v9756_v26  ;;  %v735_v61 = vmul.f32 %v9744_v51, %v9744_v51  ;;  %v9762_v45 = vsub.f32 %v9387_v37, %v9398_v48 }
 0x216   :  { %v795_v12 = vadd.f32 %v794_v36, %v732_v4  ;;  %14586 = vst [vmem:[#allocation26_spill] sm:$0xff] %v9762_v45  ;;  %v736_v4 = vmul.f32 %v9750_v55, %v9750_v55 }
 0x218   :  { %v796_v56 = vadd.f32 %v795_v12, %v733_v1  ;;  %v737_v1 = vmul.f32 %v9756_v26, %v9756_v26  ;;  %v9772_v12 = vsub.f32 %v9383_v53, %v9398_v48 }
 0x21a   :  { %v797_v58 = vadd.f32 %v796_v56, %v734_v50  ;;  %v738_v50 = vmul.f32 %v9762_v45, %v9762_v45  ;;  %v9778_v56 = vsub.f32 %v9390_v19, %v9398_v48  ;;  %v740_v34 = vmul.f32 %v9772_v12, %v9772_v12 }
 0x21c   :  { %v798_v36 = vadd.f32 %v797_v58, %v735_v61  ;;  %v739_v61 = vmul.f32 %v675_v11, %v675_v11 }
 0x21e   :  { %v799_v14 = vadd.f32 %v798_v36, %v736_v4  ;;  %v741_v4 = vmul.f32 %v9778_v56, %v9778_v56 }
 0x220   :  { %v800_v37 = vadd.f32 %v799_v14, %v737_v1 }
 0x222   :  { %v801_v58 = vadd.f32 %v800_v37, %v738_v50  ;;  %v9789_v50 = vld [vmem:[%s14383_s4] ss:$0 sm:$0xff] }
 0x224   :  { %v802_v55 = vadd.f32 %v801_v58, %v739_v61 }
 0x226   :  { %v803_v36 = vadd.f32 %v802_v55, %v740_v34  ;;  %v14588_v34 = vld [vmem:[#allocation29_spill] sm:$0xff] }
 0x228   :  { %v804_v53 = vadd.f32 %v803_v36, %v741_v4  ;;  %v14589_v4 = vld [vmem:[#allocation30_spill] sm:$0xff]  ;;  %v14590_v36 = vld [vmem:[#allocation31_spill] sm:$0xff] }
 0x22a   :  { %v805_v26 = vrot.slane %v804_v53, 4 }
 0x22c   :  { %v806_v51 = vadd.f32 %v805_v26, %v804_v53  ;;  %v14591_v53 = vld [vmem:[#allocation17_spill] sm:$0xff] }
 0x22e   :  { %v807_v60 = vrot.slane %v806_v51, 2 }
 0x230   :  { %v808_v45 = vadd.f32 %v807_v60, %v806_v51  ;;  %v9807_v51 = vld [vmem:[%s14384_s5] ss:$0 sm:$0xff] }
 0x231   :  { %14587 = vst [vmem:[#allocation35_spill] sm:$0xff] %v9807_v51 }
 0x232   :  { %v809_v1 = vrot.slane %v808_v45, 1 }
 0x234   :  { %v810_v14 = vadd.f32 %v809_v1, %v808_v45 }
 0x236   :  { %v811_v22 = vmul.f32 0.001953125, %v810_v14  ;;  %v14592_v14 = vld [vmem:[#allocation32_spill] sm:$0xff] }
 0x238   :  { %v812_v19 = vadd.f32 1e-05, %v811_v22 }
 0x23a   :  { %8829 = vrsqrt.f32 %v812_v19  ;;  %v14593_v19 = vld [vmem:[#allocation16_spill] sm:$0xff] }
 0x247   :  { %v9784_v48 = vpop.eup %8829 }
 0x248   :  { %v875_v37 = vmul.f32 %v9784_v48, %v675_v11  ;;  %v9794_v55 = vmul.f32 %v9784_v48, %v9402_v17  ;;  %v9798_v60 = vmul.f32 %v9784_v48, %v9406_v24  ;;  %v9802_v22 = vmul.f32 %v9784_v48, %v9410_v27 }
 0x249   :  { %v9811_v26 = vmul.f32 %v9784_v48, %v9418_v7  ;;  %v9815_v17 = vmul.f32 %v9784_v48, %v9422_v42  ;;  %v9819_v24 = vmul.f32 %v9784_v48, %v9428_v41  ;;  %v9823_v27 = vmul.f32 %v9784_v48, %v9434_v43 }
 0x24a   :  { %v945_v45 = vmul.f32 %v9789_v50, %v875_v37  ;;  %v9828_v11 = vmul.f32 %v9784_v48, %v9440_v2  ;;  %v9832_v7 = vmul.f32 %v9784_v48, %v9446_v31  ;;  %v9836_v42 = vmul.f32 %v9784_v48, %v9452_v44 }
 0x24b   :  { %v9840_v41 = vmul.f32 %v9784_v48, %v9458_v32  ;;  %v9844_v43 = vmul.f32 %v9784_v48, %v9464_v49  ;;  %v9848_v2 = vmul.f32 %v9784_v48, %v9470_v54  ;;  %v9852_v31 = vmul.f32 %v9784_v48, %v9476_v47 }
 0x24c   :  { %v1015_v61 = vadd.f32 %v9807_v51, %v945_v45  ;;  %v9857_v44 = vmul.f32 %v9784_v48, %v9482_v52  ;;  %v9861_v32 = vmul.f32 %v9784_v48, %v9488_v59  ;;  %v9865_v49 = vmul.f32 %v9784_v48, %v9494_v0  ;;  %v14594_v45 = vld [vmem:[#allocation33_spill] sm:$0xff]  ;;  %v14603_v51 = vld [vmem:[#allocation23_spill] sm:$0xff] }
 0x24d   :  { %v9869_v54 = vmul.f32 %v9784_v48, %v9500_v57  ;;  %v9873_v47 = vmul.f32 %v9784_v48, %v9506_v62  ;;  %v9877_v52 = vmul.f32 %v9784_v48, %v9512_v5  ;;  %v9881_v59 = vmul.f32 %v9784_v48, %v9518_v10 }
 0x24e   :  { %v1079_v58 = vmax.f32 %v1015_v61, 0.0  ;;  %v9885_v0 = vmul.f32 %v9784_v48, %v9524_v3  ;;  %v9889_v57 = vmul.f32 %v9784_v48, %v9530_v8  ;;  %v9893_v62 = vmul.f32 %v9784_v48, %v9536_v15  ;;  %v14595_v61 = vld [vmem:[#allocation19_spill] sm:$0xff] }
 0x24f   :  { %v9897_v5 = vmul.f32 %v9784_v48, %v9542_v20  ;;  %v9901_v10 = vmul.f32 %v9784_v48, %v9548_v13  ;;  %v9905_v3 = vmul.f32 %v9784_v48, %v9554_v18  ;;  %v9909_v8 = vmul.f32 %v9784_v48, %v9560_v25 }
 0x250   :  { %1252 = vst [vmem:[#allocation2 + $0x321] sm:$0xff] %v1079_v58  ;;  %v9913_v15 = vmul.f32 %v9784_v48, %v9566_v30  ;;  %v9917_v20 = vmul.f32 %v9784_v48, %v9572_v23  ;;  %v9921_v13 = vmul.f32 %v9784_v48, %v9578_v28  ;;  %v9925_v18 = vmul.f32 %v9784_v48, %v9584_v35 }
 0x251   :  { %v9929_v25 = vmul.f32 %v9784_v48, %v9590_v40  ;;  %v9933_v30 = vmul.f32 %v9784_v48, %v9596_v33  ;;  %v9937_v23 = vmul.f32 %v9784_v48, %v9602_v38  ;;  %v9941_v28 = vmul.f32 %v9784_v48, %v9608_v39 }
 0x252   :  { %v9945_v35 = vmul.f32 %v9784_v48, %v14588_v34  ;;  %v9949_v40 = vmul.f32 %v9784_v48, %v9620_v63  ;;  %v9953_v33 = vmul.f32 %v9784_v48, %v14589_v4  ;;  %v9957_v38 = vmul.f32 %v9784_v48, %v9632_v16  ;;  %v14596_v34 = vld [vmem:[#allocation34_spill] sm:$0xff] }
 0x253   :  { %v9961_v39 = vmul.f32 %v9784_v48, %v14590_v36  ;;  %v9965_v1 = vmul.f32 %v9784_v48, %v14591_v53  ;;  %v9969_v63 = vmul.f32 %v9784_v48, %v14592_v14  ;;  %v9973_v37 = vmul.f32 %v9784_v48, %v14593_v19  ;;  %v14597_v36 = vld [vmem:[#allocation18_spill] sm:$0xff] }
 0x254   :  { %v9977_v16 = vmul.f32 %v9784_v48, %v14594_v45  ;;  %v9981_v58 = vmul.f32 %v9784_v48, %v14595_v61  ;;  %v9985_v4 = vmul.f32 %v9784_v48, %v14596_v34  ;;  %v9989_v53 = vmul.f32 %v9784_v48, %v14597_v36  ;;  %v14601_v34 = vld [vmem:[#allocation20_spill] sm:$0xff] }
 0x255   :  { %v9993_v14 = vmul.f32 %v9784_v48, %v9686_v46  ;;  %v9997_v19 = vmul.f32 %v9784_v48, %v9692_v21  ;;  %v10001_v45 = vmul.f32 %v9784_v48, %v9698_v29  ;;  %v10005_v61 = vmul.f32 %v9784_v48, %v9706_v9 }
 0x256   :  { %v10009_v36 = vmul.f32 %v9784_v48, %v14601_v34  ;;  %v10013_v46 = vmul.f32 %v9784_v48, %v14603_v51  ;;  %v10017_v21 = vmul.f32 %v9784_v48, %v9726_v6 }
 0x257   :  { %14598 = vst [vmem:[#allocation29_spill] sm:$0xff] %v9997_v19  ;;  %14599 = vst [vmem:[#allocation30_spill] sm:$0xff] %v10001_v45  ;;  %v14606_v19 = vld [vmem:[#allocation25_spill] sm:$0xff]  ;;  %v14607_v45 = vld [vmem:[#allocation22_spill] sm:$0xff] }
 0x258   :  { %14600 = vst [vmem:[#allocation31_spill] sm:$0xff] %v10005_v61  ;;  %14602 = vst [vmem:[#allocation17_spill] sm:$0xff] %v10009_v36  ;;  %v10021_v29 = vmul.f32 %v9784_v48, %v14606_v19  ;;  %v10025_v9 = vmul.f32 %v9784_v48, %v14607_v45  ;;  %v14608_v61 = vld [vmem:[#allocation24_spill] sm:$0xff]  ;;  %v14609_v36 = vld [vmem:[#allocation27_spill] sm:$0xff]  ;;  %v10045_v45 = vmul.f32 %v9784_v48, %v9772_v12 }
 0x259   :  { %14604 = vst [vmem:[#allocation32_spill] sm:$0xff] %v10013_v46  ;;  %14605 = vst [vmem:[#allocation16_spill] sm:$0xff] %v10017_v21  ;;  %v10029_v34 = vmul.f32 %v9784_v48, %v14608_v61  ;;  %v10033_v51 = vmul.f32 %v9784_v48, %v14609_v36  ;;  %v14610_v46 = vld [vmem:[#allocation28_spill] sm:$0xff]  ;;  %v14611_v21 = vld [vmem:[#allocation26_spill] sm:$0xff]  ;;  %v10049_v61 = vmul.f32 %v9784_v48, %v9778_v56 }
 0x25a   :  { %v10037_v6 = vmul.f32 %v9784_v48, %v14610_v46  ;;  %v10041_v19 = vmul.f32 %v9784_v48, %v14611_v21  ;;  %v10053_v36 = vmul.f32 %v9789_v50, %v9794_v55  ;;  %v10057_v46 = vmul.f32 %v9789_v50, %v9798_v60 }
 0x25b   :  { %v10061_v21 = vmul.f32 %v9789_v50, %v9802_v22  ;;  %v10065_v12 = vmul.f32 %v9789_v50, %v9811_v26  ;;  %v10069_v56 = vmul.f32 %v9789_v50, %v9815_v17  ;;  %v10073_v48 = vmul.f32 %v9789_v50, %v9819_v24 }
 0x25c   :  { %v10077_v55 = vmul.f32 %v9789_v50, %v9823_v27  ;;  %v10081_v60 = vmul.f32 %v9789_v50, %v9828_v11  ;;  %v10085_v22 = vmul.f32 %v9789_v50, %v9832_v7  ;;  %v10089_v26 = vmul.f32 %v9789_v50, %v9836_v42 }
 0x25d   :  { %v10093_v17 = vmul.f32 %v9789_v50, %v9840_v41  ;;  %v10097_v24 = vmul.f32 %v9789_v50, %v9844_v43  ;;  %v10101_v27 = vmul.f32 %v9789_v50, %v9848_v2  ;;  %v10105_v11 = vmul.f32 %v9789_v50, %v9852_v31 }
 0x25e   :  { %v10109_v7 = vmul.f32 %v9789_v50, %v9857_v44  ;;  %v10113_v42 = vmul.f32 %v9789_v50, %v9861_v32  ;;  %v10117_v41 = vmul.f32 %v9789_v50, %v9865_v49  ;;  %v10121_v43 = vmul.f32 %v9789_v50, %v9869_v54 }
 0x25f   :  { %v10125_v2 = vmul.f32 %v9789_v50, %v9873_v47  ;;  %v10129_v31 = vmul.f32 %v9789_v50, %v9877_v52  ;;  %v10133_v44 = vmul.f32 %v9789_v50, %v9881_v59  ;;  %v10137_v32 = vmul.f32 %v9789_v50, %v9885_v0 }
 0x260   :  { %v10141_v49 = vmul.f32 %v9789_v50, %v9889_v57  ;;  %v10145_v54 = vmul.f32 %v9789_v50, %v9893_v62  ;;  %v10149_v47 = vmul.f32 %v9789_v50, %v9897_v5  ;;  %v10153_v52 = vmul.f32 %v9789_v50, %v9901_v10 }
 0x261   :  { %v10157_v59 = vmul.f32 %v9789_v50, %v9905_v3  ;;  %v10161_v0 = vmul.f32 %v9789_v50, %v9909_v8  ;;  %v10165_v57 = vmul.f32 %v9789_v50, %v9913_v15  ;;  %v10169_v62 = vmul.f32 %v9789_v50, %v9917_v20 }
 0x262   :  { %v10173_v5 = vmul.f32 %v9789_v50, %v9921_v13  ;;  %v10177_v10 = vmul.f32 %v9789_v50, %v9925_v18  ;;  %v10181_v3 = vmul.f32 %v9789_v50, %v9929_v25  ;;  %v10185_v8 = vmul.f32 %v9789_v50, %v9933_v30 }
 0x263   :  { %v10189_v15 = vmul.f32 %v9789_v50, %v9937_v23  ;;  %v10193_v20 = vmul.f32 %v9789_v50, %v9941_v28  ;;  %v10197_v13 = vmul.f32 %v9789_v50, %v9945_v35  ;;  %v10201_v18 = vmul.f32 %v9789_v50, %v9949_v40 }
 0x264   :  { %v10205_v25 = vmul.f32 %v9789_v50, %v9953_v33  ;;  %v10209_v30 = vmul.f32 %v9789_v50, %v9957_v38  ;;  %v10213_v23 = vmul.f32 %v9789_v50, %v9961_v39  ;;  %v10217_v28 = vmul.f32 %v9789_v50, %v9965_v1 }
 0x265   :  { %v10221_v35 = vmul.f32 %v9789_v50, %v9969_v63  ;;  %v10225_v40 = vmul.f32 %v9789_v50, %v9973_v37  ;;  %v10229_v33 = vmul.f32 %v9789_v50, %v9977_v16  ;;  %v10233_v38 = vmul.f32 %v9789_v50, %v9981_v58  ;;  %v14617_v37 = vld [vmem:[#allocation29_spill] sm:$0xff] }
 0x266   :  { %v10237_v39 = vmul.f32 %v9789_v50, %v9985_v4  ;;  %v10241_v1 = vmul.f32 %v9789_v50, %v9989_v53  ;;  %v10245_v63 = vmul.f32 %v9789_v50, %v9993_v14  ;;  %v10249_v16 = vmul.f32 %v9789_v50, %v14617_v37 }
 0x267   :  { %14612 = vst [vmem:[#allocation33_spill] sm:$0xff] %v10229_v33  ;;  %14613 = vst [vmem:[#allocation19_spill] sm:$0xff] %v10233_v38  ;;  %v14618_v33 = vld [vmem:[#allocation30_spill] sm:$0xff]  ;;  %v14619_v38 = vld [vmem:[#allocation31_spill] sm:$0xff] }
 0x268   :  { %14614 = vst [vmem:[#allocation34_spill] sm:$0xff] %v10237_v39  ;;  %14615 = vst [vmem:[#allocation18_spill] sm:$0xff] %v10241_v1  ;;  %v10253_v58 = vmul.f32 %v9789_v50, %v14618_v33  ;;  %v10257_v4 = vmul.f32 %v9789_v50, %v14619_v38  ;;  %v14620_v39 = vld [vmem:[#allocation17_spill] sm:$0xff]  ;;  %v14621_v1 = vld [vmem:[#allocation32_spill] sm:$0xff]  ;;  %v10273_v33 = vmul.f32 %v9789_v50, %v10021_v29 }
 0x269   :  { %14616 = vst [vmem:[#allocation20_spill] sm:$0xff] %v10245_v63  ;;  %v10261_v53 = vmul.f32 %v9789_v50, %v14620_v39  ;;  %v10265_v14 = vmul.f32 %v9789_v50, %v14621_v1  ;;  %v14622_v63 = vld [vmem:[#allocation16_spill] sm:$0xff]  ;;  %v10277_v38 = vmul.f32 %v9789_v50, %v10025_v9  ;;  %v10281_v39 = vmul.f32 %v9789_v50, %v10029_v34 }
 0x26a   :  { %v10269_v37 = vmul.f32 %v9789_v50, %v14622_v63  ;;  %v10285_v1 = vmul.f32 %v9789_v50, %v10033_v51  ;;  %v10289_v63 = vmul.f32 %v9789_v50, %v10037_v6  ;;  %v10293_v29 = vmul.f32 %v9789_v50, %v10041_v19 }
 0x26b   :  { %14623 = vst [vmem:[#allocation23_spill] sm:$0xff] %v10281_v39  ;;  %v10297_v9 = vmul.f32 %v9789_v50, %v10045_v45  ;;  %v10301_v34 = vmul.f32 %v9789_v50, %v10049_v61  ;;  %v14624_v39 = vld [vmem:[#allocation35_spill] sm:$0xff] }
 0x26c   :  { %v10305_v51 = vadd.f32 %v14624_v39, %v10053_v36  ;;  %v10309_v6 = vadd.f32 %v14624_v39, %v10057_v46  ;;  %v10313_v19 = vadd.f32 %v14624_v39, %v10061_v21  ;;  %v10317_v45 = vadd.f32 %v14624_v39, %v10065_v12 }
 0x26d   :  { %v10321_v50 = vadd.f32 %v14624_v39, %v10069_v56  ;;  %v10325_v61 = vadd.f32 %v14624_v39, %v10073_v48  ;;  %v10329_v36 = vadd.f32 %v14624_v39, %v10077_v55  ;;  %v10333_v46 = vadd.f32 %v14624_v39, %v10081_v60  ;;  %v10343_v56 = vld [vmem:[#allocation8 + $0xf8] sm:$0xff]  }
 0x26e   :  { %v10337_v21 = vadd.f32 %v14624_v39, %v10085_v22  ;;  %v10341_v12 = vadd.f32 %v14624_v39, %v10089_v26  ;;  %14625 = vst [vmem:[#allocation25_spill] sm:$0xff] %v10343_v56  ;;  %v10347_v48 = vadd.f32 %v14624_v39, %v10093_v17  ;;  %v10351_v55 = vadd.f32 %v14624_v39, %v10097_v24 }
 0x26f   :  { %v10355_v60 = vadd.f32 %v14624_v39, %v10101_v27  ;;  %v10359_v22 = vadd.f32 %v14624_v39, %v10105_v11  ;;  %v10363_v26 = vadd.f32 %v14624_v39, %v10109_v7  ;;  %v10367_v17 = vadd.f32 %v14624_v39, %v10113_v42  ;;  %8155 = vmatprep.subr.bf16.mxu0 %v10343_v56  ;;  %v14642_v56 = vld [vmem:[#allocation33_spill] sm:$0xff] }
 0x270   :  { %v10371_v24 = vadd.f32 %v14624_v39, %v10117_v41  ;;  %v10375_v27 = vadd.f32 %v14624_v39, %v10121_v43  ;;  %v10380_v11 = vadd.f32 %v14624_v39, %v10125_v2  ;;  %v10384_v7 = vadd.f32 %v14624_v39, %v10129_v31 }
 0x271   :  { %v10388_v42 = vadd.f32 %v14624_v39, %v10133_v44  ;;  %v10392_v41 = vadd.f32 %v14624_v39, %v10137_v32  ;;  %v10396_v43 = vadd.f32 %v14624_v39, %v10141_v49  ;;  %v10400_v2 = vadd.f32 %v14624_v39, %v10145_v54 }
 0x272   :  { %14626 = vst [vmem:[#allocation22_spill] sm:$0xff] %v10371_v24  ;;  %14627 = vst [vmem:[#allocation24_spill] sm:$0xff] %v10375_v27  ;;  %v10404_v31 = vadd.f32 %v14624_v39, %v10149_v47  ;;  %v10408_v44 = vadd.f32 %v14624_v39, %v10153_v52  ;;  %v10412_v32 = vadd.f32 %v14624_v39, %v10157_v59 }
 0x273   :  { %14628 = vst [vmem:[#allocation27_spill] sm:$0xff] %v10380_v11  ;;  %14629 = vst [vmem:[#allocation28_spill] sm:$0xff] %v10384_v7  ;;  %v10416_v49 = vadd.f32 %v14624_v39, %v10161_v0  ;;  %v10420_v54 = vadd.f32 %v14624_v39, %v10165_v57  ;;  %v10424_v47 = vadd.f32 %v14624_v39, %v10169_v62 }
 0x274   :  { %14630 = vst [vmem:[#allocation26_spill] sm:$0xff] %v10388_v42  ;;  %14631 = vst [vmem:[#allocation29_spill] sm:$0xff] %v10392_v41  ;;  %v10428_v52 = vadd.f32 %v14624_v39, %v10173_v5  ;;  %v10432_v59 = vadd.f32 %v14624_v39, %v10177_v10  ;;  %v10436_v0 = vadd.f32 %v14624_v39, %v10181_v3 }
 0x275   :  { %14632 = vst [vmem:[#allocation30_spill] sm:$0xff] %v10396_v43  ;;  %14633 = vst [vmem:[#allocation31_spill] sm:$0xff] %v10400_v2  ;;  %v10440_v57 = vadd.f32 %v14624_v39, %v10185_v8  ;;  %v10444_v62 = vadd.f32 %v14624_v39, %v10189_v15  ;;  %v10448_v5 = vadd.f32 %v14624_v39, %v10193_v20 }
 0x276   :  { %14634 = vst [vmem:[#allocation17_spill] sm:$0xff] %v10404_v31  ;;  %14635 = vst [vmem:[#allocation32_spill] sm:$0xff] %v10408_v44  ;;  %v10452_v10 = vadd.f32 %v14624_v39, %v10197_v13  ;;  %v10456_v3 = vadd.f32 %v14624_v39, %v10201_v18  ;;  %v10460_v8 = vadd.f32 %v14624_v39, %v10205_v25 }
 0x277   :  { %14636 = vst [vmem:[#allocation16_spill] sm:$0xff] %v10412_v32  ;;  %14637 = vst [vmem:[#allocation35_spill] sm:$0xff] %v10416_v49  ;;  %v10464_v15 = vadd.f32 %v14624_v39, %v10209_v30  ;;  %v10468_v20 = vadd.f32 %v14624_v39, %v10213_v23  ;;  %v10472_v13 = vadd.f32 %v14624_v39, %v10217_v28 }
 0x278   :  { %v10476_v18 = vadd.f32 %v14624_v39, %v10221_v35  ;;  %v10480_v25 = vadd.f32 %v14624_v39, %v10225_v40  ;;  %v10484_v30 = vadd.f32 %v14624_v39, %v14642_v56  ;;  %v10504_v56 = vadd.f32 %v14624_v39, %v10249_v16 }
 0x279   :  { %14638 = vst [vmem:[#allocation36_spill] sm:$0xff] %v10464_v15  ;;  %14639 = vst [vmem:[#allocation37_spill] sm:$0xff] %v10468_v20  ;;  %v14643_v15 = vld [vmem:[#allocation19_spill] sm:$0xff]  ;;  %v14644_v20 = vld [vmem:[#allocation34_spill] sm:$0xff]  ;;  %v10524_v16 = vadd.f32 %v14624_v39, %v10269_v37  ;;  %v10544_v37 = vadd.f32 %v14624_v39, %v10289_v63  ;;  %v14438_v63 = vmax.f32 %v10317_v45, 0.0 }
 0x27a   :  { %14640 = vst [vmem:[#allocation38_spill] sm:$0xff] %v10472_v13  ;;  %14641 = vst [vmem:[#allocation39_spill] sm:$0xff] %v10476_v18  ;;  %v10488_v23 = vadd.f32 %v14624_v39, %v14643_v15  ;;  %v10492_v28 = vadd.f32 %v14624_v39, %v14644_v20  ;;  %v14645_v13 = vld [vmem:[#allocation18_spill] sm:$0xff]  ;;  %v14646_v18 = vld [vmem:[#allocation20_spill] sm:$0xff]  ;;  %v10508_v15 = vadd.f32 %v14624_v39, %v10253_v58 }
 0x27b   :  { %v10496_v35 = vadd.f32 %v14624_v39, %v14645_v13  ;;  %v10500_v40 = vadd.f32 %v14624_v39, %v14646_v18  ;;  %v10512_v20 = vadd.f32 %v14624_v39, %v10257_v4  ;;  %v10516_v13 = vadd.f32 %v14624_v39, %v10261_v53  ;;  %14651 = vst [vmem:[#allocation18_spill] sm:$0xff] %v10544_v37 }
 0x27c   :  { %v10520_v18 = vadd.f32 %v14624_v39, %v10265_v14  ;;  %v10528_v58 = vadd.f32 %v14624_v39, %v10273_v33  ;;  %v10532_v4 = vadd.f32 %v14624_v39, %v10277_v38  ;;  %v10540_v14 = vadd.f32 %v14624_v39, %v10285_v1  ;;  %1194 = vst [vmem:[#allocation2 + $0x39] sm:$0xff] %v14438_v63 }
 0x27d   :  { %14647 = vst [vmem:[#allocation33_spill] sm:$0xff] %v10512_v20  ;;  %v14648_v20 = vld [vmem:[#allocation23_spill] sm:$0xff]  ;;  %v10548_v33 = vadd.f32 %v14624_v39, %v10293_v29  ;;  %v10552_v38 = vadd.f32 %v14624_v39, %v10297_v9  ;;  %v14436_v1 = vmax.f32 %v10309_v6, 0.0  ;;  %v14439_v37 = vmax.f32 %v10321_v50, 0.0 }
 0x27e   :  { %v10536_v53 = vadd.f32 %v14624_v39, %v14648_v20  ;;  %14650 = vst [vmem:[#allocation34_spill] sm:$0xff] %v10540_v14  ;;  %v10556_v20 = vadd.f32 %v14624_v39, %v10301_v34  ;;  %v14437_v14 = vmax.f32 %v10313_v19, 0.0  ;;  %v14440_v39 = vmax.f32 %v10341_v12, 0.0 }
 0x27f   :  { %14652 = vst [vmem:[#allocation20_spill] sm:$0xff] %v10548_v33  ;;  %14653 = vst [vmem:[#allocation23_spill] sm:$0xff] %v10552_v38  ;;  %v14441_v34 = vmax.f32 %v10347_v48, 0.0  ;;  %v14443_v33 = vmax.f32 %v10371_v24, 0.0  ;;  %v14656_v29 = vmax.f32 %v10333_v46, 0.0  ;;  %v14657_v63 = vmax.f32 %v10337_v21, 0.0 }
 0x280   :  { %14649 = vst [vmem:[#allocation19_spill] sm:$0xff] %v10536_v53  ;;  %v14435_v53 = vmax.f32 %v10305_v51, 0.0  ;;  %1192 = vst [vmem:[#allocation2 + $0x21] sm:$0xff] %v14436_v1  ;;  %v14655_v1 = vmax.f32 %v10329_v36, 0.0  ;;  %v14658_v9 = vmax.f32 %v10351_v55, 0.0  ;;  %v1048_v38 = vmax.f32 %v10428_v52, 0.0 }
 0x281   :  { %1193 = vst [vmem:[#allocation2 + $0x31] sm:$0xff] %v14437_v14  ;;  %1195 = vst [vmem:[#allocation2 + $0x49] sm:$0xff] %v14439_v37  ;;  %v14442_v14 = vmax.f32 %v10367_v17, 0.0  ;;  %v14672_v37 = vld [vmem:[#allocation37_spill] sm:$0xff]  ;;  %v14675_v52 = vmax.f32 %v10436_v0, 0.0 }
 0x282   :  { %1191 = vst [vmem:[#allocation2 + $0x19] sm:$0xff] %v14435_v53  ;;  %v14654_v53 = vmax.f32 %v10325_v61, 0.0  ;;  %1197 = vst [vmem:[#allocation2 + $0x61] sm:$0xff] %v14655_v1  ;;  %v14446_v1 = vmax.f32 %v10404_v31, 0.0 }
 0x283   :  { %1198 = vst [vmem:[#allocation2 + $0x69] sm:$0xff] %v14656_v29  ;;  %1199 = vst [vmem:[#allocation2 + $0x79] sm:$0xff] %v14657_v63  ;;  %v14659_v29 = vmax.f32 %v10355_v60, 0.0  ;;  %v14660_v63 = vmax.f32 %v10359_v22, 0.0 }
 0x284   :  { %1196 = vst [vmem:[#allocation2 + $0x51] sm:$0xff] %v14654_v53  ;;  %1200 = vst [vmem:[#allocation2 + $0x81] sm:$0xff] %v14440_v39  ;;  %v14444_v53 = vmax.f32 %v10384_v7, 0.0  ;;  %v14661_v39 = vmax.f32 %v10363_v26, 0.0 }
 0x285   :  { %1201 = vst [vmem:[#allocation2 + $0x91] sm:$0xff] %v14441_v34  ;;  %1202 = vst [vmem:[#allocation2 + $0x99] sm:$0xff] %v14658_v9  ;;  %v14445_v34 = vmax.f32 %v10400_v2, 0.0  ;;  %v14662_v9 = vmax.f32 %v10375_v27, 0.0  ;;  %v14691_v2 = vld [vmem:[#allocation34_spill] sm:$0xff] }
 0x286   :  { %1203 = vst [vmem:[#allocation2 + $0xa9] sm:$0xff] %v14659_v29  ;;  %1204 = vst [vmem:[#allocation2 + $0xb1] sm:$0xff] %v14660_v63  ;;  %v14663_v29 = vmax.f32 %v10380_v11, 0.0  ;;  %v14673_v63 = vld [vmem:[#allocation38_spill] sm:$0xff]  ;;  %v14698_v7 = vld [vmem:[#allocation23_spill] sm:$0xff] }
 0x287   :  { %1205 = vst [vmem:[#allocation2 + $0xc1] sm:$0xff] %v14661_v39  ;;  %1206 = vst [vmem:[#allocation2 + $0xc9] sm:$0xff] %v14442_v14  ;;  %v14448_v39 = vmax.f32 %v10416_v49, 0.0  ;;  %v14664_v14 = vmax.f32 %v10388_v42, 0.0  ;;  %v14690_v31 = vld [vmem:[#allocation19_spill] sm:$0xff]  ;;  %v14697_v42 = vld [vmem:[#allocation20_spill] sm:$0xff] }
 0x288   :  { %1207 = vst [vmem:[#allocation2 + $0xd9] sm:$0xff] %v14443_v33  ;;  %1208 = vst [vmem:[#allocation2 + $0xe1] sm:$0xff] %v14662_v9  ;;  %v14665_v33 = vmax.f32 %v10392_v41, 0.0  ;;  %v14666_v9 = vmax.f32 %v10396_v43, 0.0  ;;  %v14696_v41 = vld [vmem:[#allocation18_spill] sm:$0xff]  ;;  %v1080_v49 = vmax.f32 %v14698_v7, 0.0 }
 0x289   :  { %1209 = vst [vmem:[#allocation2 + $0xf1] sm:$0xff] %v14663_v29  ;;  %1210 = vst [vmem:[#allocation2 + $0xf9] sm:$0xff] %v14444_v53  ;;  %v1049_v29 = vmax.f32 %v10432_v59, 0.0  ;;  %v14678_v53 = vmax.f32 %v10448_v5, 0.0  ;;  %v1081_v43 = vmax.f32 %v10556_v20, 0.0  ;;  %v14705_v7 = vmax.f32 %v14690_v31, 0.0 }
 0x28a   :  { %1211 = vst [vmem:[#allocation2 + $0x109] sm:$0xff] %v14664_v14  ;;  %1212 = vst [vmem:[#allocation2 + $0x111] sm:$0xff] %v14665_v33  ;;  %v14667_v14 = vmax.f32 %v10408_v44, 0.0  ;;  %v14668_v33 = vmax.f32 %v10412_v32, 0.0  ;;  %v14674_v32 = vld [vmem:[#allocation39_spill] sm:$0xff]  ;;  %v1259_v44 = vld [vmem:[#allocation2 + $0x30] sm:$0xff] }
 0x28b   :  { %1213 = vst [vmem:[#allocation2 + $0x121] sm:$0xff] %v14666_v9  ;;  %1214 = vst [vmem:[#allocation2 + $0x129] sm:$0xff] %v14445_v34  ;;  %v14669_v34 = vmax.f32 %v10420_v54, 0.0  ;;  %v14704_v9 = vmax.f32 %v10532_v4, 0.0  ;;  %v14707_v20 = vmax.f32 %v10305_v51, 0.0  ;;  %v8773_v51 = vld [vmem:[#allocation8 + $0xf0] sm:$0xff]  }
 0x28c   :  { %1215 = vst [vmem:[#allocation2 + $0x139] sm:$0xff] %v14446_v1  ;;  %1216 = vst [vmem:[#allocation2 + $0x141] sm:$0xff] %v14667_v14  ;;  %v14670_v1 = vmax.f32 %v10424_v47, 0.0  ;;  %v14671_v14 = vld [vmem:[#allocation36_spill] sm:$0xff] }
 0x28d   :  { %1217 = vst [vmem:[#allocation2 + $0x151] sm:$0xff] %v14668_v33  ;;  %1218 = vst [vmem:[#allocation2 + $0x159] sm:$0xff] %v14448_v39  ;;  %v14450_v33 = vmax.f32 %v14671_v14, 0.0  ;;  %v14676_v39 = vmax.f32 %v10440_v57, 0.0 }
 0x28e   :  { %1219 = vst [vmem:[#allocation2 + $0x169] sm:$0xff] %v14669_v34  ;;  %1220 = vst [vmem:[#allocation2 + $0x171] sm:$0xff] %v14670_v1  ;;  %v14677_v34 = vmax.f32 %v10444_v62, 0.0  ;;  %v1260_v1 = vld [vmem:[#allocation2 + $0x38] sm:$0xff] }
 0x28f   :  { %1221 = vst [vmem:[#allocation2 + $0x181] sm:$0xff] %v1048_v38  ;;  %1222 = vst [vmem:[#allocation2 + $0x189] sm:$0xff] %v1049_v29  ;;  %v14679_v29 = vmax.f32 %v10452_v10, 0.0  ;;  %v14685_v38 = vld [vmem:[#allocation33_spill] sm:$0xff]  ;;  %v10745_v24 = vpack.c.bf16 %v1260_v1, %v1259_v44  ;;  %v1262_v44 = vld [vmem:[#allocation2 + $0x50] sm:$0xff] }
 0x290   :  { %1223 = vst [vmem:[#allocation2 + $0x1c9] sm:$0xff] %v14675_v52  ;;  %1224 = vst [vmem:[#allocation2 + $0x1d1] sm:$0xff] %v14676_v39  ;;  %v14680_v52 = vmax.f32 %v10456_v3, 0.0  ;;  %v14681_v39 = vmax.f32 %v10460_v8, 0.0  ;;  %v14699_v11 = vmax.f32 %v14685_v38, 0.0  ;;  %v14714_v1 = vld [vmem:[#allocation25_spill] sm:$0xff] }
 0x291   :  { %1225 = vst [vmem:[#allocation2 + $0x1e1] sm:$0xff] %v14677_v34  ;;  %1226 = vst [vmem:[#allocation2 + $0x1e9] sm:$0xff] %v14678_v53  ;;  %v14682_v53 = vmax.f32 %v14672_v37, 0.0  ;;  %v1258_v34 = vld [vmem:[#allocation2 + $0x20] sm:$0xff] }
 0x292   :  { %1227 = vst [vmem:[#allocation2 + $0x1f9] sm:$0xff] %v14679_v29  ;;  %1228 = vst [vmem:[#allocation2 + $0x201] sm:$0xff] %v14680_v52  ;;  %v14683_v29 = vmax.f32 %v14673_v63, 0.0  ;;  %v14684_v52 = vmax.f32 %v14674_v32, 0.0 }
 0x293   :  { %1229 = vst [vmem:[#allocation2 + $0x211] sm:$0xff] %v14681_v39  ;;  %1230 = vst [vmem:[#allocation2 + $0x219] sm:$0xff] %v14450_v33  ;;  %v1257_v39 = vld [vmem:[#allocation2 + $0x18] sm:$0xff]  ;;  %v14686_v33 = vmax.f32 %v10480_v25, 0.0 }
 0x294   :  { %1231 = vst [vmem:[#allocation2 + $0x229] sm:$0xff] %v14682_v53  ;;  %1232 = vst [vmem:[#allocation2 + $0x231] sm:$0xff] %v14683_v29  ;;  %v14687_v53 = vmax.f32 %v10484_v30, 0.0  ;;  %v14688_v29 = vmax.f32 %v10488_v23, 0.0  ;;  %v10739_v59 = vpack.c.bf16 %v1258_v34, %v1257_v39  ;;  %v1263_v34 = vld [vmem:[#allocation2 + $0x60] sm:$0xff]  ;;  %v1264_v39 = vld [vmem:[#allocation2 + $0x68] sm:$0xff] }
 0x295   :  { %1233 = vst [vmem:[#allocation2 + $0x241] sm:$0xff] %v14684_v52  ;;  %1234 = vst [vmem:[#allocation2 + $0x249] sm:$0xff] %v14686_v33  ;;  %v14689_v52 = vmax.f32 %v10492_v28, 0.0  ;;  %v14692_v33 = vmax.f32 %v10496_v35, 0.0 }
 0x296   :  { %1235 = vst [vmem:[#allocation2 + $0x259] sm:$0xff] %v14687_v53  ;;  %1236 = vst [vmem:[#allocation2 + $0x261] sm:$0xff] %v14688_v29  ;;  %v14693_v53 = vmax.f32 %v10500_v40, 0.0  ;;  %v14694_v29 = vmax.f32 %v10504_v56, 0.0  ;;  %8012 = vmatmul.mubr.bf16.vlgmr.msra.gmra.mxu0 %v10739_v59 }
 0x297   :  { %1237 = vst [vmem:[#allocation2 + $0x271] sm:$0xff] %v14689_v52  ;;  %1238 = vst [vmem:[#allocation2 + $0x279] sm:$0xff] %v14692_v33  ;;  %v14695_v52 = vmax.f32 %v10508_v15, 0.0  ;;  %v14700_v33 = vmax.f32 %v10516_v13, 0.0  ;;  %8015 = vmatprep.mubr.bf16.mxu0 %v10745_v24  ;;  %8156 = vmatpush3.bf16.msra.mxu0 %v14714_v1 }
 0x298   :  { %1239 = vst [vmem:[#allocation2 + $0x289] sm:$0xff] %v14693_v53  ;;  %1240 = vst [vmem:[#allocation2 + $0x291] sm:$0xff] %v14694_v29  ;;  %v14701_v53 = vmax.f32 %v10520_v18, 0.0  ;;  %v14702_v29 = vmax.f32 %v10524_v16, 0.0  ;;  %8157 = vmatprep.subr.bf16.mxu0 %v8773_v51 }
 0x299   :  { %1241 = vst [vmem:[#allocation2 + $0x2a1] sm:$0xff] %v14695_v52  ;;  %1242 = vst [vmem:[#allocation2 + $0x2a9] sm:$0xff] %v14699_v11  ;;  %v14703_v52 = vmax.f32 %v10528_v58, 0.0  ;;  %v14706_v11 = vmax.f32 %v14691_v2, 0.0 }
 0x29a   :  { %1243 = vst [vmem:[#allocation2 + $0x2b9] sm:$0xff] %v14700_v33  ;;  %1244 = vst [vmem:[#allocation2 + $0x2c1] sm:$0xff] %v14701_v53  ;;  %v14708_v33 = vmax.f32 %v10309_v6, 0.0  ;;  %v14713_v6 = vld [vmem:[#allocation21_spill] sm:$0xff] }
 0x29b   :  { %1245 = vst [vmem:[#allocation2 + $0x2d1] sm:$0xff] %v14702_v29  ;;  %1246 = vst [vmem:[#allocation2 + $0x2d9] sm:$0xff] %v14703_v52  ;;  %v14709_v29 = vmax.f32 %v10313_v19, 0.0  ;;  %v14710_v52 = vmax.f32 %v10317_v45, 0.0  ;;  %v8767_v19 = vld [vmem:[#allocation8 + $0xa8] sm:$0xff]   ;;  %8158 = vmatpush3.bf16.msra.mxu0 %v8773_v51  ;;  %v14733_v51 = vmax.f32 %v10484_v30, 0.0 }
 0x29c   :  { %1247 = vst [vmem:[#allocation2 + $0x2e9] sm:$0xff] %v14704_v9  ;;  %1248 = vst [vmem:[#allocation2 + $0x2f1] sm:$0xff] %v14705_v7  ;;  %v1432_v53 = vpack.c.bf16 %v14708_v33, %v14707_v20  ;;  %v8766_v9 = vld [vmem:[#allocation8 + $0xb0] sm:$0xff]   ;;  %v14711_v7 = vmax.f32 %v14696_v41, 0.0  ;;  %v1261_v45 = vld [vmem:[#allocation2 + $0x48] sm:$0xff]  ;;  %v14718_v33 = vmax.f32 %v10325_v61, 0.0 }
 0x29d   :  { %1249 = vst [vmem:[#allocation2 + $0x301] sm:$0xff] %v14706_v11  ;;  %v1433_v27 = vpack.c.bf16 %v14710_v52, %v14709_v29  ;;  %v14712_v11 = vmax.f32 %v14697_v42, 0.0  ;;  %1253 = vst [vmem:[#allocation2 + $0x331] sm:$0xff] %v1080_v49  ;;  %v14716_v49 = vmax.f32 %v10424_v47, 0.0  ;;  %v10765_v29 = vpack.c.bf16 %v1262_v44, %v1261_v45  ;;  %v8768_v44 = vld [vmem:[#allocation8 + $0xa0] sm:$0xff]  }
 0x29e   :  { %1250 = vst [vmem:[#allocation2 + $0x309] sm:$0xff] %v14711_v7  ;;  %1254 = vst [vmem:[#allocation2 + $0x339] sm:$0xff] %v1081_v43  ;;  %7932 = vmatmul.mubr.bf16.vlgmr.msra.gmra.mxu1 %v1432_v53  ;;  %v14715_v43 = vmax.f32 %v10420_v54, 0.0  ;;  %v14719_v52 = vmax.f32 %v10436_v0, 0.0  ;;  %v14720_v7 = vmax.f32 %v10440_v57, 0.0  ;;  %v14721_v54 = vmax.f32 %v10444_v62, 0.0 }
 0x29f   :  { %1251 = vst [vmem:[#allocation2 + $0x319] sm:$0xff] %v14712_v11  ;;  %8076 = vmatpush3.bf16.msra.mxu1 %v14713_v6  ;;  %7935 = vmatprep.mubr.bf16.mxu1 %v1433_v27  ;;  %v14717_v27 = vmax.f32 %v10321_v50, 0.0  ;;  %v14722_v47 = vmax.f32 %v10448_v5, 0.0  ;;  %v14723_v50 = vmax.f32 %v10329_v36, 0.0  ;;  %v14724_v61 = vmax.f32 %v10333_v46, 0.0  ;;  %v1266_v30 = vld [vmem:[#allocation2 + $0x80] sm:$0xff] }
 0x2a0   :  { %8077 = vmatprep.subr.bf16.mxu1 %v8766_v9  ;;  %v10759_v20 = vpack.c.bf16 %v14716_v49, %v14715_v43  ;;  %v10771_v11 = vpack.c.bf16 %v14720_v7, %v14719_v52  ;;  %v10783_v45 = vpack.c.bf16 %v1264_v39, %v1263_v34  ;;  %v14725_v0 = vmax.f32 %v10452_v10, 0.0  ;;  %8016 = vmatmul.mubr.bf16.gmra.mxu0 %v10765_v29  ;;  %v8774_v10 = vld [vmem:[#allocation8 + $0xe8] sm:$0xff]   ;;  %v1265_v52 = vld [vmem:[#allocation2 + $0x78] sm:$0xff] }
 0x2a1   :  { %v1434_v53 = vpack.c.bf16 %v14718_v33, %v14717_v27  ;;  %v1435_v6 = vpack.c.bf16 %v14724_v61, %v14723_v50  ;;  %v14726_v57 = vmax.f32 %v10456_v3, 0.0  ;;  %v14727_v62 = vmax.f32 %v10460_v8, 0.0  ;;  %8159 = vmatprep.subr.bf16.mxu0 %v8774_v10 }
 0x2a2   :  { %v14728_v5 = vmax.f32 %v14671_v14, 0.0  ;;  %v14729_v36 = vmax.f32 %v14672_v37, 0.0  ;;  %v14730_v46 = vmax.f32 %v14673_v63, 0.0  ;;  %8019 = vmatprep.mubr.bf16.mxu0 %v10783_v45  ;;  %v14731_v3 = vmax.f32 %v14674_v32, 0.0  ;;  %8160 = vmatpush3.bf16.msra.mxu0 %v8774_v10  ;;  %v1272_v10 = vld [vmem:[#allocation2 + $0xc8] sm:$0xff] }
 0x2a3   :  { %8078 = vmatpush3.bf16.msra.mxu1 %v8766_v9  ;;  %v10777_v9 = vpack.c.bf16 %v14722_v47, %v14721_v54  ;;  %v10789_v1 = vpack.c.bf16 %v14726_v57, %v14725_v0  ;;  %v14732_v8 = vmax.f32 %v10480_v25, 0.0  ;;  %v14734_v39 = vmax.f32 %v10488_v23, 0.0  ;;  %v8769_v23 = vld [vmem:[#allocation8 + $0x98] sm:$0xff]  }
 0x2a4   :  { %8079 = vmatprep.subr.bf16.mxu1 %v8767_v19  ;;  %v10795_v43 = vpack.c.bf16 %v14728_v5, %v14727_v62  ;;  %v10802_v34 = vpack.c.bf16 %v14730_v46, %v14729_v36  ;;  %v14735_v37 = vmax.f32 %v10492_v28, 0.0  ;;  %v14736_v63 = vmax.f32 %v10496_v35, 0.0  ;;  %v1268_v47 = vld [vmem:[#allocation2 + $0x98] sm:$0xff] }
 0x2a5   :  { %v10809_v14 = vpack.c.bf16 %v14732_v8, %v14731_v3  ;;  %v10815_v49 = vpack.c.bf16 %v14734_v39, %v14733_v51  ;;  %v14737_v33 = vmax.f32 %v10500_v40, 0.0  ;;  %v14738_v32 = vmax.f32 %v10504_v56, 0.0  ;;  %v1267_v56 = vld [vmem:[#allocation2 + $0x90] sm:$0xff] }
 0x2a6   :  { %7936 = vmatmul.mubr.bf16.gmra.mxu1 %v1434_v53  ;;  %v10821_v27 = vpack.c.bf16 %v14736_v63, %v14735_v37  ;;  %v8775_v53 = vld [vmem:[#allocation8 + $0xe0] sm:$0xff]   ;;  %v14739_v7 = vmax.f32 %v10508_v15, 0.0  ;;  %v14741_v35 = vmax.f32 %v10516_v13, 0.0  ;;  %v14742_v54 = vmax.f32 %v10520_v18, 0.0 }
 0x2a7   :  { %7939 = vmatprep.mubr.bf16.mxu1 %v1435_v6  ;;  %8080 = vmatpush3.bf16.msra.mxu1 %v8767_v19  ;;  %v10827_v25 = vpack.c.bf16 %v14738_v32, %v14737_v33  ;;  %v14740_v19 = vmax.f32 %v14685_v38, 0.0  ;;  %v14743_v50 = vmax.f32 %v10524_v16, 0.0  ;;  %v14744_v61 = vmax.f32 %v10528_v58, 0.0 }
 0x2a8   :  { %8081 = vmatprep.subr.bf16.mxu1 %v8768_v44  ;;  %v10839_v40 = vpack.c.bf16 %v14742_v54, %v14741_v35  ;;  %v14745_v15 = vmax.f32 %v10532_v4, 0.0  ;;  %v14746_v38 = vmax.f32 %v14690_v31, 0.0  ;;  %v14747_v13 = vmax.f32 %v14691_v2, 0.0  ;;  %8161 = vmatprep.subr.bf16.mxu0 %v8775_v53  ;;  %v8777_v2 = vld [vmem:[#allocation8 + $0xd8] sm:$0xff]   ;;  %v14759_v35 = vld [vmem:[#allocation24_spill] sm:$0xff] }
 0x2a9   :  { %v10833_v28 = vpack.c.bf16 %v14740_v19, %v14739_v7  ;;  %v10845_v6 = vpack.c.bf16 %v14744_v61, %v14743_v50  ;;  %v14748_v18 = vmax.f32 %v14696_v41, 0.0  ;;  %v14749_v62 = vmax.f32 %v10337_v21, 0.0  ;;  %v8770_v41 = vld [vmem:[#allocation8 + $0x90] sm:$0xff]   ;;  %v8771_v21 = vld [vmem:[#allocation8 + $0x88] sm:$0xff]   ;;  %8162 = vmatpush3.bf16.msra.mxu0 %v8775_v53  ;;  %v8776_v53 = vld [vmem:[#allocation8 + $0x80] sm:$0xff]  }
 0x2aa   :  { %v10851_v0 = vpack.c.bf16 %v14746_v38, %v14745_v15  ;;  %v14750_v16 = vmax.f32 %v10341_v12, 0.0  ;;  %v10863_v5 = vpack.c.bf16 %v1266_v30, %v1265_v52  ;;  %v14751_v31 = vmax.f32 %v10347_v48, 0.0  ;;  %v1269_v12 = vld [vmem:[#allocation2 + $0xa8] sm:$0xff]  ;;  %8163 = vmatprep.subr.bf16.mxu0 %v8777_v2  ;;  %v8778_v48 = vld [vmem:[#allocation8 + $0xd0] sm:$0xff]   ;;  %v14761_v50 = vld [vmem:[#allocation27_spill] sm:$0xff] }
 0x2ab   :  { %v10857_v57 = vpack.c.bf16 %v14748_v18, %v14747_v13  ;;  %8082 = vmatpush3.bf16.msra.mxu1 %v8768_v44  ;;  %v14752_v4 = vmax.f32 %v10351_v55, 0.0  ;;  %v10869_v46 = vpack.c.bf16 %v1268_v47, %v1267_v56  ;;  %v1270_v44 = vld [vmem:[#allocation2 + $0xb0] sm:$0xff]  ;;  %v1271_v55 = vld [vmem:[#allocation2 + $0xc0] sm:$0xff]  ;;  %v14753_v3 = vmax.f32 %v10355_v60, 0.0  ;;  %v8779_v52 = vld [vmem:[#allocation8 + $0xc8] sm:$0xff]  }
 0x2ac   :  { %v1436_v58 = vpack.c.bf16 %v14750_v16, %v14749_v62  ;;  %8083 = vmatprep.subr.bf16.mxu1 %v8769_v23  ;;  %8020 = vmatmul.mubr.bf16.gmra.mxu0 %v10863_v5  ;;  %v14754_v8 = vmax.f32 %v10359_v22, 0.0  ;;  %v10877_v39 = vpack.c.bf16 %v1270_v44, %v1269_v12  ;;  %v14755_v37 = vmax.f32 %v10363_v26, 0.0  ;;  %v1273_v60 = vld [vmem:[#allocation2 + $0xd8] sm:$0xff]  ;;  %v1274_v22 = vld [vmem:[#allocation2 + $0xe0] sm:$0xff]  ;;  %v1275_v30 = vld [vmem:[#allocation2 + $0xf0] sm:$0xff] }
 0x2ad   :  { %v1437_v36 = vpack.c.bf16 %v14752_v4, %v14751_v31  ;;  %8023 = vmatprep.mubr.bf16.mxu0 %v10869_v46  ;;  %8164 = vmatpush3.bf16.msra.mxu0 %v8777_v2  ;;  %v14756_v63 = vmax.f32 %v10367_v17, 0.0  ;;  %v10883_v32 = vpack.c.bf16 %v1272_v10, %v1271_v55  ;;  %v8780_v26 = vld [vmem:[#allocation8 + $0xc0] sm:$0xff]   ;;  %v10887_v17 = vld [vmem:[#allocation8 + $0x138] sm:$0xff]   ;;  %v14757_v7 = vld [vmem:[#allocation22_spill] sm:$0xff]  ;;  %v14760_v54 = vmax.f32 %v14759_v35, 0.0 }
 0x2ae   :  { %7940 = vmatmul.mubr.bf16.gmra.mxu1 %v1436_v58  ;;  %v1438_v51 = vpack.c.bf16 %v14754_v8, %v14753_v3  ;;  %8165 = vmatprep.subr.bf16.mxu0 %v8778_v48  ;;  %v14758_v19 = vmax.f32 %v14757_v7, 0.0  ;;  %v10893_v47 = vpack.c.bf16 %v1274_v22, %v1273_v60  ;;  %v14762_v61 = vmax.f32 %v14761_v50, 0.0  ;;  %v14763_v15 = vld [vmem:[#allocation28_spill] sm:$0xff]  ;;  %v1277_v62 = vld [vmem:[#allocation2 + $0x108] sm:$0xff]  ;;  %v1278_v16 = vld [vmem:[#allocation2 + $0x110] sm:$0xff] }
 0x2af   :  { %7943 = vmatprep.mubr.bf16.mxu1 %v1437_v36  ;;  %8084 = vmatpush3.bf16.msra.mxu1 %v8769_v23  ;;  %v1439_v33 = vpack.c.bf16 %v14756_v63, %v14755_v37  ;;  %v1276_v23 = vld [vmem:[#allocation2 + $0xf8] sm:$0xff]  ;;  %v14764_v38 = vmax.f32 %v14763_v15, 0.0  ;;  %v1279_v58 = vld [vmem:[#allocation2 + $0x120] sm:$0xff]  ;;  %v1280_v31 = vld [vmem:[#allocation2 + $0x128] sm:$0xff]  ;;  %v10908_v12 = vpack.c.bf16 %v1278_v16, %v1277_v62  ;;  %v14781_v16 = vmov 0.0|0.0  }
 0x2b0   :  { %8085 = vmatprep.subr.bf16.mxu1 %v8770_v41  ;;  %v1440_v56 = vpack.c.bf16 %v14760_v54, %v14758_v19  ;;  %v10899_v18 = vpack.c.bf16 %v1276_v23, %v1275_v30  ;;  %v14765_v4 = vld [vmem:[#allocation26_spill] sm:$0xff]  ;;  %v14771_v55 = vld [vmem:[#allocation31_spill] sm:$0xff]  ;;  %v10914_v8 = vpack.c.bf16 %v1280_v31, %v1279_v58  ;;  %v1282_v37 = vld [vmem:[#allocation2 + $0x140] sm:$0xff] }
 0x2b1   :  { %8166 = vmatpush3.bf16.msra.mxu0 %v8778_v48  ;;  %v1441_v13 = vpack.c.bf16 %v14764_v38, %v14762_v61  ;;  %v14766_v36 = vmax.f32 %v14765_v4, 0.0  ;;  %v14769_v44 = vld [vmem:[#allocation30_spill] sm:$0xff]  ;;  %v14772_v10 = vmax.f32 %v14771_v55, 0.0  ;;  %v14775_v60 = vld [vmem:[#allocation32_spill] sm:$0xff]  ;;  %v14779_v19 = vld [vmem:[#allocation35_spill] sm:$0xff] }
 0x2b2   :  { %8167 = vmatprep.subr.bf16.mxu0 %v8779_v52  ;;  %v14770_v48 = vmax.f32 %v14769_v44, 0.0  ;;  %v1283_v63 = vld [vmem:[#allocation2 + $0x150] sm:$0xff]  ;;  %v14776_v22 = vmax.f32 %v14775_v60, 0.0  ;;  %v14777_v23 = vld [vmem:[#allocation16_spill] sm:$0xff]  ;;  %v14780_v35 = vmax.f32 %v14779_v19, 0.0  ;;  %v1285_v15 = vld [vmem:[#allocation2 + $0x168] sm:$0xff] }
 0x2b3   :  { %8086 = vmatpush3.bf16.msra.mxu1 %v8770_v41  ;;  %v14767_v41 = vld [vmem:[#allocation29_spill] sm:$0xff]  ;;  %v14778_v7 = vmax.f32 %v14777_v23, 0.0  ;;  %v1399_v50 = vld [vmem:[#allocation2 + $0x1b1] sm:$0xff]  ;;  %v1400_v61 = vld [vmem:[#allocation2 + $0x1b9] sm:$0xff] }
 0x2b4   :  { %8087 = vmatprep.subr.bf16.mxu1 %v8771_v21  ;;  %8024 = vmatmul.mubr.bf16.gmra.mxu0 %v10877_v39  ;;  %v14768_v2 = vmax.f32 %v14767_v41, 0.0  ;;  %v1443_v3 = vpack.c.bf16 %v14772_v10, %v14770_v48  ;;  %v1286_v38 = vld [vmem:[#allocation2 + $0x170] sm:$0xff]  ;;  %v1289_v58 = vld [vmem:[#allocation2 + $0x1c8] sm:$0xff]  ;;  %v1291_v4 = vld [vmem:[#allocation2 + $0x1e0] sm:$0xff] }
 0x2b5   :  { %8027 = vmatprep.mubr.bf16.mxu0 %v10883_v32  ;;  %8168 = vmatpush3.bf16.msra.mxu0 %v8779_v52  ;;  %v1445_v54 = vpack.c.bf16 %v14780_v35, %v14778_v7  ;;  %v10932_v62 = vpack.c.bf16 %v1286_v38, %v1285_v15  ;;  %v1290_v31 = vld [vmem:[#allocation2 + $0x1d0] sm:$0xff]  ;;  %v1296_v48 = vld [vmem:[#allocation2 + $0x218] sm:$0xff]  ;;  %v1310_v19 = vld [vmem:[#allocation2 + $0x2c0] sm:$0xff] }
 0x2b6   :  { %7944 = vmatmul.mubr.bf16.gmra.mxu1 %v1438_v51  ;;  %8169 = vmatprep.subr.bf16.mxu0 %v8780_v26  ;;  %v1281_v51 = vld [vmem:[#allocation2 + $0x138] sm:$0xff]  ;;  %v10937_v41 = vpack.c.bf16 %v1290_v31, %v1289_v58  ;;  %v1295_v44 = vld [vmem:[#allocation2 + $0x210] sm:$0xff]  ;;  %v1315_v15 = vld [vmem:[#allocation2 + $0x300] sm:$0xff] }
 0x2b7   :  { %7947 = vmatprep.mubr.bf16.mxu1 %v1439_v33  ;;  %8088 = vmatpush3.bf16.msra.mxu1 %v8771_v21  ;;  %v1442_v21 = vpack.c.bf16 %v14768_v2, %v14766_v36  ;;  %v1284_v33 = vld [vmem:[#allocation2 + $0x158] sm:$0xff]  ;;  %v10922_v30 = vpack.c.bf16 %v1282_v37, %v1281_v51  ;;  %v1292_v36 = vld [vmem:[#allocation2 + $0x1e8] sm:$0xff]  ;;  %v10947_v10 = vpack.c.bf16 %v1296_v48, %v1295_v44  ;;  %v1311_v35 = vld [vmem:[#allocation2 + $0x2d0] sm:$0xff] }
 0x2b8   :  { %8089 = vmatprep.subr.bf16.mxu1 %v8776_v53  ;;  %v10939_v2 = vpack.c.bf16 %v1292_v36, %v1291_v4  ;;  %v1300_v51 = vld [vmem:[#allocation2 + $0x248] sm:$0xff]  ;;  %v1317_v31 = vld [vmem:[#allocation2 + $0x318] sm:$0xff]  ;;  %v1318_v4 = vld [vmem:[#allocation2 + $0x320] sm:$0xff] }
 0x2b9   :  { %8170 = vmatpush3.bf16.msra.mxu0 %v8780_v26  ;;  %v1316_v38 = vld [vmem:[#allocation2 + $0x308] sm:$0xff]  ;;  %v10995_v44 = vpack.c.bf16 %v1318_v4, %v1317_v31  ;;  %v2158_v48 = vld [vmem:[#allocation2 + $0x32] sm:$0xff]  ;;  %v8792_v4 = vld [vmem:[#allocation8 + $0x100] sm:$0xff]  }
 0x2ba   :  { %v1430_v58 = vld [vmem:[#allocation2 + $0x321] sm:$0xff] }
 0x2bb   :  { %8090 = vmatpush3.bf16.msra.mxu1 %v8776_v53  ;;  %v14773_v53 = vld [vmem:[#allocation17_spill] sm:$0xff] }
 0x2bc   :  { %8235 = vmatprep.subr.bf16.mxu1 %v10887_v17  ;;  %8028 = vmatmul.mubr.bf16.gmra.mxu0 %v10893_v47  ;;  %v14774_v52 = vmax.f32 %v14773_v53, 0.0  ;;  %v1304_v53 = vld [vmem:[#allocation2 + $0x278] sm:$0xff]  ;;  %v8795_v31 = vld [vmem:[#allocation8 + $0x148] sm:$0xff]  }
 0x2bd   :  { %8031 = vmatprep.mubr.bf16.mxu0 %v10899_v18 }
 0x2be   :  { %7948 = vmatmul.mubr.bf16.gmra.mxu1 %v1440_v56  ;;  %v1444_v26 = vpack.c.bf16 %v14776_v22, %v14774_v52  ;;  %v10928_v56 = vpack.c.bf16 %v1284_v33, %v1283_v63  ;;  %v1303_v33 = vld [vmem:[#allocation2 + $0x270] sm:$0xff]  ;;  %v1307_v22 = vld [vmem:[#allocation2 + $0x2a0] sm:$0xff] }
 0x2bf   :  { %7951 = vmatprep.mubr.bf16.mxu1 %v1441_v13  ;;  %v1447_v13 = vpack.c.bf16 %v1400_v61, %v1399_v50  ;;  %v10963_v60 = vpack.c.bf16 %v1304_v53, %v1303_v33  ;;  %v2162_v33 = vld [vmem:[#allocation2 + $0x62] sm:$0xff]  ;;  %v2163_v53 = vld [vmem:[#allocation2 + $0x6a] sm:$0xff] }
 0x2c4   :  { %8032 = vmatmul.mubr.bf16.gmra.mxu0 %v10908_v12 }
 0x2c5   :  { %8035 = vmatprep.mubr.bf16.mxu0 %v10914_v8 }
 0x2c6   :  { %7952 = vmatmul.mubr.bf16.gmra.mxu1 %v1442_v21  ;;  %v1294_v21 = vld [vmem:[#allocation2 + $0x200] sm:$0xff] }
 0x2c7   :  { %7955 = vmatprep.mubr.bf16.mxu1 %v1443_v3  ;;  %v1299_v3 = vld [vmem:[#allocation2 + $0x240] sm:$0xff] }
 0x2c8   :  { %v10955_v63 = vpack.c.bf16 %v1300_v51, %v1299_v3  ;;  %v8782_v3 = vld [vmem:[#allocation8 + $0x130] sm:$0xff]  }
 0x2cc   :  { %8036 = vmatmul.mubr.bf16.gmra.mxu0 %v10922_v30 }
 0x2cd   :  { %8039 = vmatprep.mubr.bf16.mxu0 %v10928_v56 }
 0x2ce   :  { %7956 = vmatmul.mubr.bf16.gmra.mxu1 %v1444_v26  ;;  %v1308_v26 = vld [vmem:[#allocation2 + $0x2a8] sm:$0xff] }
 0x2cf   :  { %7959 = vmatprep.mubr.bf16.mxu1 %v1445_v54  ;;  %v10971_v7 = vpack.c.bf16 %v1308_v26, %v1307_v22  ;;  %v1312_v54 = vld [vmem:[#allocation2 + $0x2d8] sm:$0xff]  ;;  %v2165_v26 = vld [vmem:[#allocation2 + $0x82] sm:$0xff] }
 0x2d0   :  { %v10979_v61 = vpack.c.bf16 %v1312_v54, %v1311_v35  ;;  %v2164_v22 = vld [vmem:[#allocation2 + $0x7a] sm:$0xff] }
 0x2d1   :  { %v11016_v35 = vpack.c.bf16 %v2165_v26, %v2164_v22  ;;  %v8793_v54 = vld [vmem:[#allocation8 + $0x158] sm:$0xff]   ;;  %v2698_v22 = vld [vmem:[#allocation2 + $0x180] sm:$0xff]  ;;  %v2699_v26 = vld [vmem:[#allocation2 + $0x188] sm:$0xff] }
 0x2d4   :  { %8040 = vmatmul.mubr.bf16.gmra.mxu0 %v10932_v62 }
 0x2d5   :  { %8043 = vmatprep.mubr.bf16.mxu0 %v14781_v16  ;;  %v10987_v16 = vpack.c.bf16 %v1316_v38, %v1315_v15  ;;  %v2169_v15 = vld [vmem:[#allocation2 + $0xb2] sm:$0xff]  ;;  %v8787_v38 = vld [vmem:[#allocation8 + $0x108] sm:$0xff]  }
 0x2d6   :  { %7960 = vmatmul.mubr.bf16.gmra.mxu1 %v10759_v20  ;;  %v1293_v20 = vld [vmem:[#allocation2 + $0x1f8] sm:$0xff] }
 0x2d7   :  { %7963 = vmatprep.mubr.bf16.mxu1 %v1447_v13  ;;  %v10945_v55 = vpack.c.bf16 %v1294_v21, %v1293_v20  ;;  %v14782_v20 = vmax.f32 %v14697_v42, 0.0  ;;  %v8789_v42 = vld [vmem:[#allocation8 + $0x170] sm:$0xff]  }
 0x2d9   :  { %v1462_v21 = vpack.c.bf16 %v1430_v58, %v14782_v20  ;;  %v2173_v20 = vld [vmem:[#allocation2 + $0xe2] sm:$0xff] }
 0x2dc   :  { %8044 = vmatmul.mubr.bf16.gmra.mxu0 %v10937_v41 }
 0x2dd   :  { %8047 = vmatprep.mubr.bf16.mxu0 %v10939_v2 }
 0x2de   :  { %7964 = vmatmul.mubr.bf16.gmra.mxu1 %v10771_v11  ;;  %v1297_v11 = vld [vmem:[#allocation2 + $0x228] sm:$0xff] }
 0x2df   :  { %7967 = vmatprep.mubr.bf16.mxu1 %v10777_v9  ;;  %v1298_v9 = vld [vmem:[#allocation2 + $0x230] sm:$0xff] }
 0x2e0   :  { %v10953_v37 = vpack.c.bf16 %v1298_v9, %v1297_v11  ;;  %v2159_v11 = vld [vmem:[#allocation2 + $0x3a] sm:$0xff] }
 0x2e1   :  { %v11001_v51 = vpack.c.bf16 %v2159_v11, %v2158_v48  ;;  %v2177_v11 = vld [vmem:[#allocation2 + $0x112] sm:$0xff] }
 0x2e4   :  { %8048 = vmatmul.mubr.bf16.gmra.mxu0 %v10945_v55 }
 0x2e5   :  { %8051 = vmatprep.mubr.bf16.mxu0 %v10947_v10 }
 0x2e6   :  { %7968 = vmatmul.mubr.bf16.gmra.mxu1 %v10789_v1  ;;  %v1301_v1 = vld [vmem:[#allocation2 + $0x258] sm:$0xff] }
 0x2e7   :  { %7971 = vmatprep.mubr.bf16.mxu1 %v10795_v43  ;;  %v1302_v43 = vld [vmem:[#allocation2 + $0x260] sm:$0xff] }
 0x2e8   :  { %v10961_v52 = vpack.c.bf16 %v1302_v43, %v1301_v1  ;;  %v2160_v1 = vld [vmem:[#allocation2 + $0x4a] sm:$0xff]  ;;  %v2161_v43 = vld [vmem:[#allocation2 + $0x52] sm:$0xff] }
 0x2ec   :  { %8052 = vmatmul.mubr.bf16.gmra.mxu0 %v10953_v37 }
 0x2ed   :  { %8055 = vmatprep.mubr.bf16.mxu0 %v10955_v63 }
 0x2ee   :  { %7972 = vmatmul.mubr.bf16.gmra.mxu1 %v10802_v34  ;;  %v1305_v34 = vld [vmem:[#allocation2 + $0x288] sm:$0xff] }
 0x2ef   :  { %7975 = vmatprep.mubr.bf16.mxu1 %v10809_v14  ;;  %v1306_v14 = vld [vmem:[#allocation2 + $0x290] sm:$0xff] }
 0x2f0   :  { %v10969_v23 = vpack.c.bf16 %v1306_v14, %v1305_v34  ;;  %v11008_v34 = vpack.c.bf16 %v2161_v43, %v2160_v1  ;;  %v11010_v14 = vpack.c.bf16 %v2163_v53, %v2162_v33  ;;  %v2181_v43 = vld [vmem:[#allocation2 + $0x142] sm:$0xff]  ;;  %v2182_v33 = vld [vmem:[#allocation2 + $0x152] sm:$0xff] }
 0x2f4   :  { %8056 = vmatmul.mubr.bf16.gmra.mxu0 %v10961_v52 }
 0x2f5   :  { %8059 = vmatprep.mubr.bf16.mxu0 %v10963_v60 }
 0x2f6   :  { %7976 = vmatmul.mubr.bf16.gmra.mxu1 %v10815_v49  ;;  %v8788_v49 = vld [vmem:[#allocation8 + $0x178] sm:$0xff]  }
 0x2f7   :  { %7979 = vmatprep.mubr.bf16.mxu1 %v10821_v27  ;;  %v1309_v27 = vld [vmem:[#allocation2 + $0x2b8] sm:$0xff]  ;;  %8315 = vmatprep.subr.bf16.mxu0 %v8788_v49 }
 0x2f8   :  { %v10977_v50 = vpack.c.bf16 %v1310_v19, %v1309_v27  ;;  %v2166_v27 = vld [vmem:[#allocation2 + $0x92] sm:$0xff]  ;;  %v2167_v19 = vld [vmem:[#allocation2 + $0x9a] sm:$0xff] }
 0x2fc   :  { %8060 = vmatmul.mubr.bf16.gmra.mxu0 %v10969_v23 }
 0x2fd   :  { %8063 = vmatprep.mubr.bf16.mxu0 %v10971_v7 }
 0x2fe   :  { %7980 = vmatmul.mubr.bf16.gmra.mxu1 %v10827_v25  ;;  %v1313_v25 = vld [vmem:[#allocation2 + $0x2e8] sm:$0xff] }
 0x2ff   :  { %7983 = vmatprep.mubr.bf16.mxu1 %v10833_v28  ;;  %v1314_v28 = vld [vmem:[#allocation2 + $0x2f0] sm:$0xff] }
 0x300   :  { %v10985_v13 = vpack.c.bf16 %v1314_v28, %v1313_v25  ;;  %v8786_v25 = vld [vmem:[#allocation8 + $0x110] sm:$0xff]  }
 0x301   :  { %v2168_v28 = vld [vmem:[#allocation2 + $0xaa] sm:$0xff] }
 0x302   :  { %v11024_v58 = vpack.c.bf16 %v2169_v15, %v2168_v28 }
 0x304   :  { %8064 = vmatmul.mubr.bf16.gmra.mxu0 %v10977_v50 }
 0x305   :  { %8067 = vmatprep.mubr.bf16.mxu0 %v10979_v61 }
 0x306   :  { %7984 = vmatmul.mubr.bf16.gmra.mxu1 %v10839_v40  ;;  %v2154_v40 = vld [vmem:[#allocation2 + $0x2] sm:$0xff] }
 0x307   :  { %7987 = vmatprep.mubr.bf16.mxu1 %v10845_v6  ;;  %v2155_v6 = vld [vmem:[#allocation2 + $0xa] sm:$0xff] }
 0x308   :  { %v2218_v36 = vpack.c.bf16 %v2155_v6, %v2154_v40  ;;  %v2170_v40 = vld [vmem:[#allocation2 + $0xc2] sm:$0xff]  ;;  %v2171_v6 = vld [vmem:[#allocation2 + $0xca] sm:$0xff] }
 0x30c   :  { %8068 = vmatmul.mubr.bf16.gmra.mxu0 %v10985_v13 }
 0x30d   :  { %8071 = vmatprep.mubr.bf16.mxu0 %v10987_v16 }
 0x30e   :  { %7988 = vmatmul.mubr.bf16.gmra.mxu1 %v10851_v0  ;;  %v2156_v0 = vld [vmem:[#allocation2 + $0x1a] sm:$0xff] }
 0x30f   :  { %7991 = vmatprep.mubr.bf16.mxu1 %v10857_v57  ;;  %v2157_v57 = vld [vmem:[#allocation2 + $0x22] sm:$0xff] }
 0x310   :  { %v10999_v9 = vpack.c.bf16 %v2157_v57, %v2156_v0  ;;  %v2174_v0 = vld [vmem:[#allocation2 + $0xf2] sm:$0xff]  ;;  %v2175_v57 = vld [vmem:[#allocation2 + $0xfa] sm:$0xff] }
 0x314   :  { %8072 = vmatmul.mubr.bf16.gmra.mxu0 %v10995_v44 }
 0x315   :  { %8171 = vmatprep.mubr.bf16.mxu0 %v10739_v59  ;;  %v8783_v59 = vld [vmem:[#allocation8 + $0x128] sm:$0xff]  }
 0x316   :  { %7992 = vmatmul.mubr.bf16.gmra.mxu1 %v1462_v21  ;;  %v11032_v21 = vld [vmem:[#allocation8 + $0x1b8] sm:$0xff]  }
 0x317   :  { %8091 = vmatprep.mubr.bf16.mxu1 %v2218_v36  ;;  %v2172_v36 = vld [vmem:[#allocation2 + $0xda] sm:$0xff] }
 0x318   :  { %v11034_v48 = vpack.c.bf16 %v2173_v20, %v2172_v36 }
 0x31c   :  { %8172 = vmatmul.mubr.bf16.vlgmr.msra.gmra.mxu0 %v10745_v24  ;;  %v8790_v24 = vld [vmem:[#allocation8 + $0x168] sm:$0xff]  }
 0x31d   :  { %8175 = vmatprep.mubr.bf16.mxu0 %v10765_v29  ;;  %8316 = vmatpush3.bf16.msra.mxu0 %v8788_v49  ;;  %v8791_v29 = vld [vmem:[#allocation8 + $0x160] sm:$0xff]   ;;  %v8785_v49 = vld [vmem:[#allocation8 + $0x118] sm:$0xff]  }
 0x31e   :  { %8092 = vmatmul.mubr.bf16.vlgmr.msra.gmra.mxu1 %v10999_v9  ;;  %8317 = vmatprep.subr.bf16.mxu0 %v8789_v42 }
 0x31f   :  { %8236 = vmatpush3.bf16.msra.mxu1 %v10887_v17  ;;  %8095 = vmatprep.mubr.bf16.mxu1 %v11001_v51  ;;  %v8784_v17 = vld [vmem:[#allocation8 + $0x120] sm:$0xff]  }
 0x320   :  { %8237 = vmatprep.subr.bf16.mxu1 %v8782_v3 }
 0x321   :  { %8318 = vmatpush3.bf16.msra.mxu0 %v8789_v42  ;;  %v2179_v42 = vld [vmem:[#allocation2 + $0x12a] sm:$0xff] }
 0x322   :  { %8319 = vmatprep.subr.bf16.mxu0 %v8790_v24 }
 0x323   :  { %8238 = vmatpush3.bf16.msra.mxu1 %v8782_v3  ;;  %v2178_v3 = vld [vmem:[#allocation2 + $0x122] sm:$0xff] }
 0x324   :  { %8239 = vmatprep.subr.bf16.mxu1 %v8783_v59  ;;  %8176 = vmatmul.mubr.bf16.gmra.mxu0 %v10783_v45  ;;  %v11018_v45 = vpack.c.bf16 %v2167_v19, %v2166_v27  ;;  %v11045_v1 = vpack.c.bf16 %v2179_v42, %v2178_v3  ;;  %v2747_v19 = vpack.c.bf16 %v2699_v26, %v2698_v22 }
 0x325   :  { %8179 = vmatprep.mubr.bf16.mxu0 %v10863_v5  ;;  %8320 = vmatpush3.bf16.msra.mxu0 %v8790_v24  ;;  %v8794_v5 = vld [vmem:[#allocation8 + $0x150] sm:$0xff]  }
 0x326   :  { %8096 = vmatmul.mubr.bf16.gmra.mxu1 %v11008_v34  ;;  %8321 = vmatprep.subr.bf16.mxu0 %v8791_v29 }
 0x327   :  { %8099 = vmatprep.mubr.bf16.mxu1 %v11010_v14  ;;  %8240 = vmatpush3.bf16.msra.mxu1 %v8783_v59 }
 0x328   :  { %8241 = vmatprep.subr.bf16.mxu1 %v8784_v17 }
 0x329   :  { %8322 = vmatpush3.bf16.msra.mxu0 %v8791_v29  ;;  %v2187_v29 = vld [vmem:[#allocation2 + $0x1ba] sm:$0xff] }
 0x32a   :  { %8323 = vmatprep.subr.bf16.mxu0 %v8793_v54 }
 0x32b   :  { %8242 = vmatpush3.bf16.msra.mxu1 %v8784_v17  ;;  %v2186_v17 = vld [vmem:[#allocation2 + $0x1b2] sm:$0xff] }
 0x32c   :  { %8243 = vmatprep.subr.bf16.mxu1 %v8785_v49  ;;  %8180 = vmatmul.mubr.bf16.gmra.mxu0 %v10869_v46  ;;  %v11026_v46 = vpack.c.bf16 %v2171_v6, %v2170_v40 }
 0x32d   :  { %8183 = vmatprep.mubr.bf16.mxu0 %v10877_v39  ;;  %8324 = vmatpush3.bf16.msra.mxu0 %v8793_v54  ;;  %v8796_v39 = vld [vmem:[#allocation8 + $0x140] sm:$0xff]   ;;  %v2189_v54 = vld [vmem:[#allocation2 + $0x1d2] sm:$0xff] }
 0x32e   :  { %8100 = vmatmul.mubr.bf16.gmra.mxu1 %v11016_v35  ;;  %8325 = vmatprep.subr.bf16.mxu0 %v8794_v5 }
 0x32f   :  { %8103 = vmatprep.mubr.bf16.mxu1 %v11018_v45  ;;  %8244 = vmatpush3.bf16.msra.mxu1 %v8785_v49  ;;  %v2234_v49 = vpack.c.bf16 %v2187_v29, %v2186_v17  ;;  %v2196_v29 = vld [vmem:[#allocation2 + $0x22a] sm:$0xff] }
 0x330   :  { %8245 = vmatprep.subr.bf16.mxu1 %v8786_v25 }
 0x331   :  { %8326 = vmatpush3.bf16.msra.mxu0 %v8794_v5 }
 0x332   :  { %8327 = vmatprep.subr.bf16.mxu0 %v8795_v31 }
 0x333   :  { %8246 = vmatpush3.bf16.msra.mxu1 %v8786_v25  ;;  %v2190_v25 = vld [vmem:[#allocation2 + $0x1e2] sm:$0xff] }
 0x334   :  { %8247 = vmatprep.subr.bf16.mxu1 %v8787_v38  ;;  %8184 = vmatmul.mubr.bf16.gmra.mxu0 %v10883_v32  ;;  %v11036_v32 = vpack.c.bf16 %v2175_v57, %v2174_v0  ;;  %v2194_v0 = vld [vmem:[#allocation2 + $0x212] sm:$0xff]  ;;  %v2195_v57 = vld [vmem:[#allocation2 + $0x21a] sm:$0xff] }
 0x335   :  { %8187 = vmatprep.mubr.bf16.mxu0 %v10893_v47  ;;  %8328 = vmatpush3.bf16.msra.mxu0 %v8795_v31  ;;  %v2176_v47 = vld [vmem:[#allocation2 + $0x10a] sm:$0xff] }
 0x336   :  { %8104 = vmatmul.mubr.bf16.gmra.mxu1 %v11024_v58  ;;  %8329 = vmatprep.subr.bf16.mxu0 %v8796_v39  ;;  %v11043_v59 = vpack.c.bf16 %v2177_v11, %v2176_v47 }
 0x337   :  { %8107 = vmatprep.mubr.bf16.mxu1 %v11026_v46  ;;  %8248 = vmatpush3.bf16.msra.mxu1 %v8787_v38 }
 0x338   :  { %8249 = vmatprep.subr.bf16.mxu1 %v8792_v4 }
 0x339   :  { %8330 = vmatpush3.bf16.msra.mxu0 %v8796_v39  ;;  %v2193_v39 = vld [vmem:[#allocation2 + $0x202] sm:$0xff] }
 0x33b   :  { %8250 = vmatpush3.bf16.msra.mxu1 %v8792_v4  ;;  %v2192_v4 = vld [vmem:[#allocation2 + $0x1fa] sm:$0xff] }
 0x33c   :  { %8395 = vmatprep.subr.bf16.mxu1 %v11032_v21  ;;  %8188 = vmatmul.mubr.bf16.gmra.mxu0 %v10899_v18  ;;  %v2180_v18 = vld [vmem:[#allocation2 + $0x13a] sm:$0xff] }
 0x33d   :  { %8191 = vmatprep.mubr.bf16.mxu0 %v10908_v12  ;;  %v2183_v12 = vld [vmem:[#allocation2 + $0x15a] sm:$0xff]  ;;  %v11051_v53 = vpack.c.bf16 %v2181_v43, %v2180_v18  ;;  %v2238_v18 = vpack.c.bf16 %v2195_v57, %v2194_v0  ;;  %v2202_v57 = vld [vmem:[#allocation2 + $0x272] sm:$0xff] }
 0x33e   :  { %8108 = vmatmul.mubr.bf16.gmra.mxu1 %v11034_v48  ;;  %v11053_v24 = vpack.c.bf16 %v2183_v12, %v2182_v33 }
 0x33f   :  { %8111 = vmatprep.mubr.bf16.mxu1 %v11036_v32 }
 0x344   :  { %8192 = vmatmul.mubr.bf16.gmra.mxu0 %v10914_v8  ;;  %v2184_v8 = vld [vmem:[#allocation2 + $0x16a] sm:$0xff] }
 0x345   :  { %8195 = vmatprep.mubr.bf16.mxu0 %v10922_v30  ;;  %v2185_v30 = vld [vmem:[#allocation2 + $0x172] sm:$0xff] }
 0x346   :  { %8112 = vmatmul.mubr.bf16.gmra.mxu1 %v11043_v59  ;;  %v11059_v27 = vpack.c.bf16 %v2185_v30, %v2184_v8  ;;  %v2197_v30 = vld [vmem:[#allocation2 + $0x232] sm:$0xff] }
 0x347   :  { %8115 = vmatprep.mubr.bf16.mxu1 %v11045_v1 }
 0x34c   :  { %8196 = vmatmul.mubr.bf16.gmra.mxu0 %v10928_v56  ;;  %v2188_v56 = vld [vmem:[#allocation2 + $0x1ca] sm:$0xff] }
 0x34d   :  { %8199 = vmatprep.mubr.bf16.mxu0 %v10932_v62  ;;  %v2191_v62 = vld [vmem:[#allocation2 + $0x1ea] sm:$0xff]  ;;  %v11063_v5 = vpack.c.bf16 %v2189_v54, %v2188_v56 }
 0x34e   :  { %8116 = vmatmul.mubr.bf16.gmra.mxu1 %v11051_v53  ;;  %v2236_v28 = vpack.c.bf16 %v2191_v62, %v2190_v25 }
 0x34f   :  { %8119 = vmatprep.mubr.bf16.mxu1 %v11053_v24 }
 0x354   :  { %8200 = vmatmul.mubr.bf16.gmra.mxu0 %v2747_v19  ;;  %v2199_v19 = vld [vmem:[#allocation2 + $0x24a] sm:$0xff] }
 0x355   :  { %8203 = vmatprep.mubr.bf16.mxu0 %v10937_v41 }
 0x356   :  { %8120 = vmatmul.mubr.bf16.gmra.mxu1 %v11059_v27  ;;  %v8013_v38 = vpop.f32.mrf.mxu0 }
 0x357   :  { %8123 = vmatprep.mubr.bf16.mxu1 %v2234_v49  ;;  %v2198_v49 = vld [vmem:[#allocation2 + $0x242] sm:$0xff] }
 0x358   :  { %v1899_v6 = vpop.f32.mrf.mxu0 }
 0x35a   :  { %v8014_v20 = vpop.f32.mrf.mxu0 }
 0x35c   :  { %8204 = vmatmul.mubr.bf16.gmra.mxu0 %v10939_v2  ;;  %v1902_v3 = vpop.f32.mrf.mxu0  ;;  %v2237_v2 = vpack.c.bf16 %v2193_v39, %v2192_v4  ;;  %v2200_v39 = vld [vmem:[#allocation2 + $0x25a] sm:$0xff] }
 0x35d   :  { %8207 = vmatprep.mubr.bf16.mxu0 %v10945_v55 }
 0x35e   :  { %v7933_v15 = vpop.f32.mrf.mxu1  ;;  %8124 = vmatmul.mubr.bf16.gmra.mxu1 %v11063_v5 }
 0x35f   :  { %v11067_v40 = vadd.f32 %v8013_v38, %v7933_v15  ;;  %8127 = vmatprep.mubr.bf16.mxu1 %v2236_v28  ;;  %v2240_v28 = vpack.c.bf16 %v2199_v19, %v2198_v49  ;;  %v2205_v49 = vld [vmem:[#allocation2 + $0x292] sm:$0xff] }
 0x360   :  { %v1562_v41 = vpop.f32.mrf.mxu1  ;;  %v8017_v55 = vpop.f32.mrf.mxu0 }
 0x361   :  { %v11070_v31 = vadd.f32 %v1899_v6, %v1562_v41 }
 0x362   :  { %v7934_v36 = vpop.f32.mrf.mxu1  ;;  %v1915_v8 = vpop.f32.mrf.mxu0 }
 0x363   :  { %v11072_v47 = vadd.f32 %v8014_v20, %v7934_v36  ;;  %v2201_v36 = vld [vmem:[#allocation2 + $0x262] sm:$0xff] }
 0x364   :  { %v1565_v11 = vpop.f32.mrf.mxu1  ;;  %8208 = vmatmul.mubr.bf16.gmra.mxu0 %v10947_v10  ;;  %v8018_v26 = vpop.f32.mrf.mxu0  ;;  %v2239_v10 = vpack.c.bf16 %v2197_v30, %v2196_v29 }
 0x365   :  { %v11074_v42 = vadd.f32 %v1902_v3, %v1565_v11  ;;  %8211 = vmatprep.mubr.bf16.mxu0 %v10953_v37  ;;  %v2203_v11 = vld [vmem:[#allocation2 + $0x27a] sm:$0xff] }
 0x366   :  { %v7937_v43 = vpop.f32.mrf.mxu1  ;;  %8128 = vmatmul.mubr.bf16.gmra.mxu1 %v2237_v2  ;;  %v1918_v25 = vpop.f32.mrf.mxu0 }
 0x367   :  { %v11077_v33 = vadd.f32 %v8017_v55, %v7937_v43  ;;  %8131 = vmatprep.mubr.bf16.mxu1 %v2238_v18  ;;  %v2242_v55 = vpack.c.bf16 %v2203_v11, %v2202_v57  ;;  %v2208_v11 = vld [vmem:[#allocation2 + $0x2ba] sm:$0xff] }
 0x368   :  { %v1578_v12 = vpop.f32.mrf.mxu1 }
 0x369   :  { %v11080_v17 = vadd.f32 %v1915_v8, %v1578_v12 }
 0x36a   :  { %v7938_v22 = vpop.f32.mrf.mxu1 }
 0x36b   :  { %v11082_v56 = vadd.f32 %v8018_v26, %v7938_v22  ;;  %v2204_v26 = vld [vmem:[#allocation2 + $0x28a] sm:$0xff] }
 0x36c   :  { %v1581_v54 = vpop.f32.mrf.mxu1  ;;  %v8021_v37 = vpop.f32.mrf.mxu0  ;;  %8212 = vmatmul.mubr.bf16.gmra.mxu0 %v10955_v63  ;;  %v2241_v63 = vpack.c.bf16 %v2201_v36, %v2200_v39 }
 0x36d   :  { %v11084_v62 = vadd.f32 %v1918_v25, %v1581_v54  ;;  %8215 = vmatprep.mubr.bf16.mxu0 %v10961_v52  ;;  %v2206_v25 = vld [vmem:[#allocation2 + $0x2a2] sm:$0xff] }
 0x36e   :  { %v7941_v15 = vpop.f32.mrf.mxu1  ;;  %8132 = vmatmul.mubr.bf16.gmra.mxu1 %v2239_v10  ;;  %v1931_v6 = vpop.f32.mrf.mxu0  ;;  %v2207_v10 = vld [vmem:[#allocation2 + $0x2aa] sm:$0xff] }
 0x36f   :  { %v11087_v38 = vadd.f32 %v8021_v37, %v7941_v15  ;;  %8135 = vmatprep.mubr.bf16.mxu1 %v2240_v28 }
 0x370   :  { %v1594_v41 = vpop.f32.mrf.mxu1  ;;  %v8022_v0 = vpop.f32.mrf.mxu0 }
 0x371   :  { %v11090_v4 = vadd.f32 %v1931_v6, %v1594_v41  ;;  %v2244_v6 = vpack.c.bf16 %v2207_v10, %v2206_v25 }
 0x372   :  { %v7942_v20 = vpop.f32.mrf.mxu1  ;;  %v1934_v18 = vpop.f32.mrf.mxu0 }
 0x373   :  { %v11092_v3 = vadd.f32 %v8022_v0, %v7942_v20 }
 0x374   :  { %v1597_v2 = vpop.f32.mrf.mxu1  ;;  %v8025_v52 = vpop.f32.mrf.mxu0  ;;  %8216 = vmatmul.mubr.bf16.gmra.mxu0 %v10963_v60  ;;  %v2243_v60 = vpack.c.bf16 %v2205_v49, %v2204_v26 }
 0x375   :  { %v11094_v43 = vadd.f32 %v1934_v18, %v1597_v2  ;;  %8219 = vmatprep.mubr.bf16.mxu0 %v10969_v23  ;;  %v2209_v2 = vld [vmem:[#allocation2 + $0x2c2] sm:$0xff]  ;;  %v11112_v18 = vld [vmem:[#allocation8 + $0x1f8] sm:$0xff]  }
 0x376   :  { %v7945_v12 = vpop.f32.mrf.mxu1  ;;  %8136 = vmatmul.mubr.bf16.gmra.mxu1 %v2241_v63  ;;  %v1947_v30 = vpop.f32.mrf.mxu0  ;;  %8475 = vmatprep.subr.bf16.mxu0 %v11112_v18  ;;  %v2245_v26 = vpack.c.bf16 %v2209_v2, %v2208_v11 }
 0x377   :  { %v11097_v8 = vadd.f32 %v8025_v52, %v7945_v12  ;;  %8139 = vmatprep.mubr.bf16.mxu1 %v2242_v55  ;;  %v2210_v12 = vld [vmem:[#allocation2 + $0x2d2] sm:$0xff]  ;;  %v2211_v52 = vld [vmem:[#allocation2 + $0x2da] sm:$0xff] }
 0x378   :  { %v1610_v29 = vpop.f32.mrf.mxu1  ;;  %v8026_v54 = vpop.f32.mrf.mxu0  ;;  %v2246_v49 = vpack.c.bf16 %v2211_v52, %v2210_v12 }
 0x379   :  { %v11100_v22 = vadd.f32 %v1947_v30, %v1610_v29 }
 0x37a   :  { %v7946_v19 = vpop.f32.mrf.mxu1  ;;  %v1950_v37 = vpop.f32.mrf.mxu0 }
 0x37b   :  { %v11102_v28 = vadd.f32 %v8026_v54, %v7946_v19 }
 0x37c   :  { %v1613_v15 = vpop.f32.mrf.mxu1  ;;  %v8029_v23 = vpop.f32.mrf.mxu0  ;;  %8220 = vmatmul.mubr.bf16.gmra.mxu0 %v10971_v7 }
 0x37d   :  { %v11104_v41 = vadd.f32 %v1950_v37, %v1613_v15  ;;  %8223 = vmatprep.mubr.bf16.mxu0 %v10977_v50 }
 0x37e   :  { %v7949_v39 = vpop.f32.mrf.mxu1  ;;  %8140 = vmatmul.mubr.bf16.gmra.mxu1 %v2243_v60  ;;  %v1963_v0 = vpop.f32.mrf.mxu0  ;;  %v2212_v60 = vld [vmem:[#allocation2 + $0x2ea] sm:$0xff] }
 0x37f   :  { %v11107_v36 = vadd.f32 %v8029_v23, %v7949_v39  ;;  %8143 = vmatprep.mubr.bf16.mxu1 %v2244_v6  ;;  %v2213_v6 = vld [vmem:[#allocation2 + $0x2f2] sm:$0xff] }
 0x380   :  { %v1626_v20 = vpop.f32.mrf.mxu1  ;;  %v8030_v55 = vpop.f32.mrf.mxu0 }
 0x381   :  { %v11110_v57 = vadd.f32 %v1963_v0, %v1626_v20  ;;  %v2214_v20 = vld [vmem:[#allocation2 + $0x302] sm:$0xff]  ;;  %v2215_v0 = vld [vmem:[#allocation2 + $0x30a] sm:$0xff] }
 0x382   :  { %v7950_v63 = vpop.f32.mrf.mxu1  ;;  %v1966_v30 = vpop.f32.mrf.mxu0  ;;  %v2248_v12 = vpack.c.bf16 %v2215_v0, %v2214_v20 }
 0x383   :  { %v11114_v29 = vadd.f32 %v8030_v55, %v7950_v63 }
 0x384   :  { %v1629_v7 = vpop.f32.mrf.mxu1  ;;  %v8033_v54 = vpop.f32.mrf.mxu0  ;;  %8224 = vmatmul.mubr.bf16.gmra.mxu0 %v10979_v61  ;;  %v2247_v61 = vpack.c.bf16 %v2213_v6, %v2212_v60 }
 0x385   :  { %v11117_v50 = vadd.f32 %v1966_v30, %v1629_v7  ;;  %8227 = vmatprep.mubr.bf16.mxu0 %v10985_v13 }
 0x386   :  { %v7953_v19 = vpop.f32.mrf.mxu1  ;;  %8144 = vmatmul.mubr.bf16.gmra.mxu1 %v2245_v26  ;;  %v1979_v15 = vpop.f32.mrf.mxu0 }
 0x387   :  { %v11120_v25 = vadd.f32 %v8033_v54, %v7953_v19  ;;  %8147 = vmatprep.mubr.bf16.mxu1 %v2246_v49  ;;  %v2217_v49 = vld [vmem:[#allocation2 + $0x322] sm:$0xff]  ;;  %v2216_v54 = vld [vmem:[#allocation2 + $0x31a] sm:$0xff] }
 0x388   :  { %v1642_v10 = vpop.f32.mrf.mxu1  ;;  %v8034_v23 = vpop.f32.mrf.mxu0 }
 0x389   :  { %v11123_v37 = vadd.f32 %v1979_v15, %v1642_v10  ;;  %v2730_v10 = vld [vmem:[#allocation2 + $0x330] sm:$0xff]  ;;  %v2731_v15 = vld [vmem:[#allocation2 + $0x338] sm:$0xff] }
 0x38a   :  { %v7954_v39 = vpop.f32.mrf.mxu1  ;;  %v1982_v63 = vpop.f32.mrf.mxu0 }
 0x38b   :  { %v11125_v11 = vadd.f32 %v8034_v23, %v7954_v39  ;;  %v3182_v39 = vld [vmem:[#allocation2 + $0x19] sm:$0xff]  ;;  %v3183_v23 = vld [vmem:[#allocation2 + $0x21] sm:$0xff] }
 0x38c   :  { %v1645_v2 = vpop.f32.mrf.mxu1  ;;  %v8037_v13 = vpop.f32.mrf.mxu0  ;;  %8228 = vmatmul.mubr.bf16.gmra.mxu0 %v10987_v16 }
 0x38d   :  { %v11127_v55 = vadd.f32 %v1982_v63, %v1645_v2  ;;  %8231 = vmatprep.mubr.bf16.mxu0 %v10995_v44  ;;  %v2249_v2 = vpack.c.bf16 %v2217_v49, %v2216_v54  ;;  %v2763_v63 = vpack.c.bf16 %v2731_v15, %v2730_v10  ;;  %v3246_v44 = vpack.c.bf16 %v3183_v23, %v3182_v39  ;;  %v3186_v10 = vld [vmem:[#allocation2 + $0x49] sm:$0xff]  ;;  %v3187_v15 = vld [vmem:[#allocation2 + $0x51] sm:$0xff] }
 0x38e   :  { %v7957_v52 = vpop.f32.mrf.mxu1  ;;  %8148 = vmatmul.mubr.bf16.gmra.mxu1 %v2247_v61  ;;  %v1995_v26 = vpop.f32.mrf.mxu0 }
 0x38f   :  { %v11130_v7 = vadd.f32 %v8037_v13, %v7957_v52  ;;  %8151 = vmatprep.mubr.bf16.mxu1 %v2248_v12 }
 0x390   :  { %v1658_v30 = vpop.f32.mrf.mxu1  ;;  %v8038_v6 = vpop.f32.mrf.mxu0 }
 0x391   :  { %v11133_v19 = vadd.f32 %v1995_v26, %v1658_v30 }
 0x392   :  { %v7958_v60 = vpop.f32.mrf.mxu1  ;;  %v1998_v0 = vpop.f32.mrf.mxu0 }
 0x393   :  { %v11135_v20 = vadd.f32 %v8038_v6, %v7958_v60  ;;  %v3184_v6 = vld [vmem:[#allocation2 + $0x31] sm:$0xff] }
 0x394   :  { %v1661_v16 = vpop.f32.mrf.mxu1  ;;  %v8041_v52 = vpop.f32.mrf.mxu0  ;;  %8232 = vmatmul.mubr.bf16.gmra.mxu0 %v2763_v63 }
 0x395   :  { %14783 = vst [vmem:[#allocation36_spill] sm:$0xff] %v11135_v20  ;;  %v11137_v61 = vadd.f32 %v1998_v0, %v1661_v16  ;;  %8331 = vmatprep.mubr.bf16.mxu0 %v10999_v9  ;;  %v3185_v20 = vld [vmem:[#allocation2 + $0x39] sm:$0xff] }
 0x396   :  { %v7961_v12 = vpop.f32.mrf.mxu1  ;;  %8152 = vmatmul.mubr.bf16.gmra.mxu1 %v2249_v2  ;;  %v2011_v26 = vpop.f32.mrf.mxu0  ;;  %v3247_v0 = vpack.c.bf16 %v3185_v20, %v3184_v6  ;;  %v8798_v2 = vld [vmem:[#allocation8 + $0x1b0] sm:$0xff]   ;;  %v8799_v20 = vld [vmem:[#allocation8 + $0x1a8] sm:$0xff]  }
 0x397   :  { %v11139_v13 = vadd.f32 %v8041_v52, %v7961_v12  ;;  %8251 = vmatprep.mubr.bf16.mxu1 %v3246_v44  ;;  %v3248_v44 = vpack.c.bf16 %v3187_v15, %v3186_v10  ;;  %v8805_v52 = vld [vmem:[#allocation8 + $0x1f0] sm:$0xff]  }
 0x398   :  { %v1674_v30 = vpop.f32.mrf.mxu1  ;;  %v8042_v54 = vpop.f32.mrf.mxu0  ;;  %v3189_v10 = vld [vmem:[#allocation2 + $0x69] sm:$0xff] }
 0x399   :  { %v11142_v60 = vadd.f32 %v2011_v26, %v1674_v30 }
 0x39a   :  { %v7962_v49 = vpop.f32.mrf.mxu1  ;;  %v2014_v16 = vpop.f32.mrf.mxu0 }
 0x39b   :  { %v11144_v39 = vadd.f32 %v8042_v54, %v7962_v49  ;;  %v3188_v54 = vld [vmem:[#allocation2 + $0x61] sm:$0xff] }
 0x39c   :  { %v1677_v23 = vpop.f32.mrf.mxu1  ;;  %v8045_v12 = vpop.f32.mrf.mxu0  ;;  %8332 = vmatmul.mubr.bf16.vlgmr.msra.gmra.mxu0 %v11001_v51 }
 0x39d   :  { %v11146_v63 = vadd.f32 %v2014_v16, %v1677_v23  ;;  %8335 = vmatprep.mubr.bf16.mxu0 %v11008_v34  ;;  %8476 = vmatpush3.bf16.msra.mxu0 %v11112_v18  ;;  %v3190_v23 = vld [vmem:[#allocation2 + $0x79] sm:$0xff]  ;;  %v3191_v16 = vld [vmem:[#allocation2 + $0x81] sm:$0xff] }
 0x39e   :  { %v7965_v9 = vpop.f32.mrf.mxu1  ;;  %8252 = vmatmul.mubr.bf16.vlgmr.msra.gmra.mxu1 %v3247_v0  ;;  %v2027_v49 = vpop.f32.mrf.mxu0  ;;  %8477 = vmatprep.subr.bf16.mxu0 %v8805_v52 }
 0x39f   :  { %14784 = vst [vmem:[#allocation37_spill] sm:$0xff] %v11146_v63  ;;  %v11149_v30 = vadd.f32 %v8045_v12, %v7965_v9  ;;  %8396 = vmatpush3.bf16.msra.mxu1 %v11032_v21  ;;  %8255 = vmatprep.mubr.bf16.mxu1 %v3248_v44  ;;  %v3249_v44 = vpack.c.bf16 %v3189_v10, %v3188_v54  ;;  %v8806_v9 = vld [vmem:[#allocation8 + $0x1e8] sm:$0xff]  }
 0x3a0   :  { %v1690_v26 = vpop.f32.mrf.mxu1  ;;  %8397 = vmatprep.subr.bf16.mxu1 %v8798_v2  ;;  %v8046_v51 = vpop.f32.mrf.mxu0 }
 0x3a1   :  { %14785 = vst [vmem:[#allocation38_spill] sm:$0xff] %v11149_v30  ;;  %v11153_v6 = vadd.f32 %v2027_v49, %v1690_v26  ;;  %v3250_v26 = vpack.c.bf16 %v3191_v16, %v3190_v23  ;;  %v8800_v49 = vld [vmem:[#allocation8 + $0x1a0] sm:$0xff]   ;;  %8478 = vmatpush3.bf16.msra.mxu0 %v8805_v52  ;;  %v8801_v52 = vld [vmem:[#allocation8 + $0x198] sm:$0xff]  }
 0x3a2   :  { %v7966_v15 = vpop.f32.mrf.mxu1  ;;  %v2030_v34 = vpop.f32.mrf.mxu0  ;;  %v8807_v30 = vld [vmem:[#allocation8 + $0x1e0] sm:$0xff]   ;;  %8479 = vmatprep.subr.bf16.mxu0 %v8806_v9 }
 0x3a3   :  { %14786 = vst [vmem:[#allocation39_spill] sm:$0xff] %v11153_v6  ;;  %v11156_v0 = vadd.f32 %v8046_v51, %v7966_v15  ;;  %8398 = vmatpush3.bf16.msra.mxu1 %v8798_v2  ;;  %v3192_v15 = vld [vmem:[#allocation2 + $0x91] sm:$0xff]  ;;  %v3193_v51 = vld [vmem:[#allocation2 + $0x99] sm:$0xff] }
 0x3a4   :  { %v1693_v21 = vpop.f32.mrf.mxu1  ;;  %8399 = vmatprep.subr.bf16.mxu1 %v8799_v20  ;;  %v8049_v18 = vpop.f32.mrf.mxu0  ;;  %8336 = vmatmul.mubr.bf16.gmra.mxu0 %v11010_v14  ;;  %v3194_v14 = vld [vmem:[#allocation2 + $0xa9] sm:$0xff] }
 0x3a5   :  { %v11158_v12 = vadd.f32 %v2030_v34, %v1693_v21  ;;  %8339 = vmatprep.mubr.bf16.mxu0 %v11016_v35  ;;  %8480 = vmatpush3.bf16.msra.mxu0 %v8806_v9  ;;  %v3195_v21 = vld [vmem:[#allocation2 + $0xb1] sm:$0xff] }
 0x3a6   :  { %v7969_v6 = vpop.f32.mrf.mxu1  ;;  %8256 = vmatmul.mubr.bf16.gmra.mxu1 %v3249_v44  ;;  %v2043_v54 = vpop.f32.mrf.mxu0  ;;  %8481 = vmatprep.subr.bf16.mxu0 %v8807_v30  ;;  %v3251_v44 = vpack.c.bf16 %v3193_v51, %v3192_v15 }
 0x3a7   :  { %v11161_v63 = vadd.f32 %v8049_v18, %v7969_v6  ;;  %8259 = vmatprep.mubr.bf16.mxu1 %v3250_v26  ;;  %8400 = vmatpush3.bf16.msra.mxu1 %v8799_v20  ;;  %v8809_v20 = vld [vmem:[#allocation8 + $0x1d8] sm:$0xff]   ;;  %v3252_v18 = vpack.c.bf16 %v3195_v21, %v3194_v14 }
 0x3a8   :  { %v1706_v2 = vpop.f32.mrf.mxu1  ;;  %8401 = vmatprep.subr.bf16.mxu1 %v8800_v49  ;;  %v8050_v16 = vpop.f32.mrf.mxu0 }
 0x3a9   :  { %14787 = vst [vmem:[#allocation33_spill] sm:$0xff] %v11161_v63  ;;  %v11164_v10 = vadd.f32 %v2043_v54, %v1706_v2  ;;  %v8802_v2 = vld [vmem:[#allocation8 + $0x190] sm:$0xff]   ;;  %8482 = vmatpush3.bf16.msra.mxu0 %v8807_v30  ;;  %v8803_v30 = vld [vmem:[#allocation8 + $0x188] sm:$0xff]  }
 0x3aa   :  { %v7970_v23 = vpop.f32.mrf.mxu1  ;;  %v2046_v35 = vpop.f32.mrf.mxu0  ;;  %8483 = vmatprep.subr.bf16.mxu0 %v8809_v20 }
 0x3ab   :  { %14788 = vst [vmem:[#allocation19_spill] sm:$0xff] %v11164_v10  ;;  %v11166_v6 = vadd.f32 %v8050_v16, %v7970_v23  ;;  %8402 = vmatpush3.bf16.msra.mxu1 %v8800_v49  ;;  %v8810_v10 = vld [vmem:[#allocation8 + $0x1d0] sm:$0xff]   ;;  %v3196_v23 = vld [vmem:[#allocation2 + $0xc1] sm:$0xff] }
 0x3ac   :  { %v1709_v34 = vpop.f32.mrf.mxu1  ;;  %8403 = vmatprep.subr.bf16.mxu1 %v8801_v52  ;;  %v8053_v9 = vpop.f32.mrf.mxu0  ;;  %8340 = vmatmul.mubr.bf16.gmra.mxu0 %v11018_v45  ;;  %v3197_v16 = vld [vmem:[#allocation2 + $0xc9] sm:$0xff]  ;;  %v3198_v45 = vld [vmem:[#allocation2 + $0xd9] sm:$0xff] }
 0x3ad   :  { %v11168_v26 = vadd.f32 %v2046_v35, %v1709_v34  ;;  %8343 = vmatprep.mubr.bf16.mxu0 %v11024_v58  ;;  %8484 = vmatpush3.bf16.msra.mxu0 %v8809_v20  ;;  %v3199_v34 = vld [vmem:[#allocation2 + $0xe1] sm:$0xff] }
 0x3ae   :  { %v7973_v54 = vpop.f32.mrf.mxu1  ;;  %8260 = vmatmul.mubr.bf16.gmra.mxu1 %v3251_v44  ;;  %v2059_v49 = vpop.f32.mrf.mxu0  ;;  %8485 = vmatprep.subr.bf16.mxu0 %v8810_v10 }
 0x3af   :  { %v11171_v63 = vadd.f32 %v8053_v9, %v7973_v54  ;;  %8263 = vmatprep.mubr.bf16.mxu1 %v3252_v18  ;;  %8404 = vmatpush3.bf16.msra.mxu1 %v8801_v52  ;;  %v3253_v18 = vpack.c.bf16 %v3197_v16, %v3196_v23  ;;  %v8811_v52 = vld [vmem:[#allocation8 + $0x1c8] sm:$0xff]   ;;  %v3254_v9 = vpack.c.bf16 %v3199_v34, %v3198_v45 }
 0x3b0   :  { %v1722_v15 = vpop.f32.mrf.mxu1  ;;  %8405 = vmatprep.subr.bf16.mxu1 %v8802_v2  ;;  %v8054_v21 = vpop.f32.mrf.mxu0  ;;  %v3202_v34 = vld [vmem:[#allocation2 + $0x109] sm:$0xff] }
 0x3b1   :  { %14789 = vst [vmem:[#allocation34_spill] sm:$0xff] %v11171_v63  ;;  %v11174_v51 = vadd.f32 %v2059_v49, %v1722_v15  ;;  %v8808_v15 = vld [vmem:[#allocation8 + $0x180] sm:$0xff]   ;;  %8486 = vmatpush3.bf16.msra.mxu0 %v8810_v10  ;;  %v11186_v10 = vld [vmem:[#allocation8 + $0x238] sm:$0xff]  }
 0x3b2   :  { %v7974_v14 = vpop.f32.mrf.mxu1  ;;  %v2062_v58 = vpop.f32.mrf.mxu0  ;;  %8487 = vmatprep.subr.bf16.mxu0 %v8811_v52 }
 0x3b3   :  { %14790 = vst [vmem:[#allocation18_spill] sm:$0xff] %v11174_v51  ;;  %v11176_v35 = vadd.f32 %v8054_v21, %v7974_v14  ;;  %8406 = vmatpush3.bf16.msra.mxu1 %v8802_v2  ;;  %v8812_v51 = vld [vmem:[#allocation8 + $0x1c0] sm:$0xff]   ;;  %v3200_v14 = vld [vmem:[#allocation2 + $0xf1] sm:$0xff] }
 0x3b4   :  { %v1725_v44 = vpop.f32.mrf.mxu1  ;;  %8407 = vmatprep.subr.bf16.mxu1 %v8803_v30  ;;  %v8057_v20 = vpop.f32.mrf.mxu0  ;;  %8344 = vmatmul.mubr.bf16.gmra.mxu0 %v11026_v46  ;;  %v3201_v21 = vld [vmem:[#allocation2 + $0xf9] sm:$0xff] }
 0x3b5   :  { %v11178_v54 = vadd.f32 %v2062_v58, %v1725_v44  ;;  %8347 = vmatprep.mubr.bf16.mxu0 %v11034_v48  ;;  %8488 = vmatpush3.bf16.msra.mxu0 %v8811_v52  ;;  %v3203_v44 = vld [vmem:[#allocation2 + $0x111] sm:$0xff] }
 0x3b6   :  { %v7977_v49 = vpop.f32.mrf.mxu1  ;;  %8264 = vmatmul.mubr.bf16.gmra.mxu1 %v3253_v18  ;;  %v2075_v2 = vpop.f32.mrf.mxu0  ;;  %8489 = vmatprep.subr.bf16.mxu0 %v8812_v51 }
 0x3b7   :  { %v11181_v63 = vadd.f32 %v8057_v20, %v7977_v49  ;;  %8267 = vmatprep.mubr.bf16.mxu1 %v3254_v9  ;;  %8408 = vmatpush3.bf16.msra.mxu1 %v8803_v30  ;;  %v3255_v9 = vpack.c.bf16 %v3201_v21, %v3200_v14  ;;  %v3256_v49 = vpack.c.bf16 %v3203_v44, %v3202_v34  ;;  %v3205_v21 = vld [vmem:[#allocation2 + $0x129] sm:$0xff]  ;;  %v3206_v34 = vld [vmem:[#allocation2 + $0x139] sm:$0xff]  ;;  %v3207_v44 = vld [vmem:[#allocation2 + $0x141] sm:$0xff] }
 0x3b8   :  { %v1738_v23 = vpop.f32.mrf.mxu1  ;;  %8409 = vmatprep.subr.bf16.mxu1 %v8808_v15  ;;  %v8058_v46 = vpop.f32.mrf.mxu0 }
 0x3b9   :  { %v11184_v16 = vadd.f32 %v2075_v2, %v1738_v23  ;;  %8490 = vmatpush3.bf16.msra.mxu0 %v8812_v51 }
 0x3ba   :  { %v7978_v45 = vpop.f32.mrf.mxu1  ;;  %v2078_v18 = vpop.f32.mrf.mxu0 }
 0x3bb   :  { %v11188_v58 = vadd.f32 %v8058_v46, %v7978_v45  ;;  %8410 = vmatpush3.bf16.msra.mxu1 %v8808_v15  ;;  %v3204_v15 = vld [vmem:[#allocation2 + $0x121] sm:$0xff] }
 0x3bc   :  { %v1741_v48 = vpop.f32.mrf.mxu1  ;;  %8555 = vmatprep.subr.bf16.mxu1 %v11186_v10  ;;  %v8061_v20 = vpop.f32.mrf.mxu0  ;;  %8348 = vmatmul.mubr.bf16.gmra.mxu0 %v11036_v32  ;;  %v3257_v32 = vpack.c.bf16 %v3205_v21, %v3204_v15 }
 0x3bd   :  { %v11190_v30 = vadd.f32 %v2078_v18, %v1741_v48  ;;  %8351 = vmatprep.mubr.bf16.mxu0 %v11043_v59 }
 0x3be   :  { %v7981_v52 = vpop.f32.mrf.mxu1  ;;  %8268 = vmatmul.mubr.bf16.gmra.mxu1 %v3255_v9  ;;  %v2091_v45 = vpop.f32.mrf.mxu0 }
 0x3bf   :  { %v11194_v23 = vadd.f32 %v8061_v20, %v7981_v52  ;;  %8271 = vmatprep.mubr.bf16.mxu1 %v3256_v49  ;;  %v3258_v49 = vpack.c.bf16 %v3207_v44, %v3206_v34  ;;  %v3211_v34 = vld [vmem:[#allocation2 + $0x171] sm:$0xff] }
 0x3c0   :  { %v1754_v2 = vpop.f32.mrf.mxu1  ;;  %v8062_v51 = vpop.f32.mrf.mxu0 }
 0x3c1   :  { %14791 = vst [vmem:[#allocation20_spill] sm:$0xff] %v11194_v23  ;;  %v11197_v14 = vadd.f32 %v2091_v45, %v1754_v2 }
 0x3c2   :  { %v7982_v46 = vpop.f32.mrf.mxu1  ;;  %v2094_v9 = vpop.f32.mrf.mxu0 }
 0x3c3   :  { %14792 = vst [vmem:[#allocation23_spill] sm:$0xff] %v11197_v14  ;;  %v11199_v48 = vadd.f32 %v8062_v51, %v7982_v46  ;;  %v3208_v51 = vld [vmem:[#allocation2 + $0x151] sm:$0xff] }
 0x3c4   :  { %v1757_v18 = vpop.f32.mrf.mxu1  ;;  %v8065_v59 = vpop.f32.mrf.mxu0  ;;  %8352 = vmatmul.mubr.bf16.gmra.mxu0 %v11045_v1 }
 0x3c5   :  { %14793 = vst [vmem:[#allocation21_spill] sm:$0xff] %v11199_v48  ;;  %v11201_v52 = vadd.f32 %v2094_v9, %v1757_v18  ;;  %8355 = vmatprep.mubr.bf16.mxu0 %v11051_v53  ;;  %v3209_v48 = vld [vmem:[#allocation2 + $0x159] sm:$0xff]  ;;  %v3210_v18 = vld [vmem:[#allocation2 + $0x169] sm:$0xff] }
 0x3c6   :  { %v7985_v20 = vpop.f32.mrf.mxu1  ;;  %8272 = vmatmul.mubr.bf16.gmra.mxu1 %v3257_v32  ;;  %v2107_v14 = vpop.f32.mrf.mxu0  ;;  %v3259_v1 = vpack.c.bf16 %v3209_v48, %v3208_v51  ;;  %v3726_v48 = vld [vmem:[#allocation2 + $0x182] sm:$0xff]  ;;  %v3727_v51 = vld [vmem:[#allocation2 + $0x18a] sm:$0xff] }
 0x3c7   :  { %14794 = vst [vmem:[#allocation25_spill] sm:$0xff] %v11201_v52  ;;  %v11204_v2 = vadd.f32 %v8065_v59, %v7985_v20  ;;  %8275 = vmatprep.mubr.bf16.mxu1 %v3258_v49  ;;  %v3260_v49 = vpack.c.bf16 %v3211_v34, %v3210_v18  ;;  %v3214_v34 = vld [vmem:[#allocation2 + $0x1c9] sm:$0xff] }
 0x3c8   :  { %v1770_v45 = vpop.f32.mrf.mxu1  ;;  %v8066_v21 = vpop.f32.mrf.mxu0 }
 0x3c9   :  { %14795 = vst [vmem:[#allocation22_spill] sm:$0xff] %v11204_v2  ;;  %v11207_v46 = vadd.f32 %v2107_v14, %v1770_v45 }
 0x3ca   :  { %v7986_v15 = vpop.f32.mrf.mxu1  ;;  %v2110_v32 = vpop.f32.mrf.mxu0 }
 0x3cb   :  { %14796 = vst [vmem:[#allocation24_spill] sm:$0xff] %v11207_v46  ;;  %v11209_v44 = vadd.f32 %v8066_v21, %v7986_v15  ;;  %v3212_v15 = vld [vmem:[#allocation2 + $0x181] sm:$0xff] }
 0x3cc   :  { %v1773_v9 = vpop.f32.mrf.mxu1  ;;  %v8069_v53 = vpop.f32.mrf.mxu0  ;;  %8356 = vmatmul.mubr.bf16.gmra.mxu0 %v11053_v24 }
 0x3cd   :  { %14797 = vst [vmem:[#allocation27_spill] sm:$0xff] %v11209_v44  ;;  %v11211_v20 = vadd.f32 %v2110_v32, %v1773_v9  ;;  %8359 = vmatprep.mubr.bf16.mxu0 %v11059_v27  ;;  %v3213_v44 = vld [vmem:[#allocation2 + $0x189] sm:$0xff]  ;;  %v3215_v32 = vld [vmem:[#allocation2 + $0x1d1] sm:$0xff] }
 0x3ce   :  { %v7989_v59 = vpop.f32.mrf.mxu1  ;;  %8276 = vmatmul.mubr.bf16.gmra.mxu1 %v3259_v1  ;;  %v2123_v46 = vpop.f32.mrf.mxu0  ;;  %v3262_v27 = vpack.c.bf16 %v3215_v32, %v3214_v34  ;;  %v3219_v32 = vld [vmem:[#allocation2 + $0x201] sm:$0xff] }
 0x3cf   :  { %14798 = vst [vmem:[#allocation28_spill] sm:$0xff] %v11211_v20  ;;  %v11214_v14 = vadd.f32 %v8069_v53, %v7989_v59  ;;  %8279 = vmatprep.mubr.bf16.mxu1 %v3260_v49  ;;  %v3261_v53 = vpack.c.bf16 %v3213_v44, %v3212_v15  ;;  %v3775_v49 = vpack.c.bf16 %v3727_v51, %v3726_v48  ;;  %v3730_v44 = vld [vmem:[#allocation2 + $0x1e2] sm:$0xff]  ;;  %v3731_v15 = vld [vmem:[#allocation2 + $0x1ea] sm:$0xff]  ;;  %v3218_v48 = vld [vmem:[#allocation2 + $0x1f9] sm:$0xff] }
 0x3d0   :  { %v1786_v45 = vpop.f32.mrf.mxu1  ;;  %v8070_v18 = vpop.f32.mrf.mxu0 }
 0x3d1   :  { %14799 = vst [vmem:[#allocation26_spill] sm:$0xff] %v11214_v14  ;;  %v11217_v21 = vadd.f32 %v2123_v46, %v1786_v45 }
 0x3d2   :  { %v7990_v9 = vpop.f32.mrf.mxu1  ;;  %v2126_v59 = vpop.f32.mrf.mxu0 }
 0x3d3   :  { %14800 = vst [vmem:[#allocation29_spill] sm:$0xff] %v11217_v21  ;;  %v11219_v1 = vadd.f32 %v8070_v18, %v7990_v9  ;;  %v3216_v9 = vld [vmem:[#allocation2 + $0x1e1] sm:$0xff]  ;;  %v3217_v18 = vld [vmem:[#allocation2 + $0x1e9] sm:$0xff] }
 0x3d4   :  { %v1789_v24 = vpop.f32.mrf.mxu1  ;;  %v8073_v2 = vpop.f32.mrf.mxu0  ;;  %8360 = vmatmul.mubr.bf16.gmra.mxu0 %v3775_v49  ;;  %v3263_v49 = vpack.c.bf16 %v3217_v18, %v3216_v9  ;;  %v3734_v18 = vld [vmem:[#allocation2 + $0x212] sm:$0xff] }
 0x3d5   :  { %14801 = vst [vmem:[#allocation30_spill] sm:$0xff] %v11219_v1  ;;  %v11221_v14 = vadd.f32 %v2126_v59, %v1789_v24  ;;  %8363 = vmatprep.mubr.bf16.mxu0 %v11063_v5  ;;  %v3732_v24 = vld [vmem:[#allocation2 + $0x1fa] sm:$0xff]  ;;  %v3733_v59 = vld [vmem:[#allocation2 + $0x202] sm:$0xff]  ;;  %v3777_v5 = vpack.c.bf16 %v3731_v15, %v3730_v44 }
 0x3d6   :  { %v7993_v20 = vpop.f32.mrf.mxu1  ;;  %8280 = vmatmul.mubr.bf16.gmra.mxu1 %v3261_v53  ;;  %v2139_v21 = vpop.f32.mrf.mxu0  ;;  %v3735_v44 = vld [vmem:[#allocation2 + $0x21a] sm:$0xff]  ;;  %v3222_v15 = vld [vmem:[#allocation2 + $0x229] sm:$0xff] }
 0x3d7   :  { %14802 = vst [vmem:[#allocation31_spill] sm:$0xff] %v11221_v14  ;;  %v11223_v46 = vadd.f32 %v8073_v2, %v7993_v20  ;;  %8283 = vmatprep.mubr.bf16.mxu1 %v3262_v27  ;;  %v3778_v14 = vpack.c.bf16 %v3733_v59, %v3732_v24  ;;  %v3223_v24 = vld [vmem:[#allocation2 + $0x231] sm:$0xff] }
 0x3d8   :  { %v1802_v45 = vpop.f32.mrf.mxu1  ;;  %v8074_v34 = vpop.f32.mrf.mxu0  ;;  %v3736_v59 = vld [vmem:[#allocation2 + $0x22a] sm:$0xff] }
 0x3d9   :  { %14803 = vst [vmem:[#allocation17_spill] sm:$0xff] %v11223_v46  ;;  %v11226_v1 = vadd.f32 %v2139_v21, %v1802_v45  ;;  %v3264_v46 = vpack.c.bf16 %v3219_v32, %v3218_v48 }
 0x3da   :  { %v7994_v51 = vpop.f32.mrf.mxu1  ;;  %v2142_v20 = vpop.f32.mrf.mxu0 }
 0x3db   :  { %14804 = vst [vmem:[#allocation32_spill] sm:$0xff] %v11226_v1  ;;  %v11228_v53 = vadd.f32 %v8074_v34, %v7994_v51  ;;  %v3220_v51 = vld [vmem:[#allocation2 + $0x211] sm:$0xff]  ;;  %v3221_v34 = vld [vmem:[#allocation2 + $0x219] sm:$0xff] }
 0x3dc   :  { %v1805_v2 = vpop.f32.mrf.mxu1  ;;  %v8173_v45 = vpop.f32.mrf.mxu0  ;;  %8364 = vmatmul.mubr.bf16.gmra.mxu0 %v3777_v5  ;;  %v3779_v5 = vpack.c.bf16 %v3735_v44, %v3734_v18  ;;  %v3738_v44 = vld [vmem:[#allocation2 + $0x242] sm:$0xff] }
 0x3dd   :  { %14805 = vst [vmem:[#allocation16_spill] sm:$0xff] %v11228_v53  ;;  %v11230_v27 = vadd.f32 %v2142_v20, %v1805_v2  ;;  %8367 = vmatprep.mubr.bf16.mxu0 %v3778_v14  ;;  %v3737_v2 = vld [vmem:[#allocation2 + $0x232] sm:$0xff] }
 0x3de   :  { %v8093_v21 = vpop.f32.mrf.mxu1  ;;  %8284 = vmatmul.mubr.bf16.gmra.mxu1 %v3263_v49  ;;  %v2863_v23 = vpop.f32.mrf.mxu0  ;;  %v3265_v49 = vpack.c.bf16 %v3221_v34, %v3220_v51  ;;  %v3224_v51 = vld [vmem:[#allocation2 + $0x241] sm:$0xff]  ;;  %v3225_v34 = vld [vmem:[#allocation2 + $0x249] sm:$0xff] }
 0x3df   :  { %14806 = vst [vmem:[#allocation35_spill] sm:$0xff] %v11230_v27  ;;  %v2606_v1 = vadd.f32 %v8093_v21, %v11067_v40  ;;  %8287 = vmatprep.mubr.bf16.mxu1 %v3264_v46  ;;  %v3780_v21 = vpack.c.bf16 %v3737_v2, %v3736_v59  ;;  %v3227_v59 = vld [vmem:[#allocation2 + $0x261] sm:$0xff] }
 0x3e0   :  { %v2349_v52 = vpop.f32.mrf.mxu1  ;;  %v8174_v32 = vpop.f32.mrf.mxu0  ;;  %v3740_v2 = vld [vmem:[#allocation2 + $0x25a] sm:$0xff] }
 0x3e1   :  { %v11233_v53 = vadd.f32 %v8173_v45, %v2606_v1  ;;  %v2604_v9 = vadd.f32 %v2349_v52, %v11070_v31  ;;  %v3266_v52 = vpack.c.bf16 %v3223_v24, %v3222_v15  ;;  %v3739_v15 = vld [vmem:[#allocation2 + $0x24a] sm:$0xff] }
 0x3e2   :  { %v8094_v48 = vpop.f32.mrf.mxu1  ;;  %v2866_v46 = vpop.f32.mrf.mxu0 }
 0x3e3   :  { %14807 = vst [vmem:[#allocation40_spill] sm:$0xff] %v11233_v53  ;;  %v11236_v20 = vadd.f32 %v2863_v23, %v2604_v9  ;;  %v2607_v40 = vadd.f32 %v8094_v48, %v11072_v47  ;;  %v3226_v48 = vld [vmem:[#allocation2 + $0x259] sm:$0xff] }
 0x3e4   :  { %v2352_v14 = vpop.f32.mrf.mxu1  ;;  %v8177_v53 = vpop.f32.mrf.mxu0  ;;  %8368 = vmatmul.mubr.bf16.gmra.mxu0 %v3779_v5  ;;  %v3267_v5 = vpack.c.bf16 %v3225_v34, %v3224_v51  ;;  %v3228_v51 = vld [vmem:[#allocation2 + $0x271] sm:$0xff]  ;;  %v3229_v34 = vld [vmem:[#allocation2 + $0x279] sm:$0xff] }
 0x3e5   :  { %v11239_v1 = vadd.f32 %v8174_v32, %v2607_v40  ;;  %v2605_v31 = vadd.f32 %v2352_v14, %v11074_v42  ;;  %8371 = vmatprep.mubr.bf16.mxu0 %v3780_v21  ;;  %v3741_v40 = vld [vmem:[#allocation2 + $0x262] sm:$0xff] }
 0x3e6   :  { %v8097_v45 = vpop.f32.mrf.mxu1  ;;  %8288 = vmatmul.mubr.bf16.gmra.mxu1 %v3265_v49  ;;  %v2879_v9 = vpop.f32.mrf.mxu0  ;;  %v3782_v21 = vpack.c.bf16 %v3741_v40, %v3740_v2  ;;  %v3231_v2 = vld [vmem:[#allocation2 + $0x291] sm:$0xff] }
 0x3e7   :  { %v11242_v27 = vadd.f32 %v2866_v46, %v2605_v31  ;;  %v2610_v23 = vadd.f32 %v8097_v45, %v11077_v33  ;;  %8291 = vmatprep.mubr.bf16.mxu1 %v3266_v52  ;;  %v3781_v31 = vpack.c.bf16 %v3739_v15, %v3738_v44  ;;  %v3268_v52 = vpack.c.bf16 %v3227_v59, %v3226_v48  ;;  %v3742_v15 = vld [vmem:[#allocation2 + $0x272] sm:$0xff]  ;;  %v3743_v48 = vld [vmem:[#allocation2 + $0x27a] sm:$0xff]  ;;  %v3744_v40 = vld [vmem:[#allocation2 + $0x28a] sm:$0xff] }
 0x3e8   :  { %v2365_v47 = vpop.f32.mrf.mxu1  ;;  %v8178_v24 = vpop.f32.mrf.mxu0 }
 0x3e9   :  { %v11245_v18 = vadd.f32 %v8177_v53, %v2610_v23  ;;  %v2608_v42 = vadd.f32 %v2365_v47, %v11080_v17 }
 0x3ea   :  { %v8098_v32 = vpop.f32.mrf.mxu1  ;;  %v2882_v49 = vpop.f32.mrf.mxu0 }
 0x3eb   :  { %v11248_v14 = vadd.f32 %v2879_v9, %v2608_v42  ;;  %v2611_v33 = vadd.f32 %v8098_v32, %v11082_v56  ;;  %v3230_v32 = vld [vmem:[#allocation2 + $0x289] sm:$0xff] }
 0x3ec   :  { %v2368_v46 = vpop.f32.mrf.mxu1  ;;  %v8181_v23 = vpop.f32.mrf.mxu0  ;;  %8372 = vmatmul.mubr.bf16.gmra.mxu0 %v3781_v31  ;;  %v3269_v31 = vpack.c.bf16 %v3229_v34, %v3228_v51  ;;  %v3232_v51 = vld [vmem:[#allocation2 + $0x2a1] sm:$0xff]  ;;  %v3233_v34 = vld [vmem:[#allocation2 + $0x2a9] sm:$0xff] }
 0x3ed   :  { %v11251_v53 = vadd.f32 %v8178_v24, %v2611_v33  ;;  %v2609_v17 = vadd.f32 %v2368_v46, %v11084_v62  ;;  %8375 = vmatprep.mubr.bf16.mxu0 %v3782_v21  ;;  %v3745_v33 = vld [vmem:[#allocation2 + $0x292] sm:$0xff]  ;;  %v3270_v21 = vpack.c.bf16 %v3231_v2, %v3230_v32  ;;  %v3747_v32 = vld [vmem:[#allocation2 + $0x2aa] sm:$0xff] }
 0x3ee   :  { %v8101_v45 = vpop.f32.mrf.mxu1  ;;  %8292 = vmatmul.mubr.bf16.gmra.mxu1 %v3267_v5  ;;  %v2895_v42 = vpop.f32.mrf.mxu0 }
 0x3ef   :  { %v11254_v47 = vadd.f32 %v2882_v49, %v2609_v17  ;;  %v2614_v9 = vadd.f32 %v8101_v45, %v11087_v38  ;;  %8295 = vmatprep.mubr.bf16.mxu1 %v3268_v52  ;;  %v3783_v17 = vpack.c.bf16 %v3743_v48, %v3742_v15  ;;  %v3784_v45 = vpack.c.bf16 %v3745_v33, %v3744_v40  ;;  %v3746_v48 = vld [vmem:[#allocation2 + $0x2a2] sm:$0xff]  ;;  %v3748_v33 = vld [vmem:[#allocation2 + $0x2ba] sm:$0xff] }
 0x3f0   :  { %v2381_v56 = vpop.f32.mrf.mxu1  ;;  %v8182_v59 = vpop.f32.mrf.mxu0  ;;  %v3235_v40 = vld [vmem:[#allocation2 + $0x2c1] sm:$0xff] }
 0x3f1   :  { %v11257_v44 = vadd.f32 %v8181_v23, %v2614_v9  ;;  %v2612_v62 = vadd.f32 %v2381_v56, %v11090_v4 }
 0x3f2   :  { %v8102_v24 = vpop.f32.mrf.mxu1  ;;  %v2898_v5 = vpop.f32.mrf.mxu0 }
 0x3f3   :  { %v11260_v46 = vadd.f32 %v2895_v42, %v2612_v62  ;;  %v2615_v38 = vadd.f32 %v8102_v24, %v11092_v3  ;;  %v3234_v24 = vld [vmem:[#allocation2 + $0x2b9] sm:$0xff] }
 0x3f4   :  { %v2384_v49 = vpop.f32.mrf.mxu1  ;;  %v8185_v9 = vpop.f32.mrf.mxu0  ;;  %8376 = vmatmul.mubr.bf16.gmra.mxu0 %v3783_v17  ;;  %v3271_v17 = vpack.c.bf16 %v3233_v34, %v3232_v51  ;;  %v3236_v51 = vld [vmem:[#allocation2 + $0x2d1] sm:$0xff]  ;;  %v3237_v34 = vld [vmem:[#allocation2 + $0x2d9] sm:$0xff] }
 0x3f5   :  { %v11263_v52 = vadd.f32 %v8182_v59, %v2615_v38  ;;  %v2613_v4 = vadd.f32 %v2384_v49, %v11094_v43  ;;  %8379 = vmatprep.mubr.bf16.mxu0 %v3784_v45  ;;  %v3749_v38 = vld [vmem:[#allocation2 + $0x2c2] sm:$0xff]  ;;  %v3272_v45 = vpack.c.bf16 %v3235_v40, %v3234_v24  ;;  %v3751_v24 = vld [vmem:[#allocation2 + $0x2da] sm:$0xff] }
 0x3f6   :  { %v8105_v23 = vpop.f32.mrf.mxu1  ;;  %8296 = vmatmul.mubr.bf16.gmra.mxu1 %v3269_v31  ;;  %v2911_v62 = vpop.f32.mrf.mxu0 }
 0x3f7   :  { %v11266_v56 = vadd.f32 %v2898_v5, %v2613_v4  ;;  %v2618_v42 = vadd.f32 %v8105_v23, %v11097_v8  ;;  %8299 = vmatprep.mubr.bf16.mxu1 %v3270_v21  ;;  %v3785_v4 = vpack.c.bf16 %v3747_v32, %v3746_v48  ;;  %v3786_v23 = vpack.c.bf16 %v3749_v38, %v3748_v33  ;;  %v3750_v32 = vld [vmem:[#allocation2 + $0x2d2] sm:$0xff]  ;;  %v3752_v38 = vld [vmem:[#allocation2 + $0x2ea] sm:$0xff] }
 0x3f8   :  { %v2397_v3 = vpop.f32.mrf.mxu1  ;;  %v8186_v2 = vpop.f32.mrf.mxu0  ;;  %v3239_v33 = vld [vmem:[#allocation2 + $0x2f1] sm:$0xff] }
 0x3f9   :  { %v11269_v15 = vadd.f32 %v8185_v9, %v2618_v42  ;;  %v2616_v43 = vadd.f32 %v2397_v3, %v11100_v22 }
 0x3fa   :  { %v8106_v59 = vpop.f32.mrf.mxu1  ;;  %v2914_v31 = vpop.f32.mrf.mxu0 }
 0x3fb   :  { %v11272_v49 = vadd.f32 %v2911_v62, %v2616_v43  ;;  %v2619_v8 = vadd.f32 %v8106_v59, %v11102_v28  ;;  %v3238_v59 = vld [vmem:[#allocation2 + $0x2e9] sm:$0xff] }
 0x3fc   :  { %v2400_v5 = vpop.f32.mrf.mxu1  ;;  %v8189_v42 = vpop.f32.mrf.mxu0  ;;  %8380 = vmatmul.mubr.bf16.gmra.mxu0 %v3785_v4  ;;  %v3273_v4 = vpack.c.bf16 %v3237_v34, %v3236_v51  ;;  %v3240_v51 = vld [vmem:[#allocation2 + $0x301] sm:$0xff] }
 0x3fd   :  { %v11275_v21 = vadd.f32 %v8186_v2, %v2619_v8  ;;  %v2617_v22 = vadd.f32 %v2400_v5, %v11104_v41  ;;  %8383 = vmatprep.mubr.bf16.mxu0 %v3786_v23  ;;  %v3753_v8 = vld [vmem:[#allocation2 + $0x2f2] sm:$0xff]  ;;  %v3274_v23 = vpack.c.bf16 %v3239_v33, %v3238_v59  ;;  %v3243_v34 = vld [vmem:[#allocation2 + $0x321] sm:$0xff] }
 0x3fe   :  { %v8109_v9 = vpop.f32.mrf.mxu1  ;;  %8300 = vmatmul.mubr.bf16.gmra.mxu1 %v3271_v17  ;;  %v2927_v43 = vpop.f32.mrf.mxu0  ;;  %v3754_v59 = vld [vmem:[#allocation2 + $0x302] sm:$0xff] }
 0x3ff   :  { %v11278_v3 = vadd.f32 %v2914_v31, %v2617_v22  ;;  %v2622_v62 = vadd.f32 %v8109_v9, %v11107_v36  ;;  %8303 = vmatprep.mubr.bf16.mxu1 %v3272_v45  ;;  %v3787_v22 = vpack.c.bf16 %v3751_v24, %v3750_v32  ;;  %v3788_v9 = vpack.c.bf16 %v3753_v8, %v3752_v38  ;;  %v3241_v24 = vld [vmem:[#allocation2 + $0x309] sm:$0xff]  ;;  %v3242_v38 = vld [vmem:[#allocation2 + $0x319] sm:$0xff] }
 0x400   :  { %v2413_v28 = vpop.f32.mrf.mxu1  ;;  %v8190_v40 = vpop.f32.mrf.mxu0  ;;  %v3756_v8 = vld [vmem:[#allocation2 + $0x31a] sm:$0xff] }
 0x401   :  { %v11281_v48 = vadd.f32 %v8189_v42, %v2622_v62  ;;  %v2620_v41 = vadd.f32 %v2413_v28, %v11110_v57 }
 0x402   :  { %v8110_v2 = vpop.f32.mrf.mxu1  ;;  %v2930_v17 = vpop.f32.mrf.mxu0 }
 0x403   :  { %v11284_v5 = vadd.f32 %v2927_v43, %v2620_v41  ;;  %v2623_v36 = vadd.f32 %v8110_v2, %v11114_v29  ;;  %v3755_v2 = vld [vmem:[#allocation2 + $0x30a] sm:$0xff] }
 0x404   :  { %v2416_v31 = vpop.f32.mrf.mxu1  ;;  %v8193_v62 = vpop.f32.mrf.mxu0  ;;  %8384 = vmatmul.mubr.bf16.gmra.mxu0 %v3787_v22  ;;  %v3275_v22 = vpack.c.bf16 %v3241_v24, %v3240_v51  ;;  %v3244_v51 = vld [vmem:[#allocation2 + $0x331] sm:$0xff]  ;;  %v3245_v24 = vld [vmem:[#allocation2 + $0x339] sm:$0xff] }
 0x405   :  { %v11287_v45 = vadd.f32 %v8190_v40, %v2623_v36  ;;  %v2621_v57 = vadd.f32 %v2416_v31, %v11117_v50  ;;  %8387 = vmatprep.mubr.bf16.mxu0 %v3788_v9  ;;  %v3757_v36 = vld [vmem:[#allocation2 + $0x322] sm:$0xff]  ;;  %v3276_v9 = vpack.c.bf16 %v3243_v34, %v3242_v38  ;;  %v3758_v34 = vld [vmem:[#allocation2 + $0x332] sm:$0xff] }
 0x406   :  { %v8113_v42 = vpop.f32.mrf.mxu1  ;;  %8304 = vmatmul.mubr.bf16.gmra.mxu1 %v3273_v4  ;;  %v2943_v41 = vpop.f32.mrf.mxu0 }
 0x407   :  { %v11290_v28 = vadd.f32 %v2930_v17, %v2621_v57  ;;  %v2626_v43 = vadd.f32 %v8113_v42, %v11120_v25  ;;  %8307 = vmatprep.mubr.bf16.mxu1 %v3274_v23  ;;  %v3789_v57 = vpack.c.bf16 %v3755_v2, %v3754_v59  ;;  %v3790_v42 = vpack.c.bf16 %v3757_v36, %v3756_v8  ;;  %v3759_v2 = vld [vmem:[#allocation2 + $0x33a] sm:$0xff]  ;;  %v4725_v36 = vld [vmem:[#allocation2 + $0x31] sm:$0xff] }
 0x408   :  { %v2429_v29 = vpop.f32.mrf.mxu1  ;;  %v8194_v33 = vpop.f32.mrf.mxu0  ;;  %v4212_v8 = vld [vmem:[#allocation2 + $0x38] sm:$0xff] }
 0x409   :  { %v11293_v32 = vadd.f32 %v8193_v62, %v2626_v43  ;;  %v2624_v50 = vadd.f32 %v2429_v29, %v11123_v37 }
 0x40a   :  { %v8114_v40 = vpop.f32.mrf.mxu1  ;;  %v2946_v4 = vpop.f32.mrf.mxu0 }
 0x40b   :  { %v11296_v31 = vadd.f32 %v2943_v41, %v2624_v50  ;;  %v2627_v25 = vadd.f32 %v8114_v40, %v11125_v11  ;;  %v4211_v40 = vld [vmem:[#allocation2 + $0x30] sm:$0xff] }
 0x40c   :  { %v2432_v17 = vpop.f32.mrf.mxu1  ;;  %v8197_v43 = vpop.f32.mrf.mxu0  ;;  %8388 = vmatmul.mubr.bf16.gmra.mxu0 %v3789_v57 }
 0x40d   :  { %v11299_v23 = vadd.f32 %v8194_v33, %v2627_v25  ;;  %v2625_v37 = vadd.f32 %v2432_v17, %v11127_v55  ;;  %8391 = vmatprep.mubr.bf16.mxu0 %v3790_v42  ;;  %v4726_v25 = vld [vmem:[#allocation2 + $0x39] sm:$0xff] }
 0x40e   :  { %v8117_v62 = vpop.f32.mrf.mxu1  ;;  %8308 = vmatmul.mubr.bf16.gmra.mxu1 %v3275_v22  ;;  %v2959_v50 = vpop.f32.mrf.mxu0 }
 0x40f   :  { %v11302_v29 = vadd.f32 %v2946_v4, %v2625_v37  ;;  %v2630_v41 = vadd.f32 %v8117_v62, %v11130_v7  ;;  %8311 = vmatprep.mubr.bf16.mxu1 %v3276_v9  ;;  %v14809_v7 = vld [vmem:[#allocation36_spill] sm:$0xff]  ;;  %v3277_v37 = vpack.c.bf16 %v3245_v24, %v3244_v51  ;;  %v3791_v9 = vpack.c.bf16 %v3759_v2, %v3758_v34  ;;  %v4213_v51 = vld [vmem:[#allocation2 + $0x48] sm:$0xff] }
 0x410   :  { %v2445_v11 = vpop.f32.mrf.mxu1  ;;  %v8198_v38 = vpop.f32.mrf.mxu0  ;;  %v4275_v62 = vpack.c.bf16 %v4212_v8, %v4211_v40  ;;  %v4727_v2 = vld [vmem:[#allocation2 + $0x49] sm:$0xff]  ;;  %v4728_v40 = vld [vmem:[#allocation2 + $0x51] sm:$0xff] }
 0x411   :  { %v11305_v59 = vadd.f32 %v8197_v43, %v2630_v41  ;;  %v2628_v55 = vadd.f32 %v2445_v11, %v11133_v19  ;;  %v4789_v43 = vpack.c.bf16 %v4726_v25, %v4725_v36  ;;  %v4215_v36 = vld [vmem:[#allocation2 + $0x60] sm:$0xff]  ;;  %v4216_v25 = vld [vmem:[#allocation2 + $0x68] sm:$0xff] }
 0x412   :  { %v8118_v33 = vpop.f32.mrf.mxu1  ;;  %v2962_v57 = vpop.f32.mrf.mxu0 }
 0x413   :  { %14808 = vst [vmem:[#allocation41_spill] sm:$0xff] %v11305_v59  ;;  %v11308_v17 = vadd.f32 %v2959_v50, %v2628_v55  ;;  %v2631_v4 = vadd.f32 %v8118_v33, %v14809_v7 }
 0x414   :  { %v2448_v22 = vpop.f32.mrf.mxu1  ;;  %v8201_v11 = vpop.f32.mrf.mxu0  ;;  %8392 = vmatmul.mubr.bf16.gmra.mxu0 %v3791_v9 }
 0x415   :  { %v11311_v42 = vadd.f32 %v8198_v38, %v2631_v4  ;;  %v2629_v19 = vadd.f32 %v2448_v22, %v11137_v61  ;;  %8491 = vmatprep.mubr.bf16.mxu0 %v4789_v43  ;;  %v4214_v61 = vld [vmem:[#allocation2 + $0x50] sm:$0xff]  ;;  %v4729_v4 = vld [vmem:[#allocation2 + $0x61] sm:$0xff] }
 0x416   :  { %v8121_v41 = vpop.f32.mrf.mxu1  ;;  %8312 = vmatmul.mubr.bf16.gmra.mxu1 %v3277_v37  ;;  %v2975_v33 = vpop.f32.mrf.mxu0  ;;  %v4730_v22 = vld [vmem:[#allocation2 + $0x69] sm:$0xff]  ;;  %v4276_v9 = vpack.c.bf16 %v4214_v61, %v4213_v51 }
 0x417   :  { %v11314_v59 = vadd.f32 %v2962_v57, %v2629_v19  ;;  %v2634_v50 = vadd.f32 %v8121_v41, %v11139_v13  ;;  %8411 = vmatprep.mubr.bf16.mxu1 %v4275_v62  ;;  %v4790_v19 = vpack.c.bf16 %v4728_v40, %v4727_v2  ;;  %v8814_v62 = vld [vmem:[#allocation8 + $0x230] sm:$0xff]   ;;  %v4217_v2 = vld [vmem:[#allocation2 + $0x78] sm:$0xff]  ;;  %v4218_v40 = vld [vmem:[#allocation2 + $0x80] sm:$0xff] }
 0x418   :  { %v2461_v55 = vpop.f32.mrf.mxu1  ;;  %v8202_v8 = vpop.f32.mrf.mxu0 }
 0x419   :  { %v11317_v24 = vadd.f32 %v8201_v11, %v2634_v50  ;;  %v2632_v34 = vadd.f32 %v2461_v55, %v11142_v60  ;;  %v14812_v60 = vld [vmem:[#allocation37_spill] sm:$0xff]  ;;  %v4277_v11 = vpack.c.bf16 %v4216_v25, %v4215_v36  ;;  %v14816_v25 = vld [vmem:[#allocation39_spill] sm:$0xff] }
 0x41a   :  { %v8122_v38 = vpop.f32.mrf.mxu1  ;;  %v2978_v37 = vpop.f32.mrf.mxu0 }
 0x41b   :  { %v11320_v7 = vadd.f32 %v2975_v33, %v2632_v34  ;;  %v2635_v13 = vadd.f32 %v8122_v38, %v11144_v39  ;;  %v4791_v33 = vpack.c.bf16 %v4730_v22, %v4729_v4  ;;  %v14814_v39 = vld [vmem:[#allocation38_spill] sm:$0xff]  ;;  %v4732_v4 = vld [vmem:[#allocation2 + $0x81] sm:$0xff] }
 0x41c   :  { %v2464_v57 = vpop.f32.mrf.mxu1  ;;  %v8205_v55 = vpop.f32.mrf.mxu0  ;;  %8492 = vmatmul.mubr.bf16.vlgmr.msra.gmra.mxu0 %v4790_v19  ;;  %v4219_v22 = vld [vmem:[#allocation2 + $0x90] sm:$0xff]  ;;  %v4220_v19 = vld [vmem:[#allocation2 + $0x98] sm:$0xff] }
 0x41d   :  { %14810 = vst [vmem:[#allocation36_spill] sm:$0xff] %v11320_v7  ;;  %v11323_v43 = vadd.f32 %v8202_v8, %v2635_v13  ;;  %v2633_v41 = vadd.f32 %v2464_v57, %v14812_v60  ;;  %8495 = vmatprep.mubr.bf16.mxu0 %v4791_v33  ;;  %v8815_v8 = vld [vmem:[#allocation8 + $0x228] sm:$0xff]   ;;  %v4731_v57 = vld [vmem:[#allocation2 + $0x79] sm:$0xff]  ;;  %v4733_v60 = vld [vmem:[#allocation2 + $0x91] sm:$0xff] }
 0x41e   :  { %v8125_v50 = vpop.f32.mrf.mxu1  ;;  %8412 = vmatmul.mubr.bf16.vlgmr.msra.gmra.mxu1 %v4276_v9  ;;  %v2991_v61 = vpop.f32.mrf.mxu0 }
 0x41f   :  { %14811 = vst [vmem:[#allocation42_spill] sm:$0xff] %v11323_v43  ;;  %v11326_v34 = vadd.f32 %v2978_v37, %v2633_v41  ;;  %v2638_v38 = vadd.f32 %v8125_v50, %v14814_v39  ;;  %8556 = vmatpush3.bf16.msra.mxu1 %v11186_v10  ;;  %8415 = vmatprep.mubr.bf16.mxu1 %v4277_v11  ;;  %v4734_v10 = vld [vmem:[#allocation2 + $0x99] sm:$0xff] }
 0x420   :  { %v2477_v51 = vpop.f32.mrf.mxu1  ;;  %8557 = vmatprep.subr.bf16.mxu1 %v8814_v62  ;;  %v8206_v9 = vpop.f32.mrf.mxu0  ;;  %v4278_v39 = vpack.c.bf16 %v4218_v40, %v4217_v2 }
 0x421   :  { %14813 = vst [vmem:[#allocation37_spill] sm:$0xff] %v11326_v34  ;;  %v11330_v36 = vadd.f32 %v8205_v55, %v2638_v38  ;;  %v2636_v13 = vadd.f32 %v2477_v51, %v14816_v25  ;;  %v4792_v55 = vpack.c.bf16 %v4732_v4, %v4731_v57  ;;  %v4279_v25 = vpack.c.bf16 %v4220_v19, %v4219_v22  ;;  %v8816_v34 = vld [vmem:[#allocation8 + $0x220] sm:$0xff]   ;;  %v4222_v57 = vld [vmem:[#allocation2 + $0xb0] sm:$0xff]  ;;  %v14820_v22 = vld [vmem:[#allocation19_spill] sm:$0xff] }
 0x422   :  { %v8126_v37 = vpop.f32.mrf.mxu1  ;;  %v2994_v33 = vpop.f32.mrf.mxu0  ;;  %v4735_v4 = vld [vmem:[#allocation2 + $0xa9] sm:$0xff]  ;;  %v4223_v19 = vld [vmem:[#allocation2 + $0xc0] sm:$0xff] }
 0x423   :  { %14815 = vst [vmem:[#allocation38_spill] sm:$0xff] %v11330_v36  ;;  %v11333_v41 = vadd.f32 %v2991_v61, %v2636_v13  ;;  %v2639_v11 = vadd.f32 %v8126_v37, %v11156_v0  ;;  %8558 = vmatpush3.bf16.msra.mxu1 %v8814_v62  ;;  %v4793_v36 = vpack.c.bf16 %v4734_v10, %v4733_v60  ;;  %v14818_v0 = vld [vmem:[#allocation33_spill] sm:$0xff]  ;;  %v8817_v60 = vld [vmem:[#allocation8 + $0x218] sm:$0xff]  }
 0x424   :  { %v2480_v50 = vpop.f32.mrf.mxu1  ;;  %8559 = vmatprep.subr.bf16.mxu1 %v8815_v8  ;;  %v8209_v7 = vpop.f32.mrf.mxu0  ;;  %8496 = vmatmul.mubr.bf16.gmra.mxu0 %v4792_v55  ;;  %v4221_v13 = vld [vmem:[#allocation2 + $0xa8] sm:$0xff] }
 0x425   :  { %v11336_v38 = vadd.f32 %v8206_v9, %v2639_v11  ;;  %v2637_v51 = vadd.f32 %v2480_v50, %v11158_v12  ;;  %8499 = vmatprep.mubr.bf16.mxu0 %v4793_v36  ;;  %v4736_v9 = vld [vmem:[#allocation2 + $0xb1] sm:$0xff]  ;;  %v4224_v50 = vld [vmem:[#allocation2 + $0xc8] sm:$0xff] }
 0x426   :  { %v8129_v43 = vpop.f32.mrf.mxu1  ;;  %8416 = vmatmul.mubr.bf16.gmra.mxu1 %v4278_v39  ;;  %v3007_v40 = vpop.f32.mrf.mxu0 }
 0x427   :  { %v11339_v61 = vadd.f32 %v2994_v33, %v2637_v51  ;;  %v2642_v62 = vadd.f32 %v8129_v43, %v14818_v0  ;;  %8419 = vmatprep.mubr.bf16.mxu1 %v4279_v25  ;;  %8560 = vmatpush3.bf16.msra.mxu1 %v8815_v8  ;;  %v4737_v43 = vld [vmem:[#allocation2 + $0xc1] sm:$0xff]  ;;  %v4738_v33 = vld [vmem:[#allocation2 + $0xc9] sm:$0xff]  ;;  %v4280_v8 = vpack.c.bf16 %v4222_v57, %v4221_v13  ;;  %v4225_v57 = vld [vmem:[#allocation2 + $0xd8] sm:$0xff] }
 0x428   :  { %v2493_v2 = vpop.f32.mrf.mxu1  ;;  %8561 = vmatprep.subr.bf16.mxu1 %v8816_v34  ;;  %v8210_v11 = vpop.f32.mrf.mxu0 }
 0x429   :  { %14817 = vst [vmem:[#allocation39_spill] sm:$0xff] %v11339_v61  ;;  %v11342_v12 = vadd.f32 %v8209_v7, %v2642_v62  ;;  %v2640_v37 = vadd.f32 %v2493_v2, %v14820_v22  ;;  %v4794_v7 = vpack.c.bf16 %v4736_v9, %v4735_v4  ;;  %v4281_v62 = vpack.c.bf16 %v4224_v50, %v4223_v19  ;;  %v8818_v22 = vld [vmem:[#allocation8 + $0x210] sm:$0xff]   ;;  %v4226_v4 = vld [vmem:[#allocation2 + $0xe0] sm:$0xff] }
 0x42a   :  { %v8130_v10 = vpop.f32.mrf.mxu1  ;;  %v3010_v51 = vpop.f32.mrf.mxu0  ;;  %v4795_v2 = vpack.c.bf16 %v4738_v33, %v4737_v43  ;;  %v4739_v9 = vld [vmem:[#allocation2 + $0xd9] sm:$0xff]  ;;  %v14824_v19 = vld [vmem:[#allocation18_spill] sm:$0xff]  ;;  %v8819_v43 = vld [vmem:[#allocation8 + $0x208] sm:$0xff]  }
 0x42b   :  { %14819 = vst [vmem:[#allocation33_spill] sm:$0xff] %v11342_v12  ;;  %v11345_v36 = vadd.f32 %v3007_v40, %v2640_v37  ;;  %v2643_v39 = vadd.f32 %v8130_v10, %v11166_v6  ;;  %8562 = vmatpush3.bf16.msra.mxu1 %v8816_v34  ;;  %v14822_v6 = vld [vmem:[#allocation34_spill] sm:$0xff] }
 0x42c   :  { %v2496_v55 = vpop.f32.mrf.mxu1  ;;  %8563 = vmatprep.subr.bf16.mxu1 %v8817_v60  ;;  %v8213_v61 = vpop.f32.mrf.mxu0  ;;  %8500 = vmatmul.mubr.bf16.gmra.mxu0 %v4794_v7  ;;  %v4227_v50 = vld [vmem:[#allocation2 + $0xf0] sm:$0xff] }
 0x42d   :  { %v11348_v25 = vadd.f32 %v8210_v11, %v2643_v39  ;;  %v2641_v0 = vadd.f32 %v2496_v55, %v11168_v26  ;;  %8503 = vmatprep.mubr.bf16.mxu0 %v4795_v2  ;;  %v4740_v11 = vld [vmem:[#allocation2 + $0xe1] sm:$0xff]  ;;  %v4228_v55 = vld [vmem:[#allocation2 + $0xf8] sm:$0xff] }
 0x42e   :  { %v8133_v12 = vpop.f32.mrf.mxu1  ;;  %8420 = vmatmul.mubr.bf16.gmra.mxu1 %v4280_v8  ;;  %v3023_v34 = vpop.f32.mrf.mxu0 }
 0x42f   :  { %v11351_v40 = vadd.f32 %v3010_v51, %v2641_v0  ;;  %v2646_v37 = vadd.f32 %v8133_v12, %v14822_v6  ;;  %8423 = vmatprep.mubr.bf16.mxu1 %v4281_v62  ;;  %8564 = vmatpush3.bf16.msra.mxu1 %v8817_v60  ;;  %v4741_v12 = vld [vmem:[#allocation2 + $0xf1] sm:$0xff]  ;;  %v4742_v51 = vld [vmem:[#allocation2 + $0xf9] sm:$0xff]  ;;  %v4282_v60 = vpack.c.bf16 %v4226_v4, %v4225_v57  ;;  %v4229_v4 = vld [vmem:[#allocation2 + $0x108] sm:$0xff] }
 0x430   :  { %v2509_v13 = vpop.f32.mrf.mxu1  ;;  %8565 = vmatprep.subr.bf16.mxu1 %v8818_v22  ;;  %v8214_v39 = vpop.f32.mrf.mxu0 }
 0x431   :  { %14821 = vst [vmem:[#allocation19_spill] sm:$0xff] %v11351_v40  ;;  %v11354_v26 = vadd.f32 %v8213_v61, %v2646_v37  ;;  %v2644_v10 = vadd.f32 %v2509_v13, %v14824_v19  ;;  %v4796_v61 = vpack.c.bf16 %v4740_v11, %v4739_v9  ;;  %v4283_v37 = vpack.c.bf16 %v4228_v55, %v4227_v50  ;;  %v8820_v19 = vld [vmem:[#allocation8 + $0x200] sm:$0xff]   ;;  %v4230_v9 = vld [vmem:[#allocation2 + $0x110] sm:$0xff] }
 0x432   :  { %v8134_v33 = vpop.f32.mrf.mxu1  ;;  %v3026_v62 = vpop.f32.mrf.mxu0  ;;  %v4797_v13 = vpack.c.bf16 %v4742_v51, %v4741_v12  ;;  %v4743_v11 = vld [vmem:[#allocation2 + $0x109] sm:$0xff]  ;;  %v4744_v50 = vld [vmem:[#allocation2 + $0x111] sm:$0xff]  ;;  %v4745_v51 = vld [vmem:[#allocation2 + $0x121] sm:$0xff] }
 0x433   :  { %14823 = vst [vmem:[#allocation34_spill] sm:$0xff] %v11354_v26  ;;  %v11357_v8 = vadd.f32 %v3023_v34, %v2644_v10  ;;  %v2647_v7 = vadd.f32 %v8134_v33, %v11176_v35  ;;  %8566 = vmatpush3.bf16.msra.mxu1 %v8818_v22  ;;  %v4231_v33 = vld [vmem:[#allocation2 + $0x120] sm:$0xff]  ;;  %v4232_v12 = vld [vmem:[#allocation2 + $0x128] sm:$0xff] }
 0x434   :  { %v2512_v0 = vpop.f32.mrf.mxu1  ;;  %8567 = vmatprep.subr.bf16.mxu1 %v8819_v43  ;;  %v8217_v40 = vpop.f32.mrf.mxu0  ;;  %8504 = vmatmul.mubr.bf16.gmra.mxu0 %v4796_v61  ;;  %v4285_v61 = vpack.c.bf16 %v4232_v12, %v4231_v33  ;;  %v4748_v33 = vld [vmem:[#allocation2 + $0x141] sm:$0xff] }
 0x435   :  { %v11360_v2 = vadd.f32 %v8214_v39, %v2647_v7  ;;  %v2645_v6 = vadd.f32 %v2512_v0, %v11178_v54  ;;  %8507 = vmatprep.mubr.bf16.mxu0 %v4797_v13 }
 0x436   :  { %v8137_v26 = vpop.f32.mrf.mxu1  ;;  %8424 = vmatmul.mubr.bf16.gmra.mxu1 %v4282_v60  ;;  %v3039_v22 = vpop.f32.mrf.mxu0 }
 0x437   :  { %v11363_v34 = vadd.f32 %v3026_v62, %v2645_v6  ;;  %v2650_v35 = vadd.f32 %v8137_v26, %v11181_v63  ;;  %8427 = vmatprep.mubr.bf16.mxu1 %v4283_v37  ;;  %8568 = vmatpush3.bf16.msra.mxu1 %v8819_v43  ;;  %v4746_v63 = vld [vmem:[#allocation2 + $0x129] sm:$0xff]  ;;  %v4284_v43 = vpack.c.bf16 %v4230_v9, %v4229_v4  ;;  %v4233_v9 = vld [vmem:[#allocation2 + $0x138] sm:$0xff] }
 0x438   :  { %v2525_v57 = vpop.f32.mrf.mxu1  ;;  %8569 = vmatprep.subr.bf16.mxu1 %v8820_v19  ;;  %v8218_v55 = vpop.f32.mrf.mxu0  ;;  %v4799_v6 = vpack.c.bf16 %v4746_v63, %v4745_v51  ;;  %v4236_v51 = vld [vmem:[#allocation2 + $0x158] sm:$0xff] }
 0x439   :  { %v11366_v54 = vadd.f32 %v8217_v40, %v2650_v35  ;;  %v2648_v10 = vadd.f32 %v2525_v57, %v11184_v16  ;;  %v4798_v40 = vpack.c.bf16 %v4744_v50, %v4743_v11  ;;  %v14827_v57 = vld [vmem:[#allocation20_spill] sm:$0xff]  ;;  %v14829_v11 = vld [vmem:[#allocation23_spill] sm:$0xff] }
 0x43a   :  { %v8138_v39 = vpop.f32.mrf.mxu1  ;;  %v3042_v62 = vpop.f32.mrf.mxu0  ;;  %v4747_v50 = vld [vmem:[#allocation2 + $0x139] sm:$0xff]  ;;  %v4749_v63 = vld [vmem:[#allocation2 + $0x151] sm:$0xff] }
 0x43b   :  { %v11369_v26 = vadd.f32 %v3039_v22, %v2648_v10  ;;  %v2651_v7 = vadd.f32 %v8138_v39, %v11188_v58  ;;  %8570 = vmatpush3.bf16.msra.mxu1 %v8820_v19  ;;  %v4234_v19 = vld [vmem:[#allocation2 + $0x140] sm:$0xff]  ;;  %v4235_v39 = vld [vmem:[#allocation2 + $0x150] sm:$0xff] }
 0x43c   :  { %v2528_v0 = vpop.f32.mrf.mxu1  ;;  %v8221_v13 = vpop.f32.mrf.mxu0  ;;  %8508 = vmatmul.mubr.bf16.gmra.mxu0 %v4798_v40 }
 0x43d   :  { %v11372_v60 = vadd.f32 %v8218_v55, %v2651_v7  ;;  %v2649_v16 = vadd.f32 %v2528_v0, %v11190_v30  ;;  %8511 = vmatprep.mubr.bf16.mxu0 %v4799_v6  ;;  %v4750_v7 = vld [vmem:[#allocation2 + $0x159] sm:$0xff]  ;;  %v4800_v6 = vpack.c.bf16 %v4748_v33, %v4747_v50 }
 0x43e   :  { %v8141_v37 = vpop.f32.mrf.mxu1  ;;  %8428 = vmatmul.mubr.bf16.gmra.mxu1 %v4284_v43  ;;  %v3055_v4 = vpop.f32.mrf.mxu0  ;;  %v14837_v33 = vld [vmem:[#allocation24_spill] sm:$0xff] }
 0x43f   :  { %14825 = vst [vmem:[#allocation18_spill] sm:$0xff] %v11372_v60  ;;  %v11375_v35 = vadd.f32 %v3042_v62, %v2649_v16  ;;  %v2654_v22 = vadd.f32 %v8141_v37, %v14827_v57  ;;  %8431 = vmatprep.mubr.bf16.mxu1 %v4285_v61  ;;  %v14831_v62 = vld [vmem:[#allocation21_spill] sm:$0xff]  ;;  %v4286_v61 = vpack.c.bf16 %v4234_v19, %v4233_v9  ;;  %v4238_v19 = vld [vmem:[#allocation2 + $0x170] sm:$0xff] }
 0x440   :  { %v2541_v58 = vpop.f32.mrf.mxu1  ;;  %v8222_v12 = vpop.f32.mrf.mxu0  ;;  %v4237_v9 = vld [vmem:[#allocation2 + $0x168] sm:$0xff] }
 0x441   :  { %14826 = vst [vmem:[#allocation43_spill] sm:$0xff] %v11375_v35  ;;  %v11378_v10 = vadd.f32 %v8221_v13, %v2654_v22  ;;  %v2652_v30 = vadd.f32 %v2541_v58, %v14829_v11  ;;  %v14833_v13 = vld [vmem:[#allocation25_spill] sm:$0xff]  ;;  %v4287_v22 = vpack.c.bf16 %v4236_v51, %v4235_v39  ;;  %v4801_v58 = vpack.c.bf16 %v4750_v7, %v4749_v63  ;;  %v4752_v51 = vld [vmem:[#allocation2 + $0x171] sm:$0xff]  ;;  %v4239_v63 = vld [vmem:[#allocation2 + $0x180] sm:$0xff] }
 0x442   :  { %v8142_v55 = vpop.f32.mrf.mxu1  ;;  %v3058_v16 = vpop.f32.mrf.mxu0  ;;  %v4751_v39 = vld [vmem:[#allocation2 + $0x169] sm:$0xff] }
 0x443   :  { %14828 = vst [vmem:[#allocation20_spill] sm:$0xff] %v11378_v10  ;;  %v11381_v0 = vadd.f32 %v3055_v4, %v2652_v30  ;;  %v2655_v43 = vadd.f32 %v8142_v55, %v14831_v62  ;;  %v14835_v4 = vld [vmem:[#allocation22_spill] sm:$0xff] }
 0x444   :  { %v2544_v40 = vpop.f32.mrf.mxu1  ;;  %v8225_v10 = vpop.f32.mrf.mxu0  ;;  %8512 = vmatmul.mubr.bf16.gmra.mxu0 %v4800_v6 }
 0x445   :  { %14830 = vst [vmem:[#allocation23_spill] sm:$0xff] %v11381_v0  ;;  %v11384_v37 = vadd.f32 %v8222_v12, %v2655_v43  ;;  %v2653_v57 = vadd.f32 %v2544_v40, %v14833_v13  ;;  %8515 = vmatprep.mubr.bf16.mxu0 %v4801_v58  ;;  %v4240_v40 = vld [vmem:[#allocation2 + $0x188] sm:$0xff]  ;;  %v14839_v13 = vld [vmem:[#allocation27_spill] sm:$0xff] }
 0x446   :  { %v8145_v11 = vpop.f32.mrf.mxu1  ;;  %8432 = vmatmul.mubr.bf16.gmra.mxu1 %v4286_v61  ;;  %v3071_v62 = vpop.f32.mrf.mxu0  ;;  %v4754_v61 = vld [vmem:[#allocation2 + $0x189] sm:$0xff] }
 0x447   :  { %14832 = vst [vmem:[#allocation21_spill] sm:$0xff] %v11384_v37  ;;  %v11387_v35 = vadd.f32 %v3058_v16, %v2653_v57  ;;  %v2658_v30 = vadd.f32 %v8145_v11, %v14835_v4  ;;  %8435 = vmatprep.mubr.bf16.mxu1 %v4287_v22  ;;  %v4753_v16 = vld [vmem:[#allocation2 + $0x181] sm:$0xff]  ;;  %v4288_v11 = vpack.c.bf16 %v4238_v19, %v4237_v9 }
 0x448   :  { %v2557_v55 = vpop.f32.mrf.mxu1  ;;  %v8226_v43 = vpop.f32.mrf.mxu0  ;;  %v4802_v4 = vpack.c.bf16 %v4752_v51, %v4751_v39  ;;  %v14845_v51 = vld [vmem:[#allocation29_spill] sm:$0xff] }
 0x449   :  { %14834 = vst [vmem:[#allocation25_spill] sm:$0xff] %v11387_v35  ;;  %v11390_v50 = vadd.f32 %v8225_v10, %v2658_v30  ;;  %v2656_v12 = vadd.f32 %v2557_v55, %v14837_v33  ;;  %v14841_v30 = vld [vmem:[#allocation28_spill] sm:$0xff]  ;;  %v4289_v33 = vpack.c.bf16 %v4240_v40, %v4239_v63 }
 0x44a   :  { %v8146_v7 = vpop.f32.mrf.mxu1  ;;  %v3074_v58 = vpop.f32.mrf.mxu0  ;;  %v4243_v63 = vld [vmem:[#allocation2 + $0x1e0] sm:$0xff] }
 0x44b   :  { %14836 = vst [vmem:[#allocation22_spill] sm:$0xff] %v11390_v50  ;;  %v11393_v6 = vadd.f32 %v3071_v62, %v2656_v12  ;;  %v2659_v57 = vadd.f32 %v8146_v7, %v14839_v13  ;;  %v4803_v50 = vpack.c.bf16 %v4754_v61, %v4753_v16  ;;  %v14843_v62 = vld [vmem:[#allocation26_spill] sm:$0xff]  ;;  %v4755_v7 = vld [vmem:[#allocation2 + $0x199] sm:$0xff]  ;;  %v4756_v13 = vld [vmem:[#allocation2 + $0x1a1] sm:$0xff] }
 0x44c   :  { %v2560_v22 = vpop.f32.mrf.mxu1  ;;  %v8229_v37 = vpop.f32.mrf.mxu0  ;;  %8516 = vmatmul.mubr.bf16.gmra.mxu0 %v4802_v4  ;;  %v8835_v61 = vld [vmem:[#allocation2] sm:$0xff] }
 0x44d   :  { %14838 = vst [vmem:[#allocation24_spill] sm:$0xff] %v11393_v6  ;;  %v11396_v10 = vadd.f32 %v8226_v43, %v2659_v57  ;;  %v2657_v55 = vadd.f32 %v2560_v22, %v14841_v30  ;;  %8519 = vmatprep.mubr.bf16.mxu0 %v4803_v50  ;;  %v11405_v57 = vpack.c.bf16 %v8835_v61, %v8835_v61  ;;  %v14847_v50 = vld [vmem:[#allocation30_spill] sm:$0xff]  ;;  %v4245_v61 = vld [vmem:[#allocation2 + $0x1f8] sm:$0xff] }
 0x44e   :  { %v8149_v35 = vpop.f32.mrf.mxu1  ;;  %8436 = vmatmul.mubr.bf16.gmra.mxu1 %v4288_v11  ;;  %v3087_v19 = vpop.f32.mrf.mxu0  ;;  %v4804_v22 = vpack.c.bf16 %v4756_v13, %v4755_v7  ;;  %v4757_v11 = vld [vmem:[#allocation2 + $0x1e1] sm:$0xff] }
 0x44f   :  { %14840 = vst [vmem:[#allocation27_spill] sm:$0xff] %v11396_v10  ;;  %v11399_v0 = vadd.f32 %v3074_v58, %v2657_v55  ;;  %v2662_v12 = vadd.f32 %v8149_v35, %v14843_v62  ;;  %8439 = vmatprep.mubr.bf16.mxu1 %v4289_v33  ;;  %v4244_v58 = vld [vmem:[#allocation2 + $0x1e8] sm:$0xff]  ;;  %v14849_v62 = vld [vmem:[#allocation31_spill] sm:$0xff] }
 0x450   :  { %v2573_v9 = vpop.f32.mrf.mxu1  ;;  %v8230_v16 = vpop.f32.mrf.mxu0  ;;  %v4758_v35 = vld [vmem:[#allocation2 + $0x1e9] sm:$0xff] }
 0x451   :  { %14842 = vst [vmem:[#allocation28_spill] sm:$0xff] %v11399_v0  ;;  %v11402_v39 = vadd.f32 %v8229_v37, %v2662_v12  ;;  %v2660_v43 = vadd.f32 %v2573_v9, %v14845_v51  ;;  %v4291_v9 = vpack.c.bf16 %v4244_v58, %v4243_v63  ;;  %v4805_v51 = vpack.c.bf16 %v4758_v35, %v4757_v11  ;;  %v14851_v13 = vld [vmem:[#allocation17_spill] sm:$0xff]  ;;  %v4759_v58 = vld [vmem:[#allocation2 + $0x1f9] sm:$0xff]  ;;  %v4247_v35 = vld [vmem:[#allocation2 + $0x210] sm:$0xff] }
 0x452   :  { %v8150_v40 = vpop.f32.mrf.mxu1  ;;  %v3090_v33 = vpop.f32.mrf.mxu0  ;;  %v4760_v11 = vld [vmem:[#allocation2 + $0x201] sm:$0xff] }
 0x453   :  { %14844 = vst [vmem:[#allocation26_spill] sm:$0xff] %v11402_v39  ;;  %v11407_v4 = vadd.f32 %v3087_v19, %v2660_v43  ;;  %v2663_v30 = vadd.f32 %v8150_v40, %v14847_v50 }
 0x454   :  { %v2576_v55 = vpop.f32.mrf.mxu1  ;;  %v8233_v0 = vpop.f32.mrf.mxu0  ;;  %8520 = vmatmul.mubr.bf16.gmra.mxu0 %v4804_v22  ;;  %v4248_v22 = vld [vmem:[#allocation2 + $0x218] sm:$0xff] }
 0x455   :  { %14846 = vst [vmem:[#allocation29_spill] sm:$0xff] %v11407_v4  ;;  %v11410_v37 = vadd.f32 %v8230_v16, %v2663_v30  ;;  %v2661_v12 = vadd.f32 %v2576_v55, %v14849_v62  ;;  %8523 = vmatprep.mubr.bf16.mxu0 %v4805_v51  ;;  %v4246_v16 = vld [vmem:[#allocation2 + $0x200] sm:$0xff]  ;;  %v4806_v4 = vpack.c.bf16 %v4760_v11, %v4759_v58 }
 0x456   :  { %v8153_v39 = vpop.f32.mrf.mxu1  ;;  %8440 = vmatmul.mubr.bf16.gmra.mxu1 %v11405_v57  ;;  %v3103_v40 = vpop.f32.mrf.mxu0  ;;  %v14853_v30 = vld [vmem:[#allocation32_spill] sm:$0xff] }
 0x457   :  { %14848 = vst [vmem:[#allocation30_spill] sm:$0xff] %v11410_v37  ;;  %v11414_v7 = vadd.f32 %v3090_v33, %v2661_v12  ;;  %v2666_v19 = vadd.f32 %v8153_v39, %v14851_v13  ;;  %8443 = vmatprep.mubr.bf16.mxu1 %v4291_v9  ;;  %v4761_v33 = vld [vmem:[#allocation2 + $0x211] sm:$0xff]  ;;  %v4762_v12 = vld [vmem:[#allocation2 + $0x219] sm:$0xff]  ;;  %v4292_v37 = vpack.c.bf16 %v4246_v16, %v4245_v61  ;;  %v4249_v61 = vld [vmem:[#allocation2 + $0x228] sm:$0xff] }
 0x458   :  { %v2589_v43 = vpop.f32.mrf.mxu1  ;;  %v8234_v62 = vpop.f32.mrf.mxu0  ;;  %v14854_v39 = vld [vmem:[#allocation16_spill] sm:$0xff]  ;;  %v4250_v16 = vld [vmem:[#allocation2 + $0x230] sm:$0xff] }
 0x459   :  { %14850 = vst [vmem:[#allocation31_spill] sm:$0xff] %v11414_v7  ;;  %v11417_v50 = vadd.f32 %v8233_v0, %v2666_v19  ;;  %v2664_v63 = vadd.f32 %v2589_v43, %v14853_v30  ;;  %v14855_v19 = vld [vmem:[#allocation35_spill] sm:$0xff]  ;;  %v4293_v30 = vpack.c.bf16 %v4248_v22, %v4247_v35  ;;  %v4763_v35 = vld [vmem:[#allocation2 + $0x229] sm:$0xff]  ;;  %v4251_v22 = vld [vmem:[#allocation2 + $0x240] sm:$0xff] }
 0x45a   :  { %v8154_v55 = vpop.f32.mrf.mxu1  ;;  %v3106_v13 = vpop.f32.mrf.mxu0 }
 0x45b   :  { %14852 = vst [vmem:[#allocation17_spill] sm:$0xff] %v11417_v50  ;;  %v11420_v7 = vadd.f32 %v3103_v40, %v2664_v63  ;;  %v2667_v9 = vadd.f32 %v8154_v55, %v14854_v39  ;;  %v4807_v50 = vpack.c.bf16 %v4762_v12, %v4761_v33  ;;  %v14856_v40 = vld [vmem:[#allocation40_spill] sm:$0xff] }
 0x45c   :  { %v2592_v51 = vpop.f32.mrf.mxu1  ;;  %v8333_v6 = vpop.f32.mrf.mxu0  ;;  %8524 = vmatmul.mubr.bf16.gmra.mxu0 %v4806_v4  ;;  %v4252_v4 = vld [vmem:[#allocation2 + $0x248] sm:$0xff] }
 0x45d   :  { %v11423_v0 = vadd.f32 %v8234_v62, %v2667_v9  ;;  %v2665_v43 = vadd.f32 %v2592_v51, %v14855_v19  ;;  %8527 = vmatprep.mubr.bf16.mxu0 %v4807_v50  ;;  %v4764_v62 = vld [vmem:[#allocation2 + $0x231] sm:$0xff]  ;;  %v4765_v12 = vld [vmem:[#allocation2 + $0x241] sm:$0xff]  ;;  %v4766_v9 = vld [vmem:[#allocation2 + $0x249] sm:$0xff]  ;;  %v4294_v19 = vpack.c.bf16 %v4250_v16, %v4249_v61 }
 0x45e   :  { %v8253_v10 = vpop.f32.mrf.mxu1  ;;  %8444 = vmatmul.mubr.bf16.gmra.mxu1 %v4292_v37  ;;  %v3891_v39 = vpop.f32.mrf.mxu0  ;;  %v4253_v61 = vld [vmem:[#allocation2 + $0x258] sm:$0xff]  ;;  %v4254_v16 = vld [vmem:[#allocation2 + $0x260] sm:$0xff] }
 0x45f   :  { %v11426_v60 = vadd.f32 %v3106_v13, %v2665_v43  ;;  %v3634_v63 = vadd.f32 %v8253_v10, %v14856_v40  ;;  %8447 = vmatprep.mubr.bf16.mxu1 %v4293_v30  ;;  %v4808_v43 = vpack.c.bf16 %v4764_v62, %v4763_v35  ;;  %v4295_v30 = vpack.c.bf16 %v4252_v4, %v4251_v22  ;;  %v4767_v62 = vld [vmem:[#allocation2 + $0x259] sm:$0xff]  ;;  %v4768_v22 = vld [vmem:[#allocation2 + $0x261] sm:$0xff] }
 0x460   :  { %v3377_v55 = vpop.f32.mrf.mxu1  ;;  %v8334_v37 = vpop.f32.mrf.mxu0  ;;  %v4809_v40 = vpack.c.bf16 %v4766_v9, %v4765_v12  ;;  %v4256_v12 = vld [vmem:[#allocation2 + $0x278] sm:$0xff] }
 0x461   :  { %v11429_v58 = vadd.f32 %v8333_v6, %v3634_v63  ;;  %v3632_v11 = vadd.f32 %v3377_v55, %v11236_v20  ;;  %v4769_v9 = vld [vmem:[#allocation2 + $0x271] sm:$0xff] }
 0x462   :  { %v8254_v33 = vpop.f32.mrf.mxu1  ;;  %v3894_v13 = vpop.f32.mrf.mxu0 }
 0x463   :  { %14857 = vst [vmem:[#allocation32_spill] sm:$0xff] %v11429_v58  ;;  %v11432_v51 = vadd.f32 %v3891_v39, %v3632_v11  ;;  %v3635_v10 = vadd.f32 %v8254_v33, %v11239_v1  ;;  %v4255_v33 = vld [vmem:[#allocation2 + $0x270] sm:$0xff] }
 0x464   :  { %v3380_v50 = vpop.f32.mrf.mxu1  ;;  %v8337_v55 = vpop.f32.mrf.mxu0  ;;  %8528 = vmatmul.mubr.bf16.gmra.mxu0 %v4808_v43  ;;  %v4296_v43 = vpack.c.bf16 %v4254_v16, %v4253_v61  ;;  %v4257_v61 = vld [vmem:[#allocation2 + $0x288] sm:$0xff]  ;;  %v4258_v16 = vld [vmem:[#allocation2 + $0x290] sm:$0xff] }
 0x465   :  { %v11435_v6 = vadd.f32 %v8334_v37, %v3635_v10  ;;  %v3633_v20 = vadd.f32 %v3380_v50, %v11242_v27  ;;  %8531 = vmatprep.mubr.bf16.mxu0 %v4809_v40  ;;  %v4770_v10 = vld [vmem:[#allocation2 + $0x279] sm:$0xff]  ;;  %v4297_v40 = vpack.c.bf16 %v4256_v12, %v4255_v33  ;;  %v4772_v33 = vld [vmem:[#allocation2 + $0x291] sm:$0xff] }
 0x466   :  { %v8257_v63 = vpop.f32.mrf.mxu1  ;;  %8448 = vmatmul.mubr.bf16.gmra.mxu1 %v4294_v19  ;;  %v3907_v11 = vpop.f32.mrf.mxu0 }
 0x467   :  { %v11438_v58 = vadd.f32 %v3894_v13, %v3633_v20  ;;  %v3638_v39 = vadd.f32 %v8257_v63, %v11245_v18  ;;  %8451 = vmatprep.mubr.bf16.mxu1 %v4295_v30  ;;  %v4810_v20 = vpack.c.bf16 %v4768_v22, %v4767_v62  ;;  %v4811_v63 = vpack.c.bf16 %v4770_v10, %v4769_v9  ;;  %v4771_v22 = vld [vmem:[#allocation2 + $0x289] sm:$0xff]  ;;  %v4773_v10 = vld [vmem:[#allocation2 + $0x2a1] sm:$0xff] }
 0x468   :  { %v3393_v1 = vpop.f32.mrf.mxu1  ;;  %v8338_v4 = vpop.f32.mrf.mxu0  ;;  %v4260_v9 = vld [vmem:[#allocation2 + $0x2a8] sm:$0xff] }
 0x469   :  { %v11441_v35 = vadd.f32 %v8337_v55, %v3638_v39  ;;  %v3636_v27 = vadd.f32 %v3393_v1, %v11248_v14 }
 0x46a   :  { %v8258_v37 = vpop.f32.mrf.mxu1  ;;  %v3910_v19 = vpop.f32.mrf.mxu0 }
 0x46b   :  { %v11444_v50 = vadd.f32 %v3907_v11, %v3636_v27  ;;  %v3639_v18 = vadd.f32 %v8258_v37, %v11251_v53  ;;  %v4259_v37 = vld [vmem:[#allocation2 + $0x2a0] sm:$0xff] }
 0x46c   :  { %v3396_v13 = vpop.f32.mrf.mxu1  ;;  %v8341_v39 = vpop.f32.mrf.mxu0  ;;  %8532 = vmatmul.mubr.bf16.gmra.mxu0 %v4810_v20  ;;  %v4298_v20 = vpack.c.bf16 %v4258_v16, %v4257_v61  ;;  %v4261_v61 = vld [vmem:[#allocation2 + $0x2b8] sm:$0xff]  ;;  %v4262_v16 = vld [vmem:[#allocation2 + $0x2c0] sm:$0xff] }
 0x46d   :  { %v11447_v30 = vadd.f32 %v8338_v4, %v3639_v18  ;;  %v3637_v14 = vadd.f32 %v3396_v13, %v11254_v47  ;;  %8535 = vmatprep.mubr.bf16.mxu0 %v4811_v63  ;;  %v4774_v18 = vld [vmem:[#allocation2 + $0x2a9] sm:$0xff]  ;;  %v4299_v63 = vpack.c.bf16 %v4260_v9, %v4259_v37  ;;  %v4776_v37 = vld [vmem:[#allocation2 + $0x2c1] sm:$0xff] }
 0x46e   :  { %v8261_v55 = vpop.f32.mrf.mxu1  ;;  %8452 = vmatmul.mubr.bf16.gmra.mxu1 %v4296_v43  ;;  %v3923_v27 = vpop.f32.mrf.mxu0 }
 0x46f   :  { %v11450_v1 = vadd.f32 %v3910_v19, %v3637_v14  ;;  %v3642_v11 = vadd.f32 %v8261_v55, %v11257_v44  ;;  %8455 = vmatprep.mubr.bf16.mxu1 %v4297_v40  ;;  %v4812_v14 = vpack.c.bf16 %v4772_v33, %v4771_v22  ;;  %v4813_v55 = vpack.c.bf16 %v4774_v18, %v4773_v10  ;;  %v4775_v33 = vld [vmem:[#allocation2 + $0x2b9] sm:$0xff]  ;;  %v4777_v18 = vld [vmem:[#allocation2 + $0x2d1] sm:$0xff] }
 0x470   :  { %v3409_v53 = vpop.f32.mrf.mxu1  ;;  %v8342_v12 = vpop.f32.mrf.mxu0  ;;  %v4264_v10 = vld [vmem:[#allocation2 + $0x2d8] sm:$0xff] }
 0x471   :  { %v11453_v62 = vadd.f32 %v8341_v39, %v3642_v11  ;;  %v3640_v47 = vadd.f32 %v3409_v53, %v11260_v46 }
 0x472   :  { %v8262_v4 = vpop.f32.mrf.mxu1  ;;  %v3926_v43 = vpop.f32.mrf.mxu0 }
 0x473   :  { %v11456_v13 = vadd.f32 %v3923_v27, %v3640_v47  ;;  %v3643_v44 = vadd.f32 %v8262_v4, %v11263_v52  ;;  %v4263_v4 = vld [vmem:[#allocation2 + $0x2d0] sm:$0xff] }
 0x474   :  { %v3412_v19 = vpop.f32.mrf.mxu1  ;;  %v8345_v11 = vpop.f32.mrf.mxu0  ;;  %8536 = vmatmul.mubr.bf16.gmra.mxu0 %v4812_v14  ;;  %v4300_v14 = vpack.c.bf16 %v4262_v16, %v4261_v61  ;;  %v4265_v61 = vld [vmem:[#allocation2 + $0x2e8] sm:$0xff]  ;;  %v4266_v16 = vld [vmem:[#allocation2 + $0x2f0] sm:$0xff] }
 0x475   :  { %v11459_v40 = vadd.f32 %v8342_v12, %v3643_v44  ;;  %v3641_v46 = vadd.f32 %v3412_v19, %v11266_v56  ;;  %8539 = vmatprep.mubr.bf16.mxu0 %v4813_v55  ;;  %v4778_v44 = vld [vmem:[#allocation2 + $0x2d9] sm:$0xff]  ;;  %v4301_v55 = vpack.c.bf16 %v4264_v10, %v4263_v4  ;;  %v4780_v4 = vld [vmem:[#allocation2 + $0x2f1] sm:$0xff] }
 0x476   :  { %v8265_v39 = vpop.f32.mrf.mxu1  ;;  %8456 = vmatmul.mubr.bf16.gmra.mxu1 %v4298_v20  ;;  %v3939_v47 = vpop.f32.mrf.mxu0 }
 0x477   :  { %v11462_v53 = vadd.f32 %v3926_v43, %v3641_v46  ;;  %v3646_v27 = vadd.f32 %v8265_v39, %v11269_v15  ;;  %8459 = vmatprep.mubr.bf16.mxu1 %v4299_v63  ;;  %v4814_v46 = vpack.c.bf16 %v4776_v37, %v4775_v33  ;;  %v4815_v39 = vpack.c.bf16 %v4778_v44, %v4777_v18  ;;  %v4779_v37 = vld [vmem:[#allocation2 + $0x2e9] sm:$0xff]  ;;  %v4781_v44 = vld [vmem:[#allocation2 + $0x301] sm:$0xff] }
 0x478   :  { %v3425_v52 = vpop.f32.mrf.mxu1  ;;  %v8346_v9 = vpop.f32.mrf.mxu0  ;;  %v4268_v18 = vld [vmem:[#allocation2 + $0x308] sm:$0xff] }
 0x479   :  { %v11465_v22 = vadd.f32 %v8345_v11, %v3646_v27  ;;  %v3644_v56 = vadd.f32 %v3425_v52, %v11272_v49 }
 0x47a   :  { %v8266_v12 = vpop.f32.mrf.mxu1  ;;  %v3942_v20 = vpop.f32.mrf.mxu0 }
 0x47b   :  { %v11468_v19 = vadd.f32 %v3939_v47, %v3644_v56  ;;  %v3647_v15 = vadd.f32 %v8266_v12, %v11275_v21  ;;  %v4267_v12 = vld [vmem:[#allocation2 + $0x300] sm:$0xff] }
 0x47c   :  { %v3428_v43 = vpop.f32.mrf.mxu1  ;;  %v8349_v27 = vpop.f32.mrf.mxu0  ;;  %8540 = vmatmul.mubr.bf16.gmra.mxu0 %v4814_v46  ;;  %v4302_v46 = vpack.c.bf16 %v4266_v16, %v4265_v61  ;;  %v4784_v61 = vld [vmem:[#allocation2 + $0x321] sm:$0xff] }
 0x47d   :  { %v11471_v63 = vadd.f32 %v8346_v9, %v3647_v15  ;;  %v3645_v49 = vadd.f32 %v3428_v43, %v11278_v3  ;;  %8543 = vmatprep.mubr.bf16.mxu0 %v4815_v39  ;;  %v4782_v15 = vld [vmem:[#allocation2 + $0x309] sm:$0xff]  ;;  %v4303_v39 = vpack.c.bf16 %v4268_v18, %v4267_v12  ;;  %v4272_v18 = vld [vmem:[#allocation2 + $0x338] sm:$0xff] }
 0x47e   :  { %v8269_v11 = vpop.f32.mrf.mxu1  ;;  %8460 = vmatmul.mubr.bf16.gmra.mxu1 %v4300_v14  ;;  %v3955_v56 = vpop.f32.mrf.mxu0  ;;  %v4271_v12 = vld [vmem:[#allocation2 + $0x330] sm:$0xff] }
 0x47f   :  { %v11474_v52 = vadd.f32 %v3942_v20, %v3645_v49  ;;  %v3650_v47 = vadd.f32 %v8269_v11, %v11281_v48  ;;  %8463 = vmatprep.mubr.bf16.mxu1 %v4301_v55  ;;  %v4816_v49 = vpack.c.bf16 %v4780_v4, %v4779_v37  ;;  %v4817_v11 = vpack.c.bf16 %v4782_v15, %v4781_v44  ;;  %v4783_v4 = vld [vmem:[#allocation2 + $0x319] sm:$0xff]  ;;  %v4785_v44 = vld [vmem:[#allocation2 + $0x331] sm:$0xff] }
 0x480   :  { %v3441_v21 = vpop.f32.mrf.mxu1  ;;  %v8350_v10 = vpop.f32.mrf.mxu0  ;;  %v4786_v15 = vld [vmem:[#allocation2 + $0x339] sm:$0xff] }
 0x481   :  { %v11477_v33 = vadd.f32 %v8349_v27, %v3650_v47  ;;  %v3648_v3 = vadd.f32 %v3441_v21, %v11284_v5 }
 0x482   :  { %v8270_v9 = vpop.f32.mrf.mxu1  ;;  %v11483_v14 = vpop.f32.mrf.mxu0 }
 0x483   :  { %v11480_v43 = vadd.f32 %v3955_v56, %v3648_v3  ;;  %v3651_v48 = vadd.f32 %v8270_v9, %v11287_v45  ;;  %v4269_v3 = vld [vmem:[#allocation2 + $0x318] sm:$0xff] }
 0x484   :  { %v3444_v20 = vpop.f32.mrf.mxu1  ;;  %v8353_v47 = vpop.f32.mrf.mxu0  ;;  %8544 = vmatmul.mubr.bf16.gmra.mxu0 %v4816_v49 }
 0x485   :  { %v11485_v55 = vadd.f32 %v8350_v10, %v3651_v48  ;;  %v11488_v5 = vadd.f32 %v3444_v20, %v11290_v28  ;;  %8547 = vmatprep.mubr.bf16.mxu0 %v4817_v11  ;;  %v4270_v28 = vld [vmem:[#allocation2 + $0x320] sm:$0xff] }
 0x486   :  { %v8273_v27 = vpop.f32.mrf.mxu1  ;;  %8464 = vmatmul.mubr.bf16.gmra.mxu1 %v4302_v46  ;;  %v3971_v56 = vpop.f32.mrf.mxu0  ;;  %v4304_v49 = vpack.c.bf16 %v4270_v28, %v4269_v3 }
 0x487   :  { %v3654_v21 = vadd.f32 %v8273_v27, %v11293_v32  ;;  %8467 = vmatprep.mubr.bf16.mxu1 %v4303_v39  ;;  %v4818_v39 = vpack.c.bf16 %v4784_v61, %v4783_v4  ;;  %v4305_v27 = vpack.c.bf16 %v4272_v18, %v4271_v12  ;;  %v5239_v12 = vld [vmem:[#allocation2 + $0x32] sm:$0xff] }
 0x488   :  { %v3457_v45 = vpop.f32.mrf.mxu1  ;;  %v8354_v10 = vpop.f32.mrf.mxu0 }
 0x489   :  { %v11491_v16 = vadd.f32 %v8353_v47, %v3654_v21  ;;  %v3652_v37 = vadd.f32 %v3457_v45, %v11296_v31  ;;  %v4819_v47 = vpack.c.bf16 %v4786_v15, %v4785_v44 }
 0x48a   :  { %v8274_v9 = vpop.f32.mrf.mxu1  ;;  %v11497_v46 = vpop.f32.mrf.mxu0 }
 0x48b   :  { %v11494_v48 = vadd.f32 %v3971_v56, %v3652_v37  ;;  %v3655_v32 = vadd.f32 %v8274_v9, %v11299_v23  ;;  %14858 = vst [vmem:[#allocation16_spill] sm:$0xff] %v11497_v46  ;;  %v14859_v56 = vld [vmem:[#allocation41_spill] sm:$0xff]  ;;  %v4788_v9 = vld [vmem:[#allocation2 + $0x351] sm:$0xff] }
 0x48c   :  { %v3460_v20 = vpop.f32.mrf.mxu1  ;;  %v8357_v45 = vpop.f32.mrf.mxu0  ;;  %8548 = vmatmul.mubr.bf16.gmra.mxu0 %v4818_v39  ;;  %v4787_v23 = vld [vmem:[#allocation2 + $0x349] sm:$0xff] }
 0x48d   :  { %v11499_v11 = vadd.f32 %v8354_v10, %v3655_v32  ;;  %v11502_v31 = vadd.f32 %v3460_v20, %v11302_v29  ;;  %8551 = vmatprep.mubr.bf16.mxu0 %v4819_v47  ;;  %v5240_v10 = vld [vmem:[#allocation2 + $0x3a] sm:$0xff]  ;;  %v4820_v18 = vpack.c.bf16 %v4788_v9, %v4787_v23  ;;  %v5241_v23 = vld [vmem:[#allocation2 + $0x4a] sm:$0xff]  ;;  %v5242_v9 = vld [vmem:[#allocation2 + $0x52] sm:$0xff] }
 0x48e   :  { %v8277_v21 = vpop.f32.mrf.mxu1  ;;  %8468 = vmatmul.mubr.bf16.gmra.mxu1 %v4304_v49  ;;  %v3987_v3 = vpop.f32.mrf.mxu0 }
 0x48f   :  { %v3658_v37 = vadd.f32 %v8277_v21, %v14859_v56  ;;  %8471 = vmatprep.mubr.bf16.mxu1 %v4305_v27  ;;  %v5303_v27 = vpack.c.bf16 %v5240_v10, %v5239_v12  ;;  %v14860_v56 = vld [vmem:[#allocation36_spill] sm:$0xff]  ;;  %v14862_v12 = vld [vmem:[#allocation42_spill] sm:$0xff] }
 0x490   :  { %v3473_v46 = vpop.f32.mrf.mxu1  ;;  %v8358_v4 = vpop.f32.mrf.mxu0 }
 0x491   :  { %v11505_v61 = vadd.f32 %v8357_v45, %v3658_v37  ;;  %v3656_v28 = vadd.f32 %v3473_v46, %v11308_v17 }
 0x492   :  { %v8278_v29 = vpop.f32.mrf.mxu1  ;;  %v11511_v20 = vpop.f32.mrf.mxu0 }
 0x493   :  { %v11508_v44 = vadd.f32 %v3987_v3, %v3656_v28  ;;  %v3659_v15 = vadd.f32 %v8278_v29, %v11311_v42  ;;  %v5243_v28 = vld [vmem:[#allocation2 + $0x62] sm:$0xff]  ;;  %v5244_v29 = vld [vmem:[#allocation2 + $0x6a] sm:$0xff] }
 0x494   :  { %v3476_v32 = vpop.f32.mrf.mxu1  ;;  %v8361_v17 = vpop.f32.mrf.mxu0  ;;  %8552 = vmatmul.mubr.bf16.gmra.mxu0 %v4820_v18 }
 0x495   :  { %v11513_v49 = vadd.f32 %v8358_v4, %v3659_v15  ;;  %v11516_v39 = vadd.f32 %v3476_v32, %v11314_v59  ;;  %v14864_v32 = vld [vmem:[#allocation37_spill] sm:$0xff] }
 0x496   :  { %v8281_v47 = vpop.f32.mrf.mxu1  ;;  %8472 = vmatmul.mubr.bf16.gmra.mxu1 %v11405_v57  ;;  %v4003_v45 = vpop.f32.mrf.mxu0 }
 0x497   :  { %v3662_v46 = vadd.f32 %v8281_v47, %v11317_v24  ;;  %8571 = vmatprep.mubr.bf16.mxu1 %v5303_v27  ;;  %v5304_v24 = vpack.c.bf16 %v5242_v9, %v5241_v23  ;;  %v5305_v47 = vpack.c.bf16 %v5244_v29, %v5243_v28  ;;  %v5246_v23 = vld [vmem:[#allocation2 + $0x82] sm:$0xff] }
 0x498   :  { %v3489_v21 = vpop.f32.mrf.mxu1  ;;  %v8362_v59 = vpop.f32.mrf.mxu0 }
 0x499   :  { %v11520_v42 = vadd.f32 %v8361_v17, %v3662_v46  ;;  %v3660_v37 = vadd.f32 %v3489_v21, %v14860_v56  ;;  %v14865_v21 = vld [vmem:[#allocation38_spill] sm:$0xff] }
 0x49a   :  { %v8282_v3 = vpop.f32.mrf.mxu1  ;;  %v11526_v18 = vpop.f32.mrf.mxu0 }
 0x49b   :  { %v11523_v4 = vadd.f32 %v4003_v45, %v3660_v37  ;;  %v3663_v57 = vadd.f32 %v8282_v3, %v14862_v12  ;;  %v5245_v12 = vld [vmem:[#allocation2 + $0x7a] sm:$0xff] }
 0x49c   :  { %v3492_v10 = vpop.f32.mrf.mxu1  ;;  %v8365_v46 = vpop.f32.mrf.mxu0 }
 0x49d   :  { %14861 = vst [vmem:[#allocation35_spill] sm:$0xff] %v11523_v4  ;;  %v11528_v15 = vadd.f32 %v8362_v59, %v3663_v57  ;;  %v11531_v27 = vadd.f32 %v3492_v10, %v14864_v32  ;;  %v5247_v57 = vld [vmem:[#allocation2 + $0x92] sm:$0xff]  ;;  %v5248_v10 = vld [vmem:[#allocation2 + $0x9a] sm:$0xff] }
 0x49e   :  { %v8285_v17 = vpop.f32.mrf.mxu1  ;;  %8572 = vmatmul.mubr.bf16.vlgmr.msra.gmra.mxu1 %v5304_v24  ;;  %v4019_v37 = vpop.f32.mrf.mxu0 }
 0x49f   :  { %14863 = vst [vmem:[#allocation40_spill] sm:$0xff] %v11528_v15  ;;  %v3666_v56 = vadd.f32 %v8285_v17, %v14865_v21  ;;  %8575 = vmatprep.mubr.bf16.mxu1 %v5305_v47  ;;  %v5306_v47 = vpack.c.bf16 %v5246_v23, %v5245_v12  ;;  %v5250_v12 = vld [vmem:[#allocation2 + $0xb2] sm:$0xff] }
 0x4a0   :  { %v3505_v45 = vpop.f32.mrf.mxu1  ;;  %v8366_v59 = vpop.f32.mrf.mxu0 }
 0x4a1   :  { %v11534_v4 = vadd.f32 %v8365_v46, %v3666_v56  ;;  %v3664_v3 = vadd.f32 %v3505_v45, %v11333_v41  ;;  %v14869_v46 = vld [vmem:[#allocation39_spill] sm:$0xff]  ;;  %v5307_v41 = vpack.c.bf16 %v5248_v10, %v5247_v57 }
 0x4a2   :  { %v8286_v9 = vpop.f32.mrf.mxu1  ;;  %v11540_v24 = vpop.f32.mrf.mxu0 }
 0x4a3   :  { %14866 = vst [vmem:[#allocation41_spill] sm:$0xff] %v11534_v4  ;;  %v11537_v32 = vadd.f32 %v4019_v37, %v3664_v3  ;;  %v3667_v28 = vadd.f32 %v8286_v9, %v11336_v38  ;;  %v14870_v4 = vld [vmem:[#allocation33_spill] sm:$0xff] }
 0x4a4   :  { %v3508_v29 = vpop.f32.mrf.mxu1  ;;  %v8369_v45 = vpop.f32.mrf.mxu0  ;;  %v5249_v9 = vld [vmem:[#allocation2 + $0xaa] sm:$0xff] }
 0x4a5   :  { %14867 = vst [vmem:[#allocation36_spill] sm:$0xff] %v11537_v32  ;;  %v11542_v17 = vadd.f32 %v8366_v59, %v3667_v28  ;;  %v11545_v21 = vadd.f32 %v3508_v29, %v14869_v46  ;;  %v5251_v28 = vld [vmem:[#allocation2 + $0xc2] sm:$0xff]  ;;  %v5252_v29 = vld [vmem:[#allocation2 + $0xca] sm:$0xff] }
 0x4a6   :  { %v8289_v56 = vpop.f32.mrf.mxu1  ;;  %8576 = vmatmul.mubr.bf16.gmra.mxu1 %v5306_v47  ;;  %v4035_v3 = vpop.f32.mrf.mxu0 }
 0x4a7   :  { %14868 = vst [vmem:[#allocation42_spill] sm:$0xff] %v11542_v17  ;;  %v3670_v15 = vadd.f32 %v8289_v56, %v14870_v4  ;;  %8579 = vmatprep.mubr.bf16.mxu1 %v5307_v41  ;;  %v5308_v4 = vpack.c.bf16 %v5250_v12, %v5249_v9  ;;  %v5254_v9 = vld [vmem:[#allocation2 + $0xe2] sm:$0xff] }
 0x4a8   :  { %v3521_v37 = vpop.f32.mrf.mxu1  ;;  %v8370_v59 = vpop.f32.mrf.mxu0 }
 0x4a9   :  { %v11548_v32 = vadd.f32 %v8369_v45, %v3670_v15  ;;  %v3668_v38 = vadd.f32 %v3521_v37, %v11345_v36  ;;  %v14873_v15 = vld [vmem:[#allocation19_spill] sm:$0xff]  ;;  %v5309_v36 = vpack.c.bf16 %v5252_v29, %v5251_v28 }
 0x4aa   :  { %v8290_v23 = vpop.f32.mrf.mxu1  ;;  %v11554_v47 = vpop.f32.mrf.mxu0 }
 0x4ab   :  { %14871 = vst [vmem:[#allocation37_spill] sm:$0xff] %v11548_v32  ;;  %v11551_v46 = vadd.f32 %v4035_v3, %v3668_v38  ;;  %v3671_v57 = vadd.f32 %v8290_v23, %v11348_v25  ;;  %v14874_v32 = vld [vmem:[#allocation34_spill] sm:$0xff]  ;;  %v5253_v23 = vld [vmem:[#allocation2 + $0xda] sm:$0xff] }
 0x4ac   :  { %v3524_v10 = vpop.f32.mrf.mxu1  ;;  %v8373_v37 = vpop.f32.mrf.mxu0 }
 0x4ad   :  { %14872 = vst [vmem:[#allocation38_spill] sm:$0xff] %v11551_v46  ;;  %v11556_v41 = vadd.f32 %v8370_v59, %v3671_v57  ;;  %v11559_v56 = vadd.f32 %v3524_v10, %v14873_v15  ;;  %v5255_v57 = vld [vmem:[#allocation2 + $0xf2] sm:$0xff]  ;;  %v5256_v10 = vld [vmem:[#allocation2 + $0xfa] sm:$0xff] }
 0x4ae   :  { %v8293_v45 = vpop.f32.mrf.mxu1  ;;  %8580 = vmatmul.mubr.bf16.gmra.mxu1 %v5308_v4  ;;  %v4051_v38 = vpop.f32.mrf.mxu0 }
 0x4af   :  { %v3674_v17 = vadd.f32 %v8293_v45, %v14874_v32  ;;  %8583 = vmatprep.mubr.bf16.mxu1 %v5309_v36  ;;  %v5310_v32 = vpack.c.bf16 %v5254_v9, %v5253_v23  ;;  %v5258_v23 = vld [vmem:[#allocation2 + $0x112] sm:$0xff] }
 0x4b0   :  { %v3537_v3 = vpop.f32.mrf.mxu1  ;;  %v8374_v59 = vpop.f32.mrf.mxu0 }
 0x4b1   :  { %v11562_v46 = vadd.f32 %v8373_v37, %v3674_v17  ;;  %v3672_v25 = vadd.f32 %v3537_v3, %v11357_v8  ;;  %v5311_v8 = vpack.c.bf16 %v5256_v10, %v5255_v57  ;;  %v14880_v57 = vld [vmem:[#allocation18_spill] sm:$0xff] }
 0x4b2   :  { %v8294_v12 = vpop.f32.mrf.mxu1  ;;  %v11568_v4 = vpop.f32.mrf.mxu0 }
 0x4b3   :  { %v11565_v15 = vadd.f32 %v4051_v38, %v3672_v25  ;;  %v3675_v28 = vadd.f32 %v8294_v12, %v11360_v2  ;;  %14876 = vst [vmem:[#allocation33_spill] sm:$0xff] %v11568_v4  ;;  %v5257_v12 = vld [vmem:[#allocation2 + $0x10a] sm:$0xff] }
 0x4b4   :  { %v3540_v29 = vpop.f32.mrf.mxu1  ;;  %v8377_v37 = vpop.f32.mrf.mxu0 }
 0x4b5   :  { %14875 = vst [vmem:[#allocation39_spill] sm:$0xff] %v11565_v15  ;;  %v11570_v36 = vadd.f32 %v8374_v59, %v3675_v28  ;;  %v11573_v17 = vadd.f32 %v3540_v29, %v11363_v34  ;;  %v5259_v28 = vld [vmem:[#allocation2 + $0x122] sm:$0xff]  ;;  %v5260_v34 = vld [vmem:[#allocation2 + $0x12a] sm:$0xff] }
 0x4b6   :  { %v8297_v45 = vpop.f32.mrf.mxu1  ;;  %8584 = vmatmul.mubr.bf16.gmra.mxu1 %v5310_v32  ;;  %v4067_v25 = vpop.f32.mrf.mxu0 }
 0x4b7   :  { %14877 = vst [vmem:[#allocation19_spill] sm:$0xff] %v11570_v36  ;;  %v3678_v3 = vadd.f32 %v8297_v45, %v11366_v54  ;;  %8587 = vmatprep.mubr.bf16.mxu1 %v5311_v8  ;;  %v5312_v54 = vpack.c.bf16 %v5258_v23, %v5257_v12  ;;  %v14883_v45 = vld [vmem:[#allocation43_spill] sm:$0xff]  ;;  %v5262_v12 = vld [vmem:[#allocation2 + $0x142] sm:$0xff] }
 0x4b8   :  { %v3553_v38 = vpop.f32.mrf.mxu1  ;;  %v8378_v59 = vpop.f32.mrf.mxu0 }
 0x4b9   :  { %v11576_v15 = vadd.f32 %v8377_v37, %v3678_v3  ;;  %v3676_v2 = vadd.f32 %v3553_v38, %v11369_v26  ;;  %v5313_v26 = vpack.c.bf16 %v5260_v34, %v5259_v28  ;;  %v14889_v28 = vld [vmem:[#allocation21_spill] sm:$0xff] }
 0x4ba   :  { %v8298_v9 = vpop.f32.mrf.mxu1  ;;  %v11582_v36 = vpop.f32.mrf.mxu0 }
 0x4bb   :  { %14878 = vst [vmem:[#allocation34_spill] sm:$0xff] %v11576_v15  ;;  %v11579_v29 = vadd.f32 %v4067_v25, %v3676_v2  ;;  %v3679_v10 = vadd.f32 %v8298_v9, %v14880_v57  ;;  %14881 = vst [vmem:[#allocation18_spill] sm:$0xff] %v11582_v36  ;;  %v14885_v15 = vld [vmem:[#allocation20_spill] sm:$0xff]  ;;  %v14887_v9 = vld [vmem:[#allocation23_spill] sm:$0xff] }
 0x4bc   :  { %v3556_v32 = vpop.f32.mrf.mxu1  ;;  %v8381_v38 = vpop.f32.mrf.mxu0  ;;  %v5261_v36 = vld [vmem:[#allocation2 + $0x13a] sm:$0xff] }
 0x4bd   :  { %14879 = vst [vmem:[#allocation44_spill] sm:$0xff] %v11579_v29  ;;  %v11584_v8 = vadd.f32 %v8378_v59, %v3679_v10  ;;  %v11587_v37 = vadd.f32 %v3556_v32, %v14883_v45  ;;  %v5263_v10 = vld [vmem:[#allocation2 + $0x152] sm:$0xff]  ;;  %v5264_v32 = vld [vmem:[#allocation2 + $0x15a] sm:$0xff] }
 0x4be   :  { %v8301_v3 = vpop.f32.mrf.mxu1  ;;  %8588 = vmatmul.mubr.bf16.gmra.mxu1 %v5312_v54  ;;  %v4083_v2 = vpop.f32.mrf.mxu0 }
 0x4bf   :  { %14882 = vst [vmem:[#allocation45_spill] sm:$0xff] %v11584_v8  ;;  %14884 = vst [vmem:[#allocation43_spill] sm:$0xff] %v11587_v37  ;;  %v3682_v4 = vadd.f32 %v8301_v3, %v14885_v15  ;;  %8591 = vmatprep.mubr.bf16.mxu1 %v5313_v26  ;;  %v5314_v15 = vpack.c.bf16 %v5262_v12, %v5261_v36  ;;  %v5266_v36 = vld [vmem:[#allocation2 + $0x172] sm:$0xff] }
 0x4c0   :  { %v3569_v25 = vpop.f32.mrf.mxu1  ;;  %v8382_v59 = vpop.f32.mrf.mxu0 }
 0x4c1   :  { %v11590_v29 = vadd.f32 %v8381_v38, %v3682_v4  ;;  %v3680_v57 = vadd.f32 %v3569_v25, %v14887_v9  ;;  %v14892_v4 = vld [vmem:[#allocation25_spill] sm:$0xff]  ;;  %v5315_v38 = vpack.c.bf16 %v5264_v32, %v5263_v10  ;;  %v14898_v10 = vld [vmem:[#allocation27_spill] sm:$0xff] }
 0x4c2   :  { %v8302_v23 = vpop.f32.mrf.mxu1  ;;  %v11596_v8 = vpop.f32.mrf.mxu0 }
 0x4c3   :  { %14886 = vst [vmem:[#allocation20_spill] sm:$0xff] %v11590_v29  ;;  %v11593_v45 = vadd.f32 %v4083_v2, %v3680_v57  ;;  %v3683_v34 = vadd.f32 %v8302_v23, %v14889_v28  ;;  %14890 = vst [vmem:[#allocation21_spill] sm:$0xff] %v11596_v8  ;;  %v14894_v29 = vld [vmem:[#allocation22_spill] sm:$0xff]  ;;  %v14896_v23 = vld [vmem:[#allocation24_spill] sm:$0xff] }
 0x4c4   :  { %v3572_v54 = vpop.f32.mrf.mxu1  ;;  %v8385_v9 = vpop.f32.mrf.mxu0  ;;  %v5265_v8 = vld [vmem:[#allocation2 + $0x16a] sm:$0xff] }
 0x4c5   :  { %14888 = vst [vmem:[#allocation23_spill] sm:$0xff] %v11593_v45  ;;  %v11598_v26 = vadd.f32 %v8382_v59, %v3683_v34  ;;  %v11601_v3 = vadd.f32 %v3572_v54, %v14892_v4  ;;  %v5267_v34 = vld [vmem:[#allocation2 + $0x182] sm:$0xff]  ;;  %v5268_v54 = vld [vmem:[#allocation2 + $0x18a] sm:$0xff] }
 0x4c6   :  { %v8305_v25 = vpop.f32.mrf.mxu1  ;;  %8592 = vmatmul.mubr.bf16.gmra.mxu1 %v5314_v15  ;;  %v4099_v57 = vpop.f32.mrf.mxu0 }
 0x4c7   :  { %14891 = vst [vmem:[#allocation46_spill] sm:$0xff] %v11598_v26  ;;  %14893 = vst [vmem:[#allocation25_spill] sm:$0xff] %v11601_v3  ;;  %v3686_v37 = vadd.f32 %v8305_v25, %v14894_v29  ;;  %8595 = vmatprep.mubr.bf16.mxu1 %v5315_v38  ;;  %v5316_v29 = vpack.c.bf16 %v5266_v36, %v5265_v8 }
 0x4c8   :  { %v3585_v2 = vpop.f32.mrf.mxu1  ;;  %v8386_v59 = vpop.f32.mrf.mxu0 }
 0x4c9   :  { %v11604_v45 = vadd.f32 %v8385_v9, %v3686_v37  ;;  %v3684_v28 = vadd.f32 %v3585_v2, %v14896_v23  ;;  %v14901_v37 = vld [vmem:[#allocation28_spill] sm:$0xff]  ;;  %v5317_v9 = vpack.c.bf16 %v5268_v54, %v5267_v34  ;;  %v14905_v54 = vld [vmem:[#allocation30_spill] sm:$0xff] }
 0x4ca   :  { %v8306_v12 = vpop.f32.mrf.mxu1  ;;  %v11610_v26 = vpop.f32.mrf.mxu0 }
 0x4cb   :  { %14895 = vst [vmem:[#allocation22_spill] sm:$0xff] %v11604_v45  ;;  %v11607_v4 = vadd.f32 %v4099_v57, %v3684_v28  ;;  %v3687_v32 = vadd.f32 %v8306_v12, %v14898_v10  ;;  %14899 = vst [vmem:[#allocation27_spill] sm:$0xff] %v11610_v26  ;;  %v14903_v45 = vld [vmem:[#allocation26_spill] sm:$0xff]  ;;  %v5269_v57 = vld [vmem:[#allocation2 + $0x19a] sm:$0xff] }
 0x4cc   :  { %v3588_v15 = vpop.f32.mrf.mxu1  ;;  %v8389_v23 = vpop.f32.mrf.mxu0  ;;  %v5270_v28 = vld [vmem:[#allocation2 + $0x1a2] sm:$0xff] }
 0x4cd   :  { %14897 = vst [vmem:[#allocation24_spill] sm:$0xff] %v11607_v4  ;;  %v11612_v38 = vadd.f32 %v8386_v59, %v3687_v32  ;;  %v11615_v25 = vadd.f32 %v3588_v15, %v14901_v37  ;;  %v14904_v26 = vld [vmem:[#allocation29_spill] sm:$0xff]  ;;  %v5318_v32 = vpack.c.bf16 %v5270_v28, %v5269_v57 }
 0x4ce   :  { %v8309_v2 = vpop.f32.mrf.mxu1  ;;  %8596 = vmatmul.mubr.bf16.gmra.mxu1 %v5316_v29  ;;  %v4115_v12 = vpop.f32.mrf.mxu0  ;;  %v5271_v15 = vld [vmem:[#allocation2 + $0x1e2] sm:$0xff]  ;;  %v5272_v37 = vld [vmem:[#allocation2 + $0x1ea] sm:$0xff] }
 0x4cf   :  { %14900 = vst [vmem:[#allocation47_spill] sm:$0xff] %v11612_v38  ;;  %14902 = vst [vmem:[#allocation28_spill] sm:$0xff] %v11615_v25  ;;  %v3690_v3 = vadd.f32 %v8309_v2, %v14903_v45  ;;  %8599 = vmatprep.mubr.bf16.mxu1 %v5317_v9  ;;  %v14908_v2 = vld [vmem:[#allocation31_spill] sm:$0xff] }
 0x4d0   :  { %v3601_v4 = vpop.f32.mrf.mxu1  ;;  %v8390_v59 = vpop.f32.mrf.mxu0 }
 0x4d1   :  { %v11618_v10 = vadd.f32 %v8389_v23, %v3690_v3  ;;  %v3688_v8 = vadd.f32 %v3601_v4, %v14904_v26  ;;  %v5319_v3 = vpack.c.bf16 %v5272_v37, %v5271_v15  ;;  %v14909_v4 = vld [vmem:[#allocation17_spill] sm:$0xff] }
 0x4d2   :  { %v8310_v36 = vpop.f32.mrf.mxu1  ;;  %v11624_v45 = vpop.f32.mrf.mxu0 }
 0x4d3   :  { %v11621_v34 = vadd.f32 %v4115_v12, %v3688_v8  ;;  %v3691_v29 = vadd.f32 %v8310_v36, %v14905_v54  ;;  %14906 = vst [vmem:[#allocation26_spill] sm:$0xff] %v11624_v45  ;;  %v5273_v54 = vld [vmem:[#allocation2 + $0x1fa] sm:$0xff]  ;;  %v5274_v45 = vld [vmem:[#allocation2 + $0x202] sm:$0xff] }
 0x4d4   :  { %v3604_v38 = vpop.f32.mrf.mxu1  ;;  %v8393_v26 = vpop.f32.mrf.mxu0 }
 0x4d5   :  { %v11626_v9 = vadd.f32 %v8390_v59, %v3691_v29  ;;  %v11629_v25 = vadd.f32 %v3604_v38, %v14908_v2  ;;  %v5276_v38 = vld [vmem:[#allocation2 + $0x21a] sm:$0xff] }
 0x4d6   :  { %v8313_v23 = vpop.f32.mrf.mxu1  ;;  %8600 = vmatmul.mubr.bf16.gmra.mxu1 %v5318_v32  ;;  %v4131_v12 = vpop.f32.mrf.mxu0 }
 0x4d7   :  { %14907 = vst [vmem:[#allocation29_spill] sm:$0xff] %v11626_v9  ;;  %v3694_v57 = vadd.f32 %v8313_v23, %v14909_v4  ;;  %8603 = vmatprep.mubr.bf16.mxu1 %v5319_v3  ;;  %v5275_v9 = vld [vmem:[#allocation2 + $0x212] sm:$0xff]  ;;  %v5320_v3 = vpack.c.bf16 %v5274_v45, %v5273_v54  ;;  %v5277_v45 = vld [vmem:[#allocation2 + $0x22a] sm:$0xff] }
 0x4d8   :  { %v3617_v28 = vpop.f32.mrf.mxu1  ;;  %v8394_v29 = vpop.f32.mrf.mxu0  ;;  %v5278_v54 = vld [vmem:[#allocation2 + $0x232] sm:$0xff] }
 0x4d9   :  { %v11632_v8 = vadd.f32 %v8393_v26, %v3694_v57  ;;  %v3692_v36 = vadd.f32 %v3617_v28, %v11420_v7  ;;  %v5321_v7 = vpack.c.bf16 %v5276_v38, %v5275_v9  ;;  %v14911_v28 = vld [vmem:[#allocation32_spill] sm:$0xff] }
 0x4da   :  { %v8314_v59 = vpop.f32.mrf.mxu1  ;;  %v11638_v37 = vpop.f32.mrf.mxu0 }
 0x4db   :  { %14910 = vst [vmem:[#allocation30_spill] sm:$0xff] %v11632_v8  ;;  %v11635_v2 = vadd.f32 %v4131_v12, %v3692_v36  ;;  %v3695_v15 = vadd.f32 %v8314_v59, %v11423_v0 }
 0x4dc   :  { %v3620_v32 = vpop.f32.mrf.mxu1  ;;  %v11645_v57 = vpop.f32.mrf.mxu0 }
 0x4dd   :  { %v11640_v23 = vadd.f32 %v8394_v29, %v3695_v15  ;;  %v11643_v26 = vadd.f32 %v3620_v32, %v11426_v60  ;;  %v5279_v60 = vld [vmem:[#allocation2 + $0x242] sm:$0xff]  ;;  %v5280_v29 = vld [vmem:[#allocation2 + $0x24a] sm:$0xff]  ;;  %v5322_v32 = vpack.c.bf16 %v5278_v54, %v5277_v45  ;;  %v5283_v45 = vld [vmem:[#allocation2 + $0x272] sm:$0xff] }
 0x4de   :  { %v8413_v4 = vpop.f32.mrf.mxu1  ;;  %8604 = vmatmul.mubr.bf16.gmra.mxu1 %v5320_v3  ;;  %v11650_v0 = vpop.f32.mrf.mxu0  ;;  %v5284_v54 = vld [vmem:[#allocation2 + $0x27a] sm:$0xff] }
 0x4df   :  { %v11648_v8 = vadd.f32 %v8413_v4, %v14911_v28  ;;  %8607 = vmatprep.mubr.bf16.mxu1 %v5321_v7  ;;  %v5323_v7 = vpack.c.bf16 %v5280_v29, %v5279_v60 }
 0x4e0   :  { %v4406_v12 = vpop.f32.mrf.mxu1  ;;  %v11658_v38 = vpop.f32.mrf.mxu0 }
 0x4e1   :  { %v11653_v36 = vadd.f32 %v4406_v12, %v11432_v51  ;;  %14913 = vst [vmem:[#allocation17_spill] sm:$0xff] %v11658_v38  ;;  %v5282_v38 = vld [vmem:[#allocation2 + $0x262] sm:$0xff] }
 0x4e2   :  { %v8414_v59 = vpop.f32.mrf.mxu1  ;;  %v11666_v28 = vpop.f32.mrf.mxu0 }
 0x4e3   :  { %v11656_v9 = vadd.f32 %v8414_v59, %v11435_v6  ;;  %v5281_v59 = vld [vmem:[#allocation2 + $0x25a] sm:$0xff] }
 0x4e4   :  { %v4409_v15 = vpop.f32.mrf.mxu1  ;;  %v11674_v60 = vpop.f32.mrf.mxu0 }
 0x4e5   :  { %14912 = vst [vmem:[#allocation31_spill] sm:$0xff] %v11656_v9  ;;  %v11661_v3 = vadd.f32 %v4409_v15, %v11438_v58  ;;  %14915 = vst [vmem:[#allocation48_spill] sm:$0xff] %v11674_v60 }
 0x4e6   :  { %v8417_v4 = vpop.f32.mrf.mxu1  ;;  %8608 = vmatmul.mubr.bf16.gmra.mxu1 %v5322_v32  ;;  %v5325_v32 = vpack.c.bf16 %v5284_v54, %v5283_v45 }
 0x4e7   :  { %v11664_v51 = vadd.f32 %v8417_v4, %v11441_v35  ;;  %8611 = vmatprep.mubr.bf16.mxu1 %v5323_v7  ;;  %v5324_v35 = vpack.c.bf16 %v5282_v38, %v5281_v59  ;;  %v11682_v4 = vpop.f32.mrf.mxu0  ;;  %v5287_v38 = vld [vmem:[#allocation2 + $0x2a2] sm:$0xff]  ;;  %v5288_v59 = vld [vmem:[#allocation2 + $0x2aa] sm:$0xff] }
 0x4e8   :  { %v4422_v12 = vpop.f32.mrf.mxu1 }
 0x4e9   :  { %v11669_v6 = vadd.f32 %v4422_v12, %v11444_v50  ;;  %v11690_v45 = vpop.f32.mrf.mxu0 }
 0x4ea   :  { %v8418_v9 = vpop.f32.mrf.mxu1 }
 0x4eb   :  { %v11672_v58 = vadd.f32 %v8418_v9, %v11447_v30  ;;  %v5285_v9 = vld [vmem:[#allocation2 + $0x28a] sm:$0xff] }
 0x4ec   :  { %v4425_v29 = vpop.f32.mrf.mxu1 }
 0x4ed   :  { %14914 = vst [vmem:[#allocation32_spill] sm:$0xff] %v11672_v58  ;;  %v11677_v15 = vadd.f32 %v4425_v29, %v11450_v1  ;;  %v5286_v58 = vld [vmem:[#allocation2 + $0x292] sm:$0xff] }
 0x4ee   :  { %v8421_v7 = vpop.f32.mrf.mxu1  ;;  %8612 = vmatmul.mubr.bf16.gmra.mxu1 %v5324_v35  ;;  %v5327_v35 = vpack.c.bf16 %v5288_v59, %v5287_v38 }
 0x4ef   :  { %v11680_v50 = vadd.f32 %v8421_v7, %v11453_v62  ;;  %8615 = vmatprep.mubr.bf16.mxu1 %v5325_v32  ;;  %v5326_v62 = vpack.c.bf16 %v5286_v58, %v5285_v9  ;;  %v11698_v7 = vpop.f32.mrf.mxu0  ;;  %v5291_v58 = vld [vmem:[#allocation2 + $0x2d2] sm:$0xff]  ;;  %v5292_v9 = vld [vmem:[#allocation2 + $0x2da] sm:$0xff] }
 0x4f0   :  { %v4438_v12 = vpop.f32.mrf.mxu1 }
 0x4f1   :  { %14916 = vst [vmem:[#allocation49_spill] sm:$0xff] %v11680_v50  ;;  %v11685_v30 = vadd.f32 %v4438_v12, %v11456_v13  ;;  %v11706_v38 = vpop.f32.mrf.mxu0 }
 0x4f2   :  { %v8422_v60 = vpop.f32.mrf.mxu1 }
 0x4f3   :  { %v11688_v1 = vadd.f32 %v8422_v60, %v11459_v40  ;;  %v5289_v60 = vld [vmem:[#allocation2 + $0x2ba] sm:$0xff] }
 0x4f4   :  { %v4441_v54 = vpop.f32.mrf.mxu1 }
 0x4f5   :  { %14917 = vst [vmem:[#allocation50_spill] sm:$0xff] %v11688_v1  ;;  %v11693_v29 = vadd.f32 %v4441_v54, %v11462_v53  ;;  %v5290_v1 = vld [vmem:[#allocation2 + $0x2c2] sm:$0xff] }
 0x4f6   :  { %v8425_v32 = vpop.f32.mrf.mxu1  ;;  %8616 = vmatmul.mubr.bf16.gmra.mxu1 %v5326_v62  ;;  %v5329_v62 = vpack.c.bf16 %v5292_v9, %v5291_v58 }
 0x4f7   :  { %v11696_v13 = vadd.f32 %v8425_v32, %v11465_v22  ;;  %8619 = vmatprep.mubr.bf16.mxu1 %v5327_v35  ;;  %v5328_v22 = vpack.c.bf16 %v5290_v1, %v5289_v60  ;;  %v11714_v32 = vpop.f32.mrf.mxu0  ;;  %v5295_v1 = vld [vmem:[#allocation2 + $0x302] sm:$0xff]  ;;  %v5296_v60 = vld [vmem:[#allocation2 + $0x30a] sm:$0xff] }
 0x4f8   :  { %v4454_v12 = vpop.f32.mrf.mxu1 }
 0x4f9   :  { %14918 = vst [vmem:[#allocation51_spill] sm:$0xff] %v11696_v13  ;;  %v11701_v40 = vadd.f32 %v4454_v12, %v11468_v19 }
 0x4fa   :  { %v8426_v50 = vpop.f32.mrf.mxu1 }
 0x4fb   :  { %v11704_v53 = vadd.f32 %v8426_v50, %v11471_v63  ;;  %v5293_v50 = vld [vmem:[#allocation2 + $0x2ea] sm:$0xff] }
 0x4fc   :  { %v4457_v59 = vpop.f32.mrf.mxu1 }
 0x4fd   :  { %14919 = vst [vmem:[#allocation52_spill] sm:$0xff] %v11704_v53  ;;  %v11709_v54 = vadd.f32 %v4457_v59, %v11474_v52  ;;  %v5294_v53 = vld [vmem:[#allocation2 + $0x2f2] sm:$0xff]  ;;  %v4163_v52 = vadd.f32 %v11483_v14, %v11488_v5  ;;  %v5298_v5 = vld [vmem:[#allocation2 + $0x322] sm:$0xff] }
 0x4fe   :  { %v8429_v35 = vpop.f32.mrf.mxu1  ;;  %8620 = vmatmul.mubr.bf16.gmra.mxu1 %v5328_v22  ;;  %v5330_v59 = vpack.c.bf16 %v5294_v53, %v5293_v50  ;;  %v5300_v53 = vld [vmem:[#allocation2 + $0x33a] sm:$0xff] }
 0x4ff   :  { %v11712_v19 = vadd.f32 %v8429_v35, %v11477_v33  ;;  %8623 = vmatprep.mubr.bf16.mxu1 %v5329_v62  ;;  %v11724_v33 = vpop.f32.mrf.mxu0  ;;  %v5331_v62 = vpack.c.bf16 %v5296_v60, %v5295_v1  ;;  %v14924_v50 = vld [vmem:[#allocation16_spill] sm:$0xff] }
 0x500   :  { %v4470_v12 = vpop.f32.mrf.mxu1  ;;  %v4167_v1 = vadd.f32 %v14924_v50, %v11502_v31 }
 0x501   :  { %14920 = vst [vmem:[#allocation53_spill] sm:$0xff] %v11712_v19  ;;  %v11717_v63 = vadd.f32 %v4470_v12, %v11480_v43  ;;  %v11731_v12 = vpop.f32.mrf.mxu0 }
 0x502   :  { %v8430_v13 = vpop.f32.mrf.mxu1 }
 0x503   :  { %v11722_v58 = vadd.f32 %v8430_v13, %v11485_v55  ;;  %v5297_v55 = vld [vmem:[#allocation2 + $0x31a] sm:$0xff] }
 0x504   :  { %v4473_v9 = vpop.f32.mrf.mxu1 }
 0x505   :  { %14921 = vst [vmem:[#allocation54_spill] sm:$0xff] %v11722_v58  ;;  %v11726_v22 = vadd.f32 %v4473_v9, %v4163_v52  ;;  %v5299_v58 = vld [vmem:[#allocation2 + $0x332] sm:$0xff]  ;;  %v5332_v9 = vpack.c.bf16 %v5298_v5, %v5297_v55  ;;  %v4171_v55 = vadd.f32 %v11511_v20, %v11516_v39  ;;  %v14929_v39 = vld [vmem:[#allocation40_spill] sm:$0xff] }
 0x506   :  { %v8433_v43 = vpop.f32.mrf.mxu1  ;;  %8624 = vmatmul.mubr.bf16.gmra.mxu1 %v5330_v59 }
 0x507   :  { %v11729_v35 = vadd.f32 %v8433_v43, %v11491_v16  ;;  %8627 = vmatprep.mubr.bf16.mxu1 %v5331_v62  ;;  %v11741_v16 = vpop.f32.mrf.mxu0  ;;  %v5333_v62 = vpack.c.bf16 %v5300_v53, %v5299_v58  ;;  %v5301_v43 = vld [vmem:[#allocation2 + $0x34a] sm:$0xff] }
 0x508   :  { %v4486_v19 = vpop.f32.mrf.mxu1 }
 0x509   :  { %14922 = vst [vmem:[#allocation55_spill] sm:$0xff] %v11729_v35  ;;  %v11734_v14 = vadd.f32 %v4486_v19, %v11494_v48  ;;  %v5302_v35 = vld [vmem:[#allocation2 + $0x352] sm:$0xff] }
 0x50a   :  { %v8434_v13 = vpop.f32.mrf.mxu1  ;;  %v5334_v50 = vpack.c.bf16 %v5302_v35, %v5301_v43  ;;  %v14927_v35 = vld [vmem:[#allocation35_spill] sm:$0xff] }
 0x50b   :  { %14923 = vst [vmem:[#allocation56_spill] sm:$0xff] %v11734_v14  ;;  %v11739_v60 = vadd.f32 %v8434_v13, %v11499_v11  ;;  %v11748_v14 = vpop.f32.mrf.mxu0 }
 0x50c   :  { %v4489_v52 = vpop.f32.mrf.mxu1 }
 0x50d   :  { %v11743_v59 = vadd.f32 %v4489_v52, %v4167_v1  ;;  %v11758_v5 = vpop.f32.mrf.mxu0 }
 0x50e   :  { %v8437_v48 = vpop.f32.mrf.mxu1  ;;  %8628 = vmatmul.mubr.bf16.gmra.mxu1 %v5332_v9 }
 0x50f   :  { %v11746_v19 = vadd.f32 %v8437_v48, %v11505_v61  ;;  %8631 = vmatprep.mubr.bf16.mxu1 %v5333_v62 }
 0x510   :  { %v4502_v31 = vpop.f32.mrf.mxu1 }
 0x511   :  { %v11751_v11 = vadd.f32 %v4502_v31, %v11508_v44  ;;  %v11765_v44 = vpop.f32.mrf.mxu0 }
 0x512   :  { %v8438_v13 = vpop.f32.mrf.mxu1 }
 0x513   :  { %v11756_v58 = vadd.f32 %v8438_v13, %v11513_v49  ;;  %v4175_v49 = vadd.f32 %v11526_v18, %v11531_v27  ;;  %v11775_v43 = vpop.f32.mrf.mxu0  ;;  %v4179_v18 = vadd.f32 %v11540_v24, %v11545_v21  ;;  %v14936_v27 = vld [vmem:[#allocation42_spill] sm:$0xff]  ;;  %v4183_v24 = vadd.f32 %v11554_v47, %v11559_v56  ;;  %v14948_v47 = vld [vmem:[#allocation33_spill] sm:$0xff]  ;;  %v14949_v56 = vld [vmem:[#allocation19_spill] sm:$0xff] }
 0x514   :  { %v4505_v61 = vpop.f32.mrf.mxu1 }
 0x515   :  { %14925 = vst [vmem:[#allocation16_spill] sm:$0xff] %v11756_v58  ;;  %v11760_v53 = vadd.f32 %v4505_v61, %v4171_v55  ;;  %v11782_v61 = vpop.f32.mrf.mxu0 }
 0x516   :  { %v8441_v1 = vpop.f32.mrf.mxu1  ;;  %8632 = vmatmul.mubr.bf16.gmra.mxu1 %v5334_v50  ;;  %v14932_v50 = vld [vmem:[#allocation41_spill] sm:$0xff] }
 0x517   :  { %v11763_v52 = vadd.f32 %v8441_v1, %v11520_v42 }
 0x518   :  { %v4518_v9 = vpop.f32.mrf.mxu1 }
 0x519   :  { %14926 = vst [vmem:[#allocation57_spill] sm:$0xff] %v11763_v52  ;;  %v11768_v62 = vadd.f32 %v4518_v9, %v14927_v35  ;;  %v14934_v9 = vld [vmem:[#allocation36_spill] sm:$0xff] }
 0x51a   :  { %v8442_v20 = vpop.f32.mrf.mxu1 }
 0x51b   :  { %14928 = vst [vmem:[#allocation35_spill] sm:$0xff] %v11768_v62  ;;  %v11773_v48 = vadd.f32 %v8442_v20, %v14929_v39  ;;  %v11792_v39 = vpop.f32.mrf.mxu0 }
 0x51c   :  { %v4521_v31 = vpop.f32.mrf.mxu1 }
 0x51d   :  { %14930 = vst [vmem:[#allocation40_spill] sm:$0xff] %v11773_v48  ;;  %v11777_v13 = vadd.f32 %v4521_v31, %v4175_v49  ;;  %v11799_v48 = vpop.f32.mrf.mxu0 }
 0x51e   :  { %v8445_v42 = vpop.f32.mrf.mxu1 }
 0x51f   :  { %14931 = vst [vmem:[#allocation58_spill] sm:$0xff] %v11777_v13  ;;  %v11780_v55 = vadd.f32 %v8445_v42, %v14932_v50  ;;  %v14939_v50 = vld [vmem:[#allocation37_spill] sm:$0xff] }
 0x520   :  { %v4534_v1 = vpop.f32.mrf.mxu1 }
 0x521   :  { %14933 = vst [vmem:[#allocation41_spill] sm:$0xff] %v11780_v55  ;;  %v11785_v35 = vadd.f32 %v4534_v1, %v14934_v9  ;;  %v14941_v9 = vld [vmem:[#allocation38_spill] sm:$0xff] }
 0x522   :  { %v8446_v52 = vpop.f32.mrf.mxu1 }
 0x523   :  { %14935 = vst [vmem:[#allocation36_spill] sm:$0xff] %v11785_v35  ;;  %v11790_v20 = vadd.f32 %v8446_v52, %v14936_v27  ;;  %v11809_v52 = vpop.f32.mrf.mxu0 }
 0x524   :  { %v4537_v49 = vpop.f32.mrf.mxu1 }
 0x525   :  { %14937 = vst [vmem:[#allocation42_spill] sm:$0xff] %v11790_v20  ;;  %v11794_v31 = vadd.f32 %v4537_v49, %v4179_v18 }
 0x526   :  { %v8449_v42 = vpop.f32.mrf.mxu1 }
 0x527   :  { %14938 = vst [vmem:[#allocation59_spill] sm:$0xff] %v11794_v31  ;;  %v11797_v55 = vadd.f32 %v8449_v42, %v14939_v50  ;;  %v11816_v50 = vpop.f32.mrf.mxu0 }
 0x528   :  { %v4550_v1 = vpop.f32.mrf.mxu1 }
 0x529   :  { %14940 = vst [vmem:[#allocation37_spill] sm:$0xff] %v11797_v55  ;;  %v11802_v35 = vadd.f32 %v4550_v1, %v14941_v9  ;;  %v14946_v9 = vld [vmem:[#allocation39_spill] sm:$0xff] }
 0x52a   :  { %v8450_v13 = vpop.f32.mrf.mxu1 }
 0x52b   :  { %14942 = vst [vmem:[#allocation38_spill] sm:$0xff] %v11802_v35  ;;  %v11807_v21 = vadd.f32 %v8450_v13, %v11556_v41  ;;  %v4187_v41 = vadd.f32 %v14948_v47, %v11573_v17  ;;  %v14956_v17 = vld [vmem:[#allocation43_spill] sm:$0xff]  ;;  %v14957_v47 = vld [vmem:[#allocation18_spill] sm:$0xff] }
 0x52c   :  { %v4553_v18 = vpop.f32.mrf.mxu1 }
 0x52d   :  { %14943 = vst [vmem:[#allocation60_spill] sm:$0xff] %v11807_v21  ;;  %v11811_v27 = vadd.f32 %v4553_v18, %v4183_v24  ;;  %v11826_v21 = vpop.f32.mrf.mxu0 }
 0x52e   :  { %v8453_v49 = vpop.f32.mrf.mxu1 }
 0x52f   :  { %14944 = vst [vmem:[#allocation61_spill] sm:$0xff] %v11811_v27  ;;  %v11814_v42 = vadd.f32 %v8453_v49, %v11562_v46  ;;  %v14952_v49 = vld [vmem:[#allocation34_spill] sm:$0xff]  ;;  %v11833_v27 = vpop.f32.mrf.mxu0 }
 0x530   :  { %v4566_v1 = vpop.f32.mrf.mxu1 }
 0x531   :  { %14945 = vst [vmem:[#allocation62_spill] sm:$0xff] %v11814_v42  ;;  %v11819_v55 = vadd.f32 %v4566_v1, %v14946_v9  ;;  %v14954_v9 = vld [vmem:[#allocation44_spill] sm:$0xff]  ;;  %v11843_v31 = vpop.f32.mrf.mxu0 }
 0x532   :  { %v8454_v35 = vpop.f32.mrf.mxu1  ;;  %14960 = vst [vmem:[#allocation18_spill] sm:$0xff] %v11843_v31 }
 0x533   :  { %14947 = vst [vmem:[#allocation39_spill] sm:$0xff] %v11819_v55  ;;  %v11824_v13 = vadd.f32 %v8454_v35, %v14949_v56  ;;  %v4191_v35 = vadd.f32 %v14957_v47, %v14956_v17  ;;  %v14958_v56 = vld [vmem:[#allocation45_spill] sm:$0xff] }
 0x534   :  { %v4569_v24 = vpop.f32.mrf.mxu1  ;;  %v14966_v17 = vld [vmem:[#allocation25_spill] sm:$0xff] }
 0x535   :  { %14950 = vst [vmem:[#allocation33_spill] sm:$0xff] %v11824_v13  ;;  %v11828_v18 = vadd.f32 %v4569_v24, %v4187_v41  ;;  %v14967_v47 = vld [vmem:[#allocation21_spill] sm:$0xff] }
 0x536   :  { %v8457_v46 = vpop.f32.mrf.mxu1 }
 0x537   :  { %14951 = vst [vmem:[#allocation19_spill] sm:$0xff] %v11828_v18  ;;  %v11831_v42 = vadd.f32 %v8457_v46, %v14952_v49  ;;  %v14962_v49 = vld [vmem:[#allocation20_spill] sm:$0xff]  ;;  %v11850_v18 = vpop.f32.mrf.mxu0 }
 0x538   :  { %v4582_v1 = vpop.f32.mrf.mxu1 }
 0x539   :  { %14953 = vst [vmem:[#allocation34_spill] sm:$0xff] %v11831_v42  ;;  %v11836_v55 = vadd.f32 %v4582_v1, %v14954_v9  ;;  %v14964_v9 = vld [vmem:[#allocation23_spill] sm:$0xff]  ;;  %v11860_v58 = vpop.f32.mrf.mxu0 }
 0x53a   :  { %v8458_v20 = vpop.f32.mrf.mxu1  ;;  %14970 = vst [vmem:[#allocation21_spill] sm:$0xff] %v11860_v58 }
 0x53b   :  { %14955 = vst [vmem:[#allocation44_spill] sm:$0xff] %v11836_v55  ;;  %v11841_v13 = vadd.f32 %v8458_v20, %v14958_v56  ;;  %v4195_v20 = vadd.f32 %v14967_v47, %v14966_v17  ;;  %v14968_v56 = vld [vmem:[#allocation46_spill] sm:$0xff]  ;;  %v14975_v17 = vld [vmem:[#allocation28_spill] sm:$0xff]  ;;  %v14976_v47 = vld [vmem:[#allocation27_spill] sm:$0xff] }
 0x53c   :  { %v4585_v41 = vpop.f32.mrf.mxu1 }
 0x53d   :  { %14959 = vst [vmem:[#allocation43_spill] sm:$0xff] %v11841_v13  ;;  %v11845_v24 = vadd.f32 %v4585_v41, %v4191_v35 }
 0x53e   :  { %v8461_v46 = vpop.f32.mrf.mxu1 }
 0x53f   :  { %14961 = vst [vmem:[#allocation45_spill] sm:$0xff] %v11845_v24  ;;  %v11848_v42 = vadd.f32 %v8461_v46, %v14962_v49  ;;  %v14971_v49 = vld [vmem:[#allocation22_spill] sm:$0xff]  ;;  %v11867_v24 = vpop.f32.mrf.mxu0 }
 0x540   :  { %v4598_v1 = vpop.f32.mrf.mxu1 }
 0x541   :  { %14963 = vst [vmem:[#allocation20_spill] sm:$0xff] %v11848_v42  ;;  %v11853_v55 = vadd.f32 %v4598_v1, %v14964_v9  ;;  %v14973_v9 = vld [vmem:[#allocation24_spill] sm:$0xff]  ;;  %v11877_v58 = vpop.f32.mrf.mxu0 }
 0x542   :  { %v8462_v62 = vpop.f32.mrf.mxu1 }
 0x543   :  { %14965 = vst [vmem:[#allocation23_spill] sm:$0xff] %v11853_v55  ;;  %v11858_v13 = vadd.f32 %v8462_v62, %v14968_v56  ;;  %v4199_v62 = vadd.f32 %v14976_v47, %v14975_v17  ;;  %v14977_v56 = vld [vmem:[#allocation47_spill] sm:$0xff]  ;;  %v14982_v17 = vld [vmem:[#allocation26_spill] sm:$0xff]  ;;  %v14983_v47 = vld [vmem:[#allocation29_spill] sm:$0xff] }
 0x544   :  { %v4601_v35 = vpop.f32.mrf.mxu1 }
 0x545   :  { %14969 = vst [vmem:[#allocation25_spill] sm:$0xff] %v11858_v13  ;;  %v11862_v41 = vadd.f32 %v4601_v35, %v4195_v20 }
 0x546   :  { %v8465_v46 = vpop.f32.mrf.mxu1 }
 0x547   :  { %v11865_v42 = vadd.f32 %v8465_v46, %v14971_v49 }
 0x548   :  { %v4614_v1 = vpop.f32.mrf.mxu1 }
 0x549   :  { %14972 = vst [vmem:[#allocation46_spill] sm:$0xff] %v11865_v42  ;;  %v11870_v55 = vadd.f32 %v4614_v1, %v14973_v9  ;;  %v11884_v42 = vpop.f32.mrf.mxu0 }
 0x54a   :  { %v8466_v31 = vpop.f32.mrf.mxu1 }
 0x54b   :  { %14974 = vst [vmem:[#allocation22_spill] sm:$0xff] %v11870_v55  ;;  %v11875_v13 = vadd.f32 %v8466_v31, %v14977_v56  ;;  %v4203_v31 = vadd.f32 %v14982_v17, %v11629_v25  ;;  %v4207_v25 = vadd.f32 %v11638_v37, %v11643_v26  ;;  %v5177_v26 = vadd.f32 %v11645_v57, %v11648_v8 }
 0x54c   :  { %v4617_v20 = vpop.f32.mrf.mxu1 }
 0x54d   :  { %14978 = vst [vmem:[#allocation24_spill] sm:$0xff] %v11875_v13  ;;  %v11879_v35 = vadd.f32 %v4617_v20, %v4199_v62  ;;  %v11894_v13 = vpop.f32.mrf.mxu0 }
 0x54e   :  { %v8469_v46 = vpop.f32.mrf.mxu1 }
 0x54f   :  { %14979 = vst [vmem:[#allocation28_spill] sm:$0xff] %v11879_v35  ;;  %v11882_v49 = vadd.f32 %v8469_v46, %v11618_v10  ;;  %v14985_v46 = vld [vmem:[#allocation30_spill] sm:$0xff]  ;;  %v11901_v35 = vpop.f32.mrf.mxu0 }
 0x550   :  { %v4630_v1 = vpop.f32.mrf.mxu1 }
 0x551   :  { %14980 = vst [vmem:[#allocation27_spill] sm:$0xff] %v11882_v49  ;;  %v11887_v9 = vadd.f32 %v4630_v1, %v11621_v34  ;;  %v11911_v17 = vpop.f32.mrf.mxu0 }
 0x552   :  { %v8470_v55 = vpop.f32.mrf.mxu1 }
 0x553   :  { %14981 = vst [vmem:[#allocation47_spill] sm:$0xff] %v11887_v9  ;;  %v11892_v56 = vadd.f32 %v8470_v55, %v14983_v47 }
 0x554   :  { %v4633_v62 = vpop.f32.mrf.mxu1 }
 0x555   :  { %14984 = vst [vmem:[#allocation26_spill] sm:$0xff] %v11892_v56  ;;  %v11896_v20 = vadd.f32 %v4633_v62, %v4203_v31 }
 0x556   :  { %v8473_v10 = vpop.f32.mrf.mxu1 }
 0x557   :  { %v11899_v49 = vadd.f32 %v8473_v10, %v14985_v46  ;;  %v11915_v10 = vpop.f32.mrf.mxu0 }
 0x558   :  { %v4646_v34 = vpop.f32.mrf.mxu1 }
 0x559   :  { %14986 = vst [vmem:[#allocation29_spill] sm:$0xff] %v11899_v49  ;;  %v11904_v1 = vadd.f32 %v4646_v34, %v11635_v2  ;;  %v5175_v2 = vadd.f32 %v11650_v0, %v11653_v36  ;;  %v5176_v34 = vadd.f32 %v11666_v28, %v11661_v3  ;;  %v11921_v37 = vpop.f32.mrf.mxu0  ;;  %v5179_v28 = vadd.f32 %v11682_v4, %v11669_v6 }
 0x55a   :  { %v8474_v9 = vpop.f32.mrf.mxu1 }
 0x55b   :  { %14987 = vst [vmem:[#allocation30_spill] sm:$0xff] %v11904_v1  ;;  %v11909_v55 = vadd.f32 %v8474_v9, %v11640_v23  ;;  %v11935_v36 = vpop.f32.mrf.mxu0 }
 0x55c   :  { %v4649_v31 = vpop.f32.mrf.mxu1 }
 0x55d   :  { %14988 = vst [vmem:[#allocation63_spill] sm:$0xff] %v11909_v55  ;;  %v11913_v47 = vadd.f32 %v4649_v31, %v4207_v25  ;;  %v14990_v55 = vld [vmem:[#allocation31_spill] sm:$0xff] }
 0x55e   :  { %v8573_v62 = vpop.f32.mrf.mxu1 }
 0x55f   :  { %14989 = vst [vmem:[#allocation64_spill] sm:$0xff] %v11913_v47  ;;  %v14991_v47 = vld [vmem:[#allocation17_spill] sm:$0xff]  ;;  %v11931_v56 = vadd.f32 %v8573_v62, %v5177_v26  ;;  %v11947_v62 = vpop.f32.mrf.mxu0 }
 0x560   :  { %v5434_v46 = vpop.f32.mrf.mxu1  ;;  %v5178_v1 = vadd.f32 %v14991_v47, %v14990_v55 }
 0x561   :  { %v11925_v9 = vadd.f32 %v5434_v46, %v5175_v2  ;;  %14992 = vst [vmem:[#allocation31_spill] sm:$0xff] %v11931_v56  ;;  %v5180_v2 = vadd.f32 %v11698_v7, %v11677_v15  ;;  %v11959_v7 = vpop.f32.mrf.mxu0 }
 0x562   :  { %v8574_v49 = vpop.f32.mrf.mxu1 }
 0x563   :  { %v11939_v8 = vadd.f32 %v8574_v49, %v5178_v1  ;;  %v14994_v1 = vld [vmem:[#allocation32_spill] sm:$0xff] }
 0x564   :  { %v5437_v23 = vpop.f32.mrf.mxu1 }
 0x565   :  { %v11927_v25 = vadd.f32 %v5437_v23, %v5176_v34  ;;  %v14993_v23 = vld [vmem:[#allocation48_spill] sm:$0xff] }
 0x566   :  { %v8577_v31 = vpop.f32.mrf.mxu1  ;;  %v5181_v26 = vadd.f32 %v14993_v23, %v11664_v51 }
 0x567   :  { %v5755_v0 = vadd.f32 %v11927_v25, %v11925_v9 }
 0x568   :  { %v5450_v3 = vpop.f32.mrf.mxu1 }
 0x569   :  { %v5756_v57 = vadd.f32 %v5755_v0, %v11931_v56  ;;  %v11944_v55 = vadd.f32 %v5450_v3, %v5179_v28  ;;  %v5182_v0 = vadd.f32 %v11690_v45, %v14994_v1  ;;  %v11956_v56 = vadd.f32 %v8577_v31, %v5181_v26  ;;  %v11971_v31 = vpop.f32.mrf.mxu0  ;;  %v14995_v26 = vld [vmem:[#allocation49_spill] sm:$0xff]  ;;  %v14996_v1 = vld [vmem:[#allocation50_spill] sm:$0xff] }
 0x56a   :  { %v8578_v46 = vpop.f32.mrf.mxu1  ;;  %v5183_v28 = vadd.f32 %v11714_v32, %v11685_v30 }
 0x56b   :  { %v5757_v47 = vadd.f32 %v5756_v57, %v11939_v8  ;;  %v11963_v57 = vadd.f32 %v8578_v46, %v5182_v0  ;;  %v5186_v0 = vadd.f32 %v11724_v33, %v14996_v1  ;;  %v14998_v1 = vld [vmem:[#allocation52_spill] sm:$0xff] }
 0x56c   :  { %v5453_v34 = vpop.f32.mrf.mxu1 }
 0x56d   :  { %v5758_v6 = vadd.f32 %v5757_v47, %v11944_v55  ;;  %v11952_v4 = vadd.f32 %v5453_v34, %v5180_v2  ;;  %v5184_v47 = vadd.f32 %v11731_v12, %v11693_v29  ;;  %v11983_v12 = vpop.f32.mrf.mxu0 }
 0x56e   :  { %v8581_v49 = vpop.f32.mrf.mxu1 }
 0x56f   :  { %v5759_v15 = vadd.f32 %v5758_v6, %v11952_v4  ;;  %v5185_v6 = vadd.f32 %v11706_v38, %v14995_v26 }
 0x570   :  { %v5466_v3 = vpop.f32.mrf.mxu1 }
 0x571   :  { %v5760_v51 = vadd.f32 %v5759_v15, %v11956_v56  ;;  %v11968_v34 = vadd.f32 %v5466_v3, %v5183_v28  ;;  %v11980_v15 = vadd.f32 %v8581_v49, %v5185_v6  ;;  %v5187_v28 = vadd.f32 %v11748_v14, %v11701_v40  ;;  %v11995_v49 = vpop.f32.mrf.mxu0  ;;  %v14997_v6 = vld [vmem:[#allocation51_spill] sm:$0xff] }
 0x572   :  { %v8582_v2 = vpop.f32.mrf.mxu1 }
 0x573   :  { %v5761_v45 = vadd.f32 %v5760_v51, %v11963_v57  ;;  %v11987_v51 = vadd.f32 %v8582_v2, %v5186_v0  ;;  %v5190_v0 = vadd.f32 %v11758_v5, %v14998_v1  ;;  %v15001_v1 = vld [vmem:[#allocation54_spill] sm:$0xff] }
 0x574   :  { %v5469_v23 = vpop.f32.mrf.mxu1 }
 0x575   :  { %v5762_v30 = vadd.f32 %v5761_v45, %v11968_v34  ;;  %v11976_v32 = vadd.f32 %v5469_v23, %v5184_v47  ;;  %v5188_v45 = vadd.f32 %v11765_v44, %v11709_v54  ;;  %v12007_v44 = vpop.f32.mrf.mxu0 }
 0x576   :  { %v8585_v46 = vpop.f32.mrf.mxu1 }
 0x577   :  { %v5763_v29 = vadd.f32 %v5762_v30, %v11976_v32  ;;  %v5189_v30 = vadd.f32 %v11741_v16, %v14997_v6 }
 0x578   :  { %v5482_v3 = vpop.f32.mrf.mxu1 }
 0x579   :  { %v5764_v38 = vadd.f32 %v5763_v29, %v11980_v15  ;;  %v11992_v23 = vadd.f32 %v5482_v3, %v5187_v28  ;;  %v12004_v29 = vadd.f32 %v8585_v46, %v5189_v30  ;;  %v5191_v28 = vadd.f32 %v11782_v61, %v11717_v63  ;;  %v12019_v46 = vpop.f32.mrf.mxu0  ;;  %v15000_v30 = vld [vmem:[#allocation53_spill] sm:$0xff] }
 0x57a   :  { %v8586_v47 = vpop.f32.mrf.mxu1 }
 0x57b   :  { %v5765_v33 = vadd.f32 %v5764_v38, %v11987_v51  ;;  %v12011_v38 = vadd.f32 %v8586_v47, %v5190_v0  ;;  %v5194_v0 = vadd.f32 %v11792_v39, %v15001_v1 }
 0x57c   :  { %v5485_v26 = vpop.f32.mrf.mxu1 }
 0x57d   :  { %v5766_v40 = vadd.f32 %v5765_v33, %v11992_v23  ;;  %v12000_v14 = vadd.f32 %v5485_v26, %v5188_v45  ;;  %14999 = vst [vmem:[#allocation17_spill] sm:$0xff] %v12011_v38  ;;  %v5192_v33 = vadd.f32 %v11799_v48, %v11726_v22  ;;  %v12031_v48 = vpop.f32.mrf.mxu0 }
 0x57e   :  { %v8589_v2 = vpop.f32.mrf.mxu1 }
 0x57f   :  { %v5767_v54 = vadd.f32 %v5766_v40, %v12000_v14  ;;  %v5193_v40 = vadd.f32 %v11775_v43, %v15000_v30 }
 0x580   :  { %v5498_v3 = vpop.f32.mrf.mxu1 }
 0x581   :  { %v5768_v16 = vadd.f32 %v5767_v54, %v12004_v29  ;;  %v12016_v26 = vadd.f32 %v5498_v3, %v5191_v28  ;;  %v12028_v54 = vadd.f32 %v8589_v2, %v5193_v40  ;;  %v15002_v28 = vld [vmem:[#allocation56_spill] sm:$0xff]  ;;  %v12043_v2 = vpop.f32.mrf.mxu0  ;;  %v15003_v40 = vld [vmem:[#allocation55_spill] sm:$0xff] }
 0x582   :  { %v8590_v45 = vpop.f32.mrf.mxu1 }
 0x583   :  { %v5769_v5 = vadd.f32 %v5768_v16, %v12011_v38  ;;  %v5195_v16 = vadd.f32 %v11816_v50, %v15002_v28  ;;  %v12035_v38 = vadd.f32 %v8590_v45, %v5194_v0  ;;  %v5198_v0 = vadd.f32 %v11826_v21, %v11739_v60 }
 0x584   :  { %v5501_v6 = vpop.f32.mrf.mxu1  ;;  %v5199_v28 = vadd.f32 %v11850_v18, %v11751_v11 }
 0x585   :  { %v5770_v63 = vadd.f32 %v5769_v5, %v12016_v26  ;;  %v12024_v61 = vadd.f32 %v5501_v6, %v5192_v33  ;;  %v5196_v5 = vadd.f32 %v11833_v27, %v11743_v59  ;;  %v12055_v27 = vpop.f32.mrf.mxu0 }
 0x586   :  { %v8593_v47 = vpop.f32.mrf.mxu1 }
 0x587   :  { %v5771_v22 = vadd.f32 %v5770_v63, %v12024_v61  ;;  %v5197_v63 = vadd.f32 %v11809_v52, %v15003_v40  ;;  %v12067_v21 = vpop.f32.mrf.mxu0 }
 0x588   :  { %v5514_v3 = vpop.f32.mrf.mxu1 }
 0x589   :  { %v5772_v43 = vadd.f32 %v5771_v22, %v12028_v54  ;;  %v12040_v6 = vadd.f32 %v5514_v3, %v5195_v16  ;;  %v12052_v22 = vadd.f32 %v8593_v47, %v5197_v63  ;;  %v15009_v63 = vld [vmem:[#allocation16_spill] sm:$0xff] }
 0x58a   :  { %v8594_v33 = vpop.f32.mrf.mxu1 }
 0x58b   :  { %v5773_v39 = vadd.f32 %v5772_v43, %v12035_v38  ;;  %15004 = vst [vmem:[#allocation48_spill] sm:$0xff] %v12052_v22  ;;  %v12059_v16 = vadd.f32 %v8594_v33, %v5198_v0 }
 0x58c   :  { %v5517_v30 = vpop.f32.mrf.mxu1 }
 0x58d   :  { %v5774_v50 = vadd.f32 %v5773_v39, %v12040_v6  ;;  %v12048_v45 = vadd.f32 %v5517_v30, %v5196_v5  ;;  %15005 = vst [vmem:[#allocation32_spill] sm:$0xff] %v12059_v16  ;;  %v5200_v5 = vadd.f32 %v11867_v24, %v11760_v53  ;;  %v15007_v30 = vld [vmem:[#allocation18_spill] sm:$0xff]  ;;  %v12079_v24 = vpop.f32.mrf.mxu0 }
 0x58e   :  { %v8597_v1 = vpop.f32.mrf.mxu1  ;;  %v5201_v40 = vadd.f32 %v15007_v30, %v11746_v19 }
 0x58f   :  { %v5775_v59 = vadd.f32 %v5774_v50, %v12048_v45  ;;  %v15010_v50 = vld [vmem:[#allocation21_spill] sm:$0xff] }
 0x590   :  { %v5530_v3 = vpop.f32.mrf.mxu1  ;;  %v5202_v0 = vadd.f32 %v15010_v50, %v15009_v63  ;;  %v15016_v63 = vld [vmem:[#allocation57_spill] sm:$0xff] }
 0x591   :  { %v5776_v52 = vadd.f32 %v5775_v59, %v12052_v22  ;;  %v12064_v39 = vadd.f32 %v5530_v3, %v5199_v28  ;;  %v12076_v59 = vadd.f32 %v8597_v1, %v5201_v40  ;;  %v15012_v28 = vld [vmem:[#allocation35_spill] sm:$0xff]  ;;  %v12091_v40 = vpop.f32.mrf.mxu0  ;;  %v5205_v50 = vadd.f32 %v11877_v58, %v15016_v63 }
 0x592   :  { %v8598_v43 = vpop.f32.mrf.mxu1 }
 0x593   :  { %15006 = vst [vmem:[#allocation49_spill] sm:$0xff] %v12064_v39  ;;  %v5777_v60 = vadd.f32 %v5776_v52, %v12059_v16  ;;  %15011 = vst [vmem:[#allocation51_spill] sm:$0xff] %v12076_v59  ;;  %v5203_v52 = vadd.f32 %v11884_v42, %v15012_v28  ;;  %v12083_v16 = vadd.f32 %v8598_v43, %v5202_v0 }
 0x594   :  { %v5533_v47 = vpop.f32.mrf.mxu1 }
 0x595   :  { %v5778_v11 = vadd.f32 %v5777_v60, %v12064_v39  ;;  %v12072_v18 = vadd.f32 %v5533_v47, %v5200_v5  ;;  %15013 = vst [vmem:[#allocation52_spill] sm:$0xff] %v12083_v16  ;;  %v15014_v60 = vld [vmem:[#allocation58_spill] sm:$0xff] }
 0x596   :  { %v8601_v33 = vpop.f32.mrf.mxu1  ;;  %v5204_v47 = vadd.f32 %v11901_v35, %v15014_v60 }
 0x597   :  { %15008 = vst [vmem:[#allocation50_spill] sm:$0xff] %v12072_v18  ;;  %v5779_v53 = vadd.f32 %v5778_v11, %v12072_v18 }
 0x598   :  { %v5546_v3 = vpop.f32.mrf.mxu1 }
 0x599   :  { %v5780_v19 = vadd.f32 %v5779_v53, %v12076_v59  ;;  %v12088_v30 = vadd.f32 %v5546_v3, %v5203_v52  ;;  %v15018_v53 = vld [vmem:[#allocation40_spill] sm:$0xff]  ;;  %v12100_v59 = vadd.f32 %v8601_v33, %v5205_v50  ;;  %v12103_v3 = vpop.f32.mrf.mxu0 }
 0x59a   :  { %v8602_v5 = vpop.f32.mrf.mxu1  ;;  %v5206_v28 = vadd.f32 %v11894_v13, %v15018_v53 }
 0x59b   :  { %15015 = vst [vmem:[#allocation53_spill] sm:$0xff] %v12088_v30  ;;  %v5781_v1 = vadd.f32 %v5780_v19, %v12083_v16  ;;  %15019 = vst [vmem:[#allocation56_spill] sm:$0xff] %v12100_v59  ;;  %v15020_v19 = vld [vmem:[#allocation36_spill] sm:$0xff]  ;;  %v12115_v33 = vpop.f32.mrf.mxu0 }
 0x59c   :  { %v5549_v11 = vpop.f32.mrf.mxu1  ;;  %v5207_v60 = vadd.f32 %v11915_v10, %v15020_v19  ;;  %v12107_v16 = vadd.f32 %v8602_v5, %v5206_v28 }
 0x59d   :  { %v5782_v42 = vadd.f32 %v5781_v1, %v12088_v30  ;;  %v12096_v43 = vadd.f32 %v5549_v11, %v5204_v47  ;;  %v15022_v1 = vld [vmem:[#allocation59_spill] sm:$0xff] }
 0x59e   :  { %v8605_v0 = vpop.f32.mrf.mxu1  ;;  %15021 = vst [vmem:[#allocation55_spill] sm:$0xff] %v12107_v16  ;;  %v5208_v11 = vadd.f32 %v11935_v36, %v15022_v1 }
 0x59f   :  { %15017 = vst [vmem:[#allocation54_spill] sm:$0xff] %v12096_v43  ;;  %v5783_v35 = vadd.f32 %v5782_v42, %v12096_v43  ;;  %v15024_v42 = vld [vmem:[#allocation41_spill] sm:$0xff] }
 0x5a0   :  { %v5562_v52 = vpop.f32.mrf.mxu1  ;;  %v5209_v53 = vadd.f32 %v11911_v17, %v15024_v42 }
 0x5a1   :  { %v5784_v58 = vadd.f32 %v5783_v35, %v12100_v59  ;;  %v12112_v63 = vadd.f32 %v5562_v52, %v5207_v60  ;;  %v15026_v35 = vld [vmem:[#allocation42_spill] sm:$0xff]  ;;  %v5115_v52 = vpop.f32.mrf.mxu0 }
 0x5a2   :  { %v8606_v47 = vpop.f32.mrf.mxu1  ;;  %v5210_v19 = vadd.f32 %v11921_v37, %v15026_v35  ;;  %v12124_v59 = vadd.f32 %v8605_v0, %v5209_v53 }
 0x5a3   :  { %15023 = vst [vmem:[#allocation18_spill] sm:$0xff] %v12112_v63  ;;  %v5785_v13 = vadd.f32 %v5784_v58, %v12107_v16  ;;  %v15028_v58 = vld [vmem:[#allocation38_spill] sm:$0xff]  ;;  %v12137_v0 = vpop.f32.mrf.mxu0 }
 0x5a4   :  { %v5565_v50 = vpop.f32.mrf.mxu1  ;;  %15027 = vst [vmem:[#allocation21_spill] sm:$0xff] %v12124_v59  ;;  %v5211_v1 = vadd.f32 %v11959_v7, %v15028_v58  ;;  %v12129_v16 = vadd.f32 %v8606_v47, %v5210_v19 }
 0x5a5   :  { %v5786_v10 = vadd.f32 %v5785_v13, %v12112_v63  ;;  %v12120_v5 = vadd.f32 %v5565_v50, %v5208_v11  ;;  %v15030_v11 = vld [vmem:[#allocation61_spill] sm:$0xff] }
 0x5a6   :  { %v8609_v28 = vpop.f32.mrf.mxu1  ;;  %15029 = vst [vmem:[#allocation35_spill] sm:$0xff] %v12129_v16  ;;  %v5212_v50 = vadd.f32 %v11983_v12, %v15030_v11 }
 0x5a7   :  { %15025 = vst [vmem:[#allocation16_spill] sm:$0xff] %v12120_v5  ;;  %v5787_v36 = vadd.f32 %v5786_v10, %v12120_v5  ;;  %v15032_v10 = vld [vmem:[#allocation37_spill] sm:$0xff]  ;;  %v15057_v5 = vld [vmem:[#allocation47_spill] sm:$0xff] }
 0x5a8   :  { %v5578_v60 = vpop.f32.mrf.mxu1  ;;  %v5213_v35 = vadd.f32 %v11947_v62, %v15032_v10 }
 0x5a9   :  { %v5788_v17 = vadd.f32 %v5787_v36, %v12124_v59  ;;  %v12134_v42 = vadd.f32 %v5578_v60, %v5211_v1  ;;  %v15034_v36 = vld [vmem:[#allocation60_spill] sm:$0xff]  ;;  %v5128_v60 = vpop.f32.mrf.mxu0 }
 0x5aa   :  { %v8610_v13 = vpop.f32.mrf.mxu1  ;;  %v5214_v58 = vadd.f32 %v11971_v31, %v15034_v36  ;;  %v12146_v59 = vadd.f32 %v8609_v28, %v5213_v35 }
 0x5ab   :  { %15031 = vst [vmem:[#allocation58_spill] sm:$0xff] %v12134_v42  ;;  %v5789_v37 = vadd.f32 %v5788_v17, %v12129_v16  ;;  %v15036_v17 = vld [vmem:[#allocation39_spill] sm:$0xff]  ;;  %v8546_v28 = vpop.f32.mrf.mxu0 }
 0x5ac   :  { %v5581_v53 = vpop.f32.mrf.mxu1  ;;  %15035 = vst [vmem:[#allocation40_spill] sm:$0xff] %v12146_v59  ;;  %v5215_v11 = vadd.f32 %v12007_v44, %v15036_v17  ;;  %v12151_v16 = vadd.f32 %v8610_v13, %v5214_v58  ;;  %v15042_v58 = vld [vmem:[#allocation33_spill] sm:$0xff] }
 0x5ad   :  { %v5790_v7 = vadd.f32 %v5789_v37, %v12134_v42  ;;  %v12142_v47 = vadd.f32 %v5581_v53, %v5212_v50  ;;  %v15038_v50 = vld [vmem:[#allocation19_spill] sm:$0xff]  ;;  %v15056_v42 = vld [vmem:[#allocation24_spill] sm:$0xff] }
 0x5ae   :  { %v8613_v19 = vpop.f32.mrf.mxu1  ;;  %15037 = vst [vmem:[#allocation36_spill] sm:$0xff] %v12151_v16  ;;  %v5216_v53 = vadd.f32 %v12031_v48, %v15038_v50 }
 0x5af   :  { %15033 = vst [vmem:[#allocation57_spill] sm:$0xff] %v12142_v47  ;;  %v5791_v12 = vadd.f32 %v5790_v7, %v12142_v47  ;;  %v15040_v7 = vld [vmem:[#allocation62_spill] sm:$0xff] }
 0x5b0   :  { %v5594_v1 = vpop.f32.mrf.mxu1  ;;  %v5217_v36 = vadd.f32 %v11995_v49, %v15040_v7 }
 0x5b1   :  { %v5792_v62 = vadd.f32 %v5791_v12, %v12146_v59  ;;  %v12156_v10 = vadd.f32 %v5594_v1, %v5215_v11  ;;  %v5218_v12 = vadd.f32 %v12019_v46, %v15042_v58  ;;  %v5131_v1 = vpop.f32.mrf.mxu0 }
 0x5b2   :  { %v8614_v37 = vpop.f32.mrf.mxu1  ;;  %v12166_v17 = vadd.f32 %v8613_v19, %v5217_v36 }
 0x5b3   :  { %15039 = vst [vmem:[#allocation59_spill] sm:$0xff] %v12156_v10  ;;  %v5793_v31 = vadd.f32 %v5792_v62, %v12151_v16  ;;  %v15044_v62 = vld [vmem:[#allocation44_spill] sm:$0xff]  ;;  %v12171_v16 = vadd.f32 %v8614_v37, %v5218_v12  ;;  %v8549_v19 = vpop.f32.mrf.mxu0  ;;  %v15049_v12 = vld [vmem:[#allocation43_spill] sm:$0xff] }
 0x5b4   :  { %v5597_v35 = vpop.f32.mrf.mxu1  ;;  %15043 = vst [vmem:[#allocation42_spill] sm:$0xff] %v12166_v17  ;;  %v5219_v50 = vadd.f32 %v12055_v27, %v15044_v62 }
 0x5b5   :  { %v5794_v47 = vadd.f32 %v5793_v31, %v12156_v10  ;;  %v12162_v44 = vadd.f32 %v5597_v35, %v5216_v53  ;;  %15045 = vst [vmem:[#allocation38_spill] sm:$0xff] %v12171_v16  ;;  %v15046_v53 = vld [vmem:[#allocation45_spill] sm:$0xff] }
 0x5b6   :  { %v8617_v13 = vpop.f32.mrf.mxu1  ;;  %v5220_v35 = vadd.f32 %v12079_v24, %v15046_v53 }
 0x5b7   :  { %15041 = vst [vmem:[#allocation41_spill] sm:$0xff] %v12162_v44  ;;  %v5795_v48 = vadd.f32 %v5794_v47, %v12162_v44  ;;  %v15048_v47 = vld [vmem:[#allocation34_spill] sm:$0xff] }
 0x5b8   :  { %v5610_v11 = vpop.f32.mrf.mxu1  ;;  %v5221_v58 = vadd.f32 %v12043_v2, %v15048_v47 }
 0x5b9   :  { %v5796_v49 = vadd.f32 %v5795_v48, %v12166_v17  ;;  %v12176_v7 = vadd.f32 %v5610_v11, %v5219_v50  ;;  %v5222_v48 = vadd.f32 %v12067_v21, %v15049_v12  ;;  %v5144_v11 = vpop.f32.mrf.mxu0 }
 0x5ba   :  { %v8618_v31 = vpop.f32.mrf.mxu1  ;;  %v12186_v62 = vadd.f32 %v8617_v13, %v5221_v58  ;;  %v15051_v58 = vld [vmem:[#allocation20_spill] sm:$0xff]  ;;  %v5231_v63 = vadd.f32 %v5144_v11, %v15057_v5  ;;  %v15060_v11 = vld [vmem:[#allocation30_spill] sm:$0xff] }
 0x5bb   :  { %15047 = vst [vmem:[#allocation61_spill] sm:$0xff] %v12176_v7  ;;  %v5797_v46 = vadd.f32 %v5796_v49, %v12171_v16  ;;  %v15050_v49 = vld [vmem:[#allocation23_spill] sm:$0xff]  ;;  %v12191_v16 = vadd.f32 %v8618_v31, %v5222_v48  ;;  %v8550_v13 = vpop.f32.mrf.mxu0  ;;  %v15052_v31 = vld [vmem:[#allocation25_spill] sm:$0xff] }
 0x5bc   :  { %v5613_v36 = vpop.f32.mrf.mxu1  ;;  %v5223_v53 = vadd.f32 %v12103_v3, %v15050_v49  ;;  %v5226_v48 = vadd.f32 %v12115_v33, %v15052_v31  ;;  %v15053_v49 = vld [vmem:[#allocation22_spill] sm:$0xff] }
 0x5bd   :  { %v5798_v44 = vadd.f32 %v5797_v46, %v12176_v7  ;;  %v12182_v27 = vadd.f32 %v5613_v36, %v5220_v35  ;;  %v5224_v35 = vadd.f32 %v5115_v52, %v11862_v41  ;;  %v5147_v52 = vpop.f32.mrf.mxu0 }
 0x5be   :  { %v8621_v37 = vpop.f32.mrf.mxu1 }
 0x5bf   :  { %v5799_v24 = vadd.f32 %v5798_v44, %v12182_v27  ;;  %v5225_v44 = vadd.f32 %v12091_v40, %v15051_v58  ;;  %v8553_v10 = vpop.f32.mrf.mxu0 }
 0x5c0   :  { %v5626_v50 = vpop.f32.mrf.mxu1 }
 0x5c1   :  { %v5800_v2 = vadd.f32 %v5799_v24, %v12186_v62  ;;  %v12195_v36 = vadd.f32 %v5626_v50, %v5223_v53  ;;  %v12205_v24 = vadd.f32 %v8621_v37, %v5225_v44  ;;  %v5227_v53 = vadd.f32 %v5128_v60, %v15053_v49  ;;  %v15055_v37 = vld [vmem:[#allocation46_spill] sm:$0xff]  ;;  %v5160_v49 = vpop.f32.mrf.mxu0 }
 0x5c2   :  { %v8622_v46 = vpop.f32.mrf.mxu1  ;;  %v5229_v44 = vadd.f32 %v12137_v0, %v15055_v37  ;;  %v5230_v60 = vadd.f32 %v8546_v28, %v15056_v42  ;;  %v15059_v28 = vld [vmem:[#allocation26_spill] sm:$0xff] }
 0x5c3   :  { %v5801_v21 = vadd.f32 %v5800_v2, %v12191_v16  ;;  %v12209_v2 = vadd.f32 %v8622_v46, %v5226_v48  ;;  %v8554_v30 = vpop.f32.mrf.mxu0 }
 0x5c4   :  { %v5629_v47 = vpop.f32.mrf.mxu1 }
 0x5c5   :  { %v5802_v12 = vadd.f32 %v5801_v21, %v12195_v36  ;;  %v12201_v7 = vadd.f32 %v5629_v47, %v5224_v35  ;;  %v15054_v21 = vld [vmem:[#allocation28_spill] sm:$0xff]  ;;  %v5163_v18 = vpop.f32.mrf.mxu0 }
 0x5c6   :  { %v8625_v3 = vpop.f32.mrf.mxu1  ;;  %v5228_v35 = vadd.f32 %v5131_v1, %v15054_v21 }
 0x5c7   :  { %v5803_v41 = vadd.f32 %v5802_v12, %v12201_v7  ;;  %v5743_v46 = vadd.f32 %v8625_v3, %v5229_v44  ;;  %v5234_v3 = vadd.f32 %v8550_v13, %v15059_v28 }
 0x5c8   :  { %v5642_v50 = vpop.f32.mrf.mxu1 }
 0x5c9   :  { %v5804_v40 = vadd.f32 %v5803_v41, %v12205_v24  ;;  %v5741_v47 = vadd.f32 %v5642_v50, %v5227_v53 }
 0x5ca   :  { %v8626_v58 = vpop.f32.mrf.mxu1 }
 0x5cb   :  { %v5805_v17 = vadd.f32 %v5804_v40, %v12209_v2  ;;  %v5744_v1 = vadd.f32 %v8626_v58, %v5230_v60  ;;  %v5232_v40 = vadd.f32 %v5147_v52, %v11896_v20  ;;  %v5235_v58 = vadd.f32 %v5160_v49, %v15060_v11 }
 0x5cc   :  { %v5645_v33 = vpop.f32.mrf.mxu1 }
 0x5cd   :  { %v5806_v12 = vadd.f32 %v5805_v17, %v5741_v47  ;;  %v5742_v31 = vadd.f32 %v5645_v33, %v5228_v35  ;;  %v15058_v17 = vld [vmem:[#allocation27_spill] sm:$0xff] }
 0x5ce   :  { %v8629_v59 = vpop.f32.mrf.mxu1  ;;  %v5233_v35 = vadd.f32 %v8549_v19, %v15058_v17  ;;  %v15062_v19 = vld [vmem:[#allocation29_spill] sm:$0xff]  ;;  %v15063_v17 = vld [vmem:[#allocation63_spill] sm:$0xff] }
 0x5cf   :  { %v5807_v48 = vadd.f32 %v5806_v12, %v5742_v31  ;;  %v5238_v13 = vadd.f32 %v8554_v30, %v15063_v17 }
 0x5d0   :  { %v5658_v41 = vpop.f32.mrf.mxu1  ;;  %v5747_v44 = vadd.f32 %v8629_v59, %v5233_v35 }
 0x5d1   :  { %v5808_v50 = vadd.f32 %v5807_v48, %v5743_v46  ;;  %v5745_v21 = vadd.f32 %v5658_v41, %v5231_v63  ;;  %v15061_v63 = vld [vmem:[#allocation64_spill] sm:$0xff] }
 0x5d2   :  { %v8630_v53 = vpop.f32.mrf.mxu1  ;;  %v5236_v52 = vadd.f32 %v5163_v18, %v15061_v63 }
 0x5d3   :  { %v5809_v43 = vadd.f32 %v5808_v50, %v5744_v1  ;;  %v5748_v60 = vadd.f32 %v8630_v53, %v5234_v3 }
 0x5d4   :  { %v5661_v0 = vpop.f32.mrf.mxu1 }
 0x5d5   :  { %v5810_v33 = vadd.f32 %v5809_v43, %v5745_v21  ;;  %v5746_v37 = vadd.f32 %v5661_v0, %v5232_v40  ;;  %v5237_v43 = vadd.f32 %v8553_v10, %v15062_v19 }
 0x5d6   :  { %v8633_v42 = vpop.f32.mrf.mxu1 }
 0x5d7   :  { %v5811_v12 = vadd.f32 %v5810_v33, %v5746_v37  ;;  %v5751_v59 = vadd.f32 %v8633_v42, %v5237_v43 }
 0x5d8   :  { %v5674_v5 = vpop.f32.mrf.mxu1 }
 0x5d9   :  { %v5812_v48 = vadd.f32 %v5811_v12, %v5747_v44  ;;  %v5749_v41 = vadd.f32 %v5674_v5, %v5235_v58 }
 0x5da   :  { %v8634_v20 = vpop.f32.mrf.mxu1 }
 0x5db   :  { %v5813_v50 = vadd.f32 %v5812_v48, %v5748_v60  ;;  %v5752_v33 = vadd.f32 %v8634_v20, %v5238_v13 }
 0x5dc   :  { %v5677_v39 = vpop.f32.mrf.mxu1 }
 0x5dd   :  { %v5814_v40 = vadd.f32 %v5813_v50, %v5749_v41  ;;  %v5750_v0 = vadd.f32 %v5677_v39, %v5236_v52 }
 0x5df   :  { %v5815_v35 = vadd.f32 %v5814_v40, %v5750_v0 }
 0x5e1   :  { %v5816_v28 = vadd.f32 %v5815_v35, %v5751_v59 }
 0x5e3   :  { %v5817_v22 = vadd.f32 %v5816_v28, %v5752_v33 }
 0x5e5   :  { %v5818_v49 = vrot.slane %v5817_v22, 4 }
 0x5e7   :  { %v5819_v53 = vadd.f32 %v5818_v49, %v5817_v22 }
 0x5e9   :  { %v5820_v3 = vrot.slane %v5819_v53, 2 }
 0x5eb   :  { %v5821_v12 = vadd.f32 %v5820_v3, %v5819_v53 }
 0x5ed   :  { %v5822_v11 = vrot.slane %v5821_v12, 1 }
 0x5ef   :  { %v5823_v18 = vadd.f32 %v5822_v11, %v5821_v12 }
 0x5f1   :  { %v12225_v5 = vmul.f32 0.001953125, %v5823_v18 }
 0x5f3   :  { %v12229_v10 = vsub.f32 %v12182_v27, %v12225_v5  ;;  %v12233_v39 = vsub.f32 %v12186_v62, %v12225_v5  ;;  %v12237_v30 = vsub.f32 %v12191_v16, %v12225_v5  ;;  %v12241_v22 = vsub.f32 %v12195_v36, %v12225_v5 }
 0x5f4   :  { %v12245_v42 = vsub.f32 %v12201_v7, %v12225_v5  ;;  %v12249_v27 = vsub.f32 %v12205_v24, %v12225_v5  ;;  %v12253_v62 = vsub.f32 %v12209_v2, %v12225_v5  ;;  %v12256_v58 = vsub.f32 %v5741_v47, %v12225_v5 }
 0x5f5   :  { %v12259_v16 = vsub.f32 %v5742_v31, %v12225_v5  ;;  %v12262_v36 = vsub.f32 %v5743_v46, %v12225_v5  ;;  %v12265_v7 = vsub.f32 %v5744_v1, %v12225_v5  ;;  %v12268_v48 = vsub.f32 %v5745_v21, %v12225_v5 }
 0x5f6   :  { %v12271_v24 = vsub.f32 %v5746_v37, %v12225_v5  ;;  %v12274_v2 = vsub.f32 %v5747_v44, %v12225_v5  ;;  %v12277_v47 = vsub.f32 %v5748_v60, %v12225_v5  ;;  %v12280_v31 = vsub.f32 %v5749_v41, %v12225_v5  ;;  %v15064_v60 = vld [vmem:[#allocation31_spill] sm:$0xff] }
 0x5f7   :  { %v12283_v46 = vsub.f32 %v5750_v0, %v12225_v5  ;;  %v12286_v1 = vsub.f32 %v5751_v59, %v12225_v5  ;;  %v12289_v21 = vsub.f32 %v5752_v33, %v12225_v5  ;;  %v12293_v37 = vsub.f32 %v11925_v9, %v12225_v5 }
 0x5f8   :  { %v12297_v44 = vsub.f32 %v11927_v25, %v12225_v5  ;;  %v12301_v20 = vsub.f32 %v15064_v60, %v12225_v5  ;;  %v12309_v41 = vsub.f32 %v11939_v8, %v12225_v5  ;;  %v12313_v9 = vsub.f32 %v11944_v55, %v12225_v5 }
 0x5f9   :  { %v5889_v63 = vmul.f32 %v12293_v37, %v12293_v37  ;;  %v12319_v19 = vsub.f32 %v11952_v4, %v12225_v5  ;;  %v12325_v8 = vsub.f32 %v11956_v56, %v12225_v5  ;;  %v12331_v17 = vsub.f32 %v11963_v57, %v12225_v5 }
 0x5fa   :  { %v5890_v52 = vmul.f32 %v12297_v44, %v12297_v44  ;;  %v5891_v25 = vmul.f32 %v12301_v20, %v12301_v20  ;;  %v5892_v43 = vmul.f32 %v12309_v41, %v12309_v41  ;;  %v5893_v55 = vmul.f32 %v12313_v9, %v12313_v9 }
 0x5fb   :  { %v5894_v4 = vmul.f32 %v12319_v19, %v12319_v19  ;;  %v12337_v59 = vsub.f32 %v11968_v34, %v12225_v5  ;;  %v5895_v56 = vmul.f32 %v12325_v8, %v12325_v8  ;;  %v12343_v33 = vsub.f32 %v11976_v32, %v12225_v5 }
 0x5fc   :  { %v5953_v50 = vadd.f32 %v5890_v52, %v5889_v63  ;;  %v5896_v57 = vmul.f32 %v12331_v17, %v12331_v17  ;;  %v12349_v49 = vsub.f32 %v11980_v15, %v12225_v5  ;;  %v12355_v3 = vsub.f32 %v11987_v51, %v12225_v5 }
 0x5fd   :  { %v5897_v34 = vmul.f32 %v12337_v59, %v12337_v59  ;;  %v5898_v32 = vmul.f32 %v12343_v33, %v12343_v33  ;;  %v12361_v11 = vsub.f32 %v11992_v23, %v12225_v5  ;;  %v12367_v60 = vsub.f32 %v12000_v14, %v12225_v5 }
 0x5fe   :  { %v5954_v40 = vadd.f32 %v5953_v50, %v5891_v25  ;;  %v5899_v15 = vmul.f32 %v12349_v49, %v12349_v49  ;;  %v5900_v51 = vmul.f32 %v12355_v3, %v12355_v3  ;;  %v12373_v52 = vsub.f32 %v12004_v29, %v12225_v5  ;;  %v15065_v50 = vld [vmem:[#allocation17_spill] sm:$0xff] }
 0x5ff   :  { %v5901_v23 = vmul.f32 %v12361_v11, %v12361_v11  ;;  %v5902_v14 = vmul.f32 %v12367_v60, %v12367_v60 }
 0x600   :  { %v5955_v0 = vadd.f32 %v5954_v40, %v5892_v43  ;;  %v12379_v43 = vsub.f32 %v15065_v50, %v12225_v5  ;;  %v5903_v29 = vmul.f32 %v12373_v52, %v12373_v52 }
 0x602   :  { %v5956_v13 = vadd.f32 %v5955_v0, %v5893_v55  ;;  %v12385_v55 = vsub.f32 %v12016_v26, %v12225_v5 }
 0x604   :  { %v5957_v35 = vadd.f32 %v5956_v13, %v5894_v4  ;;  %15066 = vst [vmem:[#allocation37_spill] sm:$0xff] %v12385_v55  ;;  %v12391_v4 = vsub.f32 %v12024_v61, %v12225_v5  ;;  %v5904_v13 = vmul.f32 %v12379_v43, %v12379_v43  ;;  %v5905_v26 = vmul.f32 %v12385_v55, %v12385_v55 }
 0x606   :  { %v5958_v28 = vadd.f32 %v5957_v35, %v5895_v56  ;;  %15067 = vst [vmem:[#allocation60_spill] sm:$0xff] %v12391_v4  ;;  %v12397_v35 = vsub.f32 %v12028_v54, %v12225_v5  ;;  %v5906_v61 = vmul.f32 %v12391_v4, %v12391_v4 }
 0x608   :  { %v5959_v53 = vadd.f32 %v5958_v28, %v5896_v57  ;;  %15068 = vst [vmem:[#allocation39_spill] sm:$0xff] %v12397_v35  ;;  %v12403_v28 = vsub.f32 %v12035_v38, %v12225_v5  ;;  %v5907_v54 = vmul.f32 %v12397_v35, %v12397_v35 }
 0x60a   :  { %v5960_v12 = vadd.f32 %v5959_v53, %v5897_v34  ;;  %15069 = vst [vmem:[#allocation19_spill] sm:$0xff] %v12403_v28  ;;  %v12409_v53 = vsub.f32 %v12040_v6, %v12225_v5  ;;  %v5908_v38 = vmul.f32 %v12403_v28, %v12403_v28 }
 0x60c   :  { %v5961_v18 = vadd.f32 %v5960_v12, %v5898_v32  ;;  %15070 = vst [vmem:[#allocation62_spill] sm:$0xff] %v12409_v53  ;;  %v12415_v12 = vsub.f32 %v12048_v45, %v12225_v5  ;;  %v5909_v6 = vmul.f32 %v12409_v53, %v12409_v53  ;;  %v8825_v53 = vld [vmem:[#allocation9 + $0x18] sm:$0xff]  }
 0x60e   :  { %v5962_v63 = vadd.f32 %v5961_v18, %v5899_v15  ;;  %15071 = vst [vmem:[#allocation33_spill] sm:$0xff] %v12415_v12  ;;  %v15072_v18 = vld [vmem:[#allocation48_spill] sm:$0xff]  ;;  %v5910_v45 = vmul.f32 %v12415_v12, %v12415_v12 }
 0x610   :  { %v5963_v25 = vadd.f32 %v5962_v63, %v5900_v51  ;;  %v12421_v51 = vsub.f32 %v15072_v18, %v12225_v5 }
 0x612   :  { %v5964_v40 = vadd.f32 %v5963_v25, %v5901_v23  ;;  %15073 = vst [vmem:[#allocation44_spill] sm:$0xff] %v12421_v51  ;;  %v15074_v23 = vld [vmem:[#allocation32_spill] sm:$0xff] }
 0x613   :  { %v12427_v25 = vsub.f32 %v15074_v23, %v12225_v5 }
 0x614   :  { %v5965_v0 = vadd.f32 %v5964_v40, %v5902_v14  ;;  %v15076_v14 = vld [vmem:[#allocation49_spill] sm:$0xff] }
 0x615   :  { %15075 = vst [vmem:[#allocation45_spill] sm:$0xff] %v12427_v25  ;;  %v12433_v40 = vsub.f32 %v15076_v14, %v12225_v5  ;;  %v15086_v14 = vld [vmem:[#allocation54_spill] sm:$0xff] }
 0x616   :  { %v5966_v56 = vadd.f32 %v5965_v0, %v5903_v29  ;;  %v5911_v29 = vmul.f32 %v12421_v51, %v12421_v51 }
 0x617   :  { %15077 = vst [vmem:[#allocation34_spill] sm:$0xff] %v12433_v40 }
 0x618   :  { %v5967_v57 = vadd.f32 %v5966_v56, %v5904_v13  ;;  %v15078_v13 = vld [vmem:[#allocation50_spill] sm:$0xff] }
 0x619   :  { %v12439_v56 = vsub.f32 %v15078_v13, %v12225_v5 }
 0x61a   :  { %v5968_v34 = vadd.f32 %v5967_v57, %v5905_v26  ;;  %v5912_v26 = vmul.f32 %v12427_v25, %v12427_v25  ;;  %v8822_v25 = vld [vmem:[#allocation9 + $0x30] sm:$0xff]  }
 0x61b   :  { %15079 = vst [vmem:[#allocation43_spill] sm:$0xff] %v12439_v56  ;;  %v5914_v18 = vmul.f32 %v12439_v56, %v12439_v56 }
 0x61c   :  { %v5969_v32 = vadd.f32 %v5968_v34, %v5906_v61  ;;  %v15080_v61 = vld [vmem:[#allocation51_spill] sm:$0xff] }
 0x61d   :  { %v12445_v34 = vsub.f32 %v15080_v61, %v12225_v5 }
 0x61e   :  { %v5970_v15 = vadd.f32 %v5969_v32, %v5907_v54  ;;  %v5913_v54 = vmul.f32 %v12433_v40, %v12433_v40 }
 0x61f   :  { %15081 = vst [vmem:[#allocation23_spill] sm:$0xff] %v12445_v34 }
 0x620   :  { %v5971_v63 = vadd.f32 %v5970_v15, %v5908_v38  ;;  %v15082_v38 = vld [vmem:[#allocation52_spill] sm:$0xff] }
 0x621   :  { %v12451_v15 = vsub.f32 %v15082_v38, %v12225_v5 }
 0x622   :  { %v5972_v50 = vadd.f32 %v5971_v63, %v5909_v6  ;;  %v15084_v63 = vld [vmem:[#allocation53_spill] sm:$0xff] }
 0x623   :  { %15083 = vst [vmem:[#allocation20_spill] sm:$0xff] %v12451_v15  ;;  %v12457_v23 = vsub.f32 %v15084_v63, %v12225_v5  ;;  %v15092_v63 = vld [vmem:[#allocation18_spill] sm:$0xff] }
 0x624   :  { %v5973_v0 = vadd.f32 %v5972_v50, %v5910_v45  ;;  %v5915_v45 = vmul.f32 %v12445_v34, %v12445_v34 }
 0x625   :  { %15085 = vst [vmem:[#allocation25_spill] sm:$0xff] %v12457_v23  ;;  %v5917_v61 = vmul.f32 %v12457_v23, %v12457_v23 }
 0x626   :  { %v5974_v57 = vadd.f32 %v5973_v0, %v5911_v29  ;;  %v12463_v29 = vsub.f32 %v15086_v14, %v12225_v5  ;;  %v5916_v0 = vmul.f32 %v12451_v15, %v12451_v15  ;;  %v12481_v14 = vsub.f32 %v15092_v63, %v12225_v5  ;;  %v15097_v63 = vld [vmem:[#allocation35_spill] sm:$0xff] }
 0x628   :  { %v5975_v32 = vadd.f32 %v5974_v57, %v5912_v26  ;;  %15087 = vst [vmem:[#allocation22_spill] sm:$0xff] %v12463_v29  ;;  %v15088_v26 = vld [vmem:[#allocation56_spill] sm:$0xff]  ;;  %15093 = vst [vmem:[#allocation24_spill] sm:$0xff] %v12481_v14 }
 0x629   :  { %v12469_v57 = vsub.f32 %v15088_v26, %v12225_v5  ;;  %v15094_v26 = vld [vmem:[#allocation16_spill] sm:$0xff] }
 0x62a   :  { %v5976_v6 = vadd.f32 %v5975_v32, %v5913_v54  ;;  %v15090_v32 = vld [vmem:[#allocation55_spill] sm:$0xff]  ;;  %v12487_v23 = vsub.f32 %v15094_v26, %v12225_v5  ;;  %v15098_v26 = vld [vmem:[#allocation58_spill] sm:$0xff] }
 0x62b   :  { %15089 = vst [vmem:[#allocation28_spill] sm:$0xff] %v12469_v57  ;;  %v12475_v38 = vsub.f32 %v15090_v32, %v12225_v5  ;;  %v15096_v32 = vld [vmem:[#allocation21_spill] sm:$0xff] }
 0x62c   :  { %v5977_v50 = vadd.f32 %v5976_v6, %v5914_v18  ;;  %v5918_v18 = vmul.f32 %v12463_v29, %v12463_v29  ;;  %15095 = vst [vmem:[#allocation47_spill] sm:$0xff] %v12487_v23  ;;  %v12493_v29 = vsub.f32 %v15096_v32, %v12225_v5  ;;  %v15099_v32 = vld [vmem:[#allocation57_spill] sm:$0xff] }
 0x62d   :  { %15091 = vst [vmem:[#allocation46_spill] sm:$0xff] %v12475_v38 }
 0x62e   :  { %v5978_v13 = vadd.f32 %v5977_v50, %v5915_v45  ;;  %v5919_v45 = vmul.f32 %v12469_v57, %v12469_v57  ;;  %v12499_v57 = vsub.f32 %v15097_v63, %v12225_v5  ;;  %v15100_v63 = vld [vmem:[#allocation40_spill] sm:$0xff] }
 0x630   :  { %v5979_v54 = vadd.f32 %v5978_v13, %v5916_v0  ;;  %v5920_v0 = vmul.f32 %v12475_v38, %v12475_v38  ;;  %v12505_v38 = vsub.f32 %v15098_v26, %v12225_v5  ;;  %v15101_v26 = vld [vmem:[#allocation36_spill] sm:$0xff] }
 0x631   :  { %v12523_v15 = vsub.f32 %v15101_v26, %v12225_v5  ;;  %v15104_v26 = vld [vmem:[#allocation42_spill] sm:$0xff] }
 0x632   :  { %v5980_v6 = vadd.f32 %v5979_v54, %v5917_v61  ;;  %v5921_v61 = vmul.f32 %v12481_v14, %v12481_v14  ;;  %v12511_v14 = vsub.f32 %v15099_v32, %v12225_v5  ;;  %v15102_v32 = vld [vmem:[#allocation59_spill] sm:$0xff]  ;;  %v12541_v40 = vsub.f32 %v15104_v26, %v12225_v5 }
 0x633   :  { %v12529_v34 = vsub.f32 %v15102_v32, %v12225_v5  ;;  %v8821_v32 = vld [vmem:[#allocation9 + $0x38] sm:$0xff]  }
 0x634   :  { %v5981_v50 = vadd.f32 %v5980_v6, %v5918_v18  ;;  %v5922_v18 = vmul.f32 %v12487_v23, %v12487_v23  ;;  %v12517_v23 = vsub.f32 %v15100_v63, %v12225_v5  ;;  %v15103_v63 = vld [vmem:[#allocation41_spill] sm:$0xff]  ;;  %8635 = vmatprep.subr.bf16.mxu0 %v8821_v32  ;;  %v5931_v26 = vmul.f32 %v12541_v40, %v12541_v40 }
 0x635   :  { %v12535_v56 = vsub.f32 %v15103_v63, %v12225_v5  ;;  %8636 = vmatpush3.bf16.msra.mxu0 %v8821_v32  ;;  %v8824_v32 = vld [vmem:[#allocation9 + $0x20] sm:$0xff]  }
 0x636   :  { %v5982_v13 = vadd.f32 %v5981_v50, %v5919_v45  ;;  %v5923_v45 = vmul.f32 %v12493_v29, %v12493_v29  ;;  %8637 = vmatprep.subr.bf16.mxu0 %v8822_v25 }
 0x637   :  { %v5930_v63 = vmul.f32 %v12535_v56, %v12535_v56 }
 0x638   :  { %v5983_v54 = vadd.f32 %v5982_v13, %v5920_v0  ;;  %v5924_v0 = vmul.f32 %v12499_v57, %v12499_v57 }
 0x639   :  { %8638 = vmatpush3.bf16.msra.mxu0 %v8822_v25  ;;  %v5936_v25 = vmul.f32 %v12237_v30, %v12237_v30 }
 0x63a   :  { %v5984_v6 = vadd.f32 %v5983_v54, %v5921_v61  ;;  %v5925_v61 = vmul.f32 %v12505_v38, %v12505_v38 }
 0x63c   :  { %v5985_v50 = vadd.f32 %v5984_v6, %v5922_v18  ;;  %v5926_v18 = vmul.f32 %v12511_v14, %v12511_v14 }
 0x63e   :  { %v5986_v13 = vadd.f32 %v5985_v50, %v5923_v45  ;;  %v5927_v45 = vmul.f32 %v12517_v23, %v12517_v23 }
 0x640   :  { %v5987_v54 = vadd.f32 %v5986_v13, %v5924_v0  ;;  %v5928_v0 = vmul.f32 %v12523_v15, %v12523_v15 }
 0x642   :  { %v5988_v6 = vadd.f32 %v5987_v54, %v5925_v61  ;;  %v5929_v61 = vmul.f32 %v12529_v34, %v12529_v34 }
 0x644   :  { %v5989_v50 = vadd.f32 %v5988_v6, %v5926_v18  ;;  %v15105_v18 = vld [vmem:[#allocation38_spill] sm:$0xff] }
 0x645   :  { %v12547_v6 = vsub.f32 %v15105_v18, %v12225_v5 }
 0x646   :  { %v5990_v13 = vadd.f32 %v5989_v50, %v5927_v45  ;;  %v15106_v45 = vld [vmem:[#allocation61_spill] sm:$0xff] }
 0x647   :  { %v12553_v50 = vsub.f32 %v15106_v45, %v12225_v5  ;;  %v5932_v18 = vmul.f32 %v12547_v6, %v12547_v6  ;;  %v5934_v5 = vmul.f32 %v12229_v10, %v12229_v10 }
 0x648   :  { %v5991_v54 = vadd.f32 %v5990_v13, %v5928_v0  ;;  %v8823_v13 = vld [vmem:[#allocation9 + $0x28] sm:$0xff]  }
 0x649   :  { %8639 = vmatprep.subr.bf16.mxu0 %v8823_v13 }
 0x64a   :  { %v5992_v51 = vadd.f32 %v5991_v54, %v5929_v61  ;;  %v5933_v61 = vmul.f32 %v12553_v50, %v12553_v50  ;;  %8640 = vmatpush3.bf16.msra.mxu0 %v8823_v13  ;;  %v5938_v13 = vmul.f32 %v12245_v42, %v12245_v42 }
 0x64b   :  { %8641 = vmatprep.subr.bf16.mxu0 %v8824_v32 }
 0x64c   :  { %v5993_v0 = vadd.f32 %v5992_v51, %v5930_v63  ;;  %v5935_v51 = vmul.f32 %v12233_v39, %v12233_v39 }
 0x64e   :  { %v5994_v12 = vadd.f32 %v5993_v0, %v5931_v26  ;;  %8642 = vmatpush3.bf16.msra.mxu0 %v8824_v32  ;;  %v5940_v32 = vmul.f32 %v12253_v62, %v12253_v62 }
 0x64f   :  { %8643 = vmatprep.subr.bf16.mxu0 %v8825_v53 }
 0x650   :  { %v5995_v54 = vadd.f32 %v5994_v12, %v5932_v18  ;;  %v5937_v12 = vmul.f32 %v12241_v22, %v12241_v22  ;;  %v8826_v18 = vld [vmem:[#allocation9 + $0x10] sm:$0xff]  }
 0x652   :  { %v5996_v45 = vadd.f32 %v5995_v54, %v5933_v61  ;;  %8644 = vmatpush3.bf16.msra.mxu0 %v8825_v53  ;;  %v5939_v54 = vmul.f32 %v12249_v27, %v12249_v27  ;;  %v5942_v53 = vmul.f32 %v12259_v16, %v12259_v16 }
 0x653   :  { %8645 = vmatprep.subr.bf16.mxu0 %v8826_v18 }
 0x654   :  { %v5997_v63 = vadd.f32 %v5996_v45, %v5934_v5  ;;  %v8827_v45 = vld [vmem:[#allocation9 + $0x8] sm:$0xff]  }
 0x656   :  { %v5998_v26 = vadd.f32 %v5997_v63, %v5935_v51  ;;  %8646 = vmatpush3.bf16.msra.mxu0 %v8826_v18  ;;  %v5941_v63 = vmul.f32 %v12256_v58, %v12256_v58 }
 0x657   :  { %8647 = vmatprep.subr.bf16.mxu0 %v8827_v45 }
 0x658   :  { %v5999_v0 = vadd.f32 %v5998_v26, %v5936_v25  ;;  %v8828_v26 = vld [vmem:[#allocation9] sm:$0xff]  }
 0x65a   :  { %v6000_v61 = vadd.f32 %v5999_v0, %v5937_v12  ;;  %8648 = vmatpush3.bf16.msra.mxu0 %v8827_v45  ;;  %v5943_v0 = vmul.f32 %v12262_v36, %v12262_v36  ;;  %v5947_v45 = vmul.f32 %v12274_v2, %v12274_v2 }
 0x65b   :  { %8649 = vmatprep.subr.bf16.mxu0 %v8828_v26 }
 0x65c   :  { %v6001_v5 = vadd.f32 %v6000_v61, %v5938_v13  ;;  %v5944_v61 = vmul.f32 %v12265_v7, %v12265_v7 }
 0x65e   :  { %v6002_v51 = vadd.f32 %v6001_v5, %v5939_v54  ;;  %8650 = vmatpush3.bf16.msra.mxu0 %v8828_v26  ;;  %v5945_v54 = vmul.f32 %v12268_v48, %v12268_v48 }
 0x660   :  { %v6003_v25 = vadd.f32 %v6002_v51, %v5940_v32  ;;  %v5946_v32 = vmul.f32 %v12271_v24, %v12271_v24 }
 0x662   :  { %v6004_v12 = vadd.f32 %v6003_v25, %v5941_v63  ;;  %v5948_v25 = vmul.f32 %v12277_v47, %v12277_v47 }
 0x664   :  { %v6005_v13 = vadd.f32 %v6004_v12, %v5942_v53  ;;  %v5949_v12 = vmul.f32 %v12280_v31, %v12280_v31 }
 0x666   :  { %v6006_v18 = vadd.f32 %v6005_v13, %v5943_v0  ;;  %v5950_v0 = vmul.f32 %v12283_v46, %v12283_v46 }
 0x668   :  { %v6007_v5 = vadd.f32 %v6006_v18, %v5944_v61  ;;  %v5951_v61 = vmul.f32 %v12286_v1, %v12286_v1 }
 0x66a   :  { %v6008_v51 = vadd.f32 %v6007_v5, %v5945_v54  ;;  %v5952_v54 = vmul.f32 %v12289_v21, %v12289_v21 }
 0x66c   :  { %v6009_v63 = vadd.f32 %v6008_v51, %v5946_v32 }
 0x66e   :  { %v6010_v53 = vadd.f32 %v6009_v63, %v5947_v45 }
 0x670   :  { %v6011_v26 = vadd.f32 %v6010_v53, %v5948_v25 }
 0x672   :  { %v6012_v13 = vadd.f32 %v6011_v26, %v5949_v12  ;;  %v12604_v12 = vld [vmem:[%s14385_s6] ss:$0 sm:$0xff] }
 0x674   :  { %v6013_v18 = vadd.f32 %v6012_v13, %v5950_v0 }
 0x676   :  { %v6014_v5 = vadd.f32 %v6013_v18, %v5951_v61 }
 0x678   :  { %v6015_v32 = vadd.f32 %v6014_v5, %v5952_v54 }
 0x67a   :  { %v6016_v51 = vrot.slane %v6015_v32, 4 }
 0x67c   :  { %v6017_v28 = vadd.f32 %v6016_v51, %v6015_v32 }
 0x67e   :  { %v6018_v45 = vrot.slane %v6017_v28, 2 }
 0x680   :  { %v6019_v63 = vadd.f32 %v6018_v45, %v6017_v28 }
 0x682   :  { %v6020_v35 = vrot.slane %v6019_v63, 1 }
 0x684   :  { %v6021_v4 = vadd.f32 %v6020_v35, %v6019_v63 }
 0x686   :  { %v6022_v25 = vmul.f32 0.001953125, %v6021_v4 }
 0x688   :  { %v6023_v53 = vadd.f32 1e-05, %v6022_v25 }
 0x68a   :  { %8831 = vrsqrt.f32 %v6023_v53 }
 0x697   :  { %v12599_v55 = vpop.eup %8831 }
 0x698   :  { %15107 = vst [vmem:[#allocation27_spill] sm:$0xff] %v12599_v55  ;;  %v6086_v26 = vmul.f32 %v12599_v55, %v12283_v46  ;;  %v12613_v28 = vmul.f32 %v12599_v55, %v12301_v20  ;;  %v12617_v4 = vmul.f32 %v12599_v55, %v12309_v41  ;;  %v6059_v35 = vmul.f32 %v12599_v55, %v12493_v29 }
 0x699   :  { %v6060_v13 = vmul.f32 %v12599_v55, %v12499_v57  ;;  %v6061_v46 = vmul.f32 %v12599_v55, %v12505_v38  ;;  %v6062_v61 = vmul.f32 %v12599_v55, %v12511_v14  ;;  %v6063_v20 = vmul.f32 %v12599_v55, %v12517_v23 }
 0x69a   :  { %v12609_v0 = vmul.f32 %v12604_v12, %v6086_v26  ;;  %v6064_v18 = vmul.f32 %v12599_v55, %v12523_v15  ;;  %v6065_v41 = vmul.f32 %v12599_v55, %v12529_v34  ;;  %v6066_v29 = vmul.f32 %v12599_v55, %v12535_v56 }
 0x69b   :  { %v6067_v57 = vmul.f32 %v12599_v55, %v12541_v40  ;;  %v6068_v38 = vmul.f32 %v12599_v55, %v12547_v6  ;;  %v6069_v14 = vmul.f32 %v12599_v55, %v12553_v50  ;;  %v6070_v23 = vmul.f32 %v12599_v55, %v12229_v10 }
 0x69c   :  { %v6071_v15 = vmul.f32 %v12599_v55, %v12233_v39  ;;  %v6072_v34 = vmul.f32 %v12599_v55, %v12237_v30  ;;  %v6073_v56 = vmul.f32 %v12599_v55, %v12241_v22  ;;  %v6074_v40 = vmul.f32 %v12599_v55, %v12245_v42 }
 0x69d   :  { %v6075_v6 = vmul.f32 %v12599_v55, %v12249_v27  ;;  %v6076_v50 = vmul.f32 %v12599_v55, %v12253_v62  ;;  %v6077_v10 = vmul.f32 %v12599_v55, %v12256_v58  ;;  %v6078_v39 = vmul.f32 %v12599_v55, %v12259_v16 }
 0x69e   :  { %v6079_v30 = vmul.f32 %v12599_v55, %v12262_v36  ;;  %v6080_v22 = vmul.f32 %v12599_v55, %v12265_v7  ;;  %v6081_v42 = vmul.f32 %v12599_v55, %v12268_v48  ;;  %v6082_v27 = vmul.f32 %v12599_v55, %v12271_v24 }
 0x69f   :  { %v6083_v62 = vmul.f32 %v12599_v55, %v12274_v2  ;;  %v6084_v58 = vmul.f32 %v12599_v55, %v12277_v47  ;;  %v6085_v16 = vmul.f32 %v12599_v55, %v12280_v31  ;;  %v6087_v36 = vmul.f32 %v12599_v55, %v12286_v1 }
 0x6a0   :  { %v6088_v7 = vmul.f32 %v12599_v55, %v12289_v21  ;;  %v6129_v48 = vmul.f32 %v12604_v12, %v6059_v35  ;;  %v6130_v54 = vmul.f32 %v12604_v12, %v6060_v13  ;;  %v12680_v24 = vmul.f32 %v12604_v12, %v6061_v46 }
 0x6a1   :  { %v12683_v2 = vmul.f32 %v12604_v12, %v6062_v61  ;;  %v6133_v47 = vmul.f32 %v12604_v12, %v6063_v20  ;;  %v6134_v31 = vmul.f32 %v12604_v12, %v6064_v18  ;;  %v12688_v5 = vmul.f32 %v12604_v12, %v6065_v41 }
 0x6a2   :  { %v12691_v1 = vmul.f32 %v12604_v12, %v6066_v29  ;;  %v6137_v21 = vmul.f32 %v12604_v12, %v6067_v57  ;;  %v6138_v32 = vmul.f32 %v12604_v12, %v6068_v38  ;;  %v12696_v51 = vmul.f32 %v12604_v12, %v6069_v14 }
 0x6a3   :  { %v12699_v45 = vmul.f32 %v12604_v12, %v6070_v23  ;;  %v6141_v63 = vmul.f32 %v12604_v12, %v6071_v15  ;;  %v6142_v25 = vmul.f32 %v12604_v12, %v6072_v34  ;;  %v12704_v53 = vmul.f32 %v12604_v12, %v6073_v56  ;;  %v12735_v34 = vld [vmem:[%s14386_s7] ss:$0 sm:$0xff] }
 0x6a4   :  { %v12707_v26 = vmul.f32 %v12604_v12, %v6074_v40  ;;  %v6145_v35 = vmul.f32 %v12604_v12, %v6075_v6  ;;  %v6146_v13 = vmul.f32 %v12604_v12, %v6076_v50  ;;  %v12712_v46 = vmul.f32 %v12604_v12, %v6077_v10 }
 0x6a5   :  { %v12715_v61 = vmul.f32 %v12604_v12, %v6078_v39  ;;  %v6149_v20 = vmul.f32 %v12604_v12, %v6079_v30  ;;  %v6150_v18 = vmul.f32 %v12604_v12, %v6080_v22  ;;  %v12720_v41 = vmul.f32 %v12604_v12, %v6081_v42 }
 0x6a6   :  { %v12723_v29 = vmul.f32 %v12604_v12, %v6082_v27  ;;  %v6153_v57 = vmul.f32 %v12604_v12, %v6083_v62  ;;  %v6154_v38 = vmul.f32 %v12604_v12, %v6084_v58  ;;  %v12728_v14 = vmul.f32 %v12604_v12, %v6085_v16 }
 0x6a7   :  { %v6157_v23 = vmul.f32 %v12604_v12, %v6087_v36  ;;  %v6158_v15 = vmul.f32 %v12604_v12, %v6088_v7  ;;  %v6025_v56 = vmul.f32 %v12599_v55, %v12293_v37  ;;  %v6026_v40 = vmul.f32 %v12599_v55, %v12297_v44 }
 0x6a8   :  { %v6029_v6 = vmul.f32 %v12599_v55, %v12313_v9  ;;  %v6030_v50 = vmul.f32 %v12599_v55, %v12319_v19  ;;  %v6031_v10 = vmul.f32 %v12599_v55, %v12325_v8  ;;  %v6097_v39 = vmul.f32 %v12604_v12, %v12613_v28 }
 0x6a9   :  { %v6098_v30 = vmul.f32 %v12604_v12, %v12617_v4  ;;  %v12752_v37 = vadd.f32 %v12735_v34, %v6129_v48  ;;  %v12755_v44 = vadd.f32 %v12735_v34, %v6130_v54  ;;  %v12758_v9 = vadd.f32 %v12735_v34, %v6133_v47 }
 0x6aa   :  { %v12761_v19 = vadd.f32 %v12735_v34, %v6134_v31  ;;  %v12764_v8 = vadd.f32 %v12735_v34, %v6137_v21  ;;  %v12767_v28 = vadd.f32 %v12735_v34, %v6138_v32  ;;  %v12770_v4 = vadd.f32 %v12735_v34, %v6141_v63 }
 0x6ab   :  { %v12773_v22 = vadd.f32 %v12735_v34, %v6142_v25  ;;  %v12776_v42 = vadd.f32 %v12735_v34, %v6145_v35  ;;  %v12779_v27 = vadd.f32 %v12735_v34, %v6146_v13  ;;  %v12782_v62 = vadd.f32 %v12735_v34, %v6149_v20  ;;  %v15108_v35 = vld [vmem:[#allocation37_spill] sm:$0xff]  ;;  %v15109_v13 = vld [vmem:[#allocation60_spill] sm:$0xff]  ;;  %v15110_v20 = vld [vmem:[#allocation39_spill] sm:$0xff] }
 0x6ac   :  { %v12785_v58 = vadd.f32 %v12735_v34, %v6150_v18  ;;  %v12788_v16 = vadd.f32 %v12735_v34, %v6153_v57  ;;  %v12791_v36 = vadd.f32 %v12735_v34, %v6154_v38  ;;  %v12794_v7 = vadd.f32 %v12735_v34, %v6157_v23  ;;  %v15115_v38 = vld [vmem:[#allocation33_spill] sm:$0xff] }
 0x6ad   :  { %v12797_v48 = vadd.f32 %v12735_v34, %v6158_v15  ;;  %v6032_v54 = vmul.f32 %v12599_v55, %v12331_v17  ;;  %v6033_v47 = vmul.f32 %v12599_v55, %v12337_v59  ;;  %v6034_v31 = vmul.f32 %v12599_v55, %v12343_v33 }
 0x6ae   :  { %v6035_v21 = vmul.f32 %v12599_v55, %v12349_v49  ;;  %v6036_v32 = vmul.f32 %v12599_v55, %v12355_v3  ;;  %v6037_v63 = vmul.f32 %v12599_v55, %v12361_v11  ;;  %v6038_v25 = vmul.f32 %v12599_v55, %v12367_v60  ;;  %v15111_v11 = vld [vmem:[#allocation19_spill] sm:$0xff]  ;;  %v15113_v60 = vld [vmem:[#allocation62_spill] sm:$0xff] }
 0x6af   :  { %v6039_v17 = vmul.f32 %v12599_v55, %v12373_v52  ;;  %v6040_v59 = vmul.f32 %v12599_v55, %v12379_v43  ;;  %v6041_v33 = vmul.f32 %v12599_v55, %v15108_v35  ;;  %v6042_v49 = vmul.f32 %v12599_v55, %v15109_v13 }
 0x6b0   :  { %v12823_v3 = vmul.f32 %v12599_v55, %v15110_v20  ;;  %v12827_v18 = vmul.f32 %v12599_v55, %v15111_v11  ;;  %v12831_v52 = vmul.f32 %v12599_v55, %v15113_v60  ;;  %v6167_v43 = vadd.f32 %v12735_v34, %v6097_v39 }
 0x6b1   :  { %v6168_v57 = vadd.f32 %v12735_v34, %v6098_v30  ;;  %v12837_v23 = vmul.f32 %v12599_v55, %v15115_v38  ;;  %v6095_v15 = vmul.f32 %v12604_v12, %v6025_v56  ;;  %v6096_v35 = vmul.f32 %v12604_v12, %v6026_v40 }
 0x6b2   :  { %15112 = vst [vmem:[#allocation26_spill] sm:$0xff] %v12827_v18  ;;  %15114 = vst [vmem:[#allocation30_spill] sm:$0xff] %v12831_v52  ;;  %v6099_v13 = vmul.f32 %v12604_v12, %v6029_v6  ;;  %v6100_v20 = vmul.f32 %v12604_v12, %v6030_v50  ;;  %v6101_v11 = vmul.f32 %v12604_v12, %v6031_v10  ;;  %v6231_v55 = vmax.f32 %v6167_v43, 0.0 }
 0x6b3   :  { %15116 = vst [vmem:[#allocation64_spill] sm:$0xff] %v12837_v23  ;;  %v6102_v60 = vmul.f32 %v12604_v12, %v6032_v54  ;;  %v6105_v39 = vmul.f32 %v12604_v12, %v6035_v21  ;;  %v6103_v30 = vmul.f32 %v12604_v12, %v6033_v47  ;;  %v6104_v52 = vmul.f32 %v12604_v12, %v6034_v31 }
 0x6b4   :  { %v6106_v38 = vmul.f32 %v12604_v12, %v6036_v32  ;;  %v6107_v56 = vmul.f32 %v12604_v12, %v6037_v63  ;;  %v6108_v40 = vmul.f32 %v12604_v12, %v6038_v25  ;;  %v6109_v6 = vmul.f32 %v12604_v12, %v6039_v17 }
 0x6b5   :  { %v6232_v50 = vmax.f32 %v6168_v57, 0.0  ;;  %v6110_v10 = vmul.f32 %v12604_v12, %v6040_v59  ;;  %v6165_v54 = vadd.f32 %v12735_v34, %v6095_v15  ;;  %v6166_v21 = vadd.f32 %v12735_v34, %v6096_v35 }
 0x6b6   :  { %v6169_v47 = vadd.f32 %v12735_v34, %v6099_v13  ;;  %v6171_v31 = vadd.f32 %v12735_v34, %v6101_v11  ;;  %v6172_v32 = vadd.f32 %v12735_v34, %v6102_v60  ;;  %v6175_v63 = vadd.f32 %v12735_v34, %v6105_v39 }
 0x6b7   :  { %v6170_v25 = vadd.f32 %v12735_v34, %v6100_v20  ;;  %v6176_v17 = vadd.f32 %v12735_v34, %v6106_v38  ;;  %v6229_v43 = vmax.f32 %v6165_v54, 0.0  ;;  %v6230_v57 = vmax.f32 %v6166_v21, 0.0 }
 0x6b8   :  { %v6233_v23 = vmax.f32 %v6169_v47, 0.0  ;;  %v6111_v59 = vmul.f32 %v12604_v12, %v6041_v33  ;;  %v6112_v15 = vmul.f32 %v12604_v12, %v6042_v49  ;;  %v6294_v35 = vpack.c.bf16 %v6232_v50, %v6231_v55 }
 0x6b9   :  { %v6234_v18 = vmax.f32 %v6170_v25, 0.0  ;;  %v12864_v13 = vadd.f32 %v12735_v34, %v6109_v6  ;;  %v6293_v11 = vpack.c.bf16 %v6230_v57, %v6229_v43  ;;  %v6173_v60 = vadd.f32 %v12735_v34, %v6103_v30 }
 0x6ba   :  { %v6174_v39 = vadd.f32 %v12735_v34, %v6104_v52  ;;  %v12869_v20 = vadd.f32 %v12735_v34, %v6110_v10  ;;  %v6235_v38 = vmax.f32 %v6171_v31, 0.0  ;;  %v6236_v54 = vmax.f32 %v6172_v32, 0.0 }
 0x6bb   :  { %v6239_v21 = vmax.f32 %v6175_v63, 0.0  ;;  %v6240_v47 = vmax.f32 %v6176_v17, 0.0  ;;  %v6263_v33 = vmax.f32 %v12752_v37, 0.0  ;;  %v6264_v55 = vmax.f32 %v12755_v44, 0.0  ;;  %8651 = vmatprep.mubr.bf16.mxu0 %v6293_v11 }
 0x6bc   :  { %v6295_v49 = vpack.c.bf16 %v6234_v18, %v6233_v23  ;;  %v6267_v6 = vmax.f32 %v12758_v9, 0.0  ;;  %v6268_v50 = vmax.f32 %v12761_v19, 0.0  ;;  %v6271_v30 = vmax.f32 %v12764_v8, 0.0  ;;  %8652 = vmatmul.mubr.bf16.vlgmr.msra.gmra.mxu0 %v6294_v35 }
 0x6bd   :  { %v6272_v52 = vmax.f32 %v12767_v28, 0.0  ;;  %v6275_v10 = vmax.f32 %v12770_v4, 0.0  ;;  %v6276_v31 = vmax.f32 %v12773_v22, 0.0  ;;  %v6237_v32 = vmax.f32 %v6173_v60, 0.0 }
 0x6be   :  { %8655 = vmatprep.mubr.bf16.mxu0 %v6295_v49  ;;  %v6238_v37 = vmax.f32 %v6174_v39, 0.0  ;;  %v6279_v44 = vmax.f32 %v12776_v42, 0.0  ;;  %v6280_v18 = vmax.f32 %v12779_v27, 0.0  ;;  %v6283_v9 = vmax.f32 %v12782_v62, 0.0 }
 0x6bf   :  { %v6177_v19 = vadd.f32 %v12735_v34, %v6107_v56  ;;  %v6284_v8 = vmax.f32 %v12785_v58, 0.0  ;;  %v6287_v28 = vmax.f32 %v12788_v16, 0.0  ;;  %v6288_v23 = vmax.f32 %v12791_v36, 0.0 }
 0x6c0   :  { %v6291_v4 = vmax.f32 %v12794_v7, 0.0  ;;  %v6292_v22 = vmax.f32 %v12797_v48, 0.0  ;;  %v6296_v63 = vpack.c.bf16 %v6236_v54, %v6235_v38  ;;  %v6178_v25 = vadd.f32 %v12735_v34, %v6108_v40 }
 0x6c1   :  { %v12889_v42 = vpack.c.bf16 %v6264_v55, %v6263_v33  ;;  %v6297_v27 = vpack.c.bf16 %v6238_v37, %v6237_v32  ;;  %v6298_v17 = vpack.c.bf16 %v6240_v47, %v6239_v21  ;;  %v12892_v62 = vadd.f32 %v12735_v34, %v6111_v59 }
 0x6c2   :  { %v6201_v58 = vadd.f32 %v12735_v34, %v12680_v24  ;;  %v6241_v16 = vmax.f32 %v6177_v19, 0.0  ;;  %v6202_v36 = vadd.f32 %v12735_v34, %v12683_v2  ;;  %v12898_v7 = vpack.c.bf16 %v6268_v50, %v6267_v6 }
 0x6c3   :  { %v6205_v48 = vadd.f32 %v12735_v34, %v12688_v5  ;;  %v6182_v56 = vadd.f32 %v12735_v34, %v6112_v15  ;;  %v6206_v43 = vadd.f32 %v12735_v34, %v12691_v1  ;;  %v12905_v57 = vpack.c.bf16 %v6272_v52, %v6271_v30 }
 0x6c4   :  { %v6265_v40 = vmax.f32 %v6201_v58, 0.0  ;;  %8656 = vmatmul.mubr.bf16.gmra.mxu0 %v6296_v63  ;;  %v6242_v59 = vmax.f32 %v6178_v25, 0.0  ;;  %v6266_v24 = vmax.f32 %v6202_v36, 0.0  ;;  %v6209_v2 = vadd.f32 %v12735_v34, %v12696_v51  ;;  %v15121_v58 = vld [vmem:[#allocation27_spill] sm:$0xff]  ;;  %v15122_v36 = vld [vmem:[#allocation45_spill] sm:$0xff] }
 0x6c5   :  { %v6269_v35 = vmax.f32 %v6205_v48, 0.0  ;;  %8659 = vmatprep.mubr.bf16.mxu0 %v6297_v27  ;;  %v6270_v11 = vmax.f32 %v6206_v43, 0.0  ;;  %v6210_v5 = vadd.f32 %v12735_v34, %v12699_v45  ;;  %v12911_v60 = vpack.c.bf16 %v6276_v31, %v6275_v10 }
 0x6c6   :  { %v6213_v15 = vadd.f32 %v12735_v34, %v12704_v53  ;;  %v12915_v1 = vpack.c.bf16 %v6266_v24, %v6265_v40  ;;  %v6273_v39 = vmax.f32 %v6209_v2, 0.0  ;;  %v6214_v38 = vadd.f32 %v12735_v34, %v12707_v26  ;;  %v15123_v40 = vld [vmem:[#allocation34_spill] sm:$0xff]  ;;  %v15124_v24 = vld [vmem:[#allocation43_spill] sm:$0xff] }
 0x6c7   :  { %v12919_v54 = vpack.c.bf16 %v6280_v18, %v6279_v44  ;;  %v12921_v21 = vpack.c.bf16 %v6270_v11, %v6269_v35  ;;  %v6274_v51 = vmax.f32 %v6210_v5, 0.0  ;;  %v6217_v45 = vadd.f32 %v12735_v34, %v12712_v46 }
 0x6c8   :  { %v6277_v47 = vmax.f32 %v6213_v15, 0.0  ;;  %v6278_v33 = vmax.f32 %v6214_v38, 0.0  ;;  %v6218_v55 = vadd.f32 %v12735_v34, %v12715_v61  ;;  %v12927_v53 = vpack.c.bf16 %v6284_v8, %v6283_v9  ;;  %v15117_v8 = vld [vmem:[#allocation26_spill] sm:$0xff] }
 0x6c9   :  { %v6221_v49 = vadd.f32 %v12735_v34, %v12720_v41  ;;  %v12931_v6 = vpack.c.bf16 %v6274_v51, %v6273_v39  ;;  %v6281_v26 = vmax.f32 %v6217_v45, 0.0  ;;  %v6222_v50 = vadd.f32 %v12735_v34, %v12723_v29 }
 0x6ca   :  { %v12935_v30 = vpack.c.bf16 %v6288_v23, %v6287_v28  ;;  %v12937_v52 = vpack.c.bf16 %v6278_v33, %v6277_v47  ;;  %v6282_v46 = vmax.f32 %v6218_v55, 0.0  ;;  %v6225_v61 = vadd.f32 %v12735_v34, %v12728_v14  ;;  %v15118_v28 = vld [vmem:[#allocation30_spill] sm:$0xff]  ;;  %v15125_v33 = vld [vmem:[#allocation23_spill] sm:$0xff] }
 0x6cb   :  { %v6285_v10 = vmax.f32 %v6221_v49, 0.0  ;;  %v6299_v31 = vpack.c.bf16 %v6242_v59, %v6241_v16  ;;  %v6286_v32 = vmax.f32 %v6222_v50, 0.0  ;;  %v6226_v41 = vadd.f32 %v12735_v34, %v12609_v0  ;;  %v15126_v49 = vld [vmem:[#allocation20_spill] sm:$0xff]  ;;  %v15127_v50 = vld [vmem:[#allocation25_spill] sm:$0xff] }
 0x6cc   :  { %v12943_v37 = vpack.c.bf16 %v6292_v22, %v6291_v4  ;;  %8660 = vmatmul.mubr.bf16.gmra.mxu0 %v6298_v17  ;;  %v12945_v44 = vpack.c.bf16 %v6282_v46, %v6281_v26  ;;  %v6289_v29 = vmax.f32 %v6225_v61, 0.0  ;;  %v6113_v18 = vmul.f32 %v12604_v12, %v12823_v3  ;;  %v15119_v22 = vld [vmem:[#allocation64_spill] sm:$0xff] }
 0x6cd   :  { %8663 = vmatprep.mubr.bf16.mxu0 %v6299_v31  ;;  %v12949_v9 = vpack.c.bf16 %v6286_v32, %v6285_v10  ;;  %v6290_v19 = vmax.f32 %v6226_v41, 0.0  ;;  %v6114_v14 = vmul.f32 %v12604_v12, %v15117_v8  ;;  %v6115_v23 = vmul.f32 %v12604_v12, %v15118_v28  ;;  %v15120_v17 = vld [vmem:[#allocation44_spill] sm:$0xff]  ;;  %v15128_v32 = vld [vmem:[#allocation22_spill] sm:$0xff] }
 0x6ce   :  { %v6243_v0 = vmax.f32 %v12864_v13, 0.0  ;;  %v6244_v4 = vmax.f32 %v12869_v20, 0.0  ;;  %v6116_v63 = vmul.f32 %v12604_v12, %v15119_v22  ;;  %v6245_v25 = vmax.f32 %v12892_v62, 0.0 }
 0x6cf   :  { %v6246_v3 = vmax.f32 %v6182_v56, 0.0  ;;  %v12960_v27 = vpack.c.bf16 %v6290_v19, %v6289_v29  ;;  %v6047_v16 = vmul.f32 %v15121_v58, %v15120_v17  ;;  %v6048_v48 = vmul.f32 %v15121_v58, %v15122_v36  ;;  %v15130_v17 = vld [vmem:[#allocation46_spill] sm:$0xff]  ;;  %v15131_v36 = vld [vmem:[#allocation24_spill] sm:$0xff] }
 0x6d0   :  { %v6049_v43 = vmul.f32 %v15121_v58, %v15123_v40  ;;  %v6183_v13 = vadd.f32 %v12735_v34, %v6113_v18  ;;  %v6184_v20 = vadd.f32 %v12735_v34, %v6114_v14  ;;  %v6300_v59 = vpack.c.bf16 %v6244_v4, %v6243_v0 }
 0x6d1   :  { %v6050_v62 = vmul.f32 %v15121_v58, %v15124_v24  ;;  %v6301_v56 = vpack.c.bf16 %v6246_v3, %v6245_v25  ;;  %v6185_v35 = vadd.f32 %v12735_v34, %v6115_v23  ;;  %v6186_v2 = vadd.f32 %v12735_v34, %v6116_v63  ;;  %v15129_v25 = vld [vmem:[#allocation28_spill] sm:$0xff] }
 0x6d2   :  { %v6117_v11 = vmul.f32 %v12604_v12, %v6047_v16  ;;  %v6118_v5 = vmul.f32 %v12604_v12, %v6048_v48  ;;  %v6247_v15 = vmax.f32 %v6183_v13, 0.0  ;;  %v6248_v39 = vmax.f32 %v6184_v20, 0.0  ;;  %v15132_v20 = vld [vmem:[#allocation47_spill] sm:$0xff] }
 0x6d3   :  { %v6119_v38 = vmul.f32 %v12604_v12, %v6049_v43  ;;  %v6120_v51 = vmul.f32 %v12604_v12, %v6050_v62  ;;  %v6249_v47 = vmax.f32 %v6185_v35, 0.0  ;;  %v6250_v45 = vmax.f32 %v6186_v2, 0.0 }
 0x6d4   :  { %8664 = vmatmul.mubr.bf16.gmra.mxu0 %v6300_v59  ;;  %v6051_v55 = vmul.f32 %v15121_v58, %v15125_v33  ;;  %v6052_v26 = vmul.f32 %v15121_v58, %v15126_v49  ;;  %v6053_v46 = vmul.f32 %v15121_v58, %v15127_v50  ;;  %v6187_v10 = vadd.f32 %v12735_v34, %v6117_v11 }
 0x6d5   :  { %8667 = vmatprep.mubr.bf16.mxu0 %v6301_v56  ;;  %v6188_v61 = vadd.f32 %v12735_v34, %v6118_v5  ;;  %v6302_v31 = vpack.c.bf16 %v6248_v39, %v6247_v15  ;;  %v6054_v41 = vmul.f32 %v15121_v58, %v15128_v32  ;;  %v6303_v29 = vpack.c.bf16 %v6250_v45, %v6249_v47 }
 0x6d6   :  { %v6189_v18 = vadd.f32 %v12735_v34, %v6119_v38  ;;  %v6190_v19 = vadd.f32 %v12735_v34, %v6120_v51  ;;  %v6121_v8 = vmul.f32 %v12604_v12, %v6051_v55  ;;  %v6122_v14 = vmul.f32 %v12604_v12, %v6052_v26 }
 0x6d7   :  { %v6251_v28 = vmax.f32 %v6187_v10, 0.0  ;;  %v6252_v23 = vmax.f32 %v6188_v61, 0.0  ;;  %v6123_v0 = vmul.f32 %v12604_v12, %v6053_v46  ;;  %v6124_v4 = vmul.f32 %v12604_v12, %v6054_v41 }
 0x6d8   :  { %v6253_v22 = vmax.f32 %v6189_v18, 0.0  ;;  %v6254_v63 = vmax.f32 %v6190_v19, 0.0  ;;  %v6055_v3 = vmul.f32 %v15121_v58, %v15129_v25  ;;  %v6056_v16 = vmul.f32 %v15121_v58, %v15130_v17 }
 0x6d9   :  { %v6057_v48 = vmul.f32 %v15121_v58, %v15131_v36  ;;  %v6191_v40 = vadd.f32 %v12735_v34, %v6121_v8  ;;  %v6192_v43 = vadd.f32 %v12735_v34, %v6122_v14  ;;  %v6304_v13 = vpack.c.bf16 %v6252_v23, %v6251_v28 }
 0x6da   :  { %v6058_v59 = vmul.f32 %v15121_v58, %v15132_v20  ;;  %v6305_v24 = vpack.c.bf16 %v6254_v63, %v6253_v22  ;;  %v6193_v62 = vadd.f32 %v12735_v34, %v6123_v0  ;;  %v6194_v56 = vadd.f32 %v12735_v34, %v6124_v4 }
 0x6db   :  { %v6125_v35 = vmul.f32 %v12604_v12, %v6055_v3  ;;  %v6126_v2 = vmul.f32 %v12604_v12, %v6056_v16  ;;  %v6255_v11 = vmax.f32 %v6191_v40, 0.0  ;;  %v6256_v5 = vmax.f32 %v6192_v43, 0.0 }
 0x6dc   :  { %8668 = vmatmul.mubr.bf16.gmra.mxu0 %v6302_v31  ;;  %v6127_v15 = vmul.f32 %v12604_v12, %v6057_v48  ;;  %v6128_v39 = vmul.f32 %v12604_v12, %v6058_v59  ;;  %v6257_v38 = vmax.f32 %v6193_v62, 0.0  ;;  %v6258_v51 = vmax.f32 %v6194_v56, 0.0 }
 0x6dd   :  { %8671 = vmatprep.mubr.bf16.mxu0 %v6303_v29  ;;  %v6195_v58 = vadd.f32 %v12735_v34, %v6125_v35  ;;  %v6196_v47 = vadd.f32 %v12735_v34, %v6126_v2  ;;  %v6306_v45 = vpack.c.bf16 %v6256_v5, %v6255_v11 }
 0x6de   :  { %v6307_v33 = vpack.c.bf16 %v6258_v51, %v6257_v38  ;;  %v6197_v55 = vadd.f32 %v12735_v34, %v6127_v15  ;;  %v6198_v49 = vadd.f32 %v12735_v34, %v6128_v39 }
 0x6df   :  { %v6259_v26 = vmax.f32 %v6195_v58, 0.0  ;;  %v6260_v50 = vmax.f32 %v6196_v47, 0.0 }
 0x6e0   :  { %v6261_v46 = vmax.f32 %v6197_v55, 0.0  ;;  %v6262_v10 = vmax.f32 %v6198_v49, 0.0 }
 0x6e1   :  { %v6308_v61 = vpack.c.bf16 %v6260_v50, %v6259_v26 }
 0x6e2   :  { %v6309_v12 = vpack.c.bf16 %v6262_v10, %v6261_v46 }
 0x6e4   :  { %8672 = vmatmul.mubr.bf16.gmra.mxu0 %v6304_v13 }
 0x6e5   :  { %8675 = vmatprep.mubr.bf16.mxu0 %v6305_v24 }
 0x6ec   :  { %8676 = vmatmul.mubr.bf16.gmra.mxu0 %v6306_v45 }
 0x6ed   :  { %8679 = vmatprep.mubr.bf16.mxu0 %v6307_v33 }
 0x6f4   :  { %8680 = vmatmul.mubr.bf16.gmra.mxu0 %v6308_v61 }
 0x6f5   :  { %8683 = vmatprep.mubr.bf16.mxu0 %v6309_v12 }
 0x6fc   :  { %8684 = vmatmul.mubr.bf16.gmra.mxu0 %v12889_v42 }
 0x6fd   :  { %8687 = vmatprep.mubr.bf16.mxu0 %v12915_v1 }
 0x704   :  { %8688 = vmatmul.mubr.bf16.gmra.mxu0 %v12898_v7 }
 0x705   :  { %8691 = vmatprep.mubr.bf16.mxu0 %v12921_v21 }
 0x70c   :  { %8692 = vmatmul.mubr.bf16.gmra.mxu0 %v12905_v57 }
 0x70d   :  { %8695 = vmatprep.mubr.bf16.mxu0 %v12931_v6 }
 0x714   :  { %8696 = vmatmul.mubr.bf16.gmra.mxu0 %v12911_v60 }
 0x715   :  { %8699 = vmatprep.mubr.bf16.mxu0 %v12937_v52 }
 0x71c   :  { %8700 = vmatmul.mubr.bf16.gmra.mxu0 %v12919_v54 }
 0x71d   :  { %8703 = vmatprep.mubr.bf16.mxu0 %v12945_v44 }
 0x724   :  { %8704 = vmatmul.mubr.bf16.gmra.mxu0 %v12927_v53 }
 0x725   :  { %8707 = vmatprep.mubr.bf16.mxu0 %v12949_v9 }
 0x72c   :  { %8708 = vmatmul.mubr.bf16.gmra.mxu0 %v12935_v30 }
 0x72d   :  { %8711 = vmatprep.mubr.bf16.mxu0 %v12960_v27 }
 0x734   :  { %8712 = vmatmul.mubr.bf16.gmra.mxu0 %v12943_v37 }
 0x77c   :  { %v13029_v34 = vpop.f32.mrf.mxu0 }
 0x77e   :  { %v13031_v42 = vpop.f32.mrf.mxu0 }
 0x780   :  { %v13033_v7 = vpop.f32.mrf.mxu0 }
 0x782   :  { %v13035_v57 = vpop.f32.mrf.mxu0 }
 0x783   :  { %v6680_v60 = vadd.f32 %v13035_v57, %v13031_v42 }
 0x784   :  { %v13039_v1 = vpop.f32.mrf.mxu0 }
 0x785   :  { %v6681_v54 = vadd.f32 %v13029_v34, %v6680_v60 }
 0x786   :  { %v13042_v21 = vpop.f32.mrf.mxu0 }
 0x787   :  { %v6682_v53 = vadd.f32 %v13033_v7, %v6681_v54 }
 0x788   :  { %v13045_v6 = vpop.f32.mrf.mxu0 }
 0x789   :  { %v6683_v30 = vadd.f32 %v6682_v53, %v13042_v21 }
 0x78a   :  { %v13048_v52 = vpop.f32.mrf.mxu0 }
 0x78b   :  { %v6684_v37 = vadd.f32 %v6683_v30, %v13048_v52 }
 0x78c   :  { %v13051_v44 = vpop.f32.mrf.mxu0 }
 0x78d   :  { %v6685_v9 = vadd.f32 %v13039_v1, %v6684_v37 }
 0x78e   :  { %v13054_v27 = vpop.f32.mrf.mxu0 }
 0x78f   :  { %v6686_v31 = vadd.f32 %v13045_v6, %v6685_v9 }
 0x790   :  { %v13057_v32 = vpop.f32.mrf.mxu0 }
 0x791   :  { %v6687_v41 = vadd.f32 %v6686_v31, %v13054_v27 }
 0x792   :  { %v13060_v29 = vpop.f32.mrf.mxu0 }
 0x793   :  { %v6688_v18 = vadd.f32 %v6687_v41, %v13060_v29 }
 0x794   :  { %v13063_v19 = vpop.f32.mrf.mxu0 }
 0x795   :  { %v6689_v8 = vadd.f32 %v13051_v44, %v6688_v18 }
 0x796   :  { %v13066_v14 = vpop.f32.mrf.mxu0 }
 0x797   :  { %v6690_v28 = vadd.f32 %v13057_v32, %v6689_v8 }
 0x798   :  { %v13069_v23 = vpop.f32.mrf.mxu0 }
 0x799   :  { %v6691_v0 = vadd.f32 %v6690_v28, %v13066_v14 }
 0x79a   :  { %v13072_v4 = vpop.f32.mrf.mxu0 }
 0x79b   :  { %v6692_v22 = vadd.f32 %v6691_v0, %v13072_v4 }
 0x79c   :  { %v13075_v63 = vpop.f32.mrf.mxu0 }
 0x79d   :  { %v6693_v25 = vadd.f32 %v13063_v19, %v6692_v22 }
 0x79e   :  { %v13078_v3 = vpop.f32.mrf.mxu0 }
 0x79f   :  { %v6694_v17 = vadd.f32 %v13069_v23, %v6693_v25 }
 0x7a0   :  { %v13081_v16 = vpop.f32.mrf.mxu0 }
 0x7a1   :  { %v6695_v36 = vadd.f32 %v6694_v17, %v13078_v3 }
 0x7a2   :  { %v13084_v48 = vpop.f32.mrf.mxu0 }
 0x7a3   :  { %v6696_v40 = vadd.f32 %v6695_v36, %v13084_v48 }
 0x7a4   :  { %v13087_v43 = vpop.f32.mrf.mxu0 }
 0x7a5   :  { %v6697_v13 = vadd.f32 %v13075_v63, %v6696_v40 }
 0x7a6   :  { %v13090_v20 = vpop.f32.mrf.mxu0 }
 0x7a7   :  { %v6698_v59 = vadd.f32 %v13081_v16, %v6697_v13 }
 0x7a8   :  { %v13093_v24 = vpop.f32.mrf.mxu0 }
 0x7a9   :  { %v6699_v62 = vadd.f32 %v6698_v59, %v13090_v20 }
 0x7aa   :  { %v13096_v56 = vpop.f32.mrf.mxu0 }
 0x7ab   :  { %v6700_v35 = vadd.f32 %v6699_v62, %v13096_v56 }
 0x7ac   :  { %v13099_v2 = vpop.f32.mrf.mxu0 }
 0x7ad   :  { %v6701_v11 = vadd.f32 %v13087_v43, %v6700_v35 }
 0x7ae   :  { %v13102_v5 = vpop.f32.mrf.mxu0 }
 0x7af   :  { %v6702_v15 = vadd.f32 %v13093_v24, %v6701_v11 }
 0x7b0   :  { %v13105_v39 = vpop.f32.mrf.mxu0 }
 0x7b1   :  { %v6703_v38 = vadd.f32 %v6702_v15, %v13102_v5 }
 0x7b2   :  { %v13108_v51 = vpop.f32.mrf.mxu0 }
 0x7b3   :  { %v6704_v58 = vadd.f32 %v6703_v38, %v13108_v51 }
 0x7b4   :  { %v13111_v47 = vpop.f32.mrf.mxu0 }
 0x7b5   :  { %15133 = vst [vmem:[#allocation29_spill] sm:$0xff] %v13111_v47  ;;  %v6705_v45 = vadd.f32 %v13099_v2, %v6704_v58 }
 0x7b6   :  { %v13114_v33 = vpop.f32.mrf.mxu0 }
 0x7b7   :  { %v6706_v55 = vadd.f32 %v13105_v39, %v6705_v45 }
 0x7b8   :  { %v13117_v49 = vpop.f32.mrf.mxu0 }
 0x7b9   :  { %15134 = vst [vmem:[#allocation63_spill] sm:$0xff] %v13117_v49  ;;  %v6707_v26 = vadd.f32 %v6706_v55, %v13114_v33 }
 0x7ba   :  { %v13120_v50 = vpop.f32.mrf.mxu0 }
 0x7bb   :  { %v6708_v46 = vadd.f32 %v6707_v26, %v13120_v50 }
 0x7bc   :  { %v13123_v10 = vpop.f32.mrf.mxu0 }
 0x7bd   :  { %15135 = vst [vmem:[#allocation31_spill] sm:$0xff] %v13123_v10  ;;  %v6709_v61 = vadd.f32 %v13111_v47, %v6708_v46 }
 0x7be   :  { %v13126_v12 = vpop.f32.mrf.mxu0 }
 0x7bf   :  { %15136 = vst [vmem:[#allocation17_spill] sm:$0xff] %v13126_v12  ;;  %v6710_v60 = vadd.f32 %v13117_v49, %v6709_v61 }
 0x7c0   :  { %v13129_v54 = vpop.f32.mrf.mxu0 }
 0x7c1   :  { %15137 = vst [vmem:[#allocation48_spill] sm:$0xff] %v13129_v54  ;;  %v6711_v53 = vadd.f32 %v6710_v60, %v13126_v12 }
 0x7c2   :  { %v13132_v30 = vpop.f32.mrf.mxu0 }
 0x7c3   :  { %15138 = vst [vmem:[#allocation32_spill] sm:$0xff] %v13132_v30  ;;  %v6712_v37 = vadd.f32 %v6711_v53, %v13132_v30 }
 0x7c4   :  { %v13135_v9 = vpop.f32.mrf.mxu0 }
 0x7c5   :  { %15139 = vst [vmem:[#allocation49_spill] sm:$0xff] %v13135_v9  ;;  %v6713_v31 = vadd.f32 %v13123_v10, %v6712_v37 }
 0x7c6   :  { %v13138_v41 = vpop.f32.mrf.mxu0 }
 0x7c7   :  { %15140 = vst [vmem:[#allocation50_spill] sm:$0xff] %v13138_v41  ;;  %v6714_v18 = vadd.f32 %v13129_v54, %v6713_v31 }
 0x7c8   :  { %v13141_v8 = vpop.f32.mrf.mxu0 }
 0x7c9   :  { %15141 = vst [vmem:[#allocation51_spill] sm:$0xff] %v13141_v8  ;;  %v6715_v28 = vadd.f32 %v6714_v18, %v13138_v41 }
 0x7ca   :  { %v13144_v0 = vpop.f32.mrf.mxu0 }
 0x7cb   :  { %15142 = vst [vmem:[#allocation52_spill] sm:$0xff] %v13144_v0  ;;  %v6716_v22 = vadd.f32 %v6715_v28, %v13144_v0 }
 0x7cc   :  { %v13147_v25 = vpop.f32.mrf.mxu0 }
 0x7cd   :  { %15143 = vst [vmem:[#allocation53_spill] sm:$0xff] %v13147_v25  ;;  %v6717_v17 = vadd.f32 %v13135_v9, %v6716_v22 }
 0x7ce   :  { %v13150_v36 = vpop.f32.mrf.mxu0 }
 0x7cf   :  { %15144 = vst [vmem:[#allocation54_spill] sm:$0xff] %v13150_v36  ;;  %v6718_v40 = vadd.f32 %v13141_v8, %v6717_v17 }
 0x7d0   :  { %v13153_v13 = vpop.f32.mrf.mxu0 }
 0x7d1   :  { %15145 = vst [vmem:[#allocation56_spill] sm:$0xff] %v13153_v13  ;;  %v6719_v59 = vadd.f32 %v6718_v40, %v13150_v36 }
 0x7d2   :  { %v13156_v62 = vpop.f32.mrf.mxu0 }
 0x7d3   :  { %15146 = vst [vmem:[#allocation55_spill] sm:$0xff] %v13156_v62  ;;  %v6720_v35 = vadd.f32 %v6719_v59, %v13156_v62 }
 0x7d4   :  { %v13159_v11 = vpop.f32.mrf.mxu0 }
 0x7d5   :  { %15147 = vst [vmem:[#allocation18_spill] sm:$0xff] %v13159_v11  ;;  %v6721_v15 = vadd.f32 %v13147_v25, %v6720_v35 }
 0x7d6   :  { %v13162_v38 = vpop.f32.mrf.mxu0 }
 0x7d7   :  { %15148 = vst [vmem:[#allocation16_spill] sm:$0xff] %v13162_v38  ;;  %v6722_v58 = vadd.f32 %v13153_v13, %v6721_v15 }
 0x7d8   :  { %v8698_v45 = vpop.f32.mrf.mxu0 }
 0x7d9   :  { %v6723_v55 = vadd.f32 %v6722_v58, %v13162_v38 }
 0x7da   :  { %v6602_v26 = vpop.f32.mrf.mxu0 }
 0x7db   :  { %v6724_v46 = vadd.f32 %v6723_v55, %v6602_v26 }
 0x7dc   :  { %v8701_v61 = vpop.f32.mrf.mxu0 }
 0x7dd   :  { %v6725_v60 = vadd.f32 %v13159_v11, %v6724_v46 }
 0x7de   :  { %v6615_v53 = vpop.f32.mrf.mxu0 }
 0x7df   :  { %v6726_v37 = vadd.f32 %v8698_v45, %v6725_v60 }
 0x7e0   :  { %v8702_v31 = vpop.f32.mrf.mxu0 }
 0x7e1   :  { %v6727_v18 = vadd.f32 %v6726_v37, %v6615_v53 }
 0x7e2   :  { %v6618_v28 = vpop.f32.mrf.mxu0 }
 0x7e3   :  { %v6728_v22 = vadd.f32 %v6727_v18, %v6618_v28 }
 0x7e4   :  { %v8705_v17 = vpop.f32.mrf.mxu0 }
 0x7e5   :  { %v6729_v40 = vadd.f32 %v8701_v61, %v6728_v22 }
 0x7e6   :  { %v6631_v59 = vpop.f32.mrf.mxu0 }
 0x7e7   :  { %v6730_v35 = vadd.f32 %v8702_v31, %v6729_v40 }
 0x7e8   :  { %v8706_v25 = vpop.f32.mrf.mxu0 }
 0x7e9   :  { %v6731_v15 = vadd.f32 %v6730_v35, %v6631_v59 }
 0x7ea   :  { %v6634_v13 = vpop.f32.mrf.mxu0 }
 0x7eb   :  { %v6732_v62 = vadd.f32 %v6731_v15, %v6634_v13 }
 0x7ec   :  { %v8709_v58 = vpop.f32.mrf.mxu0 }
 0x7ed   :  { %v6733_v38 = vadd.f32 %v8705_v17, %v6732_v62 }
 0x7ee   :  { %v6647_v55 = vpop.f32.mrf.mxu0 }
 0x7ef   :  { %v6734_v36 = vadd.f32 %v8706_v25, %v6733_v38 }
 0x7f0   :  { %v8710_v8 = vpop.f32.mrf.mxu0 }
 0x7f1   :  { %v6735_v46 = vadd.f32 %v6734_v36, %v6647_v55 }
 0x7f2   :  { %v6650_v11 = vpop.f32.mrf.mxu0 }
 0x7f3   :  { %v6736_v60 = vadd.f32 %v6735_v46, %v6650_v11 }
 0x7f4   :  { %v8713_v9 = vpop.f32.mrf.mxu0 }
 0x7f5   :  { %v6737_v37 = vadd.f32 %v8709_v58, %v6736_v60 }
 0x7f6   :  { %v6663_v0 = vpop.f32.mrf.mxu0 }
 0x7f7   :  { %v6738_v18 = vadd.f32 %v8710_v8, %v6737_v37 }
 0x7f8   :  { %v8714_v41 = vpop.f32.mrf.mxu0 }
 0x7f9   :  { %v6739_v22 = vadd.f32 %v6738_v18, %v6663_v0 }
 0x7fa   :  { %v6666_v54 = vpop.f32.mrf.mxu0 }
 0x7fb   :  { %v6740_v40 = vadd.f32 %v6739_v22, %v6666_v54 }
 0x7fd   :  { %v6741_v10 = vadd.f32 %v8713_v9, %v6740_v40 }
 0x7ff   :  { %v6742_v35 = vadd.f32 %v8714_v41, %v6741_v10 }
 0x801   :  { %v6743_v30 = vrot.slane %v6742_v35, 4 }
 0x803   :  { %v6744_v15 = vadd.f32 %v6743_v30, %v6742_v35 }
 0x805   :  { %v6745_v12 = vrot.slane %v6744_v15, 2 }
 0x807   :  { %v6746_v62 = vadd.f32 %v6745_v12, %v6744_v15 }
 0x809   :  { %v6747_v49 = vrot.slane %v6746_v62, 1 }
 0x80b   :  { %v6748_v38 = vadd.f32 %v6747_v49, %v6746_v62 }
 0x80d   :  { %v13167_v47 = vmul.f32 0.001953125, %v6748_v38 }
 0x80f   :  { %v13170_v36 = vsub.f32 %v6602_v26, %v13167_v47  ;;  %v13173_v46 = vsub.f32 %v8698_v45, %v13167_v47  ;;  %v13176_v60 = vsub.f32 %v6615_v53, %v13167_v47  ;;  %v13179_v37 = vsub.f32 %v6618_v28, %v13167_v47 }
 0x810   :  { %v13182_v10 = vsub.f32 %v8701_v61, %v13167_v47  ;;  %v13185_v12 = vsub.f32 %v8702_v31, %v13167_v47  ;;  %v13188_v49 = vsub.f32 %v6631_v59, %v13167_v47  ;;  %v13191_v30 = vsub.f32 %v6634_v13, %v13167_v47 }
 0x811   :  { %v13194_v45 = vsub.f32 %v8705_v17, %v13167_v47  ;;  %v13197_v26 = vsub.f32 %v8706_v25, %v13167_v47  ;;  %v13200_v53 = vsub.f32 %v6647_v55, %v13167_v47  ;;  %v13203_v61 = vsub.f32 %v6650_v11, %v13167_v47 }
 0x812   :  { %v13206_v31 = vsub.f32 %v8709_v58, %v13167_v47  ;;  %v13209_v28 = vsub.f32 %v8710_v8, %v13167_v47  ;;  %v13212_v13 = vsub.f32 %v6663_v0, %v13167_v47  ;;  %v13215_v17 = vsub.f32 %v6666_v54, %v13167_v47 }
 0x813   :  { %15149 = vst [vmem:[#allocation21_spill] sm:$0xff] %v13200_v53  ;;  %15150 = vst [vmem:[#allocation35_spill] sm:$0xff] %v13203_v61  ;;  %v13218_v25 = vsub.f32 %v8713_v9, %v13167_v47  ;;  %v13221_v59 = vsub.f32 %v8714_v41, %v13167_v47  ;;  %v13225_v11 = vsub.f32 %v13031_v42, %v13167_v47 }
 0x814   :  { %15151 = vst [vmem:[#allocation58_spill] sm:$0xff] %v13206_v31  ;;  %15152 = vst [vmem:[#allocation57_spill] sm:$0xff] %v13209_v28  ;;  %v13229_v8 = vsub.f32 %v13035_v57, %v13167_v47  ;;  %v13233_v0 = vsub.f32 %v13029_v34, %v13167_v47  ;;  %v13241_v41 = vsub.f32 %v13033_v7, %v13167_v47 }
 0x815   :  { %15153 = vst [vmem:[#allocation40_spill] sm:$0xff] %v13212_v13  ;;  %v6814_v54 = vmul.f32 %v13225_v11, %v13225_v11  ;;  %v13245_v42 = vsub.f32 %v13042_v21, %v13167_v47  ;;  %v13251_v34 = vsub.f32 %v13048_v52, %v13167_v47  ;;  %v13257_v7 = vsub.f32 %v13039_v1, %v13167_v47 }
 0x816   :  { %v6815_v9 = vmul.f32 %v13229_v8, %v13229_v8  ;;  %v6816_v57 = vmul.f32 %v13233_v0, %v13233_v0  ;;  %v6817_v55 = vmul.f32 %v13241_v41, %v13241_v41  ;;  %v13263_v40 = vsub.f32 %v13045_v6, %v13167_v47 }
 0x817   :  { %v6818_v21 = vmul.f32 %v13245_v42, %v13245_v42  ;;  %v6819_v52 = vmul.f32 %v13251_v34, %v13251_v34  ;;  %v13269_v15 = vsub.f32 %v13054_v27, %v13167_v47  ;;  %v6820_v1 = vmul.f32 %v13257_v7, %v13257_v7 }
 0x818   :  { %v6878_v58 = vadd.f32 %v6815_v9, %v6814_v54  ;;  %v13275_v38 = vsub.f32 %v13060_v29, %v13167_v47  ;;  %v6821_v6 = vmul.f32 %v13263_v40, %v13263_v40  ;;  %v13281_v9 = vsub.f32 %v13051_v44, %v13167_v47 }
 0x819   :  { %v6822_v27 = vmul.f32 %v13269_v15, %v13269_v15 }
 0x81a   :  { %v6879_v18 = vadd.f32 %v6878_v58, %v6816_v57  ;;  %v13287_v58 = vsub.f32 %v13057_v32, %v13167_v47  ;;  %v6823_v29 = vmul.f32 %v13275_v38, %v13275_v38  ;;  %v6824_v44 = vmul.f32 %v13281_v9, %v13281_v9 }
 0x81c   :  { %v6880_v22 = vadd.f32 %v6879_v18, %v6817_v55  ;;  %v13293_v18 = vsub.f32 %v13066_v14, %v13167_v47  ;;  %v6825_v32 = vmul.f32 %v13287_v58, %v13287_v58 }
 0x81e   :  { %v6881_v35 = vadd.f32 %v6880_v22, %v6818_v21  ;;  %v13299_v22 = vsub.f32 %v13072_v4, %v13167_v47  ;;  %v6826_v14 = vmul.f32 %v13293_v18, %v13293_v18 }
 0x820   :  { %v6882_v62 = vadd.f32 %v6881_v35, %v6819_v52  ;;  %v13305_v35 = vsub.f32 %v13063_v19, %v13167_v47  ;;  %v6827_v4 = vmul.f32 %v13299_v22, %v13299_v22 }
 0x822   :  { %v6883_v54 = vadd.f32 %v6882_v62, %v6820_v1  ;;  %v13311_v62 = vsub.f32 %v13069_v23, %v13167_v47  ;;  %v6828_v19 = vmul.f32 %v13305_v35, %v13305_v35 }
 0x824   :  { %v6884_v57 = vadd.f32 %v6883_v54, %v6821_v6  ;;  %v13317_v54 = vsub.f32 %v13078_v3, %v13167_v47  ;;  %v6829_v23 = vmul.f32 %v13311_v62, %v13311_v62 }
 0x826   :  { %v6885_v55 = vadd.f32 %v6884_v57, %v6822_v27  ;;  %v13323_v57 = vsub.f32 %v13084_v48, %v13167_v47  ;;  %v6830_v3 = vmul.f32 %v13317_v54, %v13317_v54 }
 0x828   :  { %v6886_v21 = vadd.f32 %v6885_v55, %v6823_v29  ;;  %v13329_v55 = vsub.f32 %v13075_v63, %v13167_v47  ;;  %v6831_v48 = vmul.f32 %v13323_v57, %v13323_v57 }
 0x82a   :  { %v6887_v52 = vadd.f32 %v6886_v21, %v6824_v44  ;;  %v13335_v21 = vsub.f32 %v13081_v16, %v13167_v47  ;;  %v6832_v63 = vmul.f32 %v13329_v55, %v13329_v55 }
 0x82c   :  { %v6888_v1 = vadd.f32 %v6887_v52, %v6825_v32  ;;  %v13341_v52 = vsub.f32 %v13090_v20, %v13167_v47  ;;  %v6833_v16 = vmul.f32 %v13335_v21, %v13335_v21 }
 0x82e   :  { %v6889_v6 = vadd.f32 %v6888_v1, %v6826_v14  ;;  %v13347_v1 = vsub.f32 %v13096_v56, %v13167_v47  ;;  %v6834_v20 = vmul.f32 %v13341_v52, %v13341_v52 }
 0x830   :  { %v6890_v27 = vadd.f32 %v6889_v6, %v6827_v4  ;;  %v13353_v6 = vsub.f32 %v13087_v43, %v13167_v47  ;;  %v6835_v56 = vmul.f32 %v13347_v1, %v13347_v1 }
 0x832   :  { %v6891_v29 = vadd.f32 %v6890_v27, %v6828_v19  ;;  %v13359_v27 = vsub.f32 %v13093_v24, %v13167_v47  ;;  %v6836_v43 = vmul.f32 %v13353_v6, %v13353_v6 }
 0x834   :  { %v6892_v44 = vadd.f32 %v6891_v29, %v6829_v23  ;;  %v13365_v29 = vsub.f32 %v13102_v5, %v13167_v47  ;;  %v6837_v24 = vmul.f32 %v13359_v27, %v13359_v27 }
 0x836   :  { %v6893_v32 = vadd.f32 %v6892_v44, %v6830_v3  ;;  %v13371_v44 = vsub.f32 %v13108_v51, %v13167_v47  ;;  %v6838_v5 = vmul.f32 %v13365_v29, %v13365_v29 }
 0x838   :  { %v6894_v14 = vadd.f32 %v6893_v32, %v6831_v48  ;;  %v13377_v32 = vsub.f32 %v13099_v2, %v13167_v47  ;;  %v6839_v51 = vmul.f32 %v13371_v44, %v13371_v44 }
 0x83a   :  { %v6895_v4 = vadd.f32 %v6894_v14, %v6832_v63  ;;  %v13383_v14 = vsub.f32 %v13105_v39, %v13167_v47  ;;  %v6840_v2 = vmul.f32 %v13377_v32, %v13377_v32 }
 0x83c   :  { %v6896_v19 = vadd.f32 %v6895_v4, %v6833_v16  ;;  %v13389_v4 = vsub.f32 %v13114_v33, %v13167_v47  ;;  %v6841_v39 = vmul.f32 %v13383_v14, %v13383_v14 }
 0x83e   :  { %v6897_v23 = vadd.f32 %v6896_v19, %v6834_v20  ;;  %v13395_v19 = vsub.f32 %v13120_v50, %v13167_v47  ;;  %v6842_v33 = vmul.f32 %v13389_v4, %v13389_v4 }
 0x840   :  { %v6898_v3 = vadd.f32 %v6897_v23, %v6835_v56  ;;  %15154 = vst [vmem:[#allocation36_spill] sm:$0xff] %v13395_v19  ;;  %v15155_v23 = vld [vmem:[#allocation29_spill] sm:$0xff]  ;;  %v6843_v50 = vmul.f32 %v13395_v19, %v13395_v19 }
 0x842   :  { %v6899_v48 = vadd.f32 %v6898_v3, %v6836_v43  ;;  %v13401_v43 = vsub.f32 %v15155_v23, %v13167_v47 }
 0x844   :  { %v6900_v63 = vadd.f32 %v6899_v48, %v6837_v24  ;;  %15156 = vst [vmem:[#allocation59_spill] sm:$0xff] %v13401_v43  ;;  %v15157_v24 = vld [vmem:[#allocation63_spill] sm:$0xff] }
 0x845   :  { %v13407_v48 = vsub.f32 %v15157_v24, %v13167_v47  ;;  %v15163_v24 = vld [vmem:[#allocation31_spill] sm:$0xff] }
 0x846   :  { %v6901_v16 = vadd.f32 %v6900_v63, %v6838_v5  ;;  %v15159_v63 = vld [vmem:[#allocation17_spill] sm:$0xff]  ;;  %v13425_v19 = vsub.f32 %v15163_v24, %v13167_v47  ;;  %v15169_v24 = vld [vmem:[#allocation52_spill] sm:$0xff] }
 0x847   :  { %15158 = vst [vmem:[#allocation41_spill] sm:$0xff] %v13407_v48 }
 0x848   :  { %v6902_v20 = vadd.f32 %v6901_v16, %v6839_v51  ;;  %v13413_v51 = vsub.f32 %v15159_v63, %v13167_v47  ;;  %v6844_v16 = vmul.f32 %v13401_v43, %v13401_v43  ;;  %15164 = vst [vmem:[#allocation61_spill] sm:$0xff] %v13425_v19  ;;  %v15165_v63 = vld [vmem:[#allocation48_spill] sm:$0xff] }
 0x849   :  { %v13431_v43 = vsub.f32 %v15165_v63, %v13167_v47  ;;  %v15171_v63 = vld [vmem:[#allocation49_spill] sm:$0xff] }
 0x84a   :  { %v6903_v56 = vadd.f32 %v6902_v20, %v6840_v2  ;;  %15160 = vst [vmem:[#allocation42_spill] sm:$0xff] %v13413_v51  ;;  %v15161_v20 = vld [vmem:[#allocation32_spill] sm:$0xff] }
 0x84b   :  { %v13419_v23 = vsub.f32 %v15161_v20, %v13167_v47  ;;  %15166 = vst [vmem:[#allocation37_spill] sm:$0xff] %v13431_v43  ;;  %v15167_v20 = vld [vmem:[#allocation50_spill] sm:$0xff] }
 0x84c   :  { %v6904_v3 = vadd.f32 %v6903_v56, %v6841_v39  ;;  %v6845_v39 = vmul.f32 %v13407_v48, %v13407_v48  ;;  %v13437_v48 = vsub.f32 %v15167_v20, %v13167_v47  ;;  %v15173_v20 = vld [vmem:[#allocation51_spill] sm:$0xff] }
 0x84d   :  { %15162 = vst [vmem:[#allocation38_spill] sm:$0xff] %v13419_v23 }
 0x84e   :  { %v6905_v5 = vadd.f32 %v6904_v3, %v6842_v33  ;;  %v6846_v33 = vmul.f32 %v13413_v51, %v13413_v51  ;;  %15168 = vst [vmem:[#allocation60_spill] sm:$0xff] %v13437_v48  ;;  %v13443_v51 = vsub.f32 %v15169_v24, %v13167_v47  ;;  %v15175_v24 = vld [vmem:[#allocation54_spill] sm:$0xff] }
 0x850   :  { %v6906_v2 = vadd.f32 %v6905_v5, %v6843_v50  ;;  %v6847_v50 = vmul.f32 %v13419_v23, %v13419_v23  ;;  %15170 = vst [vmem:[#allocation39_spill] sm:$0xff] %v13443_v51  ;;  %v13449_v23 = vsub.f32 %v15171_v63, %v13167_v47  ;;  %v15176_v63 = vld [vmem:[#allocation55_spill] sm:$0xff] }
 0x852   :  { %v6907_v56 = vadd.f32 %v6906_v2, %v6844_v16  ;;  %v6848_v16 = vmul.f32 %v13425_v19, %v13425_v19  ;;  %15172 = vst [vmem:[#allocation19_spill] sm:$0xff] %v13449_v23  ;;  %v13455_v19 = vsub.f32 %v15173_v20, %v13167_v47  ;;  %v15178_v20 = vld [vmem:[#allocation53_spill] sm:$0xff] }
 0x854   :  { %v6908_v3 = vadd.f32 %v6907_v56, %v6845_v39  ;;  %v6849_v39 = vmul.f32 %v13431_v43, %v13431_v43  ;;  %15174 = vst [vmem:[#allocation62_spill] sm:$0xff] %v13455_v19  ;;  %v13461_v43 = vsub.f32 %v15175_v24, %v13167_v47  ;;  %v15180_v24 = vld [vmem:[#allocation56_spill] sm:$0xff] }
 0x856   :  { %v6909_v5 = vadd.f32 %v6908_v3, %v6846_v33  ;;  %v6850_v33 = vmul.f32 %v13437_v48, %v13437_v48  ;;  %v13467_v48 = vsub.f32 %v15176_v63, %v13167_v47  ;;  %v15181_v63 = vld [vmem:[#allocation16_spill] sm:$0xff] }
 0x858   :  { %v6910_v2 = vadd.f32 %v6909_v5, %v6847_v50  ;;  %v6851_v50 = vmul.f32 %v13443_v51, %v13443_v51  ;;  %15177 = vst [vmem:[#allocation33_spill] sm:$0xff] %v13467_v48  ;;  %v13473_v51 = vsub.f32 %v15178_v20, %v13167_v47 }
 0x85a   :  { %v6911_v56 = vadd.f32 %v6910_v2, %v6848_v16  ;;  %v6852_v16 = vmul.f32 %v13449_v23, %v13449_v23  ;;  %15179 = vst [vmem:[#allocation26_spill] sm:$0xff] %v13473_v51  ;;  %v13479_v23 = vsub.f32 %v15180_v24, %v13167_v47 }
 0x85c   :  { %v6912_v3 = vadd.f32 %v6911_v56, %v6849_v39  ;;  %v6853_v39 = vmul.f32 %v13455_v19, %v13455_v19  ;;  %v13485_v19 = vsub.f32 %v15181_v63, %v13167_v47  ;;  %v6857_v20 = vmul.f32 %v13479_v23, %v13479_v23 }
 0x85e   :  { %v6913_v5 = vadd.f32 %v6912_v3, %v6850_v33  ;;  %v6854_v33 = vmul.f32 %v13461_v43, %v13461_v43 }
 0x860   :  { %v6914_v2 = vadd.f32 %v6913_v5, %v6851_v50  ;;  %v6855_v50 = vmul.f32 %v13467_v48, %v13467_v48  ;;  %v6858_v48 = vmul.f32 %v13485_v19, %v13485_v19 }
 0x862   :  { %v6915_v56 = vadd.f32 %v6914_v2, %v6852_v16  ;;  %v6856_v16 = vmul.f32 %v13473_v51, %v13473_v51 }
 0x864   :  { %v6916_v3 = vadd.f32 %v6915_v56, %v6853_v39  ;;  %v15182_v56 = vld [vmem:[#allocation18_spill] sm:$0xff] }
 0x865   :  { %v13493_v24 = vsub.f32 %v15182_v56, %v13167_v47  ;;  %v6862_v47 = vmul.f32 %v13176_v60, %v13176_v60  ;;  %v6863_v56 = vmul.f32 %v13179_v37, %v13179_v37 }
 0x866   :  { %v6917_v5 = vadd.f32 %v6916_v3, %v6854_v33  ;;  %v6859_v3 = vmul.f32 %v13170_v36, %v13170_v36 }
 0x867   :  { %v6860_v51 = vmul.f32 %v13493_v24, %v13493_v24 }
 0x868   :  { %v6918_v2 = vadd.f32 %v6917_v5, %v6855_v50  ;;  %v6861_v5 = vmul.f32 %v13173_v46, %v13173_v46 }
 0x86a   :  { %v6919_v39 = vadd.f32 %v6918_v2, %v6856_v16 }
 0x86c   :  { %v6920_v33 = vadd.f32 %v6919_v39, %v6857_v20  ;;  %v6864_v39 = vmul.f32 %v13182_v10, %v13182_v10 }
 0x86e   :  { %v6921_v63 = vadd.f32 %v6920_v33, %v6858_v48  ;;  %v6865_v33 = vmul.f32 %v13185_v12, %v13185_v12 }
 0x870   :  { %v6922_v50 = vadd.f32 %v6921_v63, %v6859_v3  ;;  %v6866_v63 = vmul.f32 %v13188_v49, %v13188_v49 }
 0x872   :  { %v6923_v16 = vadd.f32 %v6922_v50, %v6860_v51  ;;  %v6867_v50 = vmul.f32 %v13191_v30, %v13191_v30 }
 0x874   :  { %v6924_v2 = vadd.f32 %v6923_v16, %v6861_v5  ;;  %v6868_v16 = vmul.f32 %v13194_v45, %v13194_v45 }
 0x876   :  { %v6925_v20 = vadd.f32 %v6924_v2, %v6862_v47  ;;  %v6869_v2 = vmul.f32 %v13197_v26, %v13197_v26 }
 0x878   :  { %v6926_v48 = vadd.f32 %v6925_v20, %v6863_v56  ;;  %v6870_v20 = vmul.f32 %v13200_v53, %v13200_v53 }
 0x87a   :  { %v6927_v3 = vadd.f32 %v6926_v48, %v6864_v39  ;;  %v6871_v48 = vmul.f32 %v13203_v61, %v13203_v61 }
 0x87c   :  { %v6928_v51 = vadd.f32 %v6927_v3, %v6865_v33  ;;  %v6872_v3 = vmul.f32 %v13206_v31, %v13206_v31 }
 0x87e   :  { %v6929_v5 = vadd.f32 %v6928_v51, %v6866_v63  ;;  %v6873_v51 = vmul.f32 %v13209_v28, %v13209_v28 }
 0x880   :  { %v6930_v47 = vadd.f32 %v6929_v5, %v6867_v50  ;;  %v6874_v5 = vmul.f32 %v13212_v13, %v13212_v13 }
 0x882   :  { %v6931_v56 = vadd.f32 %v6930_v47, %v6868_v16  ;;  %v6875_v47 = vmul.f32 %v13215_v17, %v13215_v17 }
 0x884   :  { %v6932_v39 = vadd.f32 %v6931_v56, %v6869_v2  ;;  %v6876_v56 = vmul.f32 %v13218_v25, %v13218_v25 }
 0x886   :  { %v6933_v33 = vadd.f32 %v6932_v39, %v6870_v20  ;;  %v6877_v39 = vmul.f32 %v13221_v59, %v13221_v59 }
 0x888   :  { %v6934_v63 = vadd.f32 %v6933_v33, %v6871_v48 }
 0x88a   :  { %v6935_v50 = vadd.f32 %v6934_v63, %v6872_v3 }
 0x88c   :  { %v6936_v16 = vadd.f32 %v6935_v50, %v6873_v51 }
 0x88e   :  { %v6937_v2 = vadd.f32 %v6936_v16, %v6874_v5  ;;  %v13540_v5 = vld [vmem:[%s14387_s8] ss:$0 sm:$0xff]  ;;  %s9018_s8 = smov [#allocation11]  }
 0x890   :  { %v6938_v20 = vadd.f32 %v6937_v2, %v6875_v47 }
 0x892   :  { %v6939_v48 = vadd.f32 %v6938_v20, %v6876_v56  ;;  %v8836_v20 = vld [vmem:[#allocation3 + $0x1e8] sm:$0xff] }
 0x894   :  { %v6940_v33 = vadd.f32 %v6939_v48, %v6877_v39  ;;  %v15184_v48 = vld [vmem:[#allocation36_spill] sm:$0xff] }
 0x896   :  { %v6941_v31 = vrot.slane %v6940_v33, 4 }
 0x898   :  { %v6942_v28 = vadd.f32 %v6941_v31, %v6940_v33  ;;  %v15185_v33 = vld [vmem:[#allocation59_spill] sm:$0xff] }
 0x89a   :  { %v6943_v3 = vrot.slane %v6942_v28, 2 }
 0x89c   :  { %v6944_v63 = vadd.f32 %v6943_v3, %v6942_v28  ;;  %v15186_v3 = vld [vmem:[#allocation41_spill] sm:$0xff] }
 0x89e   :  { %v6945_v61 = vrot.slane %v6944_v63, 1 }
 0x8a0   :  { %v6946_v13 = vadd.f32 %v6945_v61, %v6944_v63  ;;  %v15187_v63 = vld [vmem:[#allocation42_spill] sm:$0xff] }
 0x8a2   :  { %v6947_v51 = vmul.f32 0.001953125, %v6946_v13  ;;  %v13559_v13 = vld [vmem:[%s14388_s9] ss:$0 sm:$0xff]  ;;  %s14358_s9 = sshll.u32 %s9018_s8, 4  ;;  %s7288_s9 = int_to_ptr.vmem [resolvable:$true] %s14358_s9 }
 0x8a3   :  { %15183 = vst [vmem:[#allocation30_spill] sm:$0xff] %v13559_v13  ;;  %s8980_s21 = scalar_lea.vmem %s7288_s9, 8192  ;;  %p8985_p7 = scmp.lt.s32.totalorder %s7288_s9, %s7288_s9 }
 0x8a4   :  { %v6948_v50 = vadd.f32 1e-05, %v6947_v51  ;;  %v15188_v51 = vld [vmem:[#allocation38_spill] sm:$0xff]  ;;  %p8981_p6 = scmp.ne.s32.totalorder %s7288_s9, %s8980_s21  ;;  %p8986_p8 = scmp.lt.s32.totalorder %s8980_s21, %s8980_s21 }
 0x8a6   :  { %8833 = vrsqrt.f32 %v6948_v50  ;;  %v15189_v50 = vld [vmem:[#allocation61_spill] sm:$0xff]  ;;  %p8987_p9 = por %p8986_p8, %p8985_p7 }
 0x8a8   :  { %p8988_p10 = pnand %p8987_p9, %p8981_p6 }
 0x8b3   :  { %v13535_v53 = vpop.eup %8833 }
 0x8b4   :  { %v7011_v16 = vmul.f32 %v13535_v53, %v13215_v17  ;;  %v13546_v31 = vmul.f32 %v13535_v53, %v13225_v11  ;;  %v13550_v61 = vmul.f32 %v13535_v53, %v13229_v8  ;;  %v13554_v28 = vmul.f32 %v13535_v53, %v13233_v0 }
 0x8b5   :  { %v13563_v17 = vmul.f32 %v13535_v53, %v13241_v41  ;;  %v13567_v11 = vmul.f32 %v13535_v53, %v13245_v42  ;;  %v13571_v8 = vmul.f32 %v13535_v53, %v13251_v34  ;;  %v13575_v0 = vmul.f32 %v13535_v53, %v13257_v7 }
 0x8b6   :  { %v7081_v47 = vmul.f32 %v13540_v5, %v7011_v16  ;;  %v13580_v2 = vmul.f32 %v13535_v53, %v13263_v40  ;;  %v13584_v41 = vmul.f32 %v13535_v53, %v13269_v15  ;;  %v13588_v42 = vmul.f32 %v13535_v53, %v13275_v38 }
 0x8b7   :  { %v13592_v34 = vmul.f32 %v13535_v53, %v13281_v9  ;;  %v13596_v7 = vmul.f32 %v13535_v53, %v13287_v58  ;;  %v13600_v40 = vmul.f32 %v13535_v53, %v13293_v18  ;;  %v13604_v15 = vmul.f32 %v13535_v53, %v13299_v22 }
 0x8b8   :  { %v7151_v56 = vadd.f32 %v13559_v13, %v7081_v47  ;;  %v13609_v38 = vmul.f32 %v13535_v53, %v13305_v35  ;;  %v13613_v9 = vmul.f32 %v13535_v53, %v13311_v62  ;;  %v13617_v58 = vmul.f32 %v13535_v53, %v13317_v54  ;;  %v15190_v47 = vld [vmem:[#allocation37_spill] sm:$0xff] }
 0x8b9   :  { %v13621_v18 = vmul.f32 %v13535_v53, %v13323_v57  ;;  %v13625_v22 = vmul.f32 %v13535_v53, %v13329_v55  ;;  %v13629_v35 = vmul.f32 %v13535_v53, %v13335_v21  ;;  %v13633_v62 = vmul.f32 %v13535_v53, %v13341_v52  ;;  %v15196_v13 = vld [vmem:[#allocation33_spill] sm:$0xff] }
 0x8ba   :  { %v7215_v39 = vadd.f32 %v8836_v20, %v7151_v56  ;;  %v13637_v54 = vmul.f32 %v13535_v53, %v13347_v1  ;;  %v13641_v57 = vmul.f32 %v13535_v53, %v13353_v6  ;;  %v13645_v55 = vmul.f32 %v13535_v53, %v13359_v27  ;;  %v15191_v20 = vld [vmem:[#allocation60_spill] sm:$0xff] }
 0x8bb   :  { %v13649_v21 = vmul.f32 %v13535_v53, %v13365_v29  ;;  %v13653_v52 = vmul.f32 %v13535_v53, %v13371_v44  ;;  %v13657_v1 = vmul.f32 %v13535_v53, %v13377_v32  ;;  %v13661_v6 = vmul.f32 %v13535_v53, %v13383_v14 }
 0x8bc   :  { %7279 = vst [vmem:[#allocation11 + $0x1e8] sm:$0xff] %v7215_v39  ;;  %v13665_v27 = vmul.f32 %v13535_v53, %v13389_v4  ;;  %v13669_v29 = vmul.f32 %v13535_v53, %v15184_v48  ;;  %v13673_v44 = vmul.f32 %v13535_v53, %v15185_v33  ;;  %v13677_v32 = vmul.f32 %v13535_v53, %v15186_v3  ;;  %v15193_v48 = vld [vmem:[#allocation39_spill] sm:$0xff] }
 0x8bd   :  { %v13681_v14 = vmul.f32 %v13535_v53, %v15187_v63  ;;  %v13685_v4 = vmul.f32 %v13535_v53, %v15188_v51  ;;  %v13689_v16 = vmul.f32 %v13535_v53, %v15189_v50  ;;  %v13693_v56 = vmul.f32 %v13535_v53, %v15190_v47  ;;  %v15194_v3 = vld [vmem:[#allocation19_spill] sm:$0xff]  ;;  %v15195_v51 = vld [vmem:[#allocation62_spill] sm:$0xff] }
 0x8be   :  { %v13697_v39 = vmul.f32 %v13535_v53, %v15191_v20  ;;  %v13701_v33 = vmul.f32 %v13535_v53, %v15193_v48  ;;  %v13705_v63 = vmul.f32 %v13535_v53, %v15194_v3  ;;  %v13709_v50 = vmul.f32 %v13535_v53, %v15195_v51 }
 0x8bf   :  { %v13713_v47 = vmul.f32 %v13535_v53, %v13461_v43  ;;  %v13717_v20 = vmul.f32 %v13535_v53, %v15196_v13  ;;  %v13725_v3 = vmul.f32 %v13535_v53, %v13479_v23  ;;  %v13729_v51 = vmul.f32 %v13535_v53, %v13485_v19 }
 0x8c0   :  { %15192 = vst [vmem:[#allocation64_spill] sm:$0xff] %v13697_v39  ;;  %v15197_v39 = vld [vmem:[#allocation26_spill] sm:$0xff]  ;;  %v13733_v43 = vmul.f32 %v13535_v53, %v13170_v36  ;;  %v13737_v13 = vmul.f32 %v13535_v53, %v13493_v24  ;;  %v13745_v23 = vmul.f32 %v13535_v53, %v13176_v60  ;;  %v13749_v19 = vmul.f32 %v13535_v53, %v13179_v37 }
 0x8c1   :  { %v13721_v48 = vmul.f32 %v13535_v53, %v15197_v39  ;;  %v13741_v39 = vmul.f32 %v13535_v53, %v13173_v46  ;;  %v13753_v36 = vmul.f32 %v13535_v53, %v13182_v10  ;;  %v13757_v24 = vmul.f32 %v13535_v53, %v13185_v12 }
 0x8c2   :  { %v13761_v46 = vmul.f32 %v13535_v53, %v13188_v49  ;;  %v13765_v60 = vmul.f32 %v13535_v53, %v13191_v30  ;;  %v13769_v37 = vmul.f32 %v13535_v53, %v13194_v45  ;;  %v13773_v10 = vmul.f32 %v13535_v53, %v13197_v26 }
 0x8c3   :  { %15198 = vst [vmem:[#allocation44_spill] sm:$0xff] %v13753_v36  ;;  %15199 = vst [vmem:[#allocation27_spill] sm:$0xff] %v13757_v24  ;;  %v15203_v36 = vld [vmem:[#allocation21_spill] sm:$0xff]  ;;  %v15204_v24 = vld [vmem:[#allocation35_spill] sm:$0xff] }
 0x8c4   :  { %15200 = vst [vmem:[#allocation45_spill] sm:$0xff] %v13761_v46  ;;  %15201 = vst [vmem:[#allocation34_spill] sm:$0xff] %v13765_v60  ;;  %v13777_v12 = vmul.f32 %v13535_v53, %v15203_v36  ;;  %v13781_v49 = vmul.f32 %v13535_v53, %v15204_v24  ;;  %v15205_v46 = vld [vmem:[#allocation58_spill] sm:$0xff]  ;;  %v15206_v60 = vld [vmem:[#allocation57_spill] sm:$0xff]  ;;  %v13797_v36 = vmul.f32 %v13535_v53, %v13218_v25 }
 0x8c5   :  { %15202 = vst [vmem:[#allocation43_spill] sm:$0xff] %v13769_v37  ;;  %v13785_v30 = vmul.f32 %v13535_v53, %v15205_v46  ;;  %v13789_v45 = vmul.f32 %v13535_v53, %v15206_v60  ;;  %v15207_v37 = vld [vmem:[#allocation40_spill] sm:$0xff]  ;;  %v13801_v24 = vmul.f32 %v13535_v53, %v13221_v59  ;;  %v13805_v46 = vmul.f32 %v13540_v5, %v13546_v31 }
 0x8c6   :  { %v13793_v26 = vmul.f32 %v13535_v53, %v15207_v37  ;;  %v13809_v60 = vmul.f32 %v13540_v5, %v13550_v61  ;;  %v13813_v37 = vmul.f32 %v13540_v5, %v13554_v28  ;;  %v13817_v25 = vmul.f32 %v13540_v5, %v13563_v17 }
 0x8c7   :  { %v13821_v53 = vmul.f32 %v13540_v5, %v13567_v11  ;;  %v13825_v59 = vmul.f32 %v13540_v5, %v13571_v8  ;;  %v13829_v31 = vmul.f32 %v13540_v5, %v13575_v0  ;;  %v13833_v61 = vmul.f32 %v13540_v5, %v13580_v2 }
 0x8c8   :  { %v13837_v28 = vmul.f32 %v13540_v5, %v13584_v41  ;;  %v13841_v17 = vmul.f32 %v13540_v5, %v13588_v42  ;;  %v13845_v11 = vmul.f32 %v13540_v5, %v13592_v34  ;;  %v13849_v8 = vmul.f32 %v13540_v5, %v13596_v7 }
 0x8c9   :  { %v13853_v0 = vmul.f32 %v13540_v5, %v13600_v40  ;;  %v13857_v2 = vmul.f32 %v13540_v5, %v13604_v15  ;;  %v13861_v41 = vmul.f32 %v13540_v5, %v13609_v38  ;;  %v13865_v42 = vmul.f32 %v13540_v5, %v13613_v9 }
 0x8ca   :  { %v13869_v34 = vmul.f32 %v13540_v5, %v13617_v58  ;;  %v13873_v7 = vmul.f32 %v13540_v5, %v13621_v18  ;;  %v13877_v40 = vmul.f32 %v13540_v5, %v13625_v22  ;;  %v13881_v15 = vmul.f32 %v13540_v5, %v13629_v35 }
 0x8cb   :  { %v13885_v38 = vmul.f32 %v13540_v5, %v13633_v62  ;;  %v13889_v9 = vmul.f32 %v13540_v5, %v13637_v54  ;;  %v13893_v58 = vmul.f32 %v13540_v5, %v13641_v57  ;;  %v13897_v18 = vmul.f32 %v13540_v5, %v13645_v55 }
 0x8cc   :  { %v13901_v22 = vmul.f32 %v13540_v5, %v13649_v21  ;;  %v13905_v35 = vmul.f32 %v13540_v5, %v13653_v52  ;;  %v13909_v62 = vmul.f32 %v13540_v5, %v13657_v1  ;;  %v13913_v54 = vmul.f32 %v13540_v5, %v13661_v6 }
 0x8cd   :  { %v13917_v57 = vmul.f32 %v13540_v5, %v13665_v27  ;;  %v13921_v55 = vmul.f32 %v13540_v5, %v13669_v29  ;;  %v13925_v21 = vmul.f32 %v13540_v5, %v13673_v44  ;;  %v13929_v52 = vmul.f32 %v13540_v5, %v13677_v32  ;;  %v15208_v44 = vld [vmem:[#allocation64_spill] sm:$0xff] }
 0x8ce   :  { %v13933_v1 = vmul.f32 %v13540_v5, %v13681_v14  ;;  %v13937_v6 = vmul.f32 %v13540_v5, %v13685_v4  ;;  %v13941_v27 = vmul.f32 %v13540_v5, %v13689_v16  ;;  %v13945_v29 = vmul.f32 %v13540_v5, %v13693_v56 }
 0x8cf   :  { %v13949_v32 = vmul.f32 %v13540_v5, %v15208_v44  ;;  %v13953_v14 = vmul.f32 %v13540_v5, %v13701_v33  ;;  %v13957_v4 = vmul.f32 %v13540_v5, %v13705_v63  ;;  %v13961_v16 = vmul.f32 %v13540_v5, %v13709_v50 }
 0x8d0   :  { %v13965_v56 = vmul.f32 %v13540_v5, %v13713_v47  ;;  %v13969_v44 = vmul.f32 %v13540_v5, %v13717_v20  ;;  %v13973_v33 = vmul.f32 %v13540_v5, %v13721_v48  ;;  %v13977_v63 = vmul.f32 %v13540_v5, %v13725_v3 }
 0x8d1   :  { %v13981_v50 = vmul.f32 %v13540_v5, %v13729_v51  ;;  %v13985_v47 = vmul.f32 %v13540_v5, %v13733_v43  ;;  %v13989_v20 = vmul.f32 %v13540_v5, %v13737_v13  ;;  %v13993_v48 = vmul.f32 %v13540_v5, %v13741_v39 }
 0x8d2   :  { %v13997_v3 = vmul.f32 %v13540_v5, %v13745_v23  ;;  %v14001_v51 = vmul.f32 %v13540_v5, %v13749_v19 }
 0x8d3   :  { %15209 = vst [vmem:[#allocation23_spill] sm:$0xff] %v13981_v50  ;;  %15210 = vst [vmem:[#allocation20_spill] sm:$0xff] %v13985_v47  ;;  %v15214_v50 = vld [vmem:[#allocation44_spill] sm:$0xff]  ;;  %v15215_v47 = vld [vmem:[#allocation27_spill] sm:$0xff] }
 0x8d4   :  { %15211 = vst [vmem:[#allocation25_spill] sm:$0xff] %v13989_v20  ;;  %15212 = vst [vmem:[#allocation22_spill] sm:$0xff] %v13993_v48  ;;  %v14005_v43 = vmul.f32 %v13540_v5, %v15214_v50  ;;  %v14009_v13 = vmul.f32 %v13540_v5, %v15215_v47  ;;  %v15216_v20 = vld [vmem:[#allocation45_spill] sm:$0xff]  ;;  %v15217_v48 = vld [vmem:[#allocation34_spill] sm:$0xff]  ;;  %v14025_v50 = vmul.f32 %v13540_v5, %v13773_v10 }
 0x8d5   :  { %15213 = vst [vmem:[#allocation28_spill] sm:$0xff] %v13997_v3  ;;  %v14013_v39 = vmul.f32 %v13540_v5, %v15216_v20  ;;  %v14017_v23 = vmul.f32 %v13540_v5, %v15217_v48  ;;  %v15218_v3 = vld [vmem:[#allocation43_spill] sm:$0xff]  ;;  %v14029_v47 = vmul.f32 %v13540_v5, %v13777_v12  ;;  %v14033_v20 = vmul.f32 %v13540_v5, %v13781_v49 }
 0x8d6   :  { %v14021_v19 = vmul.f32 %v13540_v5, %v15218_v3  ;;  %v14037_v48 = vmul.f32 %v13540_v5, %v13785_v30  ;;  %v14041_v3 = vmul.f32 %v13540_v5, %v13789_v45  ;;  %v14045_v10 = vmul.f32 %v13540_v5, %v13793_v26 }
 0x8d7   :  { %15219 = vst [vmem:[#allocation46_spill] sm:$0xff] %v14033_v20  ;;  %v14049_v12 = vmul.f32 %v13540_v5, %v13797_v36  ;;  %v14053_v49 = vmul.f32 %v13540_v5, %v13801_v24  ;;  %v15220_v20 = vld [vmem:[#allocation30_spill] sm:$0xff] }
 0x8d8   :  { %v14057_v30 = vadd.f32 %v15220_v20, %v13805_v46  ;;  %v14061_v45 = vadd.f32 %v15220_v20, %v13809_v60  ;;  %v14065_v26 = vadd.f32 %v15220_v20, %v13813_v37  ;;  %v14069_v36 = vadd.f32 %v15220_v20, %v13817_v25 }
 0x8d9   :  { %v14073_v5 = vadd.f32 %v15220_v20, %v13821_v53  ;;  %v14077_v24 = vadd.f32 %v15220_v20, %v13825_v59  ;;  %v14081_v46 = vadd.f32 %v15220_v20, %v13829_v31  ;;  %v14085_v60 = vadd.f32 %v15220_v20, %v13833_v61 }
 0x8da   :  { %v14089_v37 = vadd.f32 %v15220_v20, %v13837_v28  ;;  %v14093_v25 = vadd.f32 %v15220_v20, %v13841_v17  ;;  %v14097_v53 = vadd.f32 %v15220_v20, %v13845_v11  ;;  %v14101_v59 = vadd.f32 %v15220_v20, %v13849_v8 }
 0x8db   :  { %v14105_v31 = vadd.f32 %v15220_v20, %v13853_v0  ;;  %v14109_v61 = vadd.f32 %v15220_v20, %v13857_v2  ;;  %v14113_v28 = vadd.f32 %v15220_v20, %v13861_v41  ;;  %v14117_v17 = vadd.f32 %v15220_v20, %v13865_v42 }
 0x8dc   :  { %v14121_v11 = vadd.f32 %v15220_v20, %v13869_v34  ;;  %v14125_v8 = vadd.f32 %v15220_v20, %v13873_v7  ;;  %v14129_v0 = vadd.f32 %v15220_v20, %v13877_v40  ;;  %v14133_v2 = vadd.f32 %v15220_v20, %v13881_v15 }
 0x8dd   :  { %v14137_v41 = vadd.f32 %v15220_v20, %v13885_v38  ;;  %v14141_v42 = vadd.f32 %v15220_v20, %v13889_v9  ;;  %v14145_v34 = vadd.f32 %v15220_v20, %v13893_v58  ;;  %v14149_v7 = vadd.f32 %v15220_v20, %v13897_v18 }
 0x8de   :  { %v14153_v40 = vadd.f32 %v15220_v20, %v13901_v22  ;;  %v14157_v15 = vadd.f32 %v15220_v20, %v13905_v35  ;;  %v14161_v38 = vadd.f32 %v15220_v20, %v13909_v62  ;;  %v14165_v9 = vadd.f32 %v15220_v20, %v13913_v54 }
 0x8df   :  { %v14169_v58 = vadd.f32 %v15220_v20, %v13917_v57  ;;  %v14173_v18 = vadd.f32 %v15220_v20, %v13921_v55  ;;  %v14177_v22 = vadd.f32 %v15220_v20, %v13925_v21  ;;  %v14181_v35 = vadd.f32 %v15220_v20, %v13929_v52 }
 0x8e0   :  { %v14185_v62 = vadd.f32 %v15220_v20, %v13933_v1  ;;  %v14189_v54 = vadd.f32 %v15220_v20, %v13937_v6  ;;  %v14193_v57 = vadd.f32 %v15220_v20, %v13941_v27  ;;  %v14197_v55 = vadd.f32 %v15220_v20, %v13945_v29 }
 0x8e1   :  { %v14201_v21 = vadd.f32 %v15220_v20, %v13949_v32  ;;  %v14205_v52 = vadd.f32 %v15220_v20, %v13953_v14  ;;  %v14209_v1 = vadd.f32 %v15220_v20, %v13957_v4  ;;  %v14213_v6 = vadd.f32 %v15220_v20, %v13961_v16  ;;  %v15225_v4 = vld [vmem:[#allocation23_spill] sm:$0xff] }
 0x8e2   :  { %v14217_v27 = vadd.f32 %v15220_v20, %v13965_v56  ;;  %v14221_v29 = vadd.f32 %v15220_v20, %v13969_v44  ;;  %v14225_v32 = vadd.f32 %v15220_v20, %v13973_v33  ;;  %v14229_v14 = vadd.f32 %v15220_v20, %v13977_v63 }
 0x8e3   :  { %15221 = vst [vmem:[#allocation24_spill] sm:$0xff] %v14213_v6  ;;  %v14233_v16 = vadd.f32 %v15220_v20, %v15225_v4  ;;  %v15226_v6 = vld [vmem:[#allocation20_spill] sm:$0xff]  ;;  %v14253_v4 = vadd.f32 %v15220_v20, %v14001_v51  ;;  %v14273_v51 = vadd.f32 %v15220_v20, %v14021_v19  ;;  %v14293_v19 = vadd.f32 %v15220_v20, %v14041_v3  ;;  %v8839_v3 = vld [vmem:[#allocation3 + $0x10] sm:$0xff] }
 0x8e4   :  { %15222 = vst [vmem:[#allocation47_spill] sm:$0xff] %v14217_v27  ;;  %15223 = vst [vmem:[#allocation29_spill] sm:$0xff] %v14221_v29  ;;  %v14237_v56 = vadd.f32 %v15220_v20, %v15226_v6  ;;  %v15227_v27 = vld [vmem:[#allocation25_spill] sm:$0xff]  ;;  %v15228_v29 = vld [vmem:[#allocation22_spill] sm:$0xff]  ;;  %v14257_v6 = vadd.f32 %v15220_v20, %v14005_v43  ;;  %v14277_v43 = vadd.f32 %v15220_v20, %v14025_v50 }
 0x8e5   :  { %15224 = vst [vmem:[#allocation63_spill] sm:$0xff] %v14225_v32  ;;  %v14241_v44 = vadd.f32 %v15220_v20, %v15227_v27  ;;  %v14245_v33 = vadd.f32 %v15220_v20, %v15228_v29  ;;  %v15229_v32 = vld [vmem:[#allocation28_spill] sm:$0xff]  ;;  %v14261_v27 = vadd.f32 %v15220_v20, %v14009_v13  ;;  %v14265_v29 = vadd.f32 %v15220_v20, %v14013_v39 }
 0x8e6   :  { %v14249_v63 = vadd.f32 %v15220_v20, %v15229_v32  ;;  %v14269_v32 = vadd.f32 %v15220_v20, %v14017_v23  ;;  %15231 = vst [vmem:[#allocation32_spill] sm:$0xff] %v14273_v51  ;;  %15232 = vst [vmem:[#allocation31_spill] sm:$0xff] %v14277_v43  ;;  %v14281_v13 = vadd.f32 %v15220_v20, %v14029_v47  ;;  %v8840_v43 = vld [vmem:[#allocation3 + $0x18] sm:$0xff] }
 0x8e7   :  { %15230 = vst [vmem:[#allocation17_spill] sm:$0xff] %v14261_v27  ;;  %v15234_v27 = vld [vmem:[#allocation46_spill] sm:$0xff]  ;;  %v14289_v23 = vadd.f32 %v15220_v20, %v14037_v48  ;;  %15237 = vst [vmem:[#allocation49_spill] sm:$0xff] %v14293_v19  ;;  %v14297_v50 = vadd.f32 %v15220_v20, %v14045_v10  ;;  %v14301_v47 = vadd.f32 %v15220_v20, %v14049_v12 }
 0x8e8   :  { %15233 = vst [vmem:[#allocation48_spill] sm:$0xff] %v14281_v13  ;;  %v14285_v39 = vadd.f32 %v15220_v20, %v15234_v27  ;;  %v14305_v27 = vadd.f32 %v15220_v20, %v14053_v49  ;;  %v7156_v19 = vadd.f32 %v8839_v3, %v14065_v26  ;;  %v7157_v10 = vadd.f32 %v8840_v43, %v14069_v36  ;;  %v8843_v20 = vld [vmem:[#allocation3 + $0x30] sm:$0xff]  ;;  %v8849_v43 = vld [vmem:[#allocation3 + $0x60] sm:$0xff] }
 0x8e9   :  { %15236 = vst [vmem:[#allocation52_spill] sm:$0xff] %v14289_v23  ;;  %15238 = vst [vmem:[#allocation51_spill] sm:$0xff] %v14297_v50  ;;  %v8838_v23 = vld [vmem:[#allocation3 + $0x8] sm:$0xff]  ;;  %v8841_v50 = vld [vmem:[#allocation3 + $0x20] sm:$0xff]  ;;  %v7160_v49 = vadd.f32 %v8843_v20, %v14081_v46  ;;  %v7166_v46 = vadd.f32 %v8849_v43, %v14105_v31 }
 0x8ea   :  { %15235 = vst [vmem:[#allocation50_spill] sm:$0xff] %v14285_v39  ;;  %15239 = vst [vmem:[#allocation54_spill] sm:$0xff] %v14301_v47  ;;  %v8837_v39 = vld [vmem:[#allocation3] sm:$0xff]  ;;  %v7155_v13 = vadd.f32 %v8838_v23, %v14061_v45  ;;  %v7158_v12 = vadd.f32 %v8841_v50, %v14073_v5  ;;  %v8842_v47 = vld [vmem:[#allocation3 + $0x28] sm:$0xff] }
 0x8eb   :  { %15240 = vst [vmem:[#allocation55_spill] sm:$0xff] %v14305_v27  ;;  %v7154_v48 = vadd.f32 %v8837_v39, %v14057_v30  ;;  %v7159_v51 = vadd.f32 %v8842_v47, %v14077_v24  ;;  %v8844_v27 = vld [vmem:[#allocation3 + $0x38] sm:$0xff]  ;;  %v8845_v39 = vld [vmem:[#allocation3 + $0x40] sm:$0xff]  ;;  %v8846_v23 = vld [vmem:[#allocation3 + $0x48] sm:$0xff] }
 0x8ec   :  { %v7161_v30 = vadd.f32 %v8844_v27, %v14085_v60  ;;  %v7162_v45 = vadd.f32 %v8845_v39, %v14089_v37  ;;  %v7163_v26 = vadd.f32 %v8846_v23, %v14093_v25  ;;  %v8847_v3 = vld [vmem:[#allocation3 + $0x50] sm:$0xff]  ;;  %7219 = vst [vmem:[#allocation11 + $0x8] sm:$0xff] %v7155_v13  ;;  %7220 = vst [vmem:[#allocation11 + $0x10] sm:$0xff] %v7156_v19  ;;  %v8848_v5 = vld [vmem:[#allocation3 + $0x58] sm:$0xff] }
 0x8ed   :  { %v7164_v36 = vadd.f32 %v8847_v3, %v14097_v53  ;;  %7218 = vst [vmem:[#allocation11] sm:$0xff] %v7154_v48  ;;  %v7165_v24 = vadd.f32 %v8848_v5, %v14101_v59  ;;  %v8850_v50 = vld [vmem:[#allocation3 + $0x68] sm:$0xff]  ;;  %v8851_v47 = vld [vmem:[#allocation3 + $0x70] sm:$0xff]  ;;  %7221 = vst [vmem:[#allocation11 + $0x18] sm:$0xff] %v7157_v10 }
 0x8ee   :  { %v7167_v60 = vadd.f32 %v8850_v50, %v14109_v61  ;;  %v7168_v37 = vadd.f32 %v8851_v47, %v14113_v28  ;;  %7222 = vst [vmem:[#allocation11 + $0x20] sm:$0xff] %v7158_v12  ;;  %7223 = vst [vmem:[#allocation11 + $0x28] sm:$0xff] %v7159_v51  ;;  %v8852_v25 = vld [vmem:[#allocation3 + $0x78] sm:$0xff]  ;;  %v8853_v13 = vld [vmem:[#allocation3 + $0x80] sm:$0xff] }
 0x8ef   :  { %7224 = vst [vmem:[#allocation11 + $0x30] sm:$0xff] %v7160_v49  ;;  %v7169_v53 = vadd.f32 %v8852_v25, %v14117_v17  ;;  %v7170_v19 = vadd.f32 %v8853_v13, %v14121_v11  ;;  %v8854_v59 = vld [vmem:[#allocation3 + $0x88] sm:$0xff]  ;;  %v8855_v31 = vld [vmem:[#allocation3 + $0x90] sm:$0xff]  ;;  %7225 = vst [vmem:[#allocation11 + $0x38] sm:$0xff] %v7161_v30 }
 0x8f0   :  { %v7171_v27 = vadd.f32 %v8854_v59, %v14125_v8  ;;  %v7172_v48 = vadd.f32 %v8855_v31, %v14129_v0  ;;  %7226 = vst [vmem:[#allocation11 + $0x40] sm:$0xff] %v7162_v45  ;;  %7227 = vst [vmem:[#allocation11 + $0x48] sm:$0xff] %v7163_v26  ;;  %v8856_v61 = vld [vmem:[#allocation3 + $0x98] sm:$0xff]  ;;  %v8857_v51 = vld [vmem:[#allocation3 + $0xa0] sm:$0xff] }
 0x8f1   :  { %7228 = vst [vmem:[#allocation11 + $0x50] sm:$0xff] %v7164_v36  ;;  %v7173_v28 = vadd.f32 %v8856_v61, %v14133_v2  ;;  %v7174_v10 = vadd.f32 %v8857_v51, %v14137_v41  ;;  %v8858_v17 = vld [vmem:[#allocation3 + $0xa8] sm:$0xff]  ;;  %v8859_v11 = vld [vmem:[#allocation3 + $0xb0] sm:$0xff]  ;;  %7229 = vst [vmem:[#allocation11 + $0x58] sm:$0xff] %v7165_v24 }
 0x8f2   :  { %v7175_v12 = vadd.f32 %v8858_v17, %v14141_v42  ;;  %v7176_v20 = vadd.f32 %v8859_v11, %v14145_v34  ;;  %7230 = vst [vmem:[#allocation11 + $0x60] sm:$0xff] %v7166_v46  ;;  %7231 = vst [vmem:[#allocation11 + $0x68] sm:$0xff] %v7167_v60  ;;  %v8860_v8 = vld [vmem:[#allocation3 + $0xb8] sm:$0xff]  ;;  %v8861_v49 = vld [vmem:[#allocation3 + $0xc0] sm:$0xff] }
 0x8f3   :  { %7232 = vst [vmem:[#allocation11 + $0x70] sm:$0xff] %v7168_v37  ;;  %v7177_v0 = vadd.f32 %v8860_v8, %v14149_v7  ;;  %v7178_v30 = vadd.f32 %v8861_v49, %v14153_v40  ;;  %v8862_v2 = vld [vmem:[#allocation3 + $0xc8] sm:$0xff]  ;;  %v8863_v41 = vld [vmem:[#allocation3 + $0xd0] sm:$0xff]  ;;  %7233 = vst [vmem:[#allocation11 + $0x78] sm:$0xff] %v7169_v53 }
 0x8f4   :  { %v7179_v39 = vadd.f32 %v8862_v2, %v14157_v15  ;;  %v7180_v45 = vadd.f32 %v8863_v41, %v14161_v38  ;;  %7234 = vst [vmem:[#allocation11 + $0x80] sm:$0xff] %v7170_v19  ;;  %7235 = vst [vmem:[#allocation11 + $0x88] sm:$0xff] %v7171_v27  ;;  %v8864_v42 = vld [vmem:[#allocation3 + $0xd8] sm:$0xff]  ;;  %v8865_v23 = vld [vmem:[#allocation3 + $0xe0] sm:$0xff] }
 0x8f5   :  { %7236 = vst [vmem:[#allocation11 + $0x90] sm:$0xff] %v7172_v48  ;;  %v7181_v34 = vadd.f32 %v8864_v42, %v14165_v9  ;;  %v7182_v26 = vadd.f32 %v8865_v23, %v14169_v58  ;;  %v8866_v7 = vld [vmem:[#allocation3 + $0xe8] sm:$0xff]  ;;  %v8867_v40 = vld [vmem:[#allocation3 + $0xf0] sm:$0xff]  ;;  %7237 = vst [vmem:[#allocation11 + $0x98] sm:$0xff] %v7173_v28 }
 0x8f6   :  { %v7183_v3 = vadd.f32 %v8866_v7, %v14173_v18  ;;  %v7184_v36 = vadd.f32 %v8867_v40, %v14177_v22  ;;  %7238 = vst [vmem:[#allocation11 + $0xa0] sm:$0xff] %v7174_v10  ;;  %7239 = vst [vmem:[#allocation11 + $0xa8] sm:$0xff] %v7175_v12  ;;  %v8868_v15 = vld [vmem:[#allocation3 + $0xf8] sm:$0xff]  ;;  %v8869_v5 = vld [vmem:[#allocation3 + $0x100] sm:$0xff] }
 0x8f7   :  { %7240 = vst [vmem:[#allocation11 + $0xb0] sm:$0xff] %v7176_v20  ;;  %v7185_v38 = vadd.f32 %v8868_v15, %v14181_v35  ;;  %v7186_v24 = vadd.f32 %v8869_v5, %v14185_v62  ;;  %v8870_v9 = vld [vmem:[#allocation3 + $0x108] sm:$0xff]  ;;  %v8871_v58 = vld [vmem:[#allocation3 + $0x110] sm:$0xff]  ;;  %7241 = vst [vmem:[#allocation11 + $0xb8] sm:$0xff] %v7177_v0 }
 0x8f8   :  { %v7187_v43 = vadd.f32 %v8870_v9, %v14189_v54  ;;  %v7188_v46 = vadd.f32 %v8871_v58, %v14193_v57  ;;  %7242 = vst [vmem:[#allocation11 + $0xc0] sm:$0xff] %v7178_v30  ;;  %7243 = vst [vmem:[#allocation11 + $0xc8] sm:$0xff] %v7179_v39  ;;  %v8872_v18 = vld [vmem:[#allocation3 + $0x118] sm:$0xff]  ;;  %v8873_v50 = vld [vmem:[#allocation3 + $0x120] sm:$0xff] }
 0x8f9   :  { %7244 = vst [vmem:[#allocation11 + $0xd0] sm:$0xff] %v7180_v45  ;;  %v7189_v22 = vadd.f32 %v8872_v18, %v14197_v55  ;;  %v7190_v60 = vadd.f32 %v8873_v50, %v14201_v21  ;;  %v8874_v35 = vld [vmem:[#allocation3 + $0x128] sm:$0xff]  ;;  %v8875_v62 = vld [vmem:[#allocation3 + $0x130] sm:$0xff]  ;;  %7245 = vst [vmem:[#allocation11 + $0xd8] sm:$0xff] %v7181_v34 }
 0x8fa   :  { %v7191_v47 = vadd.f32 %v8874_v35, %v14205_v52  ;;  %v7192_v37 = vadd.f32 %v8875_v62, %v14209_v1  ;;  %7246 = vst [vmem:[#allocation11 + $0xe0] sm:$0xff] %v7182_v26  ;;  %7247 = vst [vmem:[#allocation11 + $0xe8] sm:$0xff] %v7183_v3  ;;  %v8876_v54 = vld [vmem:[#allocation3 + $0x138] sm:$0xff]  ;;  %v15241_v57 = vld [vmem:[#allocation24_spill] sm:$0xff] }
 0x8fb   :  { %7248 = vst [vmem:[#allocation11 + $0xf0] sm:$0xff] %v7184_v36  ;;  %v7193_v25 = vadd.f32 %v8876_v54, %v15241_v57  ;;  %v8877_v53 = vld [vmem:[#allocation3 + $0x140] sm:$0xff]  ;;  %v15242_v13 = vld [vmem:[#allocation47_spill] sm:$0xff]  ;;  %v8878_v55 = vld [vmem:[#allocation3 + $0x148] sm:$0xff] }
 0x8fc   :  { %v7194_v19 = vadd.f32 %v8877_v53, %v15242_v13  ;;  %v15243_v59 = vld [vmem:[#allocation29_spill] sm:$0xff]  ;;  %v8879_v21 = vld [vmem:[#allocation3 + $0x150] sm:$0xff]  ;;  %v15244_v31 = vld [vmem:[#allocation63_spill] sm:$0xff]  ;;  %7249 = vst [vmem:[#allocation11 + $0xf8] sm:$0xff] %v7185_v38 }
 0x8fd   :  { %v7195_v27 = vadd.f32 %v8878_v55, %v15243_v59  ;;  %v7196_v48 = vadd.f32 %v8879_v21, %v15244_v31  ;;  %7250 = vst [vmem:[#allocation11 + $0x100] sm:$0xff] %v7186_v24  ;;  %7251 = vst [vmem:[#allocation11 + $0x108] sm:$0xff] %v7187_v43  ;;  %v8880_v52 = vld [vmem:[#allocation3 + $0x158] sm:$0xff]  ;;  %v8881_v61 = vld [vmem:[#allocation3 + $0x160] sm:$0xff] }
 0x8fe   :  { %7252 = vst [vmem:[#allocation11 + $0x110] sm:$0xff] %v7188_v46  ;;  %v7197_v1 = vadd.f32 %v8880_v52, %v14229_v14  ;;  %v7198_v28 = vadd.f32 %v8881_v61, %v14233_v16  ;;  %v8882_v51 = vld [vmem:[#allocation3 + $0x168] sm:$0xff]  ;;  %v8883_v17 = vld [vmem:[#allocation3 + $0x170] sm:$0xff]  ;;  %7253 = vst [vmem:[#allocation11 + $0x118] sm:$0xff] %v7189_v22 }
 0x8ff   :  { %v7199_v10 = vadd.f32 %v8882_v51, %v14237_v56  ;;  %v7200_v12 = vadd.f32 %v8883_v17, %v14241_v44  ;;  %7254 = vst [vmem:[#allocation11 + $0x120] sm:$0xff] %v7190_v60  ;;  %7255 = vst [vmem:[#allocation11 + $0x128] sm:$0xff] %v7191_v47  ;;  %v8884_v11 = vld [vmem:[#allocation3 + $0x178] sm:$0xff]  ;;  %v8885_v8 = vld [vmem:[#allocation3 + $0x180] sm:$0xff] }
 0x900   :  { %7256 = vst [vmem:[#allocation11 + $0x130] sm:$0xff] %v7192_v37  ;;  %v7201_v20 = vadd.f32 %v8884_v11, %v14245_v33  ;;  %v7202_v0 = vadd.f32 %v8885_v8, %v14249_v63  ;;  %v8886_v14 = vld [vmem:[#allocation3 + $0x188] sm:$0xff]  ;;  %v8887_v16 = vld [vmem:[#allocation3 + $0x190] sm:$0xff]  ;;  %7257 = vst [vmem:[#allocation11 + $0x138] sm:$0xff] %v7193_v25 }
 0x901   :  { %v7203_v49 = vadd.f32 %v8886_v14, %v14253_v4  ;;  %v7204_v30 = vadd.f32 %v8887_v16, %v14257_v6  ;;  %7258 = vst [vmem:[#allocation11 + $0x140] sm:$0xff] %v7194_v19  ;;  %7259 = vst [vmem:[#allocation11 + $0x148] sm:$0xff] %v7195_v27  ;;  %v8888_v56 = vld [vmem:[#allocation3 + $0x198] sm:$0xff]  ;;  %v15245_v44 = vld [vmem:[#allocation17_spill] sm:$0xff] }
 0x902   :  { %7260 = vst [vmem:[#allocation11 + $0x150] sm:$0xff] %v7196_v48  ;;  %v7205_v2 = vadd.f32 %v8888_v56, %v15245_v44  ;;  %v8889_v33 = vld [vmem:[#allocation3 + $0x1a0] sm:$0xff]  ;;  %v8890_v63 = vld [vmem:[#allocation3 + $0x1a8] sm:$0xff]  ;;  %v8891_v4 = vld [vmem:[#allocation3 + $0x1b0] sm:$0xff] }
 0x903   :  { %v7206_v39 = vadd.f32 %v8889_v33, %v14265_v29  ;;  %v7207_v41 = vadd.f32 %v8890_v63, %v14269_v32  ;;  %v15246_v45 = vld [vmem:[#allocation32_spill] sm:$0xff]  ;;  %7261 = vst [vmem:[#allocation11 + $0x158] sm:$0xff] %v7197_v1  ;;  %7262 = vst [vmem:[#allocation11 + $0x160] sm:$0xff] %v7198_v28  ;;  %v8892_v6 = vld [vmem:[#allocation3 + $0x1b8] sm:$0xff] }
 0x904   :  { %v7208_v42 = vadd.f32 %v8891_v4, %v15246_v45  ;;  %7263 = vst [vmem:[#allocation11 + $0x168] sm:$0xff] %v7199_v10  ;;  %7264 = vst [vmem:[#allocation11 + $0x170] sm:$0xff] %v7200_v12  ;;  %v15247_v34 = vld [vmem:[#allocation31_spill] sm:$0xff]  ;;  %v8893_v26 = vld [vmem:[#allocation3 + $0x1c0] sm:$0xff] }
 0x905   :  { %v7209_v23 = vadd.f32 %v8892_v6, %v15247_v34  ;;  %v15248_v7 = vld [vmem:[#allocation48_spill] sm:$0xff]  ;;  %v8894_v40 = vld [vmem:[#allocation3 + $0x1c8] sm:$0xff]  ;;  %v15249_v36 = vld [vmem:[#allocation50_spill] sm:$0xff]  ;;  %7265 = vst [vmem:[#allocation11 + $0x178] sm:$0xff] %v7201_v20 }
 0x906   :  { %v7210_v3 = vadd.f32 %v8893_v26, %v15248_v7  ;;  %v7211_v15 = vadd.f32 %v8894_v40, %v15249_v36  ;;  %v8895_v29 = vld [vmem:[#allocation3 + $0x1d0] sm:$0xff]  ;;  %v15250_v38 = vld [vmem:[#allocation52_spill] sm:$0xff]  ;;  %7266 = vst [vmem:[#allocation11 + $0x180] sm:$0xff] %v7202_v0  ;;  %7267 = vst [vmem:[#allocation11 + $0x188] sm:$0xff] %v7203_v49 }
 0x907   :  { %v7212_v5 = vadd.f32 %v8895_v29, %v15250_v38  ;;  %7268 = vst [vmem:[#allocation11 + $0x190] sm:$0xff] %v7204_v30  ;;  %v8896_v32 = vld [vmem:[#allocation3 + $0x1d8] sm:$0xff]  ;;  %v15251_v24 = vld [vmem:[#allocation49_spill] sm:$0xff]  ;;  %v8897_v43 = vld [vmem:[#allocation3 + $0x1e0] sm:$0xff] }
 0x908   :  { %v7213_v9 = vadd.f32 %v8896_v32, %v15251_v24  ;;  %v15252_v58 = vld [vmem:[#allocation51_spill] sm:$0xff]  ;;  %v8898_v18 = vld [vmem:[#allocation3 + $0x1f0] sm:$0xff]  ;;  %7269 = vst [vmem:[#allocation11 + $0x198] sm:$0xff] %v7205_v2  ;;  %7270 = vst [vmem:[#allocation11 + $0x1a0] sm:$0xff] %v7206_v39 }
 0x909   :  { %v7214_v46 = vadd.f32 %v8897_v43, %v15252_v58  ;;  %v15253_v22 = vld [vmem:[#allocation54_spill] sm:$0xff]  ;;  %v8899_v60 = vld [vmem:[#allocation3 + $0x1f8] sm:$0xff]  ;;  %7271 = vst [vmem:[#allocation11 + $0x1a8] sm:$0xff] %v7207_v41  ;;  %7272 = vst [vmem:[#allocation11 + $0x1b0] sm:$0xff] %v7208_v42 }
 0x90a   :  { %v7216_v50 = vadd.f32 %v8898_v18, %v15253_v22  ;;  %v15254_v35 = vld [vmem:[#allocation55_spill] sm:$0xff]  ;;  %7273 = vst [vmem:[#allocation11 + $0x1b8] sm:$0xff] %v7209_v23  ;;  %7274 = vst [vmem:[#allocation11 + $0x1c0] sm:$0xff] %v7210_v3 }
 0x90b   :  { %v7217_v47 = vadd.f32 %v8899_v60, %v15254_v35  ;;  %7275 = vst [vmem:[#allocation11 + $0x1c8] sm:$0xff] %v7211_v15  ;;  %7276 = vst [vmem:[#allocation11 + $0x1d0] sm:$0xff] %v7212_v5 }
 0x90c   :  { %7277 = vst [vmem:[#allocation11 + $0x1d8] sm:$0xff] %v7213_v9  ;;  %7278 = vst [vmem:[#allocation11 + $0x1e0] sm:$0xff] %v7214_v46 }
 0x90d   :  { %7280 = vst [vmem:[#allocation11 + $0x1f0] sm:$0xff] %v7216_v50  ;;  %7281 = vst [vmem:[#allocation11 + $0x1f8] sm:$0xff] %v7217_v47 }
 0x90e   :  { %8991 = shalt.err (!%p8988_p10)
}
 0x90f   :  { %7293 = dma.vmem_to_hbm [thread:$0]  %s7288_s9, 8192, %s14389_s10, [#allocation5], %s9012_s23, %s9012_s23, %s9013_s24  }
 0x910   :  { %9006 = dma.done.wait [#allocation5], 8192  }
 0x911   :  { %9007 = vsyncadd [#allocation5], 4294959104 }
 0x912   :  { %7297 = vsyncpa [#allocation4], 1 }
 0x913   :  { %7298 = vsyncpa [#allocation7], 1 }
 0x914   :  { %7299 = vsyncpa [#allocation10], 1 }
 0x915   :  { %7300 = vsyncpa [#allocation5], 1 }

</bundles_post_ra>
